<compile_context>
chip_gen: v6e
topology: v6e:2x2x1
jax: 0.10.0
libtpu: 0.0.40
codegen_flags: <defaults>
</compile_context>

<pallas_src>
import functools
import math

import jax
import jax.numpy as jnp
from jax.experimental import pallas as pl
from jax.experimental.pallas import tpu as pltpu

PI = 0.5
SIGMA_1 = math.exp(-0.0)   # torch.FloatTensor([exp(-0)])
SIGMA_2 = math.exp(-6.0)   # torch.FloatTensor([exp(-6)])
LOG_SQRT_2PI = math.log(math.sqrt(2.0 * math.pi))

# Constants of the scale-mixture components, folded at trace time:
#   t1 = log(pi)   + logN(w;0,s1) = _T1_C - _T1_A * w^2
#   t2 = log(1-pi) + logN(w;0,s2) = _T2_C - _T2_A * w^2
_T1_C = math.log(PI) - LOG_SQRT_2PI - math.log(SIGMA_1)
_T2_C = math.log(1.0 - PI) - LOG_SQRT_2PI - math.log(SIGMA_2)
_T1_A = 1.0 / (2.0 * SIGMA_1 * SIGMA_1)
_T2_A = 1.0 / (2.0 * SIGMA_2 * SIGMA_2)

# Exact per-element log-prob contribution of a zero-padded parameter
# (mu = rho = eps = 0  ->  w = 0, sigma = log1p(exp(0)) = log 2).
_LP_PAD = (max(_T1_C, _T2_C)
           + math.log1p(math.exp(min(_T1_C, _T2_C) - max(_T1_C, _T2_C))))
_LVP_PAD = -LOG_SQRT_2PI - math.log(math.log(2.0))


def _mixture_log_prob(w, fast_tail):
    """log(pi*N(w;0,s1) + (1-pi)*N(w;0,s2)) via stable single-exp logsumexp.

    Only the EUP-bound exp/log1p tail optionally runs in bf16 (v6e/v7x); the
    dominant `hi` term and the final sum stay f32, bounding the error.
    """
    w2 = w * w
    t1 = _T1_C - _T1_A * w2
    t2 = _T2_C - _T2_A * w2
    hi = jnp.maximum(t1, t2)
    d = jnp.minimum(t1, t2) - hi          # always <= 0
    if fast_tail:
        tail = jnp.log1p(jnp.exp(d.astype(jnp.bfloat16))).astype(jnp.float32)
    else:
        tail = jnp.log1p(jnp.exp(d))
    return hi + tail


def _sample_weight_bias(wmu_ref, wrho_ref, weps_ref, bmu_ref, brho_ref, beps_ref):
    wmu = wmu_ref[...]
    wrho = wrho_ref[...]
    weps = weps_ref[...].astype(jnp.float32)   # eps stored bf16: upcast in-kernel
    bmu = bmu_ref[...]
    brho = brho_ref[...]
    beps = beps_ref[...].astype(jnp.float32)
    # NOTE: log1p(exp(rho)) mirrors torch.log1p(torch.exp(rho)) exactly,
    # including the overflow for rho >~ 88 (parity with the PyTorch module).
    wsig = jnp.log1p(jnp.exp(wrho))
    bsig = jnp.log1p(jnp.exp(brho))
    w = wmu + wsig * weps
    b = bmu + bsig * beps
    return w, b, wsig, bsig, weps, beps


def _bayes_linear_kernel(x_ref, wmu_ref, wrho_ref, weps_ref,
                         bmu_ref, brho_ref, beps_ref,
                         y_ref, lp_ref, lvp_ref, *, fast_tail):
    w, b, wsig, bsig, weps, beps = _sample_weight_bias(
        wmu_ref, wrho_ref, weps_ref, bmu_ref, brho_ref, beps_ref)

    # F.linear on this out-tile: y = x @ W_tile.T + b_tile   (MXU).
    y = jax.lax.dot_general(x_ref[...], w, (((1,), (1,)), ((), ())),
                            preferred_element_type=jnp.float32)
    y_ref[...] = y + b                   # b broadcasts over batch rows

    # Scale-mixture prior log prob (partial sum over this tile's params).
    lp = (jnp.sum(_mixture_log_prob(w, fast_tail))
          + jnp.sum(_mixture_log_prob(b, fast_tail)))

    # Variational posterior log prob: (W - mu)^2 / (2 sigma^2) == 0.5 * eps^2.
    lvp = (jnp.sum(-LOG_SQRT_2PI - jnp.log(wsig) - 0.5 * (weps * weps))
           + jnp.sum(-LOG_SQRT_2PI - jnp.log(bsig) - 0.5 * (beps * beps)))

    # One unmasked (8, 128) splat per tile (no iota/compare/select masking);
    # the wrapper picks one lane per tile and sums the partials.
    lp_ref[...] = jnp.broadcast_to(lp, (8, 128))
    lvp_ref[...] = jnp.broadcast_to(lvp, (8, 128))


def _bayes_linear_sample_kernel(x_ref, wmu_ref, wrho_ref, weps_ref,
                                bmu_ref, brho_ref, beps_ref, y_ref):
    """calculate_log_probs=False path: sampling + matmul only."""
    w, b, _, _, _, _ = _sample_weight_bias(
        wmu_ref, wrho_ref, weps_ref, bmu_ref, brho_ref, beps_ref)
    y = jax.lax.dot_general(x_ref[...], w, (((1,), (1,)), ((), ())),
                            preferred_element_type=jnp.float32)
    y_ref[...] = y + b


def _tpu_generation_config():
    """Generation-aware scoped-VMEM limit and bf16-EUP availability."""
    try:
        kind = jax.devices()[0].device_kind.lower()
    except Exception:
        kind = ""
    # bf16 VPU/EUP exists on v6e and v7x; keep f32 transcendentals elsewhere.
    fast_tail = ("v6" in kind) or ("v7" in kind) or ("7x" in kind)
    try:
        phys_vmem = pltpu.get_tpu_info().vmem_capacity_bytes
    except Exception:
        phys_vmem = 128 << 20
    # ~half of physical VMEM: 32 MiB on v7x (64 MiB), 64 MiB on v5e/v6e (128 MiB).
    vmem_limit = max(32 << 20, min(phys_vmem // 2, 64 << 20))
    return vmem_limit, fast_tail


def _select_tiling(out_features, in_features, batch, vmem_limit_bytes, eps_itemsize):
    """Pick the out-feature tile.  Returns (tile_out, n_tiles, out_padded).

    n_tiles == 1 means a single (gridless) step with full-array blocks.
    """
    stream_bpp = 4 + 4 + eps_itemsize          # mu(f32) + rho(f32) + eps bytes/param
    total_stream = out_features * in_features * stream_bpp

    def step_vmem(t):
        w_tile = t * in_features
        return (2 * w_tile * stream_bpp            # double-buffered weight streams
                + 2 * batch * in_features * 4       # resident x (conservative 2x)
                + 2 * (batch * t + 2 * 8 * 128) * 4  # y tile + partial-sum slabs
                + 6 * w_tile * 4                    # headroom: elementwise f32 temps
                + 2 * 3 * t * 4)                    # bias tiles

    # Tiny layer: one gridless step avoids all per-step grid overhead.
    if total_stream <= (3 << 20) and step_vmem(out_features) <= vmem_limit_bytes:
        return out_features, 1, out_features

    if step_vmem(128) > vmem_limit_bytes:
        # TODO(synk): add In (K) tiling with an f32 accumulator for very wide layers.
        raise ValueError("in_features too wide for a (128, In) tile; K-tiling not implemented")

    # Grow the tile from 128 while keeping >=4 grid steps (>=2 per v7x core),
    # a <=4 MiB weight slab per step, and the VMEM budget.
    tile = 128
    while True:
        cand = tile + 128
        if (out_features + cand - 1) // cand < 4:
            break
        if step_vmem(cand) > vmem_limit_bytes:
            break
        if cand * in_features * stream_bpp > (4 << 20):
            break
        tile = cand
    n_tiles = (out_features + tile - 1) // tile
    return tile, n_tiles, n_tiles * tile


def bayesian_linear_forward(x, weight_mu, weight_rho, weight_eps,
                            bias_mu, bias_rho, bias_eps, *,
                            compute_log_probs=True):
    """BayesianLinear forward (sample=True).

    Returns (y, log_prior, log_variational_posterior) when compute_log_probs,
    else just y.  eps arrays may be bf16 (recommended) or f32.
    """
    B, In = x.shape
    Out = weight_mu.shape[0]

    vmem_limit, fast_tail = _tpu_generation_config()
    eps_itemsize = jnp.dtype(weight_eps.dtype).itemsize
    tile_out, n_tiles, out_padded = _select_tiling(Out, In, B, vmem_limit, eps_itemsize)
    assert tile_out * n_tiles == out_padded

    pad = out_padded - Out
    wmu, wrho, weps = weight_mu, weight_rho, weight_eps
    bmu, brho, beps = bias_mu, bias_rho, bias_eps
    if pad:
        wmu = jnp.pad(wmu, ((0, pad), (0, 0)))
        wrho = jnp.pad(wrho, ((0, pad), (0, 0)))
        weps = jnp.pad(weps, ((0, pad), (0, 0)))
        bmu = jnp.pad(bmu, (0, pad))
        brho = jnp.pad(brho, (0, pad))
        beps = jnp.pad(beps, (0, pad))
    bmu2 = bmu.reshape(1, out_padded)
    brho2 = brho.reshape(1, out_padded)
    beps2 = beps.reshape(1, out_padded)

    x_spec = pl.BlockSpec((B, In), lambda j: (0, 0))           # resident
    w_spec = pl.BlockSpec((tile_out, In), lambda j: (j, 0))    # Out-tiled
    b_spec = pl.BlockSpec((1, tile_out), lambda j: (0, j))
    y_spec = pl.BlockSpec((B, tile_out), lambda j: (0, j))     # lane-dense slab
    s_spec = pl.BlockSpec((8, 128), lambda j: (0, j))          # per-tile partials

    cparams = pltpu.CompilerParams(
        dimension_semantics=("parallel",),   # megacore: shard out-tiles over TCs
        vmem_limit_bytes=vmem_limit,
    )

    if not compute_log_probs:
        y_pad = pl.pallas_call(
            _bayes_linear_sample_kernel,
            out_shape=jax.ShapeDtypeStruct((B, out_padded), jnp.float32),
            grid=(n_tiles,),
            in_specs=[x_spec, w_spec, w_spec, w_spec, b_spec, b_spec, b_spec],
            out_specs=y_spec,
            compiler_params=cparams,
        )(x, wmu, wrho, weps, bmu2, brho2, beps2)
        return y_pad[:, :Out] if pad else y_pad

    kernel = functools.partial(_bayes_linear_kernel, fast_tail=fast_tail)
    y_pad, lp_parts, lvp_parts = pl.pallas_call(
        kernel,
        out_shape=(
            jax.ShapeDtypeStruct((B, out_padded), jnp.float32),
            jax.ShapeDtypeStruct((8, n_tiles * 128), jnp.float32),
            jax.ShapeDtypeStruct((8, n_tiles * 128), jnp.float32),
        ),
        grid=(n_tiles,),
        in_specs=[x_spec, w_spec, w_spec, w_spec, b_spec, b_spec, b_spec],
        out_specs=(y_spec, s_spec, s_spec),
        compiler_params=cparams,
    )(x, wmu, wrho, weps, bmu2, brho2, beps2)

    # Each tile's (8,128) slab is a splat of its partial sum: pick one lane
    # per tile and add.
    lp = jnp.sum(lp_parts[0, ::128])
    lvp = jnp.sum(lvp_parts[0, ::128])
    if pad:
        n_pad = pad * In + pad                      # padded weight + bias elements
        lp = lp - n_pad * _LP_PAD
        lvp = lvp - n_pad * _LVP_PAD
    y = y_pad[:, :Out] if pad else y_pad
    return y, lp, lvp


def _reference_forward(x, wmu, wrho, weps, bmu, brho, beps):
    """Pure-JAX reference mirroring the PyTorch module's formulas (f32 eps)."""
    wsig = jnp.log1p(jnp.exp(wrho))
    w = wmu + wsig * weps
    bsig = jnp.log1p(jnp.exp(brho))
    b = bmu + bsig * beps
    y = jnp.dot(x, w.T, precision=jax.lax.Precision.HIGHEST) + b

    def mix_naive(v):
        logp1 = -LOG_SQRT_2PI - math.log(SIGMA_1) - v * v / (2.0 * SIGMA_1 ** 2)
        logp2 = -LOG_SQRT_2PI - math.log(SIGMA_2) - v * v / (2.0 * SIGMA_2 ** 2)
        return jnp.log(PI * jnp.exp(logp1) + (1.0 - PI) * jnp.exp(logp2))

    def gauss(v, mu, sig):
        return -LOG_SQRT_2PI - jnp.log(sig) - (v - mu) ** 2 / (2.0 * sig * sig)

    lp = jnp.sum(mix_naive(w)) + jnp.sum(mix_naive(b))
    lvp = jnp.sum(gauss(w, wmu, wsig)) + jnp.sum(gauss(b, bmu, bsig))
    return y, lp, lvp


def _run_case(name, key, batch, in_features, out_features, check_sample_only=False):
    k = jax.random.split(key, 7)
    weight_mu = jax.random.uniform(k[0], (out_features, in_features),
                                   jnp.float32, -0.2, 0.2)
    weight_rho = jax.random.uniform(k[1], (out_features, in_features),
                                    jnp.float32, -5.0, -4.0)
    bias_mu = jax.random.uniform(k[2], (out_features,), jnp.float32, -0.2, 0.2)
    bias_rho = jax.random.uniform(k[3], (out_features,), jnp.float32, -5.0, -4.0)
    # Reparameterization noise, stored in bf16 (HBM stream cut); the N(0,1)
    # sampling semantics of the module are unchanged.
    weight_eps = jax.random.normal(k[4], (out_features, in_features),
                                   jnp.float32).astype(jnp.bfloat16)
    bias_eps = jax.random.normal(k[5], (out_features,),
                                 jnp.float32).astype(jnp.bfloat16)
    x = jax.random.normal(k[6], (batch, in_features), jnp.float32)

    y, lp, lvp = bayesian_linear_forward(
        x, weight_mu, weight_rho, weight_eps, bias_mu, bias_rho, bias_eps)
    jax.block_until_ready((y, lp, lvp))

    y_ref, lp_ref, lvp_ref = _reference_forward(
        x, weight_mu, weight_rho, weight_eps.astype(jnp.float32),
        bias_mu, bias_rho, bias_eps.astype(jnp.float32))

    assert jnp.allclose(y, y_ref, atol=1e-3, rtol=1e-3), name
    assert jnp.allclose(lp, lp_ref, atol=5.0, rtol=2e-4), name
    assert jnp.allclose(lvp, lvp_ref, atol=5.0, rtol=2e-4), name

    if check_sample_only:
        y2 = bayesian_linear_forward(
            x, weight_mu, weight_rho, weight_eps, bias_mu, bias_rho, bias_eps,
            compute_log_probs=False)
        jax.block_until_ready(y2)
        assert jnp.allclose(y2, y_ref, atol=1e-3, rtol=1e-3), name + "_sample_only"


if __name__ == "__main__":
    root = jax.random.PRNGKey(0)
    k_a, k_b, k_c = jax.random.split(root, 3)

    # A: tiled path (4 out-tiles of 256, "parallel" grid, bf16 eps streams).
    _run_case("tiled_1024x512", k_a, batch=8, in_features=512, out_features=1024,
              check_sample_only=True)
    # B: tiny, irregular layer -> single gridless step with full-array blocks.
    _run_case("gridless_200x320", k_b, batch=4, in_features=320, out_features=200)
    # C: non-multiple-of-128 out_features on the tiled path -> zero-padding
    #    plus analytic correction of the padded elements' log-prob terms.
    _run_case("padded_600x512", k_c, batch=8, in_features=512, out_features=600)

    print("KERNEL_OK")
</pallas_src>

<mosaic_0001>
module attributes {stable_mosaic.version = 11 : i64} {
  func.func @_bayes_linear_kernel(%arg0: i32, %arg1: memref<8x512xf32, #tpu.memory_space<vmem>>, %arg2: memref<256x512xf32, #tpu.memory_space<vmem>>, %arg3: memref<256x512xf32, #tpu.memory_space<vmem>>, %arg4: memref<256x512xbf16, #tpu.memory_space<vmem>>, %arg5: memref<1x256xf32, #tpu.memory_space<vmem>>, %arg6: memref<1x256xf32, #tpu.memory_space<vmem>>, %arg7: memref<1x256xbf16, #tpu.memory_space<vmem>>, %arg8: memref<8x256xf32, #tpu.memory_space<vmem>>, %arg9: memref<8x128xf32, #tpu.memory_space<vmem>>, %arg10: memref<8x128xf32, #tpu.memory_space<vmem>>) attributes {dimension_semantics = [#tpu.dimension_semantics<parallel>], iteration_bounds = array<i64: 4>, scalar_prefetch = 0 : i64, scratch_operands = 0 : i64, tpu.core_type = #tpu.core_type<tc>, window_params = [{pipeline_mode = #tpu.pipeline_mode<synchronous>, transform_indices = @transform_0, window_bounds = array<i64: 8, 512>}, {transform_indices = @transform_1, window_bounds = array<i64: 256, 512>}, {transform_indices = @transform_2, window_bounds = array<i64: 256, 512>}, {transform_indices = @transform_3, window_bounds = array<i64: 256, 512>}, {transform_indices = @transform_4, window_bounds = array<i64: 1, 256>}, {transform_indices = @transform_5, window_bounds = array<i64: 1, 256>}, {transform_indices = @transform_6, window_bounds = array<i64: 1, 256>}, {transform_indices = @transform_7, window_bounds = array<i64: 8, 256>}, {transform_indices = @transform_8, window_bounds = array<i64: 8, 128>}, {transform_indices = @transform_9, window_bounds = array<i64: 8, 128>}]} {
    %c0 = arith.constant 0 : index
    %c0_0 = arith.constant 0 : index
    %0 = vector.load %arg2[%c0, %c0_0] : memref<256x512xf32, #tpu.memory_space<vmem>>, vector<256x512xf32>
    %c0_1 = arith.constant 0 : index
    %c0_2 = arith.constant 0 : index
    %1 = vector.load %arg3[%c0_1, %c0_2] : memref<256x512xf32, #tpu.memory_space<vmem>>, vector<256x512xf32>
    %c0_3 = arith.constant 0 : index
    %c0_4 = arith.constant 0 : index
    %2 = vector.load %arg4[%c0_3, %c0_4] : memref<256x512xbf16, #tpu.memory_space<vmem>>, vector<256x512xbf16>
    %3 = arith.extf %2 : vector<256x512xbf16> to vector<256x512xf32>
    %c0_5 = arith.constant 0 : index
    %c0_6 = arith.constant 0 : index
    %4 = vector.load %arg5[%c0_5, %c0_6] : memref<1x256xf32, #tpu.memory_space<vmem>>, vector<1x256xf32>
    %c0_7 = arith.constant 0 : index
    %c0_8 = arith.constant 0 : index
    %5 = vector.load %arg6[%c0_7, %c0_8] : memref<1x256xf32, #tpu.memory_space<vmem>>, vector<1x256xf32>
    %c0_9 = arith.constant 0 : index
    %c0_10 = arith.constant 0 : index
    %6 = vector.load %arg7[%c0_9, %c0_10] : memref<1x256xbf16, #tpu.memory_space<vmem>>, vector<1x256xbf16>
    %7 = arith.extf %6 : vector<1x256xbf16> to vector<1x256xf32>
    %8 = math.exp %1 : vector<256x512xf32>
    %9 = math.log1p %8 : vector<256x512xf32>
    %10 = math.exp %5 : vector<1x256xf32>
    %11 = math.log1p %10 : vector<1x256xf32>
    %12 = arith.mulf %9, %3 : vector<256x512xf32>
    %13 = arith.addf %0, %12 : vector<256x512xf32>
    %14 = arith.mulf %11, %7 : vector<1x256xf32>
    %15 = arith.addf %4, %14 : vector<1x256xf32>
    %c0_11 = arith.constant 0 : index
    %c0_12 = arith.constant 0 : index
    %16 = vector.load %arg1[%c0_11, %c0_12] : memref<8x512xf32, #tpu.memory_space<vmem>>, vector<8x512xf32>
    %cst = arith.constant dense<0.000000e+00> : vector<8x256xf32>
    %17 = tpu.matmul %16, %13, %cst {dimension_numbers = #tpu.dot_dimension_numbers<[1], [1], [0], [0], [0, 0, 1, 0], [], []>} : vector<8x512xf32>, vector<256x512xf32>, vector<8x256xf32> -> vector<8x256xf32>
    %18 = vector.broadcast %15 : vector<1x256xf32> to vector<8x256xf32>
    %19 = arith.addf %17, %18 : vector<8x256xf32>
    %c0_13 = arith.constant 0 : index
    %c0_14 = arith.constant 0 : index
    %20 = vector.load %arg8[%c0_13, %c0_14] : memref<8x256xf32, #tpu.memory_space<vmem>>, vector<8x256xf32>
    tpu.vector_store %arg8[%c0_13, %c0_14], %19 {strides = array<i32>} : memref<8x256xf32, #tpu.memory_space<vmem>>, vector<8x256xf32>,
    %21 = arith.mulf %13, %13 : vector<256x512xf32>
    %cst_15 = arith.constant 5.000000e-01 : f32
    %22 = vector.broadcast %cst_15 : f32 to vector<256x512xf32>
    %23 = arith.mulf %22, %21 : vector<256x512xf32>
    %cst_16 = arith.constant -1.6120857 : f32
    %24 = vector.broadcast %cst_16 : f32 to vector<256x512xf32>
    %25 = arith.subf %24, %23 : vector<256x512xf32>
    %cst_17 = arith.constant 81377.3984 : f32
    %26 = vector.broadcast %cst_17 : f32 to vector<256x512xf32>
    %27 = arith.mulf %26, %21 : vector<256x512xf32>
    %cst_18 = arith.constant 4.38791418 : f32
    %28 = vector.broadcast %cst_18 : f32 to vector<256x512xf32>
    %29 = arith.subf %28, %27 : vector<256x512xf32>
    %30 = arith.maximumf %25, %29 : vector<256x512xf32>
    %31 = arith.minimumf %25, %29 : vector<256x512xf32>
    %32 = arith.subf %31, %30 : vector<256x512xf32>
    %33 = math.exp %32 : vector<256x512xf32>
    %34 = math.log1p %33 : vector<256x512xf32>
    %35 = arith.addf %30, %34 : vector<256x512xf32>
    %36 = vector.shape_cast %35 : vector<256x512xf32> to vector<1x256x512xf32>
    %cst_19 = arith.constant dense<0.000000e+00> : vector<1xf32>
    %37 = vector.multi_reduction <add>, %36, %cst_19 [1, 2] : vector<1x256x512xf32> to vector<1xf32>
    %38 = vector.shape_cast %37 : vector<1xf32> to vector<1x1x1xf32>
    %39 = vector.extract %38[0, 0, 0] : f32 from vector<1x1x1xf32>
    %40 = arith.mulf %15, %15 : vector<1x256xf32>
    %cst_20 = arith.constant 5.000000e-01 : f32
    %41 = vector.broadcast %cst_20 : f32 to vector<1x256xf32>
    %42 = arith.mulf %41, %40 : vector<1x256xf32>
    %cst_21 = arith.constant -1.6120857 : f32
    %43 = vector.broadcast %cst_21 : f32 to vector<1x256xf32>
    %44 = arith.subf %43, %42 : vector<1x256xf32>
    %cst_22 = arith.constant 81377.3984 : f32
    %45 = vector.broadcast %cst_22 : f32 to vector<1x256xf32>
    %46 = arith.mulf %45, %40 : vector<1x256xf32>
    %cst_23 = arith.constant 4.38791418 : f32
    %47 = vector.broadcast %cst_23 : f32 to vector<1x256xf32>
    %48 = arith.subf %47, %46 : vector<1x256xf32>
    %49 = arith.maximumf %44, %48 : vector<1x256xf32>
    %50 = arith.minimumf %44, %48 : vector<1x256xf32>
    %51 = arith.subf %50, %49 : vector<1x256xf32>
    %52 = math.exp %51 : vector<1x256xf32>
    %53 = math.log1p %52 : vector<1x256xf32>
    %54 = arith.addf %49, %53 : vector<1x256xf32>
    %55 = vector.shape_cast %54 : vector<1x256xf32> to vector<1x1x256xf32>
    %cst_24 = arith.constant dense<0.000000e+00> : vector<1xf32>
    %56 = vector.multi_reduction <add>, %55, %cst_24 [1, 2] : vector<1x1x256xf32> to vector<1xf32>
    %57 = vector.shape_cast %56 : vector<1xf32> to vector<1x1x1xf32>
    %58 = vector.extract %57[0, 0, 0] : f32 from vector<1x1x1xf32>
    %59 = arith.addf %39, %58 : f32
    %60 = math.log %9 : vector<256x512xf32>
    %cst_25 = arith.constant -0.918938517 : f32
    %61 = vector.broadcast %cst_25 : f32 to vector<256x512xf32>
    %62 = arith.subf %61, %60 : vector<256x512xf32>
    %63 = arith.mulf %3, %3 : vector<256x512xf32>
    %cst_26 = arith.constant 5.000000e-01 : f32
    %64 = vector.broadcast %cst_26 : f32 to vector<256x512xf32>
    %65 = arith.mulf %64, %63 : vector<256x512xf32>
    %66 = arith.subf %62, %65 : vector<256x512xf32>
    %67 = vector.shape_cast %66 : vector<256x512xf32> to vector<1x256x512xf32>
    %cst_27 = arith.constant dense<0.000000e+00> : vector<1xf32>
    %68 = vector.multi_reduction <add>, %67, %cst_27 [1, 2] : vector<1x256x512xf32> to vector<1xf32>
    %69 = vector.shape_cast %68 : vector<1xf32> to vector<1x1x1xf32>
    %70 = vector.extract %69[0, 0, 0] : f32 from vector<1x1x1xf32>
    %71 = math.log %11 : vector<1x256xf32>
    %cst_28 = arith.constant -0.918938517 : f32
    %72 = vector.broadcast %cst_28 : f32 to vector<1x256xf32>
    %73 = arith.subf %72, %71 : vector<1x256xf32>
    %74 = arith.mulf %7, %7 : vector<1x256xf32>
    %cst_29 = arith.constant 5.000000e-01 : f32
    %75 = vector.broadcast %cst_29 : f32 to vector<1x256xf32>
    %76 = arith.mulf %75, %74 : vector<1x256xf32>
    %77 = arith.subf %73, %76 : vector<1x256xf32>
    %78 = vector.shape_cast %77 : vector<1x256xf32> to vector<1x1x256xf32>
    %cst_30 = arith.constant dense<0.000000e+00> : vector<1xf32>
    %79 = vector.multi_reduction <add>, %78, %cst_30 [1, 2] : vector<1x1x256xf32> to vector<1xf32>
    %80 = vector.shape_cast %79 : vector<1xf32> to vector<1x1x1xf32>
    %81 = vector.extract %80[0, 0, 0] : f32 from vector<1x1x1xf32>
    %82 = arith.addf %70, %81 : f32
    %83 = vector.broadcast %59 : f32 to vector<8x128xf32>
    %c0_31 = arith.constant 0 : index
    %c0_32 = arith.constant 0 : index
    %84 = vector.load %arg9[%c0_31, %c0_32] : memref<8x128xf32, #tpu.memory_space<vmem>>, vector<8x128xf32>
    tpu.vector_store %arg9[%c0_31, %c0_32], %83 {strides = array<i32>} : memref<8x128xf32, #tpu.memory_space<vmem>>, vector<8x128xf32>,
    %85 = vector.broadcast %82 : f32 to vector<8x128xf32>
    %c0_33 = arith.constant 0 : index
    %c0_34 = arith.constant 0 : index
    %86 = vector.load %arg10[%c0_33, %c0_34] : memref<8x128xf32, #tpu.memory_space<vmem>>, vector<8x128xf32>
    tpu.vector_store %arg10[%c0_33, %c0_34], %85 {strides = array<i32>} : memref<8x128xf32, #tpu.memory_space<vmem>>, vector<8x128xf32>,
    return
  }
  func.func @transform_0(%arg0: i32) -> (i32, i32) {
    %c0_i32 = arith.constant 0 : i32
    %c0_i32_0 = arith.constant 0 : i32
    %c0_i32_1 = arith.constant 0 : i32
    return %c0_i32, %c0_i32_0 : i32, i32
  }
  func.func @transform_1(%arg0: i32) -> (i32, i32) {
    %c0_i32 = arith.constant 0 : i32
    %c0_i32_0 = arith.constant 0 : i32
    return %arg0, %c0_i32 : i32, i32
  }
  func.func @transform_2(%arg0: i32) -> (i32, i32) {
    %c0_i32 = arith.constant 0 : i32
    %c0_i32_0 = arith.constant 0 : i32
    return %arg0, %c0_i32 : i32, i32
  }
  func.func @transform_3(%arg0: i32) -> (i32, i32) {
    %c0_i32 = arith.constant 0 : i32
    %c0_i32_0 = arith.constant 0 : i32
    return %arg0, %c0_i32 : i32, i32
  }
  func.func @transform_4(%arg0: i32) -> (i32, i32) {
    %c0_i32 = arith.constant 0 : i32
    %c0_i32_0 = arith.constant 0 : i32
    return %c0_i32, %arg0 : i32, i32
  }
  func.func @transform_5(%arg0: i32) -> (i32, i32) {
    %c0_i32 = arith.constant 0 : i32
    %c0_i32_0 = arith.constant 0 : i32
    return %c0_i32, %arg0 : i32, i32
  }
  func.func @transform_6(%arg0: i32) -> (i32, i32) {
    %c0_i32 = arith.constant 0 : i32
    %c0_i32_0 = arith.constant 0 : i32
    return %c0_i32, %arg0 : i32, i32
  }
  func.func @transform_7(%arg0: i32) -> (i32, i32) {
    %c0_i32 = arith.constant 0 : i32
    %c0_i32_0 = arith.constant 0 : i32
    return %c0_i32, %arg0 : i32, i32
  }
  func.func @transform_8(%arg0: i32) -> (i32, i32) {
    %c0_i32 = arith.constant 0 : i32
    %c0_i32_0 = arith.constant 0 : i32
    return %c0_i32, %arg0 : i32, i32
  }
  func.func @transform_9(%arg0: i32) -> (i32, i32) {
    %c0_i32 = arith.constant 0 : i32
    %c0_i32_0 = arith.constant 0 : i32
    return %c0_i32, %arg0 : i32, i32
  }
}

</mosaic_0001>

<bundles_post_ra>
// kernel: tpu_custom_call.1
= control target key start
LH: loop header
LB: loop body
LE: loop exit
PB: predicated region body
PF: predicated region fallthrough
CT: control target
= control target key end

     0   :  { %s15468_s0 = inlined_call_operand.hbm [shape: f32[8,512], index: 0, kind: input, shape index: {}]   ;;  %s15469_s1 = inlined_call_operand.hbm [shape: f32[1024,512], index: 1, kind: input, shape index: {}]   ;;  %s15470_s2 = inlined_call_operand.hbm [shape: f32[1024,512], index: 2, kind: input, shape index: {}]   ;;  %s15471_s3 = inlined_call_operand.hbm [shape: bf16[1024,512], index: 3, kind: input, shape index: {}]   ;;  %s15472_s4 = inlined_call_operand.hbm [shape: f32[1,1024], index: 4, kind: input, shape index: {}]   ;;  %s15473_s5 = inlined_call_operand.hbm [shape: f32[1,1024], index: 5, kind: input, shape index: {}]   ;;  %s15474_s6 = inlined_call_operand.hbm [shape: bf16[1,1024], index: 6, kind: input, shape index: {}]   ;;  %s15475_s7 = inlined_call_operand.hbm [shape: f32[8,1024], index: 7, kind: output, shape index: {0}]   ;;  %s15476_s8 = inlined_call_operand.hbm [shape: f32[8,512], index: 8, kind: output, shape index: {1}]   ;;  %s15477_s9 = inlined_call_operand.hbm [shape: f32[8,512], index: 9, kind: output, shape index: {2}]  }
   0x1   :  { %15787 = sst [smem:[#allocation262_spill]] %s15469_s1 }
   0x2   :  { %15788 = sst [smem:[#allocation263_spill]] %s15470_s2 }
   0x3   :  { %15789 = sst [smem:[#allocation264_spill]] %s15471_s3 }
   0x4   :  { %15790 = sst [smem:[#allocation265_spill]] %s15473_s5 }
   0x5   :  { %15791 = sst [smem:[#allocation266_spill]] %s15475_s7 }
   0x6   :  { %15792 = sst [smem:[#allocation267_spill]] %s15476_s8 }
   0x7   :  { %15793 = sst [smem:[#allocation268_spill]] %s15477_s9 }
   0x8   :  { %15 = vsyncpa [#allocation3], 0 }
   0x9   :  { %16 = vsyncpa [#allocation6], 0 }
   0xa   :  { %18 = vsyncpa [#allocation6 + $0x1], 0 }
   0xb   :  { %19 = vsyncpa [#allocation9], 0 }
   0xc   :  { %21 = vsyncpa [#allocation9 + $0x1], 0 }
   0xd   :  { %22 = vsyncpa [#allocation12], 0 }
   0xe   :  { %24 = vsyncpa [#allocation12 + $0x1], 0 }
   0xf   :  { %25 = vsyncpa [#allocation4], 0 }
  0x10   :  { %27 = vsyncpa [#allocation4 + $0x1], 0 }
  0x11   :  { %28 = vsyncpa [#allocation16], 0 }
  0x12   :  { %30 = vsyncpa [#allocation16 + $0x1], 0  ;;  %s8706_s30 = smov 0   ;;  %s8708_s10 = smov 0  }
  0x13   :  { %s8710_s11 = smov 0   ;;  %s8712_s12 = smov 0  }
  0x14 LB: > { %15794 = sst [smem:[#allocation24_spill]] %s8635_s11  ;;  %s8727_s13 = sadd.s32 1, %s8639_s12   ;;  %s8639_s12 = sphi %s8712_s12, %s17334_s12   ;;  %s8635_s11 = sphi %s8710_s11, %s17336_s11   ;;  %s8631_s10 = sphi %s8708_s10, %s17338_s10   ;;  %s8627_s30 = sphi %s8706_s30, %s17337_s30  }
  0x15   : > { %15795 = sst [smem:[#allocation25_spill]] %s8727_s13  ;;  %s64_s14 = sadd.s32 1, %s8635_s11 }
  0x16   : > { %s61_s15 = ssub.s32 %s8639_s12, %s8727_s13  ;;  %p15480_p0 = scmp.ne.s32.totalorder %s8635_s11, %s8631_s10 }
  0x17   : > { %p62_p1 = scmp.eq.s32.totalorder %s61_s15, 0  ;;  %p72_p2 = scmp.eq.s32.totalorder %s8639_s12, 0 }
  0x18   : > { %p6981_p3 = scmp.lt.s32.totalorder %s8639_s12, 4  ;;  %s8743_s17 = sand.u32 1, %s8639_s12  }
  0x19   : > { %s8737_s16 = scalar_select %p62_p1, %s8635_s11, %s64_s14  }
  0x1a   : > { %p73_p4 = por %p72_p2, %p15480_p0  ;;  %s8746_s18 = sand.u32 1, %s8635_s11  }
  0x1b   : > { %15796 = sst [smem:[#allocation26_spill]] %s8737_s16  ;;  %s15478_s19 = sshll.u32 %s8746_s18, 10 }
  0x1c   : > { %s15479_s20 = sshll.u32 %s8639_s12, 14  ;;  %s15797_s1 = sld [smem:[#allocation262_spill]] }
  0x1d   : > { %s324_s24 = scalar_lea.vmem [#allocation5], %s15478_s19  ;;  %p8759_p5 = pnand %p6981_p3, %p73_p4 }
  0x1e   : > { %s332_s25 = sshll.u32 %s324_s24, 4  ;;  %s15486_s27 = scalar_lea.sflag [#allocation6], %s8743_s17  ;;  %s8763_s25 = int_to_ptr.vmem [resolvable:$true] %s332_s25 }
  0x1f   : > { %p8770_p7 = pneg %p8759_p5 }
  0x22   : > { %s8755_s23 = scalar_lea.hbm %s15797_s1, %s15479_s20  ;;  %s8318_s21 = scalar_lea.hbm %s15797_s1, 65536 }
  0x23   : > { %s8313_s28 = scalar_lea.hbm %s8755_s23, 16384  ;;  %p8319_p10 = scmp.lt.s32.totalorder %s8755_s23, %s15797_s1 }
  0x24   : > { %p8314_p6 = scmp.ne.s32.totalorder %s8755_s23, %s8313_s28  ;;  %p8320_p11 = scmp.lt.s32.totalorder %s8318_s21, %s8313_s28 }
  0x26   : > { %p8316_p8 = pnand %p8770_p7, %p8314_p6  ;;  %p8321_p12 = por %p8320_p11, %p8319_p10 }
  0x28   : > { %p8317_p9 = pneg %p8316_p8 }
  0x2a   : > { %p8322_p13 = pnand %p8321_p12, %p8317_p9 }
  0x2c   : > { %8325 = shalt.err (!%p8322_p13)
}
  0x2d   : > { %s8326_s19 = scalar_lea.vmem %s8763_s25, 16384  ;;  %s8641_s20 = smov [#allocation5]  }
  0x2e   : > { %p8327_p1 = scmp.ne.s32.totalorder %s8763_s25, %s8326_s19  ;;  %s8331_s14 = sshll.u32 %s8641_s20, 4  ;;  %s8332_s14 = int_to_ptr.vmem [resolvable:$false] %s8331_s14 }
  0x2f   : > { %s8333_s15 = scalar_lea.vmem %s8332_s14, 32768  ;;  %p8334_p4 = scmp.lt.s32.totalorder %s8763_s25, %s8332_s14 }
  0x30   : > { %p8329_p2 = pnand %p8327_p1, %p8770_p7  ;;  %p8335_p6 = scmp.lt.s32.totalorder %s8333_s15, %s8326_s19 }
  0x32   : > { %p8330_p3 = pneg %p8329_p2  ;;  %p8336_p8 = por %p8335_p6, %p8334_p4 }
  0x34   : > { %p8337_p0 = pnand %p8336_p8, %p8330_p3 }
  0x36   : > { %8340 = shalt.err (!%p8337_p0)
}
  0x37   : > { %s15488_s28 = smov 512   ;;  %s15491_s21 = smov 32  }
  0x38   : > { %6954 = dma.hbm_to_vmem [thread:$0]  (!%p8759_p5), %s8755_s23, 16384, %s8763_s25, %s15486_s27, %s15488_s28, %s15488_s28, %s15491_s21  }
  0x39   : > { %s15800_s19 = sshll.u32 %s8639_s12, 14  ;;  %s15801_s2 = sld [smem:[#allocation263_spill]] }
  0x3a   : > { %s15802_s14 = sshll.u32 %s8746_s18, 10  ;;  %s6874_s16 = sshll.u32 %s8746_s18, 9 }
  0x3b   : > { %s346_s15 = scalar_lea.vmem [#allocation7], %s15802_s14  ;;  %s6912_s13 = sshll.u32 %s8639_s12, 13 }
  0x3c   : > { %s354_s1 = sshll.u32 %s346_s15, 4  ;;  %s15803_s3 = sld [smem:[#allocation264_spill]]  ;;  %s8806_s1 = int_to_ptr.vmem [resolvable:$true] %s354_s1 }
  0x3d   : > { %s368_s23 = scalar_lea.vmem [#allocation8], %s6874_s16  ;;  %s15487_s20 = scalar_lea.sflag [#allocation9], %s8743_s17 }
  0x3e   : > { %s376_s25 = sshll.u32 %s368_s23, 4  ;;  %s8815_s25 = int_to_ptr.vmem [resolvable:$true] %s376_s25 }
  0x3f   : > { %s8802_s24 = scalar_lea.hbm %s15801_s2, %s15800_s19  ;;  %s8818_s19 = sshll.u32 %s8746_s18, 1 }
  0x42   : > { %s8813_s7 = scalar_lea.hbm %s15803_s3, %s6912_s13  ;;  %s8346_s8 = scalar_lea.hbm %s15803_s3, 32768 }
  0x43   : > { %s8341_s22 = scalar_lea.hbm %s8813_s7, 8192  ;;  %p8347_p11 = scmp.lt.s32.totalorder %s8813_s7, %s15803_s3 }
  0x44   : > { %p8342_p0 = scmp.ne.s32.totalorder %s8813_s7, %s8341_s22  ;;  %p8348_p12 = scmp.lt.s32.totalorder %s8346_s8, %s8341_s22 }
  0x46   : > { %p8344_p9 = pnand %p8342_p0, %p8770_p7  ;;  %p8349_p13 = por %p8348_p12, %p8347_p11 }
  0x48   : > { %p8345_p10 = pneg %p8344_p9 }
  0x4a   : > { %p8350_p1 = pnand %p8349_p13, %p8345_p10 }
  0x4c   : > { %8353 = shalt.err (!%p8350_p1)
}
  0x4d   : > { %s8354_s16 = scalar_lea.vmem %s8815_s25, 8192  ;;  %s8644_s18 = smov [#allocation8]  }
  0x4e   : > { %p8355_p2 = scmp.ne.s32.totalorder %s8815_s25, %s8354_s16  ;;  %s8359_s23 = sshll.u32 %s8644_s18, 4  ;;  %s8360_s23 = int_to_ptr.vmem [resolvable:$false] %s8359_s23 }
  0x4f   : > { %s8361_s14 = scalar_lea.vmem %s8360_s23, 16384  ;;  %p8362_p6 = scmp.lt.s32.totalorder %s8815_s25, %s8360_s23 }
  0x50   : > { %p8357_p3 = pnand %p8355_p2, %p8770_p7  ;;  %p8363_p8 = scmp.lt.s32.totalorder %s8361_s14, %s8354_s16 }
  0x52   : > { %p8358_p4 = pneg %p8357_p3  ;;  %p8364_p0 = por %p8363_p8, %p8362_p6 }
  0x54   : > { %p8365_p9 = pnand %p8364_p0, %p8358_p4 }
  0x56   : > { %8368 = shalt.err (!%p8365_p9)
}
  0x57   : > { %s8645_s22 = smov 256   ;;  %s8646_s15 = smov 16  }
  0x58   : > { %6960 = dma.hbm_to_vmem [thread:$0]  (!%p8759_p5), %s8813_s7, 8192, %s8815_s25, %s15487_s20, %s8645_s22, %s8645_s22, %s8646_s15  }
  0x59   : > { %s8844_s8 = sshll.u32 %s8639_s12, 5  ;;  %s15804_s5 = sld [smem:[#allocation265_spill]] }
  0x5a   : > { %s409_s18 = scalar_lea.vmem [#allocation11], %s8818_s19  ;;  %s15490_s14 = scalar_lea.sflag [#allocation12], %s8743_s17 }
  0x5b   : > { %s417_s23 = sshll.u32 %s409_s18, 4  ;;  %s418_s23 = int_to_ptr.vmem [resolvable:$true] %s417_s23 }
  0x5f   : > { %s8850_s16 = scalar_lea.hbm %s15804_s5, %s8844_s8  ;;  %s8374_s22 = scalar_lea.hbm %s15804_s5, 128 }
  0x60   : > { %s8369_s27 = scalar_lea.hbm %s8850_s16, 32  ;;  %p8375_p13 = scmp.lt.s32.totalorder %s8850_s16, %s15804_s5 }
  0x61   : > { %p8370_p10 = scmp.ne.s32.totalorder %s8850_s16, %s8369_s27  ;;  %p8376_p1 = scmp.lt.s32.totalorder %s8374_s22, %s8369_s27 }
  0x63   : > { %p8372_p11 = pnand %p8370_p10, %p8770_p7  ;;  %p8377_p2 = por %p8376_p1, %p8375_p13 }
  0x65   : > { %p8373_p12 = pneg %p8372_p11 }
  0x67   : > { %p8378_p3 = pnand %p8377_p2, %p8373_p12 }
  0x69   : > { %8381 = shalt.err (!%p8378_p3)
}
  0x6a   : > { %s8382_s13 = scalar_lea.vmem %s418_s23, 32  ;;  %s8647_s18 = smov [#allocation11]  }
  0x6b   : > { %p8383_p4 = scmp.ne.s32.totalorder %s418_s23, %s8382_s13  ;;  %s8387_s20 = sshll.u32 %s8647_s18, 4  ;;  %s8388_s20 = int_to_ptr.vmem [resolvable:$false] %s8387_s20 }
  0x6c   : > { %s8389_s28 = scalar_lea.vmem %s8388_s20, 64  ;;  %p8390_p0 = scmp.lt.s32.totalorder %s418_s23, %s8388_s20 }
  0x6d   : > { %p8385_p6 = pnand %p8383_p4, %p8770_p7  ;;  %p8391_p9 = scmp.lt.s32.totalorder %s8389_s28, %s8382_s13 }
  0x6f   : > { %p8386_p8 = pneg %p8385_p6  ;;  %p8392_p10 = por %p8391_p9, %p8390_p0 }
  0x71   : > { %p8393_p11 = pnand %p8392_p10, %p8386_p8 }
  0x73   : > { %8396 = shalt.err (!%p8393_p11)
}
  0x74   : > { %6966 = dma.hbm_to_vmem [thread:$0]  (!%p8759_p5), %s8850_s16, 32, %s418_s23, %s15490_s14  }
  0x75   : > { %s8873_s27 = sadd.s32 4294967295, %s8639_s12   ;;  %s15489_s28 = sadd.s32 4294967294, %s8639_s12  }
  0x76   : > { %p77_p12 = scmp.ne.s32.totalorder %s8631_s10, %s8627_s30  ;;  %p15493_p13 = scmp.eq.s32.totalorder %s8873_s27, 0 }
  0x77   : > { %p231_p1 = scmp.eq.s32.totalorder %s8873_s27, 3  ;;  %p237_p2 = scmp.eq.s32.totalorder %s15489_s28, 3 }
  0x78   : > { %p8884_p3 = por %p15493_p13, %p77_p12  ;;  %p6863_p4 = scmp.ge.s32.totalorder %s8639_s12, 1 }
  0x79   : > { %p15806_p6 = scmp.ne.s32.totalorder %s8635_s11, %s8631_s10  ;;  %p8896_p0 = por %p237_p2, %p77_p12 }
  0x7a   : > { %s15805_s20 = scalar_select %p8884_p3, 1, 0 }
  0x7b   : > { %p8892_p8 = por %p231_p1, %p15806_p6  ;;  %p296_p9 = scmp.lt.s32.totalorder %s8639_s12, 5 }
  0x7c   : > { %s15808_s23 = scalar_select %p8896_p0, 1, 0 }
  0x7d   : > { %s15807_s16 = scalar_select %p8892_p8, 1, 0 }
  0x7e   : > { %p8901_p10 = pnand %p6863_p4, %p296_p9  ;;  %s8648_s25 = smov [#allocation2]  }
  0x7f   : > { %s309_s22 = sshll.u32 %s8648_s25, 4  ;;  %s8911_s13 = scalar_lea.hbm %s15472_s4, %s8844_s8  ;;  %s8905_s22 = int_to_ptr.vmem [resolvable:$true] %s309_s22 }
  0x80   : > { %s15809_s7 = scalar_select %p8901_p10, 1, 0 }
  0x81   : > { %s390_s18 = scalar_lea.vmem [#allocation10], %s8818_s19  ;;  %s8397_s14 = scalar_lea.hbm %s8802_s24, 16384 }
  0x82   : > { %s8916_s28 = sshll.u32 %s390_s18, 4  ;;  %p8398_p12 = scmp.ne.s32.totalorder %s8802_s24, %s8397_s14  ;;  %s399_s28 = int_to_ptr.vmem [resolvable:$true] %s8916_s28 }
  0x83   : > { %s8402_s25 = scalar_lea.hbm %s15801_s2, 65536  ;;  %p8403_p4 = scmp.lt.s32.totalorder %s8802_s24, %s15801_s2 }
  0x84   : > { %p8400_p1 = pnand %p8398_p12, %p8770_p7  ;;  %p8404_p6 = scmp.lt.s32.totalorder %s8402_s25, %s8397_s14 }
  0x86   : > { %p8401_p2 = pneg %p8400_p1  ;;  %p8405_p9 = por %p8404_p6, %p8403_p4 }
  0x88   : > { %p8406_p13 = pnand %p8405_p9, %p8401_p2 }
  0x8a   : > { %8409 = shalt.err (!%p8406_p13)
}
  0x8b   : > { %s8410_s15 = scalar_lea.vmem %s8806_s1, 16384  ;;  %s8649_s9 = smov [#allocation7]  }
  0x8c   : > { %p8411_p11 = scmp.ne.s32.totalorder %s8806_s1, %s8410_s15  ;;  %s8415_s3 = sshll.u32 %s8649_s9, 4  ;;  %s8416_s3 = int_to_ptr.vmem [resolvable:$false] %s8415_s3 }
  0x8d   : > { %s8417_s21 = scalar_lea.vmem %s8416_s3, 32768  ;;  %p8418_p0 = scmp.lt.s32.totalorder %s8806_s1, %s8416_s3 }
  0x8e   : > { %p8413_p12 = pnand %p8411_p11, %p8770_p7  ;;  %p8419_p8 = scmp.lt.s32.totalorder %s8417_s21, %s8410_s15 }
  0x90   : > { %p8414_p1 = pneg %p8413_p12  ;;  %p8420_p3 = por %p8419_p8, %p8418_p0 }
  0x92   : > { %p8421_p10 = pnand %p8420_p3, %p8414_p1 }
  0x94   : > { %8424 = shalt.err (!%p8421_p10)
}
  0x95   : > { %s15810_s5 = smov 32   ;;  %s15811_s11 = smov 512  }
  0x96   : > { %s15812_s14 = scalar_lea.sflag [#allocation6], %s8743_s17  ;;  %p15813_p13 = scmp.eq.s32.totalorder %s8873_s27, 0 }
  0x97   : > { %6957 = dma.hbm_to_vmem [thread:$0]  (!%p8759_p5), %s8802_s24, 16384, %s8806_s1, %s15812_s14, %s15811_s11, %s15811_s11, %s15810_s5  }
  0x98   : > { %p15814_p3 = scmp.ne.s32.totalorder %s15809_s7, 0  ;;  %s8425_s25 = scalar_lea.hbm %s8911_s13, 32 }
  0x99   : > { %p8426_p10 = scmp.ne.s32.totalorder %s8911_s13, %s8425_s25  ;;  %s8430_s3 = scalar_lea.hbm %s15472_s4, 128 }
  0x9a   : > { %p15815_p8 = pneg %p15814_p3  ;;  %p8431_p4 = scmp.lt.s32.totalorder %s8911_s13, %s15472_s4 }
  0x9b   : > { %p8428_p11 = pnand %p8426_p10, %p8770_p7  ;;  %p8432_p6 = scmp.lt.s32.totalorder %s8430_s3, %s8425_s25 }
  0x9c   : > { %p8948_p0 = pnand %p15815_p8, %p15813_p13 }
  0x9d   : > { %p8429_p2 = pneg %p8428_p11  ;;  %p8433_p9 = por %p8432_p6, %p8431_p4 }
  0x9e   : > { %s15816_s18 = scalar_select %p8948_p0, 1, 0 }
  0x9f   : > { %p8434_p12 = pnand %p8433_p9, %p8429_p2 }
  0xa1   : > { %8437 = shalt.err (!%p8434_p12)
}
  0xa2   : > { %s8438_s1 = scalar_lea.vmem %s399_s28, 32  ;;  %s8650_s24 = smov [#allocation10]  }
  0xa3   : > { %p8439_p1 = scmp.ne.s32.totalorder %s399_s28, %s8438_s1  ;;  %s8443_s5 = sshll.u32 %s8650_s24, 4  ;;  %s8444_s5 = int_to_ptr.vmem [resolvable:$false] %s8443_s5 }
  0xa4   : > { %s8445_s11 = scalar_lea.vmem %s8444_s5, 64  ;;  %p8446_p10 = scmp.lt.s32.totalorder %s399_s28, %s8444_s5 }
  0xa5   : > { %p8441_p13 = pnand %p8439_p1, %p8770_p7  ;;  %p8447_p11 = scmp.lt.s32.totalorder %s8445_s11, %s8438_s1 }
  0xa7   : > { %p8442_p8 = pneg %p8441_p13  ;;  %p8448_p3 = por %p8447_p11, %p8446_p10 }
  0xa9   : > { %p8449_p0 = pnand %p8448_p3, %p8442_p8 }
  0xab   : > { %8452 = shalt.err (!%p8449_p0)
}
  0xac   : > { %s15817_s2 = scalar_lea.sflag [#allocation9], %s8743_s17  ;;  %p15818_p2 = scmp.ne.s32.totalorder %s15816_s18, 0 }
  0xad   : > { %6963 = dma.hbm_to_vmem [thread:$0]  (!%p8759_p5), %s8911_s13, 32, %s399_s28, %s15817_s2  }
  0xae   : > { %p8455_p4 = pneg %p15818_p2  ;;  %s8464_s14 = scalar_lea.vmem %s8905_s22, 512 }
  0xaf   : > { %p8465_p6 = scmp.ne.s32.totalorder %s8905_s22, %s8464_s14  ;;  %p8472_p1 = scmp.lt.s32.totalorder %s8905_s22, %s8905_s22 }
  0xb0   : > { %p8473_p3 = scmp.lt.s32.totalorder %s8464_s14, %s8464_s14 }
  0xb1   : > { %p8467_p9 = pnand %p8465_p6, %p8455_p4 }
  0xb2   : > { %p8474_p0 = por %p8473_p3, %p8472_p1 }
  0xb3   : > { %p8468_p12 = pneg %p8467_p9 }
  0xb5   : > { %p8475_p13 = pnand %p8474_p0, %p8468_p12 }
  0xb7   : > { %8478 = shalt.err (!%p8475_p13)
}
  0xb8   : > { %6950 = dma.hbm_to_vmem [thread:$0]  (!%p15818_p2), %s15468_s0, 512, %s8905_s22, [#allocation3]  }
  0xb9   : > { %s434_s9 = scalar_lea.hbm %s15474_s6, %s8844_s8  ;;  %s428_s3 = scalar_lea.vmem [#allocation13], %s8818_s19 }
  0xba   : > { %s436_s21 = sshll.u32 %s428_s3, 4  ;;  %s8479_s1 = scalar_lea.hbm %s434_s9, 32  ;;  %s437_s21 = int_to_ptr.vmem [resolvable:$true] %s436_s21 }
  0xbb   : > { %p8480_p8 = scmp.ne.s32.totalorder %s434_s9, %s8479_s1  ;;  %s8484_s5 = scalar_lea.hbm %s15474_s6, 128 }
  0xbc   : > { %p8485_p2 = scmp.lt.s32.totalorder %s434_s9, %s15474_s6  ;;  %p8486_p4 = scmp.lt.s32.totalorder %s8484_s5, %s8479_s1 }
  0xbd   : > { %p8482_p10 = pnand %p8480_p8, %p8770_p7 }
  0xbe   : > { %p8487_p6 = por %p8486_p4, %p8485_p2 }
  0xbf   : > { %p8483_p11 = pneg %p8482_p10 }
  0xc1   : > { %p8488_p9 = pnand %p8487_p6, %p8483_p11 }
  0xc3   : > { %8491 = shalt.err (!%p8488_p9)
}
  0xc4   : > { %s8492_s19 = scalar_lea.vmem %s437_s21, 32  ;;  %s8651_s8 = smov [#allocation13]  }
  0xc5   : > { %p8493_p12 = scmp.ne.s32.totalorder %s437_s21, %s8492_s19  ;;  %s8497_s22 = sshll.u32 %s8651_s8, 4  ;;  %s8498_s22 = int_to_ptr.vmem [resolvable:$false] %s8497_s22 }
  0xc6   : > { %s8499_s14 = scalar_lea.vmem %s8498_s22, 64  ;;  %p8500_p0 = scmp.lt.s32.totalorder %s437_s21, %s8498_s22 }
  0xc7   : > { %p8495_p1 = pnand %p8493_p12, %p8770_p7  ;;  %p8501_p13 = scmp.lt.s32.totalorder %s8499_s14, %s8492_s19 }
  0xc9   : > { %p8496_p3 = pneg %p8495_p1  ;;  %p8502_p8 = por %p8501_p13, %p8500_p0 }
  0xcb   : > { %p8503_p10 = pnand %p8502_p8, %p8496_p3 }
  0xcd   : > { %8506 = shalt.err (!%p8503_p10)
}
  0xce   : > { %s15819_s25 = scalar_lea.sflag [#allocation12], %s8743_s17  ;;  %p15820_p11 = scmp.ne.s32.totalorder %s15809_s7, 0 }
  0xcf   : > { %6969 = dma.hbm_to_vmem [thread:$0]  (!%p8759_p5), %s434_s9, 32, %s437_s21, %s15819_s25  }
  0xd0   : > { %445 = sbr.rel (%p15820_p11) target bundleno = 1915 (0x77b), region = 48 }
  0xd5   : > { %p15821_p7 = scmp.eq.s32.totalorder %s8873_s27, 0 }
  0xd7   : > { %8602 = dma.done.wait (%p15821_p7), [#allocation3], 512   ;;  %p15822_p2 = pmov %p15821_p7 }
  0xd8   : > { %s9009_s29 = sand.u32 1, %s8873_s27   ;;  %s9012_s15 = sand.u32 1, %s8631_s10  }
  0xd9   : > { %8604 = vsyncadd (%p15822_p2), [#allocation3], 4294966784  ;;  %s6889_s17 = sshll.u32 %s9012_s15, 10  ;;  %s452_s26 = scalar_lea.sflag [#allocation6], %s9009_s29 }
  0xda   : > { %s9016_s28 = scalar_lea.vmem [#allocation5], %s6889_s17  ;;  %p15823_p5 = scmp.ne.s32.totalorder %s15805_s20, 0 }
  0xdc   : > { %8606 = dma.done.wait (%p15823_p5), %s452_s26, 32768  }
  0xdd   : > { %8608 = vsyncadd (%p15823_p5), %s452_s26, 4294934528  ;;  %s6891_s7 = sshll.u32 %s9012_s15, 9  ;;  %s9023_s13 = scalar_lea.vmem [#allocation7], %s6889_s17 }
  0xde   : > { %s470_s9 = scalar_lea.sflag [#allocation9], %s9009_s29  ;;  %s9026_s3 = scalar_lea.vmem [#allocation8], %s6891_s7 }
  0xdf   : > { %8610 = dma.done.wait (%p15823_p5), %s470_s9, 8224  }
  0xe0   : > { %8612 = vsyncadd (%p15823_p5), %s470_s9, 4294959072  ;;  %s9033_s21 = sshll.u32 %s9012_s15, 1  ;;  %s488_s18 = scalar_lea.sflag [#allocation12], %s9009_s29 }
  0xe1   : > { %s482_s1 = scalar_lea.vmem [#allocation10], %s9033_s21  ;;  %s491_s24 = scalar_lea.vmem [#allocation11], %s9033_s21 }
  0xe2   : > { %8614 = dma.done.wait (%p15823_p5), %s488_s18, 64  }
  0xe3   : > { %8616 = vsyncadd (%p15823_p5), %s488_s18, 4294967232  ;;  %v766_v0 = vld [vmem:[%s9023_s13 + $0x1e8] sm:$0xff]  ;;  %v765_v2 = vld [vmem:[%s9023_s13 + $0x1e0] sm:$0xff]  ;;  %s500_s20 = scalar_lea.vmem [#allocation13], %s9033_s21  ;;  %s6895_s5 = sshll.u32 %s9012_s15, 4 }
  0xe4   : > { %v1151_v1 = vmul.f32 1.442695, %v766_v0  ;;  %v1149_v3 = vmul.f32 1.442695, %v765_v2  ;;  %v768_v4 = vld [vmem:[%s9023_s13 + $0x1f8] sm:$0xff]  ;;  %v767_v5 = vld [vmem:[%s9023_s13 + $0x1f0] sm:$0xff] }
  0xe5   : > { %v762_v6 = vld [vmem:[%s9023_s13 + $0x1c8] sm:$0xff]  ;;  %v1155_v7 = vmul.f32 1.442695, %v768_v4  ;;  %v1153_v8 = vmul.f32 1.442695, %v767_v5  ;;  %v761_v10 = vld [vmem:[%s9023_s13 + $0x1c0] sm:$0xff] }
  0xe6   : > { %7022 = vpow2.f32 %v1151_v1  ;;  %v1143_v9 = vmul.f32 1.442695, %v762_v6  ;;  %v764_v11 = vld [vmem:[%s9023_s13 + $0x1d8] sm:$0xff]  ;;  %v1141_v12 = vmul.f32 1.442695, %v761_v10  ;;  %v763_v14 = vld [vmem:[%s9023_s13 + $0x1d0] sm:$0xff] }
  0xe7   : > { %7024 = vpow2.f32 %v1149_v3  ;;  %v1147_v13 = vmul.f32 1.442695, %v764_v11  ;;  %v1145_v18 = vmul.f32 1.442695, %v763_v14  ;;  %v758_v27 = vld [vmem:[%s9023_s13 + $0x1a8] sm:$0xff]  ;;  %v863_v29 = vld [vmem:[%s9026_s3 + $0xf0] sm:$0xff] }
  0xe8   : > { %7026 = vpow2.f32 %v1155_v7  ;;  %v757_v30 = vld [vmem:[%s9023_s13 + $0x1a0] sm:$0xff]  ;;  %v864_v32 = vld [vmem:[%s9026_s3 + $0xf8] sm:$0xff]  ;;  %v1135_v34 = vmul.f32 1.442695, %v758_v27  ;;  %v9059_v35 = vunpack.c.h.bf16 %v863_v29  ;;  %v9063_v40 = vunpack.c.l.bf16 %v863_v29  ;;  %v638_v5 = vld [vmem:[%s9016_s28 + $0x1e8] sm:$0xff]  ;;  %s555_s11 = scalar_lea.vmem [#allocation14], %s6895_s5 }
  0xe9   : > { %7028 = vpow2.f32 %v1153_v8  ;;  %v1133_v42 = vmul.f32 1.442695, %v757_v30  ;;  %v9065_v44 = vunpack.c.h.bf16 %v864_v32  ;;  %v9067_v45 = vunpack.c.l.bf16 %v864_v32  ;;  %v9072_v53 = vld [vmem:[%s9026_s3 + $0xe0] sm:$0xff]  ;;  %s6916_s2 = sshll.u32 %s8873_s27, 8  ;;  %s17328_s22 = sld [smem:[#allocation266_spill]] }
  0xea   : > { %7030 = vpow2.f32 %v1143_v9  ;;  %v9080_v58 = vunpack.c.h.bf16 %v9072_v53  ;;  %v637_v11 = vld [vmem:[%s9016_s28 + $0x1e0] sm:$0xff]  ;;  %s6587_s25 = sshll.u32 %s555_s11, 4  ;;  %s6563_s17 = scalar_lea.sflag [#allocation4], %s9012_s15  ;;  %s6588_s25 = int_to_ptr.vmem [resolvable:$true] %s6587_s25 }
  0xeb   : > { %7032 = vpow2.f32 %v1141_v12  ;;  %s8507_s26 = scalar_lea.vmem %s6588_s25, 256  ;;  %p17329_p6 = scmp.ne.s32.totalorder %s15807_s16, 0 }
  0xec   : > { %7034 = vpow2.f32 %v1147_v13  ;;  %p8508_p4 = scmp.ne.s32.totalorder %s6588_s25, %s8507_s26 }
  0xee   : > { %p8509_p9 = pnand %p8508_p4, %p17329_p6 }
  0xef   : > { %s6585_s14 = scalar_lea.hbm %s17328_s22, %s6916_s2 }
  0xf0   : > { %p8510_p12 = pneg %p8509_p9 }
  0xf3   : > { %v7023_v15 = vpop.eup %7022 }
  0xf4   : > { %v7025_v16 = vpop.eup %7024  ;;  %v1834_v17 = vadd.f32 1.0, %v7023_v15  ;;  %v1837_v25 = vmul.f32 -0.5, %v7023_v15  ;;  %v1840_v39 = vand.u32 2147483647, %v7023_v15 }
  0xf5   : > { %v1825_v19 = vadd.f32 1.0, %v7025_v16  ;;  %v7027_v20 = vpop.eup %7026  ;;  %v1828_v28 = vmul.f32 -0.5, %v7025_v16  ;;  %v1831_v43 = vand.u32 2147483647, %v7025_v16 }
  0xf6   : > { %7036 = vlog2.f32 %v1834_v17  ;;  %v7029_v21 = vpop.eup %7028  ;;  %v1852_v22 = vadd.f32 1.0, %v7027_v20  ;;  %v1855_v33 = vmul.f32 -0.5, %v7027_v20  ;;  %v1838_v36 = vadd.f32 1.0, %v1837_v25 }
  0xf7   : > { %7038 = vlog2.f32 %v1825_v19  ;;  %v9050_v23 = vpop.eup %7030  ;;  %v1843_v24 = vadd.f32 1.0, %v7029_v21  ;;  %v1846_v37 = vmul.f32 -0.5, %v7029_v21  ;;  %v1829_v41 = vadd.f32 1.0, %v1828_v28  ;;  %v640_v19 = vld [vmem:[%s9016_s28 + $0x1f8] sm:$0xff] }
  0xf8   : > { %7040 = vpow2.f32 %v1145_v18  ;;  %v1798_v26 = vadd.f32 1.0, %v9050_v23  ;;  %v9056_v31 = vpop.eup %7032  ;;  %v1856_v47 = vadd.f32 1.0, %v1855_v33  ;;  %v1858_v48 = vand.u32 2147483647, %v7027_v20  ;;  %v634_v33 = vld [vmem:[%s9016_s28 + $0x1c8] sm:$0xff] }
  0xf9   : > { %7042 = vlog2.f32 %v1852_v22  ;;  %v9061_v38 = vpop.eup %7034  ;;  %v1789_v46 = vadd.f32 1.0, %v9056_v31  ;;  %v1801_v49 = vmul.f32 -0.5, %v9050_v23  ;;  %v1839_v50 = vmul.f32 %v7023_v15, %v1838_v36 }
  0xfa   : > { %7044 = vlog2.f32 %v1843_v24  ;;  %v1847_v51 = vadd.f32 1.0, %v1846_v37  ;;  %v1849_v52 = vand.u32 2147483647, %v7029_v21  ;;  %v1816_v54 = vadd.f32 1.0, %v9061_v38 }
  0xfb   : > { %7046 = vlog2.f32 %v1798_v26  ;;  %vm9075_vm0 = vcmp.lt.f32.partialorder %v1840_v39, 0.0004427343  ;;  %v1830_v57 = vmul.f32 %v7025_v16, %v1829_v41  ;;  %vm9082_vm1 = vcmp.lt.f32.partialorder %v1831_v43, 0.0004427343  ;;  %v639_v26 = vld [vmem:[%s9016_s28 + $0x1f0] sm:$0xff] }
  0xfc   : > { %7048 = vpow2.f32 %v1135_v34  ;;  %v1804_v62 = vand.u32 2147483647, %v9050_v23  ;;  %v1857_v1 = vmul.f32 %v7027_v20, %v1856_v47  ;;  %vm9089_vm2 = vcmp.lt.f32.partialorder %v1858_v48, 0.0004427343 }
  0xfd   : > { %7050 = vpow2.f32 %v1133_v42  ;;  %v1802_v3 = vadd.f32 1.0, %v1801_v49  ;;  %v1848_v7 = vmul.f32 %v7029_v21, %v1847_v51  ;;  %vm9096_vm3 = vcmp.lt.f32.partialorder %v1849_v52, 0.0004427343 }
  0xfe   : > { %7052 = vlog2.f32 %v1789_v46  ;;  %vm9105_vm4 = vcmp.lt.f32.partialorder %v1804_v62, 0.0004427343  ;;  %v1792_v30 = vmul.f32 -0.5, %v9056_v31  ;;  %v6060_v37 = vmul.f32 %v9059_v35, %v9059_v35 }
  0xff   : > { %7054 = vlog2.f32 %v1816_v54  ;;  %v1803_v21 = vmul.f32 %v9050_v23, %v1802_v3  ;;  %v1819_v41 = vmul.f32 -0.5, %v9061_v38  ;;  %v6059_v42 = vmul.f32 %v9063_v40, %v9063_v40 }
 0x100   : > { %v6062_v46 = vmul.f32 %v9065_v44, %v9065_v44  ;;  %v1793_v47 = vadd.f32 1.0, %v1792_v30  ;;  %v1795_v49 = vand.u32 2147483647, %v9056_v31  ;;  %v1822_v51 = vand.u32 2147483647, %v9061_v38 }
 0x101   : > { %v6187_v54 = vmul.f32 0.5, %v6059_v42 }
 0x102   : > { %v1794_v62 = vmul.f32 %v9056_v31, %v1793_v47  ;;  %vm1796_vm5 = vcmp.lt.f32.partialorder %v1795_v49, 0.0004427343  ;;  %vm9167_vm6 = vcmp.lt.f32.partialorder %v1822_v51, 0.0004427343 }
 0x103   : > { %v7037_v55 = vpop.eup %7036 }
 0x104   : > { %v7039_v59 = vpop.eup %7038  ;;  %v1836_v60 = vmul.f32 0.6931472, %v7037_v55  ;;  %v6061_v55 = vmul.f32 %v9067_v45, %v9067_v45 }
 0x105   : > { %v9087_v63 = vpop.eup %7040  ;;  %v1827_v0 = vmul.f32 0.6931472, %v7039_v59 }
 0x106   : > { %v7043_v4 = vpop.eup %7042  ;;  %v1842_v6 = vsel %vm9075_vm0, %v1839_v50, %v1836_v60  ;;  %v1807_v22 = vadd.f32 1.0, %v9087_v63  ;;  %v6188_v50 = vmul.f32 0.5, %v6060_v37  ;;  %v6190_v60 = vmul.f32 0.5, %v6062_v46 }
 0x107   : > { %v7045_v9 = vpop.eup %7044  ;;  %v2509_v10 = vmul.f32 %v1842_v6, %v9059_v35  ;;  %7056 = vlog2.f32 %v1842_v6  ;;  %v1833_v12 = vsel %vm9082_vm1, %v1830_v57, %v1827_v0  ;;  %v1854_v13 = vmul.f32 0.6931472, %v7043_v4  ;;  %v760_v57 = vld [vmem:[%s9023_s13 + $0x1b8] sm:$0xff]  ;;  %v862_v0 = vld [vmem:[%s9026_s3 + $0xe8] sm:$0xff] }
 0x108   : > { %v2508_v14 = vmul.f32 %v1833_v12, %v9063_v40  ;;  %7058 = vlog2.f32 %v1833_v12  ;;  %v1845_v15 = vmul.f32 0.6931472, %v7045_v9  ;;  %v7047_v17 = vpop.eup %7046  ;;  %v1820_v40 = vadd.f32 1.0, %v1819_v41 }
 0x109   : > { %v9109_v18 = vadd.f32 %v2509_v10, %v638_v5  ;;  %v1860_v20 = vsel %vm9089_vm2, %v1857_v1, %v1854_v13  ;;  %v1800_v29 = vmul.f32 0.6931472, %v7047_v17  ;;  %v9133_v36 = vpop.eup %7048  ;;  %v1810_v1 = vmul.f32 -0.5, %v9087_v63 }
 0x10a   : > { %v9116_v24 = vadd.f32 %v2508_v14, %v637_v11  ;;  %v2511_v25 = vmul.f32 %v1860_v20, %v9065_v44  ;;  %7060 = vlog2.f32 %v1860_v20  ;;  %v1851_v27 = vsel %vm9096_vm3, %v1848_v7, %v1845_v15  ;;  %v9143_v43 = vpop.eup %7050  ;;  %v633_v20 = vld [vmem:[%s9016_s28 + $0x1c0] sm:$0xff] }
 0x10b   : > { %2730 = vmatprep.subr.mxu0 %v9109_v18  ;;  %v2510_v28 = vmul.f32 %v1851_v27, %v9067_v45  ;;  %7062 = vlog2.f32 %v1851_v27  ;;  %v1806_v34 = vsel %vm9105_vm4, %v1803_v21, %v1800_v29  ;;  %v7053_v48 = vpop.eup %7052  ;;  %v9155_v44 = vunpack.c.l.bf16 %v9072_v53  ;;  %v636_v27 = vld [vmem:[%s9016_s28 + $0x1d8] sm:$0xff] }
 0x10c   : > { %2731 = vmatpush1.xpose.msra.mxu0 %v9116_v24  ;;  %v9125_v23 = vadd.f32 %v2511_v25, %v640_v19  ;;  %v2505_v39 = vmul.f32 %v1806_v34, %v9080_v58  ;;  %7064 = vlog2.f32 %v1807_v22  ;;  %v7055_v52 = vpop.eup %7054  ;;  %v1762_v56 = vadd.f32 1.0, %v9133_v36 }
 0x10d   : > { %v9128_v32 = vadd.f32 %v2510_v28, %v639_v26  ;;  %7066 = vlog2.f32 %v1806_v34  ;;  %v1791_v61 = vmul.f32 0.6931472, %v7053_v48  ;;  %v6056_v4 = vmul.f32 %v9080_v58, %v9080_v58 }
 0x10e   : > { %2801 = vmatprep.subr.mxu1 %v9125_v23  ;;  %v9147_v35 = vadd.f32 %v2505_v39, %v634_v33  ;;  %v9164_v45 = vunpack.c.h.bf16 %v862_v0  ;;  %v1821_v5 = vmul.f32 %v9061_v38, %v1820_v40  ;;  %v1139_v7 = vmul.f32 1.442695, %v760_v57  ;;  %v635_v40 = vld [vmem:[%s9016_s28 + $0x1d0] sm:$0xff] }
 0x10f   : > { %2802 = vmatpush1.xpose.msra.mxu1 %v9128_v32  ;;  %v1818_v9 = vmul.f32 0.6931472, %v7055_v52  ;;  %7068 = vlog2.f32 %v1762_v56  ;;  %v1753_v10 = vadd.f32 1.0, %v9143_v43  ;;  %v1797_v13 = vsel %vm1796_vm5, %v1794_v62, %v1791_v61 }
 0x110   : > { %2732 = vmatprep.subr.mxu0 %v9147_v35  ;;  %v1811_v14 = vadd.f32 1.0, %v1810_v1  ;;  %v6189_v16 = vmul.f32 0.5, %v6061_v55  ;;  %v1813_v21 = vand.u32 2147483647, %v9087_v63  ;;  %7070 = vpow2.f32 %v1139_v7 }
 0x111   : > { %v2504_v26 = vmul.f32 %v1797_v13, %v9155_v44  ;;  %v1824_v28 = vsel %vm9167_vm6, %v1821_v5, %v1818_v9  ;;  %7072 = vlog2.f32 %v1753_v10  ;;  %v6184_v33 = vmul.f32 0.5, %v6056_v4 }
 0x112   : > { %v2507_v34 = vmul.f32 %v1824_v28, %v9164_v45  ;;  %v1812_v37 = vmul.f32 %v9087_v63, %v1811_v14  ;;  %7074 = vlog2.f32 %v1797_v13  ;;  %v955_v47 = vunpack.c.l.bf16 %v862_v0 }
 0x113   : > { %v9188_v42 = vadd.f32 %v2504_v26, %v633_v20  ;;  %7076 = vlog2.f32 %v1824_v28  ;;  %vm1814_vm7 = vcmp.lt.f32.partialorder %v1813_v21, 0.0004427343  ;;  %v1756_v55 = vmul.f32 -0.5, %v9143_v43 }
 0x114   : > { %v7057_v59 = vpop.eup %7056  ;;  %v9190_v46 = vadd.f32 %v2507_v34, %v636_v27  ;;  %v6058_v4 = vmul.f32 %v9164_v45, %v9164_v45  ;;  %v630_v45 = vld [vmem:[%s9016_s28 + $0x1a8] sm:$0xff] }
 0x115   : > { %v7059_v2 = vpop.eup %7058  ;;  %v5738_v3 = vmul.f32 0.6931472, %v7057_v59  ;;  %2733 = vmatpush1.xpose.msra.mxu0 %v9188_v42  ;;  %v1768_v59 = vand.u32 2147483647, %v9133_v36  ;;  %v1757_v0 = vadd.f32 1.0, %v1756_v55  ;;  %v754_v27 = vld [vmem:[%s9023_s13 + $0x188] sm:$0xff] }
 0x116   : > { %v5736_v53 = vmul.f32 0.6931472, %v7059_v2  ;;  %2803 = vmatprep.subr.mxu1 %v9190_v46  ;;  %v6055_v2 = vmul.f32 %v9155_v44, %v9155_v44  ;;  %v6186_v13 = vmul.f32 0.5, %v6058_v4 }
 0x117   : > { %v7061_v31 = vpop.eup %7060  ;;  %v5932_v8 = vsub.f32 -0.9189385, %v5738_v3  ;;  %vm1769_vm8 = vcmp.lt.f32.partialorder %v1768_v59, 0.0004427343  ;;  %v1759_v3 = vand.u32 2147483647, %v9143_v43  ;;  %v1758_v10 = vmul.f32 %v9143_v43, %v1757_v0 }
 0x118   : > { %v7063_v11 = vpop.eup %7062  ;;  %v5931_v58 = vsub.f32 -0.9189385, %v5736_v53  ;;  %v5742_v12 = vmul.f32 0.6931472, %v7061_v31  ;;  %v859_v53 = vld [vmem:[%s9026_s3 + $0xd0] sm:$0xff]  ;;  %v6183_v44 = vmul.f32 0.5, %v6055_v2 }
 0x119   : > { %v9172_v15 = vsub.f32 %v5932_v8, %v6188_v50  ;;  %v5740_v38 = vmul.f32 0.6931472, %v7063_v11  ;;  %v7065_v22 = vpop.eup %7064  ;;  %v1765_v50 = vmul.f32 -0.5, %v9133_v36  ;;  %v950_v6 = vunpack.c.h.bf16 %v859_v53  ;;  %v759_v31 = vld [vmem:[%s9023_s13 + $0x1b0] sm:$0xff]  ;;  %v860_v59 = vld [vmem:[%s9026_s3 + $0xd8] sm:$0xff] }
 0x11a   : > { %v9174_v17 = vsub.f32 %v5931_v58, %v6187_v54  ;;  %v5934_v19 = vsub.f32 -0.9189385, %v5742_v12  ;;  %v7067_v29 = vpop.eup %7066  ;;  %v1809_v49 = vmul.f32 0.6931472, %v7065_v22  ;;  %v6057_v58 = vmul.f32 %v955_v47, %v955_v47 }
 0x11b   : > { %15836 = vst [vmem:[#allocation27_spill] sm:$0xff] %v9172_v15  ;;  %v5933_v25 = vsub.f32 -0.9189385, %v5740_v38  ;;  %v5730_v41 = vmul.f32 0.6931472, %v7067_v29  ;;  %v1766_v54 = vadd.f32 1.0, %v1765_v50  ;;  %v9216_v14 = vunpack.c.l.bf16 %v859_v53 }
 0x11c   : > { %15837 = vst [vmem:[#allocation28_spill] sm:$0xff] %v9174_v17  ;;  %v9182_v30 = vsub.f32 %v5934_v19, %v6190_v60  ;;  %v1815_v51 = vsel %vm1814_vm7, %v1812_v37, %v1809_v49  ;;  %v7069_v56 = vpop.eup %7068  ;;  %vm1760_vm9 = vcmp.lt.f32.partialorder %v1759_v3, 0.0004427343  ;;  %v1137_v38 = vmul.f32 1.442695, %v759_v31  ;;  %v632_v53 = vld [vmem:[%s9016_s28 + $0x1b8] sm:$0xff] }
 0x11d   : > { %v9186_v39 = vsub.f32 %v5933_v25, %v6189_v16  ;;  %v5928_v48 = vsub.f32 -0.9189385, %v5730_v41  ;;  %v2506_v52 = vmul.f32 %v1815_v51, %v955_v47  ;;  %7078 = vlog2.f32 %v1815_v51  ;;  %v9203_v60 = vpop.eup %7070 }
 0x11e   : > { %15838 = vst [vmem:[#allocation29_spill] sm:$0xff] %v9182_v30  ;;  %v1764_v61 = vmul.f32 0.6931472, %v7069_v56  ;;  %v1767_v62 = vmul.f32 %v9133_v36, %v1766_v54  ;;  %v7073_v1 = vpop.eup %7072  ;;  %v1780_v7 = vadd.f32 1.0, %v9203_v60  ;;  %v6185_v25 = vmul.f32 0.5, %v6057_v58 }
 0x11f   : > { %15839 = vst [vmem:[#allocation30_spill] sm:$0xff] %v9186_v39  ;;  %v9195_v63 = vsub.f32 %v5928_v48, %v6184_v33  ;;  %v9199_v57 = vadd.f32 %v2506_v52, %v635_v40  ;;  %v7075_v5 = vpop.eup %7074  ;;  %v1755_v9 = vmul.f32 0.6931472, %v7073_v1  ;;  %v629_v33 = vld [vmem:[%s9016_s28 + $0x1a0] sm:$0xff]  ;;  %v1127_v41 = vmul.f32 1.442695, %v754_v27 }
 0x120   : > { %v7077_v8 = vpop.eup %7076  ;;  %v1770_v36 = vsel %vm1769_vm8, %v1767_v62, %v1764_v61  ;;  %v5728_v11 = vmul.f32 0.6931472, %v7075_v5  ;;  %7080 = vlog2.f32 %v1780_v7  ;;  %v1783_v49 = vmul.f32 -0.5, %v9203_v60  ;;  %v857_v27 = vld [vmem:[%s9026_s3 + $0xc0] sm:$0xff] }
 0x121   : > { %15840 = vst [vmem:[#allocation31_spill] sm:$0xff] %v9195_v63  ;;  %2804 = vmatpush1.xpose.msra.mxu1 %v9199_v57  ;;  %v5734_v12 = vmul.f32 0.6931472, %v7077_v8  ;;  %v2501_v19 = vmul.f32 %v1770_v36, %v950_v6  ;;  %7082 = vlog2.f32 %v1770_v36  ;;  %v9218_v21 = vsel %vm1760_vm9, %v1758_v10, %v1755_v9  ;;  %v753_v36 = vld [vmem:[%s9023_s13 + $0x180] sm:$0xff]  ;;  %v756_v9 = vld [vmem:[%s9023_s13 + $0x198] sm:$0xff] }
 0x122   : > { %v5927_v16 = vsub.f32 -0.9189385, %v5728_v11  ;;  %v2500_v34 = vmul.f32 %v9218_v21, %v9216_v14  ;;  %7084 = vpow2.f32 %v1137_v38  ;;  %v6052_v50 = vmul.f32 %v950_v6, %v950_v6 }
 0x123   : > { %v5930_v20 = vsub.f32 -0.9189385, %v5734_v12  ;;  %v9222_v26 = vadd.f32 %v2501_v19, %v630_v45  ;;  %7086 = vpow2.f32 %v1127_v41  ;;  %v1784_v51 = vadd.f32 1.0, %v1783_v49  ;;  %v755_v19 = vld [vmem:[%s9023_s13 + $0x190] sm:$0xff] }
 0x124   : > { %v9220_v22 = vsub.f32 %v5927_v16, %v6183_v44  ;;  %v9231_v47 = vadd.f32 %v2500_v34, %v629_v33  ;;  %v6180_v56 = vmul.f32 0.5, %v6052_v50  ;;  %v1786_v0 = vand.u32 2147483647, %v9203_v60  ;;  %v750_v34 = vld [vmem:[%s9023_s13 + $0x168] sm:$0xff]  ;;  %v631_v41 = vld [vmem:[%s9016_s28 + $0x1b0] sm:$0xff] }
 0x125   : > { %v9225_v28 = vsub.f32 %v5930_v20, %v6186_v13  ;;  %2734 = vmatprep.subr.mxu0 %v9222_v26  ;;  %v1785_v62 = vmul.f32 %v9203_v60, %v1784_v51  ;;  %v9240_v2 = vunpack.c.h.bf16 %v860_v59  ;;  %v1125_v44 = vmul.f32 1.442695, %v753_v36 }
 0x126   : > { %15841 = vst [vmem:[#allocation32_spill] sm:$0xff] %v9220_v22  ;;  %2735 = vmatpush1.xpose.msra.mxu0 %v9231_v47  ;;  %vm1787_vm10 = vcmp.lt.f32.partialorder %v1786_v0, 0.0004427343  ;;  %v1131_v12 = vmul.f32 1.442695, %v756_v9  ;;  %v951_v20 = vunpack.c.l.bf16 %v860_v59  ;;  %v946_v49 = vunpack.c.h.bf16 %v857_v27 }
 0x127   : > { %15842 = vst [vmem:[#allocation33_spill] sm:$0xff] %v9225_v28  ;;  %v1129_v33 = vmul.f32 1.442695, %v755_v19  ;;  %v1119_v51 = vmul.f32 1.442695, %v750_v34  ;;  %v2935_v34 = vmul.f32 %v9109_v18, %v9109_v18 }
 0x129   : > { %v3319_v18 = vmul.f32 81377.4, %v2935_v34 }
 0x12a   : > { %v7079_v43 = vpop.eup %7078 }
 0x12b   : > { %v5732_v29 = vmul.f32 0.6931472, %v7079_v43 }
 0x12d   : > { %v5929_v37 = vsub.f32 -0.9189385, %v5732_v29  ;;  %v7081_v40 = vpop.eup %7080 }
 0x12e   : > { %v7083_v52 = vpop.eup %7082  ;;  %v1782_v61 = vmul.f32 0.6931472, %v7081_v40 }
 0x12f   : > { %v9233_v48 = vsub.f32 %v5929_v37, %v6185_v25  ;;  %v7085_v54 = vpop.eup %7084  ;;  %v5722_v55 = vmul.f32 0.6931472, %v7083_v52 }
 0x130   : > { %v1771_v3 = vadd.f32 1.0, %v7085_v54  ;;  %v9245_v5 = vsel %vm1787_vm10, %v1785_v62, %v1782_v61  ;;  %v7087_v6 = vpop.eup %7086  ;;  %v1774_v8 = vmul.f32 -0.5, %v7085_v54  ;;  %v1777_v58 = vand.u32 2147483647, %v7085_v54 }
 0x131   : > { %15843 = vst [vmem:[#allocation34_spill] sm:$0xff] %v9233_v48  ;;  %v5924_v1 = vsub.f32 -0.9189385, %v5722_v55  ;;  %v2503_v7 = vmul.f32 %v9245_v5, %v9240_v2  ;;  %v1726_v60 = vadd.f32 1.0, %v7087_v6  ;;  %v1729_v11 = vmul.f32 -0.5, %v7087_v6  ;;  %v854_v48 = vld [vmem:[%s9026_s3 + $0xa8] sm:$0xff] }
 0x132   : > { %7088 = vlog2.f32 %v1771_v3  ;;  %v1775_v10 = vadd.f32 1.0, %v1774_v8  ;;  %vm1778_vm11 = vcmp.lt.f32.partialorder %v1777_v58, 0.0004427343  ;;  %v1732_v16 = vand.u32 2147483647, %v7087_v6 }
 0x133   : > { %v9242_v4 = vsub.f32 %v5924_v1, %v6180_v56  ;;  %v9249_v31 = vadd.f32 %v2503_v7, %v632_v53  ;;  %7090 = vlog2.f32 %v1726_v60  ;;  %v1730_v45 = vadd.f32 1.0, %v1729_v11  ;;  %v749_v56 = vld [vmem:[%s9023_s13 + $0x160] sm:$0xff] }
 0x134   : > { %v1776_v13 = vmul.f32 %v7085_v54, %v1775_v10  ;;  %7092 = vpow2.f32 %v1125_v44  ;;  %vm1733_vm12 = vcmp.lt.f32.partialorder %v1732_v16, 0.0004427343  ;;  %v626_v54 = vld [vmem:[%s9016_s28 + $0x188] sm:$0xff]  ;;  %v1117_v62 = vmul.f32 1.442695, %v749_v56 }
 0x135   : > { %15844 = vst [vmem:[#allocation35_spill] sm:$0xff] %v9242_v4  ;;  %2805 = vmatprep.subr.mxu1 %v9249_v31  ;;  %7094 = vpow2.f32 %v1131_v12  ;;  %v1731_v29 = vmul.f32 %v7087_v6, %v1730_v45  ;;  %v6053_v53 = vmul.f32 %v951_v20, %v951_v20  ;;  %v6048_v60 = vmul.f32 %v946_v49, %v946_v49  ;;  %v620_v4 = vld [vmem:[%s9016_s28 + $0x158] sm:$0xff] }
 0x137   : > { %v6181_v10 = vmul.f32 0.5, %v6053_v53 }
 0x13f   : > { %v7089_v38 = vpop.eup %7088 }
 0x140   : > { %v1773_v43 = vmul.f32 0.6931472, %v7089_v38  ;;  %v7091_v37 = vpop.eup %7090 }
 0x141   : > { %v1728_v40 = vmul.f32 0.6931472, %v7091_v37  ;;  %v7093_v0 = vpop.eup %7092 }
 0x142   : > { %v1779_v25 = vsel %vm1778_vm11, %v1776_v13, %v1773_v43  ;;  %v7095_v1 = vpop.eup %7094  ;;  %v1717_v3 = vadd.f32 1.0, %v7093_v0  ;;  %v1720_v8 = vmul.f32 -0.5, %v7093_v0  ;;  %v6176_v13 = vmul.f32 0.5, %v6048_v60 }
 0x143   : > { %v2502_v50 = vmul.f32 %v1779_v25, %v951_v20  ;;  %7096 = vlog2.f32 %v1779_v25  ;;  %v1734_v55 = vsel %vm1733_vm12, %v1731_v29, %v1728_v40  ;;  %v1744_v6 = vadd.f32 1.0, %v7095_v1 }
 0x144   : > { %7098 = vpow2.f32 %v1129_v33  ;;  %v2497_v59 = vmul.f32 %v1734_v55, %v946_v49  ;;  %v1721_v45 = vadd.f32 1.0, %v1720_v8  ;;  %v1723_v20 = vand.u32 2147483647, %v7093_v0  ;;  %v752_v49 = vld [vmem:[%s9023_s13 + $0x178] sm:$0xff] }
 0x145   : > { %v9258_v52 = vadd.f32 %v2502_v50, %v631_v41  ;;  %7100 = vlog2.f32 %v1734_v55  ;;  %v1747_v43 = vmul.f32 -0.5, %v7095_v1  ;;  %v945_v40 = vunpack.c.l.bf16 %v857_v27 }
 0x146   : > { %7102 = vpow2.f32 %v1119_v51  ;;  %v9263_v61 = vadd.f32 %v2497_v59, %v626_v54  ;;  %v1722_v37 = vmul.f32 %v7093_v0, %v1721_v45  ;;  %vm1724_vm13 = vcmp.lt.f32.partialorder %v1723_v20, 0.0004427343 }
 0x147   : > { %2806 = vmatpush1.xpose.msra.mxu1 %v9258_v52  ;;  %7104 = vpow2.f32 %v1117_v62  ;;  %v1748_v51 = vadd.f32 1.0, %v1747_v43  ;;  %v2934_v54 = vmul.f32 %v9116_v24, %v9116_v24  ;;  %v1750_v56 = vand.u32 2147483647, %v7095_v1  ;;  %v751_v43 = vld [vmem:[%s9023_s13 + $0x170] sm:$0xff] }
 0x148   : > { %2736 = vmatprep.subr.mxu0 %v9263_v61  ;;  %7106 = vlog2.f32 %v1717_v3  ;;  %v1123_v59 = vmul.f32 1.442695, %v752_v49  ;;  %v3063_v62 = vmul.f32 0.5, %v2935_v34  ;;  %v625_v3 = vld [vmem:[%s9016_s28 + $0x180] sm:$0xff]  ;;  %v3447_v34 = vsub.f32 4.387914, %v3319_v18 }
 0x149   : > { %7108 = vlog2.f32 %v1744_v6  ;;  %v1749_v27 = vmul.f32 %v7095_v1, %v1748_v51  ;;  %v9288_v24 = vmul.f32 0.5, %v2934_v54  ;;  %vm1751_vm14 = vcmp.lt.f32.partialorder %v1750_v56, 0.0004427343  ;;  %v628_v1 = vld [vmem:[%s9016_s28 + $0x198] sm:$0xff] }
 0x14a   : > { %v2936_v51 = vmul.f32 %v9128_v32, %v9128_v32  ;;  %v6047_v18 = vmul.f32 %v945_v40, %v945_v40 }
 0x150   : > { %v7097_v7 = vpop.eup %7096 }
 0x151   : > { %v9266_v36 = vpop.eup %7098  ;;  %v5724_v9 = vmul.f32 0.6931472, %v7097_v7  ;;  %v858_v7 = vld [vmem:[%s9026_s3 + $0xc8] sm:$0xff] }
 0x152   : > { %v7101_v11 = vpop.eup %7100  ;;  %v1735_v38 = vadd.f32 1.0, %v9266_v36  ;;  %v1738_v53 = vmul.f32 -0.5, %v9266_v36  ;;  %v9317_v32 = vunpack.c.l.bf16 %v858_v7 }
 0x153   : > { %v9268_v44 = vpop.eup %7102  ;;  %v5925_v58 = vsub.f32 -0.9189385, %v5724_v9  ;;  %v5714_v12 = vmul.f32 0.6931472, %v7101_v11  ;;  %v9290_v9 = vunpack.c.h.bf16 %v858_v7  ;;  %v627_v7 = vld [vmem:[%s9016_s28 + $0x190] sm:$0xff] }
 0x154   : > { %v9273_v25 = vpop.eup %7104  ;;  %7110 = vlog2.f32 %v1735_v38  ;;  %v1690_v29 = vadd.f32 1.0, %v9268_v44  ;;  %v1693_v60 = vmul.f32 -0.5, %v9268_v44  ;;  %v1739_v38 = vadd.f32 1.0, %v1738_v53  ;;  %v855_v53 = vld [vmem:[%s9026_s3 + $0xb0] sm:$0xff] }
 0x155   : > { %v9271_v16 = vsub.f32 %v5925_v58, %v6181_v10  ;;  %v5920_v19 = vsub.f32 -0.9189385, %v5714_v12  ;;  %v1681_v41 = vadd.f32 1.0, %v9273_v25  ;;  %v7107_v50 = vpop.eup %7106  ;;  %v3318_v10 = vmul.f32 81377.4, %v2934_v54 }
 0x156   : > { %7112 = vlog2.f32 %v1690_v29  ;;  %v1719_v55 = vmul.f32 0.6931472, %v7107_v50  ;;  %v7109_v8 = vpop.eup %7108  ;;  %v1684_v12 = vmul.f32 -0.5, %v9273_v25  ;;  %v1694_v20 = vadd.f32 1.0, %v1693_v60 }
 0x157   : > { %15845 = vst [vmem:[#allocation36_spill] sm:$0xff] %v9271_v16  ;;  %v9276_v33 = vsub.f32 %v5920_v19, %v6176_v13  ;;  %7114 = vlog2.f32 %v1681_v41  ;;  %v1746_v58 = vmul.f32 0.6931472, %v7109_v8  ;;  %v2937_v13 = vmul.f32 %v9125_v23, %v9125_v23 }
 0x158   : > { %v1725_v0 = vsel %vm1724_vm13, %v1722_v37, %v1719_v55  ;;  %v1741_v19 = vand.u32 2147483647, %v9266_v36  ;;  %v3191_v29 = vsub.f32 -1.6120857, %v3063_v62  ;;  %v1696_v41 = vand.u32 2147483647, %v9268_v44 }
 0x159   : > { %15846 = vst [vmem:[#allocation37_spill] sm:$0xff] %v9276_v33  ;;  %v2496_v6 = vmul.f32 %v1725_v0, %v945_v40  ;;  %7116 = vlog2.f32 %v1725_v0  ;;  %v1752_v45 = vsel %vm1751_vm14, %v1749_v27, %v1746_v58  ;;  %v3190_v50 = vsub.f32 -1.6120857, %v9288_v24  ;;  %v621_v0 = vld [vmem:[%s9016_s28 + $0x160] sm:$0xff] }
 0x15a   : > { %7118 = vpow2.f32 %v1123_v59  ;;  %v2499_v37 = vmul.f32 %v1752_v45, %v9290_v9  ;;  %v3446_v23 = vsub.f32 4.387914, %v3318_v10  ;;  %v1685_v54 = vadd.f32 1.0, %v1684_v12 }
 0x15b   : > { %v9292_v11 = vadd.f32 %v2496_v6, %v625_v3  ;;  %7120 = vlog2.f32 %v1752_v45  ;;  %v1687_v56 = vand.u32 2147483647, %v9273_v25  ;;  %v1121_v59 = vmul.f32 1.442695, %v751_v43 }
 0x15c   : > { %v9306_v55 = vadd.f32 %v2499_v37, %v628_v1  ;;  %v1740_v3 = vmul.f32 %v9266_v36, %v1739_v38  ;;  %vm9310_vm15 = vcmp.lt.f32.partialorder %v1741_v19, 0.0004427343  ;;  %v1695_v6 = vmul.f32 %v9268_v44, %v1694_v20 }
 0x15d   : > { %2737 = vmatpush1.xpose.msra.mxu0 %v9292_v11  ;;  %vm1697_vm0 = vcmp.lt.f32.partialorder %v1696_v41, 0.0004427343  ;;  %v9319_v24 = vmax.f32 %v3191_v29, %v3447_v34  ;;  %v3065_v40 = vmul.f32 0.5, %v2937_v13  ;;  %v9321_v36 = vunpack.c.h.bf16 %v855_v53 }
 0x15e   : > { %2807 = vmatprep.subr.mxu1 %v9306_v55  ;;  %v1686_v10 = vmul.f32 %v9273_v25, %v1685_v54  ;;  %v3703_v58 = vmin.f32 %v3191_v29, %v3447_v34  ;;  %v3321_v12 = vmul.f32 81377.4, %v2937_v13  ;;  %vm9324_vm1 = vcmp.lt.f32.partialorder %v1687_v56, 0.0004427343  ;;  %v622_v34 = vld [vmem:[%s9016_s28 + $0x168] sm:$0xff] }
 0x15f   : > { %15849 = vst [vmem:[#allocation38_spill] sm:$0xff] %v9319_v24  ;;  %7122 = vpow2.f32 %v1121_v59  ;;  %v941_v38 = vunpack.c.l.bf16 %v855_v53  ;;  %v9331_v43 = vmax.f32 %v3190_v50, %v3446_v23  ;;  %v3064_v25 = vmul.f32 0.5, %v2936_v51  ;;  %v746_v53 = vld [vmem:[%s9023_s13 + $0x148] sm:$0xff] }
 0x160   : > { %v6175_v29 = vmul.f32 0.5, %v6047_v18  ;;  %v3702_v56 = vmin.f32 %v3190_v50, %v3446_v23  ;;  %v3193_v59 = vsub.f32 -1.6120857, %v3065_v40  ;;  %v6050_v44 = vmul.f32 %v9290_v9, %v9290_v9 }
 0x161   : > { %v7111_v49 = vpop.eup %7110  ;;  %15852 = vst [vmem:[#allocation39_spill] sm:$0xff] %v9331_v43  ;;  %v1111_v40 = vmul.f32 1.442695, %v746_v53 }
 0x162   : > { %v1737_v27 = vmul.f32 0.6931472, %v7111_v49  ;;  %v3830_v9 = vsub.f32 %v3702_v56, %v9331_v43 }
 0x163   : > { %v7113_v62 = vpop.eup %7112 }
 0x164   : > { %v1692_v60 = vmul.f32 0.6931472, %v7113_v62  ;;  %v7115_v8 = vpop.eup %7114  ;;  %v1743_v1 = vsel %vm9310_vm15, %v1740_v3, %v1737_v27  ;;  %v3320_v62 = vmul.f32 81377.4, %v2936_v51 }
 0x165   : > { %v1683_v19 = vmul.f32 0.6931472, %v7115_v8  ;;  %v2498_v13 = vmul.f32 %v1743_v1, %v9317_v32  ;;  %7124 = vlog2.f32 %v1743_v1  ;;  %v2931_v8 = vmul.f32 %v9147_v35, %v9147_v35 }
 0x166   : > { %v1698_v45 = vsel %vm1697_vm0, %v1695_v6, %v1692_v60  ;;  %v7117_v20 = vpop.eup %7116  ;;  %v3449_v60 = vsub.f32 4.387914, %v3321_v12  ;;  %v3448_v12 = vsub.f32 4.387914, %v3320_v62  ;;  %v3831_v35 = vsub.f32 %v3703_v58, %v9319_v24 }
 0x167   : > { %v9335_v37 = vpop.eup %7118  ;;  %v5712_v41 = vmul.f32 0.6931472, %v7117_v20  ;;  %v2493_v49 = vmul.f32 %v1698_v45, %v9321_v36  ;;  %v1689_v54 = vsel %vm9324_vm1, %v1686_v10, %v1683_v19  ;;  %v9340_v3 = vadd.f32 %v2498_v13, %v627_v7 }
 0x168   : > { %7126 = vlog2.f32 %v1698_v45  ;;  %v2492_v27 = vmul.f32 %v1689_v54, %v941_v38  ;;  %v1708_v50 = vadd.f32 1.0, %v9335_v37  ;;  %v3192_v10 = vsub.f32 -1.6120857, %v3064_v25  ;;  %v7121_v7 = vpop.eup %7120 }
 0x169   : > { %v5919_v18 = vsub.f32 -0.9189385, %v5712_v41  ;;  %v9344_v6 = vadd.f32 %v2493_v49, %v622_v34  ;;  %2808 = vmatpush1.xpose.msra.mxu1 %v9340_v3  ;;  %7128 = vlog2.f32 %v1689_v54  ;;  %v3059_v1 = vmul.f32 0.5, %v2931_v8 }
 0x16a   : > { %v9355_v51 = vadd.f32 %v2492_v27, %v621_v0  ;;  %7130 = vlog2.f32 %v1708_v50  ;;  %v3315_v45 = vmul.f32 81377.4, %v2931_v8  ;;  %v5718_v19 = vmul.f32 0.6931472, %v7121_v7 }
 0x16b   : > { %v9352_v23 = vsub.f32 %v5919_v18, %v6175_v29  ;;  %2738 = vmatprep.subr.mxu0 %v9344_v6  ;;  %v6178_v20 = vmul.f32 0.5, %v6050_v44  ;;  %v9360_v29 = vmax.f32 %v3193_v59, %v3449_v60  ;;  %7132 = vpow2.f32 %v1111_v40 }
 0x16c   : > { %2739 = vmatpush1.xpose.msra.mxu0 %v9355_v51  ;;  %v3705_v13 = vmin.f32 %v3193_v59, %v3449_v60  ;;  %v9362_v34 = vmax.f32 %v3192_v10, %v3448_v12  ;;  %v3704_v25 = vmin.f32 %v3192_v10, %v3448_v12  ;;  %v5922_v41 = vsub.f32 -0.9189385, %v5718_v19  ;;  %v9364_v49 = vpop.eup %7122 }
 0x16d   : > { %15853 = vst [vmem:[#allocation40_spill] sm:$0xff] %v9352_v23  ;;  %15854 = vst [vmem:[#allocation41_spill] sm:$0xff] %v9360_v29  ;;  %v4020_v54 = vmul.f32 1.442695, %v3831_v35  ;;  %v6049_v58 = vmul.f32 %v9317_v32, %v9317_v32  ;;  %v1711_v56 = vmul.f32 -0.5, %v9335_v37  ;;  %v6044_v59 = vmul.f32 %v9321_v36, %v9321_v36 }
 0x16e   : > { %15855 = vst [vmem:[#allocation42_spill] sm:$0xff] %v9362_v34  ;;  %v4018_v62 = vmul.f32 1.442695, %v3830_v9  ;;  %v3187_v0 = vsub.f32 -1.6120857, %v3059_v1  ;;  %v9369_v18 = vsub.f32 %v5922_v41, %v6178_v20  ;;  %v3833_v60 = vsub.f32 %v3705_v13, %v9360_v29 }
 0x16f   : > { %v3443_v53 = vsub.f32 4.387914, %v3315_v45  ;;  %v3832_v8 = vsub.f32 %v3704_v25, %v9362_v34  ;;  %v6043_v44 = vmul.f32 %v941_v38, %v941_v38  ;;  %v1699_v50 = vadd.f32 1.0, %v9364_v49 }
 0x170   : > { %15856 = vst [vmem:[#allocation43_spill] sm:$0xff] %v9369_v18  ;;  %7134 = vpow2.f32 %v4020_v54  ;;  %v6177_v40 = vmul.f32 0.5, %v6049_v58  ;;  %v1712_v10 = vadd.f32 1.0, %v1711_v56  ;;  %v1714_v35 = vand.u32 2147483647, %v9335_v37  ;;  %v9382_v56 = vld [vmem:[%s9026_s3 + $0xb8] sm:$0xff] }
 0x171   : > { %7136 = vpow2.f32 %v4018_v62  ;;  %v9376_v7 = vmax.f32 %v3187_v0, %v3443_v53  ;;  %v3699_v36 = vmin.f32 %v3187_v0, %v3443_v53  ;;  %v6172_v45 = vmul.f32 0.5, %v6044_v59 }
 0x172   : > { %v7125_v27 = vpop.eup %7124  ;;  %v4024_v38 = vmul.f32 1.442695, %v3833_v60  ;;  %v4022_v20 = vmul.f32 1.442695, %v3832_v8  ;;  %v6171_v13 = vmul.f32 0.5, %v6043_v44  ;;  %7138 = vlog2.f32 %v1699_v50 }
 0x173   : > { %v5716_v32 = vmul.f32 0.6931472, %v7125_v27  ;;  %15857 = vst [vmem:[#allocation44_spill] sm:$0xff] %v9376_v7  ;;  %v1713_v62 = vmul.f32 %v9335_v37, %v1712_v10  ;;  %v745_v27 = vld [vmem:[%s9023_s13 + $0x140] sm:$0xff]  ;;  %v2930_v0 = vmul.f32 %v9188_v42, %v9188_v42  ;;  %v944_v53 = vunpack.c.h.bf16 %v9382_v56  ;;  %v624_v42 = vld [vmem:[%s9016_s28 + $0x178] sm:$0xff] }
 0x174   : > { %vm1715_vm2 = vcmp.lt.f32.partialorder %v1714_v35, 0.0004427343  ;;  %v3827_v60 = vsub.f32 %v3699_v36, %v9376_v7  ;;  %v1109_v37 = vmul.f32 1.442695, %v745_v27  ;;  %7140 = vpow2.f32 %v4024_v38 }
 0x175   : > { %v7127_v12 = vpop.eup %7126  ;;  %v5921_v9 = vsub.f32 -0.9189385, %v5716_v32  ;;  %v2933_v32 = vmul.f32 %v9190_v46, %v9190_v46  ;;  %7142 = vpow2.f32 %v4022_v20  ;;  %v3314_v35 = vmul.f32 81377.4, %v2930_v0 }
 0x176   : > { %v5706_v1 = vmul.f32 0.6931472, %v7127_v12  ;;  %v7129_v19 = vpop.eup %7128  ;;  %v3058_v12 = vmul.f32 0.5, %v2930_v0  ;;  %v4012_v36 = vmul.f32 1.442695, %v3827_v60  ;;  %v1702_v38 = vmul.f32 -0.5, %v9364_v49 }
 0x177   : > { %v7131_v25 = vpop.eup %7130  ;;  %v9379_v41 = vsub.f32 %v5921_v9, %v6177_v40  ;;  %v5704_v58 = vmul.f32 0.6931472, %v7129_v19  ;;  %v748_v19 = vld [vmem:[%s9023_s13 + $0x158] sm:$0xff]  ;;  %v2932_v0 = vmul.f32 %v9199_v57, %v9199_v57  ;;  %v9432_v43 = vunpack.c.l.bf16 %v9382_v56 }
 0x178   : > { %v5916_v54 = vsub.f32 -0.9189385, %v5706_v1  ;;  %v1710_v59 = vmul.f32 0.6931472, %v7131_v25  ;;  %v9392_v50 = vpop.eup %7132  ;;  %v6051_v1 = vmul.f32 %v9216_v14, %v9216_v14  ;;  %v3061_v25 = vmul.f32 0.5, %v2933_v32 }
 0x179   : > { %15858 = vst [vmem:[#allocation45_spill] sm:$0xff] %v9379_v41  ;;  %v5915_v44 = vsub.f32 -0.9189385, %v5704_v58  ;;  %v3442_v58 = vsub.f32 4.387914, %v3314_v35 }
 0x17a   : > { %v9390_v8 = vsub.f32 %v5916_v54, %v6172_v45  ;;  %v1716_v10 = vsel %vm1715_vm2, %v1713_v62, %v1710_v59  ;;  %v1654_v45 = vadd.f32 1.0, %v9392_v50  ;;  %v3186_v54 = vsub.f32 -1.6120857, %v3058_v12 }
 0x17b   : > { %v9396_v40 = vsub.f32 %v5915_v44, %v6171_v13  ;;  %v2495_v9 = vmul.f32 %v1716_v10, %v944_v53  ;;  %7144 = vlog2.f32 %v1716_v10  ;;  %v3317_v13 = vmul.f32 81377.4, %v2933_v32 }
 0x17c   : > { %15859 = vst [vmem:[#allocation46_spill] sm:$0xff] %v9390_v8  ;;  %7146 = vpow2.f32 %v1109_v37  ;;  %v1115_v14 = vmul.f32 1.442695, %v748_v19  ;;  %v9414_v59 = vmul.f32 0.5, %v6051_v1  ;;  %v3189_v60 = vsub.f32 -1.6120857, %v3061_v25 }
 0x17d   : > { %15860 = vst [vmem:[#allocation47_spill] sm:$0xff] %v9396_v40  ;;  %v9403_v46 = vadd.f32 %v2495_v9, %v624_v42  ;;  %7148 = vlog2.f32 %v1654_v45  ;;  %v9406_v20 = vpop.eup %7134  ;;  %v9418_v44 = vmul.f32 %v9240_v2, %v9240_v2  ;;  %v1703_v32 = vadd.f32 1.0, %v1702_v38  ;;  %v747_v37 = vld [vmem:[%s9023_s13 + $0x150] sm:$0xff] }
 0x17e   : > { %v9409_v62 = vpop.eup %7136  ;;  %v4706_v27 = vmul.f32 -0.5, %v9406_v20  ;;  %7150 = vpow2.f32 %v4012_v36  ;;  %v4703_v10 = vadd.f32 1.0, %v9406_v20  ;;  %v3445_v12 = vsub.f32 4.387914, %v3317_v13  ;;  %v623_v19 = vld [vmem:[%s9016_s28 + $0x170] sm:$0xff] }
 0x17f   : > { %2809 = vmatprep.subr.mxu1 %v9403_v46  ;;  %7152 = vpow2.f32 %v1115_v14  ;;  %v7139_v42 = vpop.eup %7138  ;;  %v1705_v35 = vand.u32 2147483647, %v9364_v49  ;;  %v1657_v9 = vmul.f32 -0.5, %v9392_v50  ;;  %v4694_v36 = vadd.f32 1.0, %v9409_v62 }
 0x180   : > { %v4697_v1 = vmul.f32 -0.5, %v9409_v62  ;;  %v9427_v45 = vmax.f32 %v3186_v54, %v3442_v58  ;;  %v4707_v2 = vadd.f32 1.0, %v4706_v27  ;;  %v3698_v25 = vmin.f32 %v3186_v54, %v3442_v58 }
 0x181   : > { %v3060_v38 = vmul.f32 0.5, %v2932_v0  ;;  %v6046_v14 = vmul.f32 %v944_v53, %v944_v53  ;;  %v1701_v29 = vmul.f32 0.6931472, %v7139_v42  ;;  %v1704_v13 = vmul.f32 %v9364_v49, %v1703_v32  ;;  %v9438_v27 = vpop.eup %7140 }
 0x182   : > { %15861 = vst [vmem:[#allocation48_spill] sm:$0xff] %v9427_v45  ;;  %v1113_v34 = vmul.f32 1.442695, %v747_v37  ;;  %7154 = vlog2.f32 %v4703_v10  ;;  %vm9434_vm3 = vcmp.lt.f32.partialorder %v1705_v35, 0.0004427343  ;;  %v1658_v24 = vadd.f32 1.0, %v1657_v9  ;;  %v9443_v49 = vpop.eup %7142 }
 0x183   : > { %15864 = vst [vmem:[#allocation49_spill] sm:$0xff] %v9438_v27  ;;  %7156 = vlog2.f32 %v4694_v36  ;;  %v9440_v54 = vmax.f32 %v3189_v60, %v3445_v12  ;;  %v3316_v53 = vmul.f32 81377.4, %v2932_v0  ;;  %v1660_v58 = vand.u32 2147483647, %v9392_v50  ;;  %15866 = vst [vmem:[#allocation51_spill] sm:$0xff] %v9443_v49 }
 0x184   : > { %v9446_v56 = vmul.f32 %v9406_v20, %v4707_v2  ;;  %v4698_v32 = vadd.f32 1.0, %v4697_v1  ;;  %v3826_v37 = vsub.f32 %v3698_v25, %v9427_v45  ;;  %v3701_v42 = vmin.f32 %v3189_v60, %v3445_v12  ;;  %v9456_v2 = vld [vmem:[%s9026_s3 + $0xa0] sm:$0xff] }
 0x185   : > { %15865 = vst [vmem:[#allocation50_spill] sm:$0xff] %v9440_v54  ;;  %v3188_v35 = vsub.f32 -1.6120857, %v3060_v38  ;;  %v6174_v9 = vmul.f32 0.5, %v6046_v14  ;;  %v1707_v36 = vsel %vm9434_vm3, %v1704_v13, %v1701_v29  ;;  %7158 = vpow2.f32 %v1113_v34 }
 0x186   : > { %15867 = vst [vmem:[#allocation52_spill] sm:$0xff] %v9446_v56  ;;  %v2494_v30 = vmul.f32 %v1707_v36, %v9432_v43  ;;  %7160 = vlog2.f32 %v1707_v36  ;;  %v1659_v1 = vmul.f32 %v9392_v50, %v1658_v24  ;;  %v3444_v60 = vsub.f32 4.387914, %v3316_v53 }
 0x187   : > { %v9460_v12 = vunpack.c.h.bf16 %v9456_v2  ;;  %vm9462_vm4 = vcmp.lt.f32.partialorder %v1660_v58, 0.0004427343  ;;  %v2927_v34 = vmul.f32 %v9222_v26, %v9222_v26  ;;  %v4721_v50 = vadd.f32 1.0, %v9438_v27 }
 0x188   : > { %v7145_v10 = vpop.eup %7144  ;;  %v9469_v14 = vadd.f32 %v2494_v30, %v623_v19  ;;  %v4724_v53 = vmul.f32 -0.5, %v9438_v27  ;;  %v4712_v58 = vadd.f32 1.0, %v9443_v49  ;;  %v4715_v45 = vmul.f32 -0.5, %v9443_v49  ;;  %v618_v30 = vld [vmem:[%s9016_s28 + $0x148] sm:$0xff] }
 0x189   : > { %v9452_v0 = vpop.eup %7146  ;;  %v5710_v7 = vmul.f32 0.6931472, %v7145_v10  ;;  %v3829_v10 = vsub.f32 %v3701_v42, %v9440_v54  ;;  %v3700_v19 = vmin.f32 %v3188_v35, %v3444_v60  ;;  %v4010_v42 = vmul.f32 1.442695, %v3826_v37 }
 0x18a   : > { %v7149_v25 = vpop.eup %7148  ;;  %v1645_v29 = vadd.f32 1.0, %v9452_v0  ;;  %2810 = vmatpush1.xpose.msra.mxu1 %v9469_v14  ;;  %v3055_v54 = vmul.f32 0.5, %v2927_v34  ;;  %v3311_v15 = vmul.f32 81377.4, %v2927_v34 }
 0x18b   : > { %v5918_v38 = vsub.f32 -0.9189385, %v5710_v7  ;;  %v1656_v13 = vmul.f32 0.6931472, %v7149_v25  ;;  %v9471_v24 = vpop.eup %7150  ;;  %v9486_v7 = vmax.f32 %v3188_v35, %v3444_v60  ;;  %v9496_v60 = vmul.f32 %v9409_v62, %v4698_v32 }
 0x18c   : > { %15870 = vst [vmem:[#allocation53_spill] sm:$0xff] %v9471_v24  ;;  %v9477_v36 = vpop.eup %7152  ;;  %7162 = vlog2.f32 %v1645_v29  ;;  %v1648_v29 = vmul.f32 -0.5, %v9452_v0  ;;  %v4670_v37 = vmul.f32 -0.5, %v9471_v24  ;;  %v9506_v32 = vadd.f32 1.0, %v4715_v45 }
 0x18d   : > { %v9480_v39 = vsub.f32 %v5918_v38, %v6174_v9  ;;  %v1662_v26 = vsel %vm9462_vm4, %v1659_v1, %v1656_v13  ;;  %15872 = vst [vmem:[#allocation55_spill] sm:$0xff] %v9486_v7  ;;  %v1672_v17 = vadd.f32 1.0, %v9477_v36  ;;  %v4725_v9 = vadd.f32 1.0, %v4724_v53  ;;  %15873 = vst [vmem:[#allocation56_spill] sm:$0xff] %v9496_v60 }
 0x18e   : > { %v2489_v25 = vmul.f32 %v1662_v26, %v9460_v12  ;;  %7164 = vlog2.f32 %v1662_v26  ;;  %v4016_v38 = vmul.f32 1.442695, %v3829_v10  ;;  %v4667_v1 = vadd.f32 1.0, %v9471_v24 }
 0x18f   : > { %15871 = vst [vmem:[#allocation54_spill] sm:$0xff] %v9480_v39  ;;  %7166 = vlog2.f32 %v4721_v50  ;;  %v7155_v35 = vpop.eup %7154  ;;  %v3828_v34 = vsub.f32 %v3700_v19, %v9486_v7  ;;  %v3183_v50 = vsub.f32 -1.6120857, %v3055_v54  ;;  %v3439_v53 = vsub.f32 4.387914, %v3311_v15  ;;  %v742_v15 = vld [vmem:[%s9023_s13 + $0x128] sm:$0xff] }
 0x190   : > { %v9490_v28 = vadd.f32 %v2489_v25, %v618_v30  ;;  %7168 = vlog2.f32 %v1672_v17  ;;  %v7157_v13 = vpop.eup %7156  ;;  %v6045_v10 = vmul.f32 %v9432_v43, %v9432_v43  ;;  %v9504_v17 = vmul.f32 %v9438_v27, %v4725_v9  ;;  %v617_v27 = vld [vmem:[%s9016_s28 + $0x140] sm:$0xff] }
 0x191   : > { %7170 = vlog2.f32 %v4712_v58  ;;  %v9511_v26 = vmul.f32 0.6931472, %v7155_v35  ;;  %v1649_v19 = vadd.f32 1.0, %v1648_v29  ;;  %v1675_v54 = vmul.f32 -0.5, %v9477_v36 }
 0x192   : > { %2740 = vmatprep.subr.mxu0 %v9490_v28  ;;  %7172 = vpow2.f32 %v4010_v42  ;;  %15874 = vst [vmem:[#allocation57_spill] sm:$0xff] %v9504_v17  ;;  %v9509_v30 = vpop.eup %7158  ;;  %v9515_v42 = vadd.f32 1.0, %v4670_v37  ;;  %v4014_v43 = vmul.f32 1.442695, %v3828_v34  ;;  %v1651_v9 = vand.u32 2147483647, %v9452_v0 }
 0x193   : > { %7174 = vpow2.f32 %v4016_v38  ;;  %15875 = vst [vmem:[#allocation58_spill] sm:$0xff] %v9511_v26  ;;  %v7161_v25 = vpop.eup %7160  ;;  %v1663_v45 = vadd.f32 1.0, %v9509_v30  ;;  %v9519_v57 = vmax.f32 %v3183_v50, %v3439_v53  ;;  %v3695_v38 = vmin.f32 %v3183_v50, %v3439_v53 }
 0x194   : > { %7176 = vlog2.f32 %v4667_v1  ;;  %v5708_v58 = vmul.f32 0.6931472, %v7161_v25  ;;  %v6173_v17 = vmul.f32 0.5, %v6045_v10  ;;  %v9521_v35 = vmul.f32 0.6931472, %v7157_v13 }
 0x195   : > { %v2926_v1 = vmul.f32 %v9231_v47, %v9231_v47  ;;  %7178 = vlog2.f32 %v1663_v45  ;;  %v1103_v29 = vmul.f32 1.442695, %v742_v15  ;;  %v15877_v37 = vand.u32 2147483647, %v9406_v20 }
 0x196   : > { %15876 = vst [vmem:[#allocation59_spill] sm:$0xff] %v9521_v35  ;;  %v15878_v34 = vmov 0  ;;  %v5917_v7 = vsub.f32 -0.9189385, %v5708_v58  ;;  %v6040_v50 = vmul.f32 %v9460_v12, %v9460_v12  ;;  %v1650_v53 = vmul.f32 %v9452_v0, %v1649_v19  ;;  %v741_v19 = vld [vmem:[%s9023_s13 + $0x120] sm:$0xff] }
 0x197   : > { %vm9527_vm5 = vcmp.lt.f32.partialorder %v15877_v37, 0.0004427343  ;;  %v1676_v13 = vadd.f32 1.0, %v1675_v54  ;;  %7180 = vlog2.f32 %v9218_v21  ;;  %v9536_v47 = vunpack.c.l.bf16 %v9456_v2 }
 0x198   : > { %v15879_v34 = vsel %vm9527_vm5, 4294967295, %v15878_v34  ;;  %vm9538_vm6 = vcmp.lt.f32.partialorder %v1651_v9, 0.0004427343  ;;  %v1678_v15 = vand.u32 2147483647, %v9477_v36  ;;  %v15884_v0 = vmov 0 }
 0x199   : > { %15880 = vst [vmem:[#allocation60_spill] sm:$0xff] %v15879_v34  ;;  %v7163_v10 = vpop.eup %7162  ;;  %v15883_v25 = vand.u32 2147483647, %v9409_v62  ;;  %7182 = vpow2.f32 %v4014_v43  ;;  %v3823_v21 = vsub.f32 %v3695_v38, %v9519_v57  ;;  %v9550_v2 = vsub.f32 %v5917_v7, %v6173_v17 }
 0x19a   : > { %v1647_v12 = vmul.f32 0.6931472, %v7163_v10  ;;  %v3054_v54 = vmul.f32 0.5, %v2926_v1  ;;  %v3310_v9 = vmul.f32 81377.4, %v2926_v1  ;;  %v1666_v45 = vmul.f32 -0.5, %v9509_v30 }
 0x19b   : > { %v7165_v58 = vpop.eup %7164  ;;  %vm9545_vm7 = vcmp.lt.f32.partialorder %v15883_v25, 0.0004427343  ;;  %15887 = vst [vmem:[#allocation62_spill] sm:$0xff] %v9550_v2  ;;  %7184 = vpow2.f32 %v1103_v29  ;;  %v6168_v25 = vmul.f32 0.5, %v6040_v50  ;;  %v1677_v7 = vmul.f32 %v9477_v36, %v1676_v13 }
 0x19c   : > { %v15885_v0 = vsel %vm9545_vm7, 4294967295, %v15884_v0  ;;  %v9554_v37 = vpop.eup %7166  ;;  %v5698_v62 = vmul.f32 0.6931472, %v7165_v58  ;;  %v1653_v43 = vsel %vm9538_vm6, %v1650_v53, %v1647_v12  ;;  %v9562_v10 = vunpack.c.h.bf16 %v854_v48  ;;  %v744_v58 = vld [vmem:[%s9023_s13 + $0x138] sm:$0xff] }
 0x19d   : > { %15886 = vst [vmem:[#allocation61_spill] sm:$0xff] %v15885_v0  ;;  %15888 = vst [vmem:[#allocation63_spill] sm:$0xff] %v9554_v37  ;;  %v7169_v17 = vpop.eup %7168  ;;  %v2488_v38 = vmul.f32 %v1653_v43, %v9536_v47  ;;  %vm9564_vm8 = vcmp.lt.f32.partialorder %v1678_v15, 0.0004427343  ;;  %v1101_v29 = vmul.f32 1.442695, %v741_v19  ;;  %7186 = vlog2.f32 %v1653_v43 }
 0x19e   : > { %v7171_v50 = vpop.eup %7170  ;;  %v4004_v37 = vmul.f32 1.442695, %v3823_v21  ;;  %v5912_v20 = vsub.f32 -0.9189385, %v5698_v62  ;;  %v1674_v53 = vmul.f32 0.6931472, %v7169_v17 }
 0x19f   : > { %v9569_v12 = vpop.eup %7172  ;;  %v3182_v36 = vsub.f32 -1.6120857, %v3054_v54  ;;  %v3438_v13 = vsub.f32 4.387914, %v3310_v9  ;;  %v9571_v63 = vadd.f32 %v2488_v38, %v617_v27  ;;  %v1667_v22 = vadd.f32 1.0, %v1666_v45  ;;  %v743_v62 = vld [vmem:[%s9023_s13 + $0x130] sm:$0xff] }
 0x1a0   : > { %v9573_v16 = vpop.eup %7174  ;;  %v9575_v15 = vsub.f32 %v5912_v20, %v6168_v25  ;;  %v1680_v19 = vsel %vm9564_vm8, %v1677_v7, %v1674_v53  ;;  %7188 = vpow2.f32 %v1101_v29  ;;  %v1107_v21 = vmul.f32 1.442695, %v744_v58 }
 0x1a1   : > { %15891 = vst [vmem:[#allocation64_spill] sm:$0xff] %v9573_v16  ;;  %v7177_v43 = vpop.eup %7176  ;;  %v4661_v17 = vmul.f32 -0.5, %v9569_v12  ;;  %2741 = vmatpush1.xpose.msra.mxu0 %v9571_v63  ;;  %v2491_v27 = vmul.f32 %v1680_v19, %v9562_v10  ;;  %7190 = vlog2.f32 %v1680_v19  ;;  %v1669_v54 = vand.u32 2147483647, %v9509_v30 }
 0x1a2   : > { %15892 = vst [vmem:[#allocation65_spill] sm:$0xff] %v9575_v15  ;;  %v9587_v9 = vmul.f32 %v9443_v49, %v9506_v32  ;;  %v9591_v45 = vmul.f32 %v9471_v24, %v9515_v42  ;;  %v4658_v7 = vadd.f32 1.0, %v9569_v12  ;;  %7192 = vpow2.f32 %v4004_v37  ;;  %v7179_v32 = vpop.eup %7178  ;;  %v614_v24 = vld [vmem:[%s9016_s28 + $0x128] sm:$0xff] }
 0x1a3   : > { %v9599_v1 = vadd.f32 %v2491_v27, %v620_v4  ;;  %v1105_v29 = vmul.f32 1.442695, %v743_v62  ;;  %v9601_v58 = vmax.f32 %v3182_v36, %v3438_v13  ;;  %v3694_v20 = vmin.f32 %v3182_v36, %v3438_v13  ;;  %v738_v36 = vld [vmem:[%s9023_s13 + $0x108] sm:$0xff]  ;;  %v619_v4 = vld [vmem:[%s9016_s28 + $0x150] sm:$0xff] }
 0x1a4   : > { %15893 = vst [vmem:[#allocation66_spill] sm:$0xff] %v9587_v9  ;;  %15894 = vst [vmem:[#allocation67_spill] sm:$0xff] %v9591_v45  ;;  %v1668_v42 = vmul.f32 %v9509_v30, %v1667_v22  ;;  %7194 = vpow2.f32 %v1107_v21  ;;  %v4662_v19 = vadd.f32 1.0, %v4661_v17  ;;  %v1665_v37 = vmul.f32 0.6931472, %v7179_v32  ;;  %v7181_v62 = vpop.eup %7180 }
 0x1a5   : > { %15895 = vst [vmem:[#allocation68_spill] sm:$0xff] %v9601_v58  ;;  %2811 = vmatprep.subr.mxu1 %v9599_v1  ;;  %vm9609_vm9 = vcmp.lt.f32.partialorder %v1669_v54, 0.0004427343  ;;  %v9613_v27 = vmul.f32 0.6931472, %v7171_v50  ;;  %7196 = vlog2.f32 %v4658_v7  ;;  %v2929_v22 = vmul.f32 %v9249_v31, %v9249_v31 }
 0x1a6   : > { %v9617_v30 = vunpack.c.l.bf16 %v854_v48  ;;  %v9620_v13 = vpop.eup %7182  ;;  %v4685_v17 = vadd.f32 1.0, %v9573_v16  ;;  %v4688_v54 = vmul.f32 -0.5, %v9573_v16  ;;  %7198 = vpow2.f32 %v1105_v29 }
 0x1a7   : > { %15898 = vst [vmem:[#allocation69_spill] sm:$0xff] %v9613_v27  ;;  %15899 = vst [vmem:[#allocation70_spill] sm:$0xff] %v9620_v13  ;;  %v3822_v50 = vsub.f32 %v3694_v20, %v9601_v58  ;;  %v9629_v7 = vmul.f32 0.5, %v9418_v44  ;;  %v6039_v48 = vmul.f32 %v9536_v47, %v9536_v47  ;;  %v1671_v31 = vsel %vm9609_vm9, %v1668_v42, %v1665_v37 }
 0x1a8   : > { %v9625_v32 = vpop.eup %7184  ;;  %v9636_v53 = vmul.f32 %v9569_v12, %v4662_v19  ;;  %v5720_v29 = vmul.f32 0.6931472, %v7181_v62  ;;  %v1095_v25 = vmul.f32 1.442695, %v738_v36  ;;  %v3057_v21 = vmul.f32 0.5, %v2929_v22 }
 0x1a9   : > { %v3313_v35 = vmul.f32 81377.4, %v2929_v22  ;;  %v2490_v20 = vmul.f32 %v1671_v31, %v9617_v30  ;;  %7200 = vlog2.f32 %v1671_v31  ;;  %v4689_v60 = vadd.f32 1.0, %v4688_v54 }
 0x1aa   : > { %15900 = vst [vmem:[#allocation71_spill] sm:$0xff] %v9636_v53  ;;  %v7187_v44 = vpop.eup %7186  ;;  %7202 = vlog2.f32 %v4685_v17  ;;  %v6042_v47 = vmul.f32 %v9562_v10, %v9562_v10  ;;  %v1618_v42 = vadd.f32 1.0, %v9625_v32  ;;  %v4002_v19 = vmul.f32 1.442695, %v3822_v50 }
 0x1ab   : > { %7204 = vlog2.f32 %v9245_v5  ;;  %v5696_v37 = vmul.f32 0.6931472, %v7187_v44  ;;  %v6167_v62 = vmul.f32 0.5, %v6039_v48  ;;  %v9647_v22 = vmul.f32 0.6931472, %v7177_v43 }
 0x1ac   : > { %v5923_v38 = vsub.f32 -0.9189385, %v5720_v29  ;;  %v2923_v17 = vmul.f32 %v9263_v61, %v9263_v61  ;;  %7206 = vpow2.f32 %v1095_v25  ;;  %v3185_v31 = vsub.f32 -1.6120857, %v3057_v21 }
 0x1ad   : > { %v9645_v36 = vpop.eup %7188  ;;  %15901 = vst [vmem:[#allocation72_spill] sm:$0xff] %v9647_v22  ;;  %v3441_v10 = vsub.f32 4.387914, %v3313_v35  ;;  %v5911_v0 = vsub.f32 -0.9189385, %v5696_v37  ;;  %v9651_v26 = vadd.f32 %v2490_v20, %v619_v4  ;;  %v2928_v5 = vmul.f32 %v9258_v52, %v9258_v52 }
 0x1ae   : > { %v7191_v54 = vpop.eup %7190  ;;  %v6170_v48 = vmul.f32 0.5, %v6042_v47  ;;  %7208 = vlog2.f32 %v1618_v42  ;;  %v9658_v43 = vmul.f32 %v9573_v16, %v4689_v60  ;;  %v4676_v61 = vadd.f32 1.0, %v9620_v13 }
 0x1af   : > { %v5702_v50 = vmul.f32 0.6931472, %v7191_v54  ;;  %v9655_v44 = vpop.eup %7192  ;;  %7210 = vpow2.f32 %v4002_v19  ;;  %v9661_v25 = vsub.f32 %v5911_v0, %v6167_v62  ;;  %2812 = vmatpush1.xpose.msra.mxu1 %v9651_v26  ;;  %v3051_v21 = vmul.f32 0.5, %v2923_v17 }
 0x1b0   : > { %15902 = vst [vmem:[#allocation73_spill] sm:$0xff] %v9658_v43  ;;  %v3307_v29 = vmul.f32 81377.4, %v2923_v17  ;;  %v1609_v20 = vadd.f32 1.0, %v9645_v36  ;;  %v9668_v47 = vmul.f32 -0.5, %v9620_v13  ;;  %v9671_v60 = vsub.f32 %v5923_v38, %v9414_v59 }
 0x1b1   : > { %15903 = vst [vmem:[#allocation74_spill] sm:$0xff] %v9661_v25  ;;  %v9664_v35 = vpop.eup %7194  ;;  %v5914_v52 = vsub.f32 -0.9189385, %v5702_v50  ;;  %v9673_v4 = vmax.f32 %v3185_v31, %v3441_v10  ;;  %v3697_v42 = vmin.f32 %v3185_v31, %v3441_v10  ;;  %v3056_v19 = vmul.f32 0.5, %v2928_v5 }
 0x1b2   : > { %15904 = vst [vmem:[#allocation75_spill] sm:$0xff] %v9671_v60  ;;  %v7197_v0 = vpop.eup %7196  ;;  %v3312_v37 = vmul.f32 81377.4, %v2928_v5  ;;  %v1621_v54 = vmul.f32 -0.5, %v9625_v32  ;;  %v4631_v56 = vadd.f32 1.0, %v9655_v44  ;;  %7212 = vlog2.f32 %v1609_v20 }
 0x1b3   : > { %15905 = vst [vmem:[#allocation76_spill] sm:$0xff] %v9673_v4  ;;  %v9675_v62 = vsub.f32 %v5914_v52, %v6170_v48  ;;  %v9678_v17 = vpop.eup %7198  ;;  %v1636_v59 = vadd.f32 1.0, %v9664_v35  ;;  %7214 = vlog2.f32 %v4676_v61  ;;  %v3179_v38 = vsub.f32 -1.6120857, %v3051_v21 }
 0x1b4   : > { %v3435_v34 = vsub.f32 4.387914, %v3307_v29  ;;  %v6041_v31 = vmul.f32 %v9617_v30, %v9617_v30  ;;  %v9685_v10 = vmul.f32 0.6931472, %v7197_v0  ;;  %v3825_v5 = vsub.f32 %v3697_v42, %v9673_v4  ;;  %v851_v4 = vld [vmem:[%s9026_s3 + $0x90] sm:$0xff] }
 0x1b5   : > { %15906 = vst [vmem:[#allocation77_spill] sm:$0xff] %v9675_v62  ;;  %v2922_v48 = vmul.f32 %v9292_v11, %v9292_v11  ;;  %7216 = vlog2.f32 %v1636_v59  ;;  %v3184_v50 = vsub.f32 -1.6120857, %v3056_v19  ;;  %v3440_v9 = vsub.f32 4.387914, %v3312_v37  ;;  %v599_v62 = vld [vmem:[%s9016_s28 + $0xb0] sm:$0xff] }
 0x1b6   : > { %15907 = vst [vmem:[#allocation78_spill] sm:$0xff] %v9685_v10  ;;  %v7201_v52 = vpop.eup %7200  ;;  %v1622_v20 = vadd.f32 1.0, %v1621_v54  ;;  %v1627_v27 = vadd.f32 1.0, %v9678_v17  ;;  %7218 = vlog2.f32 %v4631_v56  ;;  %v1624_v30 = vand.u32 2147483647, %v9625_v32 }
 0x1b7   : > { %v9691_v61 = vpop.eup %7202  ;;  %v5700_v21 = vmul.f32 0.6931472, %v7201_v52  ;;  %v1612_v29 = vmul.f32 -0.5, %v9645_v36  ;;  %v9698_v11 = vmul.f32 -0.5, %v9655_v44  ;;  %v9700_v0 = vmax.f32 %v3179_v38, %v3435_v34 }
 0x1b8   : > { %v9695_v42 = vpop.eup %7204  ;;  %v6169_v19 = vmul.f32 0.5, %v6041_v31  ;;  %7220 = vlog2.f32 %v1627_v27  ;;  %v3691_v54 = vmin.f32 %v3179_v38, %v3435_v34  ;;  %v3050_v59 = vmul.f32 0.5, %v2922_v48 }
 0x1b9   : > { %15908 = vst [vmem:[#allocation79_spill] sm:$0xff] %v9700_v0  ;;  %v9702_v37 = vpop.eup %7206  ;;  %v5913_v56 = vsub.f32 -0.9189385, %v5700_v21  ;;  %v1639_v52 = vmul.f32 -0.5, %v9664_v35  ;;  %v9705_v43 = vmul.f32 1.442695, %v3825_v5  ;;  %v2925_v22 = vmul.f32 %v9306_v55, %v9306_v55 }
 0x1ba   : > { %v3306_v45 = vmul.f32 81377.4, %v2922_v48  ;;  %v1623_v49 = vmul.f32 %v9625_v32, %v1622_v20  ;;  %v9711_v31 = vmax.f32 %v3184_v50, %v3440_v9  ;;  %v9713_v27 = vunpack.c.h.bf16 %v851_v4 }
 0x1bb   : > { %v7209_v16 = vpop.eup %7208  ;;  %vm1625_vm10 = vcmp.lt.f32.partialorder %v1624_v30, 0.0004427343  ;;  %v1613_v34 = vadd.f32 1.0, %v1612_v29  ;;  %v9717_v5 = vsub.f32 %v5913_v56, %v6169_v19  ;;  %v1615_v21 = vand.u32 2147483647, %v9645_v36  ;;  %v737_v19 = vld [vmem:[%s9023_s13 + $0x100] sm:$0xff] }
 0x1bc   : > { %15909 = vst [vmem:[#allocation80_spill] sm:$0xff] %v9711_v31  ;;  %v9715_v38 = vpop.eup %7210  ;;  %v1620_v48 = vmul.f32 0.6931472, %v7209_v16  ;;  %v1582_v55 = vadd.f32 1.0, %v9702_v37  ;;  %v9721_v58 = vmin.f32 %v3184_v50, %v3440_v9  ;;  %v3819_v32 = vsub.f32 %v3691_v54, %v9700_v0 }
 0x1bd   : > { %15910 = vst [vmem:[#allocation81_spill] sm:$0xff] %v9717_v5  ;;  %v3178_v20 = vsub.f32 -1.6120857, %v3050_v59  ;;  %v1640_v60 = vadd.f32 1.0, %v1639_v52  ;;  %v3434_v18 = vsub.f32 4.387914, %v3306_v45  ;;  %v1614_v33 = vmul.f32 %v9645_v36, %v1613_v34 }
 0x1be   : > { %v3053_v30 = vmul.f32 0.5, %v2925_v22  ;;  %v1626_v29 = vsel %vm1625_vm10, %v1623_v49, %v1620_v48  ;;  %v1642_v41 = vand.u32 2147483647, %v9664_v35  ;;  %v3309_v56 = vmul.f32 81377.4, %v2925_v22  ;;  %v852_v52 = vld [vmem:[%s9026_s3 + $0x98] sm:$0xff] }
 0x1bf   : > { %v2485_v16 = vmul.f32 %v1626_v29, %v9713_v27  ;;  %7222 = vlog2.f32 %v1626_v29  ;;  %v7213_v9 = vpop.eup %7212  ;;  %v9729_v50 = vunpack.c.l.bf16 %v851_v4  ;;  %vm9731_vm11 = vcmp.lt.f32.partialorder %v1615_v21, 0.0004427343 }
 0x1c0   : > { %v1630_v45 = vmul.f32 -0.5, %v9678_v17  ;;  %7224 = vlog2.f32 %v1582_v55  ;;  %v9736_v49 = vpop.eup %7214  ;;  %v1611_v22 = vmul.f32 0.6931472, %v7213_v9  ;;  %v1641_v48 = vmul.f32 %v9664_v35, %v1640_v60  ;;  %v613_v55 = vld [vmem:[%s9016_s28 + $0x120] sm:$0xff] }
 0x1c1   : > { %v9738_v59 = vadd.f32 %v2485_v16, %v614_v24  ;;  %v1093_v36 = vmul.f32 1.442695, %v737_v19  ;;  %v3996_v4 = vmul.f32 1.442695, %v3819_v32  ;;  %v9742_v29 = vmax.f32 %v3178_v20, %v3434_v18 }
 0x1c2   : > { %v7217_v34 = vpop.eup %7216  ;;  %v9744_v21 = vunpack.c.h.bf16 %v852_v52  ;;  %vm1643_vm12 = vcmp.lt.f32.partialorder %v1642_v41, 0.0004427343  ;;  %v3690_v0 = vmin.f32 %v3178_v20, %v3434_v18  ;;  %v3181_v23 = vsub.f32 -1.6120857, %v3053_v30  ;;  %v616_v18 = vld [vmem:[%s9016_s28 + $0x138] sm:$0xff] }
 0x1c3   : > { %15913 = vst [vmem:[#allocation82_spill] sm:$0xff] %v9742_v29  ;;  %2742 = vmatprep.subr.mxu0 %v9738_v59  ;;  %v1617_v24 = vsel %vm9731_vm11, %v1614_v33, %v1611_v22  ;;  %v1638_v16 = vmul.f32 0.6931472, %v7217_v34  ;;  %v9750_v9 = vpop.eup %7218  ;;  %v3437_v35 = vsub.f32 4.387914, %v3309_v56  ;;  %v1631_v32 = vadd.f32 1.0, %v1630_v45 }
 0x1c4   : > { %v2484_v60 = vmul.f32 %v1617_v24, %v9729_v50  ;;  %7226 = vlog2.f32 %v1617_v24  ;;  %v2924_v41 = vmul.f32 %v9340_v3, %v9340_v3  ;;  %v1633_v30 = vand.u32 2147483647, %v9678_v17 }
 0x1c5   : > { %v7221_v19 = vpop.eup %7220  ;;  %v1644_v20 = vsel %vm1643_vm12, %v1641_v48, %v1638_v16  ;;  %7228 = vpow2.f32 %v1093_v36  ;;  %v2919_v33 = vmul.f32 %v9344_v6, %v9344_v6  ;;  %v4622_v22 = vadd.f32 1.0, %v9715_v38 }
 0x1c6   : > { %v9759_v54 = vadd.f32 %v2484_v60, %v613_v55  ;;  %v2487_v56 = vmul.f32 %v1644_v20, %v9744_v21  ;;  %7230 = vlog2.f32 %v1644_v20  ;;  %v3824_v3 = vsub.f32 %v9721_v58, %v9711_v31 }
 0x1c7   : > { %7232 = vpow2.f32 %v9705_v43  ;;  %v1585_v45 = vmul.f32 -0.5, %v9702_v37  ;;  %v3818_v48 = vsub.f32 %v3690_v0, %v9742_v29  ;;  %v1629_v6 = vmul.f32 0.6931472, %v7221_v19 }
 0x1c8   : > { %2743 = vmatpush1.xpose.msra.mxu0 %v9759_v54  ;;  %v9769_v36 = vadd.f32 %v2487_v56, %v616_v18  ;;  %v1632_v34 = vmul.f32 %v9678_v17, %v1631_v32  ;;  %v9772_v55 = vmax.f32 %v3181_v23, %v3437_v35  ;;  %v9774_v24 = vmin.f32 %v3181_v23, %v3437_v35 }
 0x1c9   : > { %v6036_v43 = vmul.f32 %v9713_v27, %v9713_v27  ;;  %vm1634_vm13 = vcmp.lt.f32.partialorder %v1633_v30, 0.0004427343  ;;  %7234 = vpow2.f32 %v3996_v4  ;;  %v3052_v58 = vmul.f32 0.5, %v2924_v41 }
 0x1ca   : > { %15914 = vst [vmem:[#allocation83_spill] sm:$0xff] %v9772_v55  ;;  %v3308_v16 = vmul.f32 81377.4, %v2924_v41  ;;  %v3047_v60 = vmul.f32 0.5, %v2919_v33  ;;  %2813 = vmatprep.subr.mxu1 %v9769_v36  ;;  %7236 = vlog2.f32 %v4622_v22  ;;  %v3303_v0 = vmul.f32 81377.4, %v2919_v33 }
 0x1cb   : > { %v9779_v19 = vunpack.c.l.bf16 %v852_v52  ;;  %v1586_v17 = vadd.f32 1.0, %v1585_v45  ;;  %v4006_v18 = vmul.f32 1.442695, %v3824_v3  ;;  %v9781_v23 = vmul.f32 1.442695, %v3818_v48  ;;  %v615_v52 = vld [vmem:[%s9016_s28 + $0x130] sm:$0xff] }
 0x1cc   : > { %v7223_v32 = vpop.eup %7222  ;;  %v1635_v35 = vsel %vm1634_vm13, %v1632_v34, %v1629_v6  ;;  %v1588_v27 = vand.u32 2147483647, %v9702_v37  ;;  %v3821_v41 = vsub.f32 %v9774_v24, %v9772_v55  ;;  %v2918_v20 = vmul.f32 %v9355_v51, %v9355_v51  ;;  %v9799_v51 = vld [vmem:[%s9026_s3 + $0x80] sm:$0xff] }
 0x1cd   : > { %v7225_v4 = vpop.eup %7224  ;;  %v5690_v30 = vmul.f32 0.6931472, %v7223_v32  ;;  %v6164_v33 = vmul.f32 0.5, %v6036_v43  ;;  %v3180_v56 = vsub.f32 -1.6120857, %v3052_v58  ;;  %v6035_v3 = vmul.f32 %v9729_v50, %v9729_v50 }
 0x1ce   : > { %v3436_v22 = vsub.f32 4.387914, %v3308_v16  ;;  %v3175_v45 = vsub.f32 -1.6120857, %v3047_v60  ;;  %v15915_v48 = vand.u32 2147483647, %v9569_v12  ;;  %v2486_v31 = vmul.f32 %v1635_v35, %v9779_v19 }
 0x1cf   : > { %v15916_v6 = vmov 0  ;;  %v3431_v34 = vsub.f32 4.387914, %v3303_v0  ;;  %v5908_v24 = vsub.f32 -0.9189385, %v5690_v30  ;;  %v1587_v43 = vmul.f32 %v9702_v37, %v1586_v17 }
 0x1d0   : > { %vm9793_vm14 = vcmp.lt.f32.partialorder %v15915_v48, 0.0004427343  ;;  %v6038_v58 = vmul.f32 %v9744_v21, %v9744_v21  ;;  %v9805_v50 = vunpack.c.h.bf16 %v9799_v51  ;;  %v1584_v12 = vmul.f32 0.6931472, %v7225_v4  ;;  %v740_v4 = vld [vmem:[%s9023_s13 + $0x118] sm:$0xff] }
 0x1d1   : > { %v15917_v6 = vsel %vm9793_vm14, 4294967295, %v15916_v6  ;;  %vm9807_vm15 = vcmp.lt.f32.partialorder %v1588_v27, 0.0004427343  ;;  %v7227_v60 = vpop.eup %7226  ;;  %v3046_v0 = vmul.f32 0.5, %v2918_v20  ;;  %v3302_v32 = vmul.f32 81377.4, %v2918_v20 }
 0x1d2   : > { %15918 = vst [vmem:[#allocation84_spill] sm:$0xff] %v15917_v6  ;;  %v9811_v30 = vsub.f32 %v5908_v24, %v6164_v33  ;;  %v9813_v48 = vadd.f32 %v2486_v31, %v615_v52  ;;  %v9815_v37 = vpop.eup %7228  ;;  %v9817_v17 = vmax.f32 %v3180_v56, %v3436_v22  ;;  %v5688_v21 = vmul.f32 0.6931472, %v7227_v60  ;;  %v610_v20 = vld [vmem:[%s9016_s28 + $0x108] sm:$0xff] }
 0x1d3   : > { %v6163_v55 = vmul.f32 0.5, %v6035_v3  ;;  %7238 = vlog2.f32 %v1635_v35  ;;  %v7231_v27 = vpop.eup %7230  ;;  %v3692_v29 = vmin.f32 %v3180_v56, %v3436_v22  ;;  %v9820_v39 = vmax.f32 %v3175_v45, %v3431_v34 }
 0x1d4   : > { %15921 = vst [vmem:[#allocation85_spill] sm:$0xff] %v9811_v30  ;;  %15922 = vst [vmem:[#allocation86_spill] sm:$0xff] %v9817_v17  ;;  %v3687_v2 = vmin.f32 %v3175_v45, %v3431_v34  ;;  %2814 = vmatpush1.xpose.msra.mxu1 %v9813_v48  ;;  %v1590_v31 = vsel %vm9807_vm15, %v1587_v43, %v1584_v12  ;;  %v9826_v33 = vpop.eup %7232  ;;  %v5907_v52 = vsub.f32 -0.9189385, %v5688_v21  ;;  %v5694_v24 = vmul.f32 0.6931472, %v7231_v27 }
 0x1d5   : > { %15923 = vst [vmem:[#allocation87_spill] sm:$0xff] %v9820_v39  ;;  %15924 = vst [vmem:[#allocation88_spill] sm:$0xff] %v9826_v33  ;;  %v6166_v8 = vmul.f32 0.5, %v6038_v58  ;;  %v2481_v3 = vmul.f32 %v1590_v31, %v9805_v50  ;;  %v3174_v35 = vsub.f32 -1.6120857, %v3046_v0  ;;  %7240 = vlog2.f32 %v1590_v31 }
 0x1d6   : > { %v3430_v60 = vsub.f32 4.387914, %v3302_v32  ;;  %v1099_v56 = vmul.f32 1.442695, %v740_v4  ;;  %v9829_v22 = vsub.f32 %v5907_v52, %v6163_v55  ;;  %v5910_v45 = vsub.f32 -0.9189385, %v5694_v24  ;;  %v9834_v16 = vpop.eup %7234 }
 0x1d7   : > { %v9831_v34 = vadd.f32 %v2481_v3, %v610_v20  ;;  %v1573_v40 = vadd.f32 1.0, %v9815_v37  ;;  %15926 = vst [vmem:[#allocation90_spill] sm:$0xff] %v9834_v16  ;;  %v4680_v43 = vadd.f32 1.0, %v9668_v47  ;;  %v4635_v12 = vadd.f32 1.0, %v9698_v11  ;;  %v9839_v0 = vpop.eup %7236  ;;  %v734_v24 = vld [vmem:[%s9023_s13 + $0xe8] sm:$0xff] }
 0x1d8   : > { %15925 = vst [vmem:[#allocation89_spill] sm:$0xff] %v9829_v22  ;;  %7242 = vpow2.f32 %v4006_v18  ;;  %v3820_v58 = vsub.f32 %v3692_v29, %v9817_v17  ;;  %v4637_v55 = vand.u32 2147483647, %v9655_v44  ;;  %v3815_v32 = vsub.f32 %v3687_v2, %v9820_v39  ;;  %v739_v2 = vld [vmem:[%s9023_s13 + $0x110] sm:$0xff] }
 0x1d9   : > { %v9843_v21 = vsub.f32 %v5910_v45, %v6166_v8  ;;  %2744 = vmatprep.subr.mxu0 %v9831_v34  ;;  %7244 = vlog2.f32 %v1573_v40  ;;  %v4000_v47 = vmul.f32 1.442695, %v3821_v41  ;;  %v9847_v11 = vmax.f32 %v3174_v35, %v3430_v60 }
 0x1da   : > { %7246 = vpow2.f32 %v9781_v23  ;;  %v3686_v18 = vmin.f32 %v3174_v35, %v3430_v60  ;;  %v5726_v4 = vmul.f32 0.6931472, %v9695_v42  ;;  %v4595_v8 = vadd.f32 1.0, %v9834_v16 }
 0x1db   : > { %15927 = vst [vmem:[#allocation91_spill] sm:$0xff] %v9843_v21  ;;  %15928 = vst [vmem:[#allocation92_spill] sm:$0xff] %v9847_v11  ;;  %7248 = vpow2.f32 %v1099_v56  ;;  %v4633_v40 = vmul.f32 0.6931472, %v9750_v9  ;;  %v4636_v23 = vmul.f32 %v9655_v44, %v4635_v12  ;;  %v4625_v41 = vmul.f32 -0.5, %v9715_v38 }
 0x1dc   : > { %v3998_v27 = vmul.f32 1.442695, %v3820_v58  ;;  %v9860_v20 = vmul.f32 %v9620_v13, %v4680_v43  ;;  %vm9862_vm0 = vcmp.lt.f32.partialorder %v4637_v55, 0.0004427343  ;;  %v3988_v52 = vmul.f32 1.442695, %v3815_v32 }
 0x1dd   : > { %v1576_v42 = vmul.f32 -0.5, %v9815_v37  ;;  %7250 = vpow2.f32 %v4000_v47  ;;  %v3814_v3 = vsub.f32 %v3686_v18, %v9847_v11  ;;  %v6037_v44 = vmul.f32 %v9779_v19, %v9779_v19  ;;  %v10081_v11 = vld [vmem:[%s9026_s3 + $0x78] sm:$0xff] }
 0x1de   : > { %15929 = vst [vmem:[#allocation93_spill] sm:$0xff] %v9860_v20  ;;  %v1097_v9 = vmul.f32 1.442695, %v739_v2  ;;  %v9872_v35 = vmul.f32 0.6931472, %v9691_v61  ;;  %7252 = vlog2.f32 %v4595_v8  ;;  %v4639_v43 = vsel %vm9862_vm0, %v4636_v23, %v4633_v40 }
 0x1df   : > { %v4628_v60 = vand.u32 2147483647, %v9715_v38  ;;  %v5926_v56 = vsub.f32 -0.9189385, %v5726_v4  ;;  %v4626_v12 = vadd.f32 1.0, %v4625_v41  ;;  %7254 = vpow2.f32 %v3998_v27 }
 0x1e0   : > { %15932 = vst [vmem:[#allocation94_spill] sm:$0xff] %v9872_v35  ;;  %v7239_v45 = vpop.eup %7238  ;;  %v1087_v58 = vmul.f32 1.442695, %v734_v24  ;;  %7256 = vpow2.f32 %v3988_v52  ;;  %v6032_v19 = vmul.f32 %v9805_v50, %v9805_v50  ;;  %v1577_v32 = vadd.f32 1.0, %v1576_v42 }
 0x1e1   : > { %v5692_v55 = vmul.f32 0.6931472, %v7239_v45  ;;  %v3986_v47 = vmul.f32 1.442695, %v3814_v3  ;;  %v6165_v61 = vmul.f32 0.5, %v6037_v44  ;;  %7258 = vpow2.f32 %v1097_v9  ;;  %v733_v3 = vld [vmem:[%s9023_s13 + $0xe0] sm:$0xff] }
 0x1e2   : > { %v1579_v18 = vand.u32 2147483647, %v9815_v37  ;;  %v7241_v4 = vpop.eup %7240  ;;  %v9881_v8 = vmul.f32 0.6931472, %v9736_v49  ;;  %vm9883_vm1 = vcmp.lt.f32.partialorder %v4628_v60, 0.0004427343  ;;  %v9889_v23 = vsub.f32 %v5926_v56, %v9629_v7 }
 0x1e3   : > { %v15934_v2 = vmov 0  ;;  %v4652_v40 = vmul.f32 -0.5, %v9826_v33  ;;  %v4649_v50 = vadd.f32 1.0, %v9826_v33  ;;  %v5909_v41 = vsub.f32 -0.9189385, %v5692_v55 }
 0x1e4   : > { %15933 = vst [vmem:[#allocation95_spill] sm:$0xff] %v9881_v8  ;;  %v15935_v2 = vsel %vm9883_vm1, 4294967295, %v15934_v2  ;;  %15937 = vst [vmem:[#allocation97_spill] sm:$0xff] %v9889_v23  ;;  %v5682_v27 = vmul.f32 0.6931472, %v7241_v4  ;;  %7260 = vpow2.f32 %v1087_v58  ;;  %v9895_v52 = vadd.f32 %v4639_v43, %v9519_v57 }
 0x1e5   : > { %15936 = vst [vmem:[#allocation96_spill] sm:$0xff] %v15935_v2  ;;  %v9892_v31 = vpop.eup %7242  ;;  %v9898_v49 = vmul.f32 %v9715_v38, %v4626_v12  ;;  %v6160_v42 = vmul.f32 0.5, %v6032_v19  ;;  %v1578_v24 = vmul.f32 %v9815_v37, %v1577_v32  ;;  %7262 = vpow2.f32 %v3986_v47  ;;  %v609_v19 = vld [vmem:[%s9016_s28 + $0x100] sm:$0xff] }
 0x1e6   : > { %15938 = vst [vmem:[#allocation98_spill] sm:$0xff] %v9892_v31  ;;  %15939 = vst [vmem:[#allocation99_spill] sm:$0xff] %v9895_v52  ;;  %v7245_v44 = vpop.eup %7244  ;;  %v9902_v7 = vsub.f32 %v5909_v41, %v6165_v61  ;;  %v929_v9 = vunpack.c.l.bf16 %v9799_v51  ;;  %vm1580_vm2 = vcmp.lt.f32.partialorder %v1579_v18, 0.0004427343  ;;  %v4653_v57 = vadd.f32 1.0, %v4652_v40  ;;  %v736_v61 = vld [vmem:[%s9023_s13 + $0xf8] sm:$0xff] }
 0x1e7   : > { %15940 = vst [vmem:[#allocation100_spill] sm:$0xff] %v9898_v49  ;;  %v9905_v60 = vpop.eup %7246  ;;  %v4598_v56 = vmul.f32 -0.5, %v9834_v16  ;;  %v5904_v38 = vsub.f32 -0.9189385, %v5682_v27  ;;  %v1575_v45 = vmul.f32 0.6931472, %v7245_v44  ;;  %7264 = vlog2.f32 %v4649_v50 }
 0x1e8   : > { %15941 = vst [vmem:[#allocation101_spill] sm:$0xff] %v9902_v7  ;;  %15942 = vst [vmem:[#allocation102_spill] sm:$0xff] %v9905_v60  ;;  %v9908_v43 = vpop.eup %7248  ;;  %v9911_v37 = vmul.f32 0.6931472, %v9839_v0  ;;  %v4640_v12 = vadd.f32 1.0, %v9892_v31  ;;  %v4589_v51 = vmul.f32 -0.5, %v9905_v60  ;;  %v2921_v4 = vmul.f32 %v9403_v46, %v9403_v46 }
 0x1e9   : > { %v1085_v58 = vmul.f32 1.442695, %v733_v3  ;;  %v9915_v55 = vsub.f32 %v5904_v38, %v6160_v42  ;;  %v1581_v32 = vsel %vm1580_vm2, %v1578_v24, %v1575_v45  ;;  %v1600_v47 = vadd.f32 1.0, %v9908_v43  ;;  %v850_v52 = vld [vmem:[%s9026_s3 + $0x88] sm:$0xff] }
 0x1ea   : > { %15943 = vst [vmem:[#allocation103_spill] sm:$0xff] %v9911_v37  ;;  %v4643_v18 = vmul.f32 -0.5, %v9892_v31  ;;  %v2480_v0 = vmul.f32 %v1581_v32, %v929_v9  ;;  %7266 = vlog2.f32 %v1581_v32  ;;  %v9923_v40 = vpop.eup %7250  ;;  %v9926_v50 = vmul.f32 %v9826_v33, %v4653_v57 }
 0x1eb   : > { %15944 = vst [vmem:[#allocation104_spill] sm:$0xff] %v9915_v55  ;;  %15945 = vst [vmem:[#allocation105_spill] sm:$0xff] %v9923_v40  ;;  %v4599_v27 = vadd.f32 1.0, %v4598_v56  ;;  %7268 = vlog2.f32 %v1600_v47  ;;  %v7253_v42 = vpop.eup %7252  ;;  %v4586_v24 = vadd.f32 1.0, %v9905_v60  ;;  %v1091_v44 = vmul.f32 1.442695, %v736_v61 }
 0x1ec   : > { %15946 = vst [vmem:[#allocation106_spill] sm:$0xff] %v9926_v50  ;;  %v9930_v3 = vadd.f32 %v2480_v0, %v609_v19  ;;  %7270 = vpow2.f32 %v1085_v58  ;;  %v9932_v38 = vpop.eup %7254  ;;  %v4590_v45 = vadd.f32 1.0, %v4589_v51  ;;  %v9941_v32 = vadd.f32 1.0, %v4643_v18 }
 0x1ed   : > { %15947 = vst [vmem:[#allocation107_spill] sm:$0xff] %v9932_v38  ;;  %7272 = vlog2.f32 %v4640_v12  ;;  %v9939_v56 = vpop.eup %7256  ;;  %v4613_v19 = vadd.f32 1.0, %v9923_v40  ;;  %v3049_v47 = vmul.f32 0.5, %v2921_v4  ;;  %v3305_v58 = vmul.f32 81377.4, %v2921_v4 }
 0x1ee   : > { %15948 = vst [vmem:[#allocation108_spill] sm:$0xff] %v9939_v56  ;;  %15949 = vst [vmem:[#allocation109_spill] sm:$0xff] %v9941_v32  ;;  %2745 = vmatpush1.xpose.msra.mxu0 %v9930_v3  ;;  %v9945_v61 = vpop.eup %7258  ;;  %v9948_v0 = vmul.f32 %v9834_v16, %v4599_v27  ;;  %v1603_v29 = vmul.f32 -0.5, %v9908_v43  ;;  %7274 = vpow2.f32 %v1091_v44  ;;  %v9952_v51 = vmul.f32 0.6931472, %v7253_v42 }
 0x1ef   : > { %7276 = vlog2.f32 %v4586_v24  ;;  %v4604_v46 = vadd.f32 1.0, %v9932_v38  ;;  %v9959_v41 = vmul.f32 %v9905_v60, %v4590_v45  ;;  %v4559_v27 = vadd.f32 1.0, %v9939_v56 }
 0x1f0   : > { %15950 = vst [vmem:[#allocation110_spill] sm:$0xff] %v9948_v0  ;;  %15951 = vst [vmem:[#allocation111_spill] sm:$0xff] %v9952_v51  ;;  %v4562_v57 = vmul.f32 -0.5, %v9939_v56  ;;  %v1591_v12 = vadd.f32 1.0, %v9945_v61  ;;  %7278 = vlog2.f32 %v4613_v19  ;;  %v9965_v42 = vmul.f32 -0.5, %v9923_v40  ;;  %v612_v0 = vld [vmem:[%s9016_s28 + $0x118] sm:$0xff] }
 0x1f1   : > { %v9956_v4 = vpop.eup %7260  ;;  %15952 = vst [vmem:[#allocation112_spill] sm:$0xff] %v9959_v41  ;;  %v3177_v24 = vsub.f32 -1.6120857, %v3049_v47  ;;  %v3433_v44 = vsub.f32 4.387914, %v3305_v58  ;;  %v9970_v35 = vmul.f32 -0.5, %v9932_v38  ;;  %v6031_v45 = vmul.f32 %v929_v9, %v929_v9 }
 0x1f2   : > { %15953 = vst [vmem:[#allocation113_spill] sm:$0xff] %v9965_v42  ;;  %v9967_v18 = vpop.eup %7262  ;;  %v1604_v20 = vadd.f32 1.0, %v1603_v29  ;;  %7280 = vlog2.f32 %v1591_v12  ;;  %v1606_v19 = vand.u32 2147483647, %v9908_v43  ;;  %v1546_v10 = vadd.f32 1.0, %v9956_v4  ;;  %v735_v9 = vld [vmem:[%s9023_s13 + $0xf0] sm:$0xff] }
 0x1f3   : > { %15954 = vst [vmem:[#allocation114_spill] sm:$0xff] %v9967_v18  ;;  %15955 = vst [vmem:[#allocation115_spill] sm:$0xff] %v9970_v35  ;;  %7282 = vlog2.f32 %v4604_v46  ;;  %v4563_v47 = vadd.f32 1.0, %v4562_v57  ;;  %v2920_v6 = vmul.f32 %v9469_v14, %v9469_v14  ;;  %v4550_v29 = vadd.f32 1.0, %v9967_v18  ;;  %v732_v40 = vld [vmem:[%s9023_s13 + $0xd8] sm:$0xff] }
 0x1f4   : > { %v9975_v53 = vpop.eup %7264  ;;  %7284 = vlog2.f32 %v4559_v27  ;;  %v9983_v12 = vmax.f32 %v3177_v24, %v3433_v44  ;;  %v2915_v8 = vmul.f32 %v9490_v28, %v9490_v28  ;;  %v9988_v27 = vunpack.c.h.bf16 %v850_v52 }
 0x1f5   : > { %15956 = vst [vmem:[#allocation116_spill] sm:$0xff] %v9975_v53  ;;  %v6159_v53 = vmul.f32 0.5, %v6031_v45  ;;  %v1605_v57 = vmul.f32 %v9908_v43, %v1604_v20  ;;  %v1594_v58 = vmul.f32 -0.5, %v9945_v61  ;;  %vm1607_vm3 = vcmp.lt.f32.partialorder %v1606_v19, 0.0004427343 }
 0x1f6   : > { %15957 = vst [vmem:[#allocation117_spill] sm:$0xff] %v9983_v12  ;;  %7286 = vlog2.f32 %v1546_v10  ;;  %v1089_v46 = vmul.f32 1.442695, %v735_v9  ;;  %v3689_v2 = vmin.f32 %v3177_v24, %v3433_v44  ;;  %v3048_v13 = vmul.f32 0.5, %v2920_v6 }
 0x1f7   : > { %v7267_v50 = vpop.eup %7266  ;;  %v3304_v28 = vmul.f32 81377.4, %v2920_v6  ;;  %v4553_v45 = vmul.f32 -0.5, %v9967_v18  ;;  %v3043_v33 = vmul.f32 0.5, %v2915_v8  ;;  %v3299_v20 = vmul.f32 81377.4, %v2915_v8 }
 0x1f8   : > { %v7269_v14 = vpop.eup %7268  ;;  %v5680_v37 = vmul.f32 0.6931472, %v7267_v50  ;;  %v1595_v41 = vadd.f32 1.0, %v1594_v58  ;;  %v1597_v50 = vand.u32 2147483647, %v9945_v61  ;;  %v1549_v44 = vmul.f32 -0.5, %v9956_v4 }
 0x1f9   : > { %v9992_v49 = vpop.eup %7270  ;;  %v1602_v17 = vmul.f32 0.6931472, %v7269_v14  ;;  %7288 = vpow2.f32 %v1089_v46  ;;  %v3817_v8 = vsub.f32 %v3689_v2, %v9983_v12  ;;  %v3432_v58 = vsub.f32 4.387914, %v3304_v28 }
 0x1fa   : > { %v9994_v32 = vpop.eup %7272  ;;  %v5903_v43 = vsub.f32 -0.9189385, %v5680_v37  ;;  %v1537_v10 = vadd.f32 1.0, %v9992_v49  ;;  %v3176_v37 = vsub.f32 -1.6120857, %v3048_v13  ;;  %v1596_v46 = vmul.f32 %v9945_v61, %v1595_v41 }
 0x1fb   : > { %15958 = vst [vmem:[#allocation118_spill] sm:$0xff] %v9994_v32  ;;  %v1608_v51 = vsel %vm1607_vm3, %v1605_v57, %v1602_v17  ;;  %v10000_v19 = vpop.eup %7274  ;;  %v3171_v57 = vsub.f32 -1.6120857, %v3043_v33  ;;  %v2914_v32 = vmul.f32 %v9571_v63, %v9571_v63  ;;  %v10018_v13 = vmul.f32 %v9939_v56, %v4563_v47 }
 0x1fc   : > { %v10002_v24 = vsub.f32 %v5903_v43, %v6159_v53  ;;  %v2483_v6 = vmul.f32 %v1608_v51, %v9988_v27  ;;  %v10006_v9 = vpop.eup %7276  ;;  %7290 = vlog2.f32 %v1608_v51  ;;  %v1564_v17 = vadd.f32 1.0, %v10000_v19 }
 0x1fd   : > { %15960 = vst [vmem:[#allocation120_spill] sm:$0xff] %v10006_v9  ;;  %7292 = vlog2.f32 %v1537_v10  ;;  %v10012_v53 = vpop.eup %7278  ;;  %v3427_v43 = vsub.f32 4.387914, %v3299_v20  ;;  %15962 = vst [vmem:[#allocation122_spill] sm:$0xff] %v10018_v13  ;;  %v10021_v2 = vunpack.c.l.bf16 %v850_v52  ;;  %vm10023_vm4 = vcmp.lt.f32.partialorder %v1597_v50, 0.0004427343 }
 0x1fe   : > { %15959 = vst [vmem:[#allocation119_spill] sm:$0xff] %v10002_v24  ;;  %v10010_v14 = vadd.f32 %v2483_v6, %v612_v0  ;;  %15961 = vst [vmem:[#allocation121_spill] sm:$0xff] %v10012_v53  ;;  %7294 = vlog2.f32 %v1564_v17  ;;  %v1550_v0 = vadd.f32 1.0, %v1549_v44  ;;  %v4554_v63 = vadd.f32 1.0, %v4553_v45  ;;  %v611_v17 = vld [vmem:[%s9016_s28 + $0x110] sm:$0xff] }
 0x1ff   : > { %v7281_v31 = vpop.eup %7280  ;;  %7296 = vlog2.f32 %v4550_v29  ;;  %v1552_v61 = vand.u32 2147483647, %v9956_v4  ;;  %v3992_v28 = vmul.f32 1.442695, %v3817_v8  ;;  %v10032_v52 = vmax.f32 %v3176_v37, %v3432_v58  ;;  %v847_v8 = vld [vmem:[%s9026_s3 + $0x70] sm:$0xff] }
 0x200   : > { %2815 = vmatprep.subr.mxu1 %v10010_v14  ;;  %v10027_v51 = vpop.eup %7282  ;;  %v1593_v41 = vmul.f32 0.6931472, %v7281_v31  ;;  %v10034_v20 = vmin.f32 %v3176_v37, %v3432_v58  ;;  %v1540_v50 = vmul.f32 -0.5, %v9992_v49  ;;  %v10037_v10 = vmax.f32 %v3171_v57, %v3427_v43  ;;  %v730_v31 = vld [vmem:[%s9023_s13 + $0xc8] sm:$0xff] }
 0x201   : > { %15965 = vst [vmem:[#allocation123_spill] sm:$0xff] %v10027_v51  ;;  %v10030_v47 = vpop.eup %7284  ;;  %15966 = vst [vmem:[#allocation124_spill] sm:$0xff] %v10032_v52  ;;  %v3042_v6 = vmul.f32 0.5, %v2914_v32  ;;  %v3298_v44 = vmul.f32 81377.4, %v2914_v32  ;;  %v1551_v12 = vmul.f32 %v9956_v4, %v1550_v0  ;;  %v1567_v37 = vmul.f32 -0.5, %v10000_v19 }
 0x202   : > { %15967 = vst [vmem:[#allocation125_spill] sm:$0xff] %v10037_v10  ;;  %v1599_v29 = vsel %vm10023_vm4, %v1596_v46, %v1593_v41  ;;  %v3683_v53 = vmin.f32 %v3171_v57, %v3427_v43  ;;  %v6034_v51 = vmul.f32 %v9988_v27, %v9988_v27  ;;  %v10049_v32 = vunpack.c.h.bf16 %v847_v8  ;;  %v606_v57 = vld [vmem:[%s9016_s28 + $0xe8] sm:$0xff] }
 0x203   : > { %v2482_v45 = vmul.f32 %v1599_v29, %v10021_v2  ;;  %7298 = vlog2.f32 %v1599_v29  ;;  %v7287_v58 = vpop.eup %7286  ;;  %vm1553_vm6 = vcmp.lt.f32.partialorder %v1552_v61, 0.0004427343  ;;  %v1541_v41 = vadd.f32 1.0, %v1540_v50 }
 0x204   : > { %v1548_v33 = vmul.f32 0.6931472, %v7287_v58  ;;  %v1079_v29 = vmul.f32 1.442695, %v730_v31  ;;  %v10054_v39 = vmul.f32 %v9967_v18, %v4554_v63  ;;  %7300 = vpow2.f32 %v3992_v28  ;;  %v727_v18 = vld [vmem:[%s9023_s13 + $0xb0] sm:$0xff] }
 0x205   : > { %v10051_v46 = vadd.f32 %v2482_v45, %v611_v17  ;;  %v1543_v43 = vand.u32 2147483647, %v9992_v49  ;;  %v3170_v27 = vsub.f32 -1.6120857, %v3042_v6  ;;  %v3426_v0 = vsub.f32 4.387914, %v3298_v44 }
 0x206   : > { %15968 = vst [vmem:[#allocation126_spill] sm:$0xff] %v10054_v39  ;;  %v1554_v61 = vsel %vm1553_vm6, %v1551_v12, %v1548_v33  ;;  %v1568_v17 = vadd.f32 1.0, %v1567_v37  ;;  %v729_v45 = vld [vmem:[%s9023_s13 + $0xc0] sm:$0xff]  ;;  %v10062_v58 = vpop.eup %7288  ;;  %v3811_v50 = vsub.f32 %v3683_v53, %v10037_v10  ;;  %v1570_v28 = vand.u32 2147483647, %v10000_v19 }
 0x207   : > { %2816 = vmatpush1.xpose.msra.mxu1 %v10051_v46  ;;  %v2477_v63 = vmul.f32 %v1554_v61, %v10049_v32  ;;  %7302 = vlog2.f32 %v1554_v61  ;;  %v6162_v4 = vmul.f32 0.5, %v6034_v51  ;;  %v10067_v38 = vunpack.c.l.bf16 %v847_v8 }
 0x208   : > { %v1542_v6 = vmul.f32 %v9992_v49, %v1541_v41  ;;  %7304 = vpow2.f32 %v1079_v29  ;;  %vm10072_vm8 = vcmp.lt.f32.partialorder %v1543_v43, 0.0004427343  ;;  %v1077_v33 = vmul.f32 1.442695, %v729_v45  ;;  %v605_v45 = vld [vmem:[%s9016_s28 + $0xe0] sm:$0xff] }
 0x209   : > { %v7291_v31 = vpop.eup %7290  ;;  %v10070_v37 = vadd.f32 %v2477_v63, %v606_v57  ;;  %v10076_v42 = vmax.f32 %v3170_v27, %v3426_v0  ;;  %v2917_v51 = vmul.f32 %v9599_v1, %v9599_v1  ;;  %v1569_v49 = vmul.f32 %v10000_v19, %v1568_v17 }
 0x20a   : > { %v7293_v12 = vpop.eup %7292  ;;  %v5686_v44 = vmul.f32 0.6931472, %v7291_v31  ;;  %v3682_v41 = vmin.f32 %v3170_v27, %v3426_v0  ;;  %v10086_v57 = vunpack.c.h.bf16 %v10081_v11  ;;  %vm1571_vm9 = vcmp.lt.f32.partialorder %v1570_v28, 0.0004427343 }
 0x20b   : > { %v7295_v61 = vpop.eup %7294  ;;  %15971 = vst [vmem:[#allocation127_spill] sm:$0xff] %v10076_v42  ;;  %v1539_v8 = vmul.f32 0.6931472, %v7293_v12  ;;  %2746 = vmatprep.subr.mxu0 %v10070_v37  ;;  %v6033_v1 = vmul.f32 %v10021_v2, %v10021_v2  ;;  %v1555_v27 = vadd.f32 1.0, %v10062_v58  ;;  %v2916_v0 = vmul.f32 %v9651_v26, %v9651_v26 }
 0x20c   : > { %v5906_v29 = vsub.f32 -0.9189385, %v5686_v44  ;;  %v10088_v43 = vpop.eup %7296  ;;  %v1566_v19 = vmul.f32 0.6931472, %v7295_v61  ;;  %7306 = vpow2.f32 %v1077_v33  ;;  %v3980_v31 = vmul.f32 1.442695, %v3811_v50 }
 0x20d   : > { %v1545_v63 = vsel %vm10072_vm8, %v1542_v6, %v1539_v8  ;;  %v3045_v12 = vmul.f32 0.5, %v2917_v51  ;;  %v608_v44 = vld [vmem:[%s9016_s28 + $0xf8] sm:$0xff]  ;;  %v3810_v6 = vsub.f32 %v3682_v41, %v10076_v42  ;;  %v3301_v26 = vmul.f32 81377.4, %v2917_v51 }
 0x20e   : > { %v10098_v17 = vsub.f32 %v5906_v29, %v6162_v4  ;;  %v2476_v28 = vmul.f32 %v1545_v63, %v10067_v38  ;;  %7308 = vlog2.f32 %v1545_v63  ;;  %v1572_v2 = vsel %vm1571_vm9, %v1569_v49, %v1566_v19 }
 0x20f   : > { %v2479_v61 = vmul.f32 %v1572_v2, %v10086_v57  ;;  %7310 = vlog2.f32 %v1572_v2  ;;  %v6161_v8 = vmul.f32 0.5, %v6033_v1  ;;  %v3044_v29 = vmul.f32 0.5, %v2916_v0 }
 0x210   : > { %15972 = vst [vmem:[#allocation128_spill] sm:$0xff] %v10098_v17  ;;  %v7299_v13 = vpop.eup %7298  ;;  %v10104_v53 = vadd.f32 %v2476_v28, %v605_v45  ;;  %7312 = vlog2.f32 %v1555_v27  ;;  %v6028_v50 = vmul.f32 %v10049_v32, %v10049_v32  ;;  %v1083_v49 = vmul.f32 1.442695, %v732_v40 }
 0x211   : > { %v5684_v4 = vmul.f32 0.6931472, %v7299_v13  ;;  %v10110_v33 = vadd.f32 %v2479_v61, %v608_v44  ;;  %v10112_v63 = vpop.eup %7300  ;;  %v15974_v41 = vsub.f32 %v10034_v20, %v10032_v52  ;;  %v3300_v19 = vmul.f32 81377.4, %v2916_v0 }
 0x212   : > { %2747 = vmatpush1.xpose.msra.mxu0 %v10104_v53  ;;  %15973 = vst [vmem:[#allocation129_spill] sm:$0xff] %v10112_v63  ;;  %v2911_v13 = vmul.f32 %v9738_v59, %v9738_v59  ;;  %v10120_v1 = vmul.f32 0.6931472, %v10030_v47  ;;  %7314 = vpow2.f32 %v3980_v31  ;;  %v3978_v32 = vmul.f32 1.442695, %v3810_v6 }
 0x213   : > { %v3990_v45 = vmul.f32 1.442695, %v15974_v41  ;;  %v5905_v51 = vsub.f32 -0.9189385, %v5684_v4  ;;  %v2910_v27 = vmul.f32 %v9759_v54, %v9759_v54  ;;  %2817 = vmatprep.subr.mxu1 %v10110_v33  ;;  %v3173_v28 = vsub.f32 -1.6120857, %v3045_v12 }
 0x214   : > { %15975 = vst [vmem:[#allocation130_spill] sm:$0xff] %v10120_v1  ;;  %v7303_v40 = vpop.eup %7302  ;;  %v3429_v44 = vsub.f32 4.387914, %v3301_v26  ;;  %v1558_v0 = vmul.f32 -0.5, %v10062_v58  ;;  %v3172_v59 = vsub.f32 -1.6120857, %v3044_v29  ;;  %7316 = vpow2.f32 %v1083_v49 }
 0x215   : > { %v10125_v20 = vsub.f32 %v5905_v51, %v6161_v8  ;;  %v10128_v2 = vpop.eup %7304  ;;  %v5674_v61 = vmul.f32 0.6931472, %v7303_v40  ;;  %v6156_v47 = vmul.f32 0.5, %v6028_v50  ;;  %7318 = vpow2.f32 %v3990_v45 }
 0x216   : > { %v3428_v31 = vsub.f32 4.387914, %v3300_v19  ;;  %v3039_v6 = vmul.f32 0.5, %v2911_v13  ;;  %v3295_v4 = vmul.f32 81377.4, %v2911_v13  ;;  %7320 = vpow2.f32 %v3978_v32 }
 0x217   : > { %15976 = vst [vmem:[#allocation131_spill] sm:$0xff] %v10125_v20  ;;  %v3038_v54 = vmul.f32 0.5, %v2910_v27  ;;  %v3294_v41 = vmul.f32 81377.4, %v2910_v27  ;;  %v5900_v52 = vsub.f32 -0.9189385, %v5674_v61  ;;  %v6027_v26 = vmul.f32 %v10067_v38, %v10067_v38 }
 0x218   : > { %v10131_v12 = vadd.f32 1.0, %v10112_v63  ;;  %v1559_v8 = vadd.f32 1.0, %v1558_v0  ;;  %v1510_v29 = vadd.f32 1.0, %v10128_v2  ;;  %v2913_v50 = vmul.f32 %v9769_v36, %v9769_v36 }
 0x219   : > { %v10138_v49 = vsub.f32 %v5900_v52, %v6156_v47  ;;  %v6030_v45 = vmul.f32 %v10086_v57, %v10086_v57  ;;  %v1561_v19 = vand.u32 2147483647, %v10062_v58  ;;  %v10143_v13 = vpop.eup %7306  ;;  %v10145_v51 = vmax.f32 %v3173_v28, %v3429_v44 }
 0x21a   : > { %v3685_v32 = vmin.f32 %v3173_v28, %v3429_v44  ;;  %v10147_v27 = vmax.f32 %v3172_v59, %v3428_v31  ;;  %v3167_v38 = vsub.f32 -1.6120857, %v3039_v6  ;;  %v3684_v0 = vmin.f32 %v3172_v59, %v3428_v31 }
 0x21b   : > { %15977 = vst [vmem:[#allocation132_spill] sm:$0xff] %v10138_v49  ;;  %15978 = vst [vmem:[#allocation133_spill] sm:$0xff] %v10145_v51  ;;  %v7309_v40 = vpop.eup %7308  ;;  %v3423_v61 = vsub.f32 4.387914, %v3295_v4  ;;  %v3166_v1 = vsub.f32 -1.6120857, %v3038_v54  ;;  %v1560_v57 = vmul.f32 %v10062_v58, %v1559_v8  ;;  %7322 = vlog2.f32 %v1510_v29 }
 0x21c   : > { %15979 = vst [vmem:[#allocation134_spill] sm:$0xff] %v10147_v27  ;;  %v3422_v36 = vsub.f32 4.387914, %v3294_v41  ;;  %v7311_v52 = vpop.eup %7310  ;;  %v5672_v47 = vmul.f32 0.6931472, %v7309_v40  ;;  %v6155_v9 = vmul.f32 0.5, %v6027_v26  ;;  %v10151_v6 = vunpack.c.l.bf16 %v10081_v11 }
 0x21d   : > { %v7313_v39 = vpop.eup %7312  ;;  %v3041_v35 = vmul.f32 0.5, %v2913_v50  ;;  %v5678_v10 = vmul.f32 0.6931472, %v7311_v52  ;;  %v6158_v16 = vmul.f32 0.5, %v6030_v45  ;;  %vm1562_vm10 = vcmp.lt.f32.partialorder %v1561_v19, 0.0004427343 }
 0x21e   : > { %v3297_v28 = vmul.f32 81377.4, %v2913_v50  ;;  %v5899_v44 = vsub.f32 -0.9189385, %v5672_v47  ;;  %v1557_v59 = vmul.f32 0.6931472, %v7313_v39  ;;  %v3813_v31 = vsub.f32 %v3685_v32, %v10145_v51 }
 0x21f   : > { %v3812_v4 = vsub.f32 %v3684_v0, %v10147_v27  ;;  %v10155_v54 = vmax.f32 %v3167_v38, %v3423_v61  ;;  %v5902_v58 = vsub.f32 -0.9189385, %v5678_v10  ;;  %v10157_v41 = vpop.eup %7314  ;;  %v3679_v26 = vmin.f32 %v3167_v38, %v3423_v61  ;;  %v607_v39 = vld [vmem:[%s9016_s28 + $0xf0] sm:$0xff] }
 0x220   : > { %15981 = vst [vmem:[#allocation136_spill] sm:$0xff] %v10157_v41  ;;  %v10159_v8 = vsub.f32 %v5899_v44, %v6155_v9  ;;  %v1563_v29 = vsel %vm1562_vm10, %v1560_v57, %v1557_v59  ;;  %v1501_v50 = vadd.f32 1.0, %v10143_v13  ;;  %v10162_v45 = vmax.f32 %v3166_v1, %v3422_v36 }
 0x221   : > { %15980 = vst [vmem:[#allocation135_spill] sm:$0xff] %v10155_v54  ;;  %v3678_v11 = vmin.f32 %v3166_v1, %v3422_v36  ;;  %v10164_v19 = vsub.f32 %v5902_v58, %v6158_v16  ;;  %v1513_v32 = vmul.f32 -0.5, %v10128_v2  ;;  %v10168_v40 = vpop.eup %7316  ;;  %v3169_v0 = vsub.f32 -1.6120857, %v3041_v35 }
 0x222   : > { %15982 = vst [vmem:[#allocation137_spill] sm:$0xff] %v10159_v8  ;;  %15983 = vst [vmem:[#allocation138_spill] sm:$0xff] %v10162_v45  ;;  %v3425_v10 = vsub.f32 4.387914, %v3297_v28  ;;  %v2478_v52 = vmul.f32 %v1563_v29, %v10151_v6  ;;  %7324 = vlog2.f32 %v1563_v29  ;;  %v10171_v9 = vpop.eup %7318  ;;  %v4523_v38 = vadd.f32 1.0, %v10157_v41 }
 0x223   : > { %15984 = vst [vmem:[#allocation139_spill] sm:$0xff] %v10164_v19  ;;  %15985 = vst [vmem:[#allocation140_spill] sm:$0xff] %v10171_v9  ;;  %v3984_v61 = vmul.f32 1.442695, %v3813_v31  ;;  %v2912_v1 = vmul.f32 %v9813_v48, %v9813_v48  ;;  %v1528_v16 = vadd.f32 1.0, %v10168_v40  ;;  %v10177_v36 = vpop.eup %7320  ;;  %v3807_v57 = vsub.f32 %v3679_v26, %v10155_v54  ;;  %v835_v19 = vld [vmem:[%s9026_s3 + $0x10] sm:$0xff] }
 0x224   : > { %15986 = vst [vmem:[#allocation141_spill] sm:$0xff] %v10177_v36  ;;  %v3982_v47 = vmul.f32 1.442695, %v3812_v4  ;;  %v10180_v35 = vadd.f32 %v2478_v52, %v607_v39  ;;  %7326 = vlog2.f32 %v1501_v50  ;;  %v3806_v28 = vsub.f32 %v3678_v11, %v10162_v45  ;;  %v731_v50 = vld [vmem:[%s9023_s13 + $0xd0] sm:$0xff]  ;;  %v845_v52 = vld [vmem:[%s9026_s3 + $0x60] sm:$0xff] }
 0x225   : > { %v1514_v44 = vadd.f32 1.0, %v1513_v32  ;;  %v1516_v59 = vand.u32 2147483647, %v10128_v2  ;;  %7328 = vlog2.f32 %v1528_v16  ;;  %v10185_v31 = vmul.f32 0.6931472, %v10088_v43 }
 0x226   : > { %7330 = vlog2.f32 %v10131_v12  ;;  %v10188_v48 = vmax.f32 %v3169_v0, %v3425_v10  ;;  %v3681_v4 = vmin.f32 %v3169_v0, %v3425_v10  ;;  %2818 = vmatpush1.xpose.msra.mxu1 %v10180_v35  ;;  %v4514_v58 = vadd.f32 1.0, %v10177_v36 }
 0x227   : > { %15987 = vst [vmem:[#allocation142_spill] sm:$0xff] %v10185_v31  ;;  %7332 = vlog2.f32 %v4523_v38  ;;  %v3040_v26 = vmul.f32 0.5, %v2912_v1  ;;  %v3296_v29 = vmul.f32 81377.4, %v2912_v1  ;;  %v10194_v11 = vmul.f32 -0.5, %v10112_v63  ;;  %v604_v63 = vld [vmem:[%s9016_s28 + $0xd8] sm:$0xff] }
 0x228   : > { %15988 = vst [vmem:[#allocation143_spill] sm:$0xff] %v10188_v48  ;;  %7334 = vpow2.f32 %v3984_v61  ;;  %v3972_v43 = vmul.f32 1.442695, %v3807_v57  ;;  %v1504_v39 = vmul.f32 -0.5, %v10143_v13  ;;  %v7323_v12 = vpop.eup %7322  ;;  %v3970_v32 = vmul.f32 1.442695, %v3806_v28 }
 0x229   : > { %15989 = vst [vmem:[#allocation144_spill] sm:$0xff] %v10194_v11  ;;  %7336 = vpow2.f32 %v3982_v47  ;;  %v1515_v0 = vmul.f32 %v10128_v2, %v1514_v44  ;;  %vm1517_vm11 = vcmp.lt.f32.partialorder %v1516_v59, 0.0004427343  ;;  %v3809_v10 = vsub.f32 %v3681_v4, %v10188_v48 }
 0x22a   : > { %v1512_v38 = vmul.f32 0.6931472, %v7323_v12  ;;  %v1531_v1 = vmul.f32 -0.5, %v10168_v40  ;;  %v1081_v16 = vmul.f32 1.442695, %v731_v50  ;;  %7338 = vlog2.f32 %v4514_v58 }
 0x22b   : > { %v3168_v51 = vsub.f32 -1.6120857, %v3040_v26  ;;  %v3424_v61 = vsub.f32 4.387914, %v3296_v29  ;;  %v10201_v57 = vunpack.c.h.bf16 %v845_v52  ;;  %7340 = vpow2.f32 %v3972_v43  ;;  %v602_v29 = vld [vmem:[%s9016_s28 + $0xc8] sm:$0xff] }
 0x22c   : > { %v2906_v47 = vmul.f32 %v9930_v3, %v9930_v3  ;;  %v6029_v2 = vmul.f32 %v10151_v6, %v10151_v6  ;;  %v1505_v28 = vadd.f32 1.0, %v1504_v39  ;;  %v4568_v44 = vadd.f32 1.0, %v10171_v9 }
 0x22d   : > { %v1518_v59 = vsel %vm1517_vm11, %v1515_v0, %v1512_v38  ;;  %v1507_v4 = vand.u32 2147483647, %v10143_v13  ;;  %7342 = vpow2.f32 %v1081_v16  ;;  %v4526_v58 = vmul.f32 -0.5, %v10157_v41 }
 0x22e   : > { %7344 = vpow2.f32 %v3970_v32  ;;  %v3976_v26 = vmul.f32 1.442695, %v3809_v10  ;;  %v1532_v50 = vadd.f32 1.0, %v1531_v1  ;;  %v10211_v12 = vmax.f32 %v3168_v51, %v3424_v61 }
 0x22f   : > { %v7325_v43 = vpop.eup %7324  ;;  %v2907_v3 = vmul.f32 %v9831_v34, %v9831_v34  ;;  %v2473_v6 = vmul.f32 %v1518_v59, %v10201_v57  ;;  %v1534_v39 = vand.u32 2147483647, %v10168_v40  ;;  %v3034_v0 = vmul.f32 0.5, %v2906_v47 }
 0x230   : > { %15990 = vst [vmem:[#allocation145_spill] sm:$0xff] %v10211_v12  ;;  %v5676_v38 = vmul.f32 0.6931472, %v7325_v43  ;;  %v6157_v16 = vmul.f32 0.5, %v6029_v2  ;;  %v1506_v31 = vmul.f32 %v10143_v13, %v1505_v28  ;;  %v3290_v10 = vmul.f32 81377.4, %v2906_v47 }
 0x231   : > { %v7327_v32 = vpop.eup %7326  ;;  %v10218_v1 = vadd.f32 %v2473_v6, %v602_v29  ;;  %v10220_v27 = vunpack.c.l.bf16 %v845_v52  ;;  %vm10222_vm12 = vcmp.lt.f32.partialorder %v1507_v4, 0.0004427343  ;;  %7346 = vlog2.f32 %v1518_v59  ;;  %v10227_v43 = vld [vmem:[%s9026_s3 + $0x68] sm:$0xff] }
 0x232   : > { %v7329_v34 = vpop.eup %7328  ;;  %v5901_v11 = vsub.f32 -0.9189385, %v5676_v38  ;;  %v1503_v42 = vmul.f32 0.6931472, %v7327_v32  ;;  %v1533_v13 = vmul.f32 %v10168_v40, %v1532_v50  ;;  %v3680_v47 = vmin.f32 %v3168_v51, %v3424_v61  ;;  %v726_v29 = vld [vmem:[%s9023_s13 + $0xa8] sm:$0xff]  ;;  %v601_v40 = vld [vmem:[%s9016_s28 + $0xc0] sm:$0xff] }
 0x233   : > { %v10230_v2 = vpop.eup %7330  ;;  %2748 = vmatprep.subr.mxu0 %v10218_v1  ;;  %v10234_v52 = vunpack.c.h.bf16 %v10227_v43  ;;  %v1530_v28 = vmul.f32 0.6931472, %v7329_v34  ;;  %vm10236_vm13 = vcmp.lt.f32.partialorder %v1534_v39, 0.0004427343  ;;  %v3035_v6 = vmul.f32 0.5, %v2907_v3 }
 0x234   : > { %15993 = vst [vmem:[#allocation146_spill] sm:$0xff] %v10230_v2  ;;  %v7333_v59 = vpop.eup %7332  ;;  %v3291_v38 = vmul.f32 81377.4, %v2907_v3  ;;  %v10241_v32 = vsub.f32 %v5901_v11, %v6157_v16  ;;  %v1509_v51 = vsel %vm10222_vm12, %v1506_v31, %v1503_v42  ;;  %v3162_v50 = vsub.f32 -1.6120857, %v3034_v0 }
 0x235   : > { %v10246_v61 = vpop.eup %7334  ;;  %v3418_v2 = vsub.f32 4.387914, %v3290_v10  ;;  %v2472_v39 = vmul.f32 %v1509_v51, %v10220_v27  ;;  %7348 = vlog2.f32 %v1509_v51  ;;  %v4527_v60 = vadd.f32 1.0, %v4526_v58 }
 0x236   : > { %15996 = vst [vmem:[#allocation147_spill] sm:$0xff] %v10241_v32  ;;  %15997 = vst [vmem:[#allocation148_spill] sm:$0xff] %v10246_v61  ;;  %v10249_v34 = vpop.eup %7336  ;;  %7350 = vlog2.f32 %v4568_v44  ;;  %v1536_v11 = vsel %vm10236_vm13, %v1533_v13, %v1530_v28  ;;  %v1071_v3 = vmul.f32 1.442695, %v726_v29  ;;  %v10254_v16 = vmul.f32 -0.5, %v10171_v9 }
 0x237   : > { %15998 = vst [vmem:[#allocation149_spill] sm:$0xff] %v10249_v34  ;;  %7352 = vpow2.f32 %v3976_v26  ;;  %v10256_v42 = vadd.f32 %v2472_v39, %v601_v40  ;;  %v2475_v31 = vmul.f32 %v1536_v11, %v10234_v52  ;;  %v7339_v0 = vpop.eup %7338  ;;  %v3163_v51 = vsub.f32 -1.6120857, %v3035_v6 }
 0x238   : > { %15999 = vst [vmem:[#allocation150_spill] sm:$0xff] %v10254_v16  ;;  %v3419_v48 = vsub.f32 4.387914, %v3291_v38  ;;  %7354 = vlog2.f32 %v1536_v11  ;;  %v10261_v44 = vpop.eup %7340  ;;  %v4517_v58 = vmul.f32 -0.5, %v10177_v36  ;;  %v3808_v13 = vsub.f32 %v3680_v47, %v10211_v12 }
 0x239   : > { %16000 = vst [vmem:[#allocation151_spill] sm:$0xff] %v10261_v44  ;;  %v10265_v28 = vmax.f32 %v3162_v50, %v3418_v2  ;;  %v3674_v26 = vmin.f32 %v3162_v50, %v3418_v2  ;;  %2749 = vmatpush1.xpose.msra.mxu0 %v10256_v42  ;;  %v10271_v29 = vmul.f32 %v10157_v41, %v4527_v60  ;;  %v4541_v6 = vadd.f32 1.0, %v10246_v61 }
 0x23a   : > { %v10268_v4 = vpop.eup %7342  ;;  %v10274_v38 = vadd.f32 %v2475_v31, %v604_v63  ;;  %7356 = vpow2.f32 %v1071_v3  ;;  %v10278_v39 = vmul.f32 0.6931472, %v7333_v59  ;;  %v4490_v2 = vmul.f32 -0.5, %v10261_v44 }
 0x23b   : > { %16001 = vst [vmem:[#allocation152_spill] sm:$0xff] %v10265_v28  ;;  %16002 = vst [vmem:[#allocation153_spill] sm:$0xff] %v10271_v29  ;;  %v10276_v40 = vpop.eup %7344  ;;  %v1519_v50 = vadd.f32 1.0, %v10268_v4  ;;  %v4532_v11 = vadd.f32 1.0, %v10249_v34  ;;  %v10284_v10 = vmax.f32 %v3163_v51, %v3419_v48  ;;  %v3675_v60 = vmin.f32 %v3163_v51, %v3419_v48 }
 0x23c   : > { %16003 = vst [vmem:[#allocation154_spill] sm:$0xff] %v10276_v40  ;;  %16004 = vst [vmem:[#allocation155_spill] sm:$0xff] %v10278_v39  ;;  %v6024_v63 = vmul.f32 %v10201_v57, %v10201_v57  ;;  %2819 = vmatprep.subr.mxu1 %v10274_v38  ;;  %v10289_v3 = vadd.f32 1.0, %v4517_v58  ;;  %v3974_v59 = vmul.f32 1.442695, %v3808_v13  ;;  %v3802_v31 = vsub.f32 %v3674_v26, %v10265_v28  ;;  %v725_v13 = vld [vmem:[%s9023_s13 + $0xa0] sm:$0xff] }
 0x23d   : > { %16005 = vst [vmem:[#allocation156_spill] sm:$0xff] %v10284_v10  ;;  %7358 = vlog2.f32 %v1519_v50  ;;  %v10294_v9 = vmul.f32 -0.5, %v10249_v34  ;;  %v4487_v48 = vadd.f32 1.0, %v10261_v44  ;;  %v10297_v16 = vmul.f32 0.6931472, %v7339_v0 }
 0x23e   : > { %16006 = vst [vmem:[#allocation157_spill] sm:$0xff] %v10289_v3  ;;  %7360 = vlog2.f32 %v4541_v6  ;;  %v7347_v51 = vpop.eup %7346  ;;  %v4491_v29 = vadd.f32 1.0, %v4490_v2  ;;  %v6023_v58 = vmul.f32 %v10220_v27, %v10220_v27  ;;  %v3803_v26 = vsub.f32 %v3675_v60, %v10284_v10 }
 0x23f   : > { %16007 = vst [vmem:[#allocation158_spill] sm:$0xff] %v10294_v9  ;;  %16008 = vst [vmem:[#allocation159_spill] sm:$0xff] %v10297_v16  ;;  %7362 = vlog2.f32 %v4532_v11  ;;  %v5666_v6 = vmul.f32 0.6931472, %v7347_v51  ;;  %v6152_v50 = vmul.f32 0.5, %v6024_v63  ;;  %v1522_v12 = vmul.f32 -0.5, %v10268_v4 }
 0x240   : > { %7364 = vpow2.f32 %v3974_v59  ;;  %v3962_v39 = vmul.f32 1.442695, %v3802_v31  ;;  %v6026_v2 = vmul.f32 %v10234_v52, %v10234_v52  ;;  %v1069_v27 = vmul.f32 1.442695, %v725_v13  ;;  %v728_v52 = vld [vmem:[%s9023_s13 + $0xb8] sm:$0xff] }
 0x241   : > { %7366 = vlog2.f32 %v4487_v48  ;;  %v5896_v57 = vsub.f32 -0.9189385, %v5666_v6  ;;  %v10311_v11 = vmul.f32 %v10261_v44, %v4491_v29  ;;  %v4481_v60 = vmul.f32 -0.5, %v10276_v40 }
 0x242   : > { %v7349_v0 = vpop.eup %7348  ;;  %v6151_v59 = vmul.f32 0.5, %v6023_v58  ;;  %v4478_v51 = vadd.f32 1.0, %v10276_v40  ;;  %v3964_v6 = vmul.f32 1.442695, %v3803_v26  ;;  %7368 = vpow2.f32 %v3962_v39 }
 0x243   : > { %v10308_v56 = vpop.eup %7350  ;;  %16010 = vst [vmem:[#allocation161_spill] sm:$0xff] %v10311_v11  ;;  %v5664_v63 = vmul.f32 0.6931472, %v7349_v0  ;;  %v10318_v47 = vsub.f32 %v5896_v57, %v6152_v50  ;;  %v2909_v29 = vmul.f32 %v10010_v14, %v10010_v14  ;;  %v1523_v34 = vadd.f32 1.0, %v1522_v12 }
 0x244   : > { %16009 = vst [vmem:[#allocation160_spill] sm:$0xff] %v10308_v56  ;;  %v10314_v31 = vpop.eup %7352  ;;  %v6154_v58 = vmul.f32 0.5, %v6026_v2  ;;  %v1525_v16 = vand.u32 2147483647, %v10268_v4  ;;  %7370 = vpow2.f32 %v1069_v27  ;;  %v4482_v48 = vadd.f32 1.0, %v4481_v60 }
 0x245   : > { %16011 = vst [vmem:[#allocation162_spill] sm:$0xff] %v10314_v31  ;;  %16012 = vst [vmem:[#allocation163_spill] sm:$0xff] %v10318_v47  ;;  %v7355_v13 = vpop.eup %7354  ;;  %v5895_v56 = vsub.f32 -0.9189385, %v5664_v63  ;;  %v2908_v57 = vmul.f32 %v10051_v46, %v10051_v46  ;;  %v1075_v39 = vmul.f32 1.442695, %v728_v52  ;;  %7372 = vpow2.f32 %v3964_v6 }
 0x246   : > { %v5670_v0 = vmul.f32 0.6931472, %v7355_v13  ;;  %v4505_v14 = vadd.f32 1.0, %v10314_v31  ;;  %v3037_v2 = vmul.f32 0.5, %v2909_v29  ;;  %v3293_v63 = vmul.f32 81377.4, %v2909_v29 }
 0x247   : > { %v10325_v45 = vpop.eup %7356  ;;  %v10329_v26 = vsub.f32 %v5895_v56, %v6151_v59  ;;  %v1524_v27 = vmul.f32 %v10268_v4, %v1523_v34  ;;  %v1073_v13 = vmul.f32 1.442695, %v727_v18  ;;  %v10337_v46 = vunpack.c.l.bf16 %v10227_v43  ;;  %v722_v56 = vld [vmem:[%s9023_s13 + $0x88] sm:$0xff]  ;;  %v603_v29 = vld [vmem:[%s9016_s28 + $0xd0] sm:$0xff] }
 0x248   : > { %v5898_v12 = vsub.f32 -0.9189385, %v5670_v0  ;;  %v1474_v50 = vadd.f32 1.0, %v10325_v45  ;;  %vm1526_vm15 = vcmp.lt.f32.partialorder %v1525_v16, 0.0004427343  ;;  %v3036_v6 = vmul.f32 0.5, %v2908_v57 }
 0x249   : > { %16013 = vst [vmem:[#allocation164_spill] sm:$0xff] %v10329_v26  ;;  %v3292_v52 = vmul.f32 81377.4, %v2908_v57  ;;  %v4508_v18 = vmul.f32 -0.5, %v10314_v31  ;;  %v2903_v4 = vmul.f32 %v10070_v37, %v10070_v37  ;;  %v3165_v16 = vsub.f32 -1.6120857, %v3037_v2 }
 0x24a   : > { %v7359_v54 = vpop.eup %7358  ;;  %v10334_v60 = vsub.f32 %v5898_v12, %v6154_v58  ;;  %7374 = vlog2.f32 %v1474_v50  ;;  %v1063_v12 = vmul.f32 1.442695, %v722_v56  ;;  %v721_v50 = vld [vmem:[%s9023_s13 + $0x80] sm:$0xff]  ;;  %v1477_v57 = vmul.f32 -0.5, %v10325_v45 }
 0x24b   : > { %v10340_v59 = vpop.eup %7360  ;;  %v1521_v0 = vmul.f32 0.6931472, %v7359_v54  ;;  %7376 = vpow2.f32 %v1075_v39  ;;  %v3421_v54 = vsub.f32 4.387914, %v3293_v63  ;;  %v10355_v34 = vmul.f32 %v10276_v40, %v4482_v48  ;;  %v724_v40 = vld [vmem:[%s9023_s13 + $0x98] sm:$0xff] }
 0x24c   : > { %16014 = vst [vmem:[#allocation165_spill] sm:$0xff] %v10334_v60  ;;  %16015 = vst [vmem:[#allocation166_spill] sm:$0xff] %v10340_v59  ;;  %7378 = vlog2.f32 %v4478_v51  ;;  %v10346_v43 = vpop.eup %7362  ;;  %v3164_v37 = vsub.f32 -1.6120857, %v3036_v6  ;;  %v3420_v2 = vsub.f32 4.387914, %v3292_v52  ;;  %v10934_v49 = vunpack.c.l.bf16 %v835_v19 }
 0x24d   : > { %16016 = vst [vmem:[#allocation167_spill] sm:$0xff] %v10346_v43  ;;  %v1527_v58 = vsel %vm1526_vm15, %v1524_v27, %v1521_v0  ;;  %7380 = vpow2.f32 %v1073_v13  ;;  %v10350_v59 = vpop.eup %7364  ;;  %16018 = vst [vmem:[#allocation169_spill] sm:$0xff] %v10355_v34  ;;  %v3031_v43 = vmul.f32 0.5, %v2903_v4  ;;  %v3287_v27 = vmul.f32 81377.4, %v2903_v4 }
 0x24e   : > { %16017 = vst [vmem:[#allocation168_spill] sm:$0xff] %v10350_v59  ;;  %v2474_v51 = vmul.f32 %v1527_v58, %v10337_v46  ;;  %7382 = vlog2.f32 %v1527_v58  ;;  %v7367_v39 = vpop.eup %7366  ;;  %v1061_v56 = vmul.f32 1.442695, %v721_v50  ;;  %v4496_v0 = vadd.f32 1.0, %v10350_v59 }
 0x24f   : > { %7384 = vlog2.f32 %v4505_v14  ;;  %v4499_v63 = vmul.f32 -0.5, %v10350_v59  ;;  %v2902_v58 = vmul.f32 %v10104_v53, %v10104_v53  ;;  %v10363_v9 = vpop.eup %7368  ;;  %v10366_v14 = vmax.f32 %v3165_v16, %v3421_v54 }
 0x250   : > { %v10357_v13 = vadd.f32 %v2474_v51, %v603_v29  ;;  %7386 = vpow2.f32 %v1063_v12  ;;  %16019 = vst [vmem:[#allocation170_spill] sm:$0xff] %v10363_v9  ;;  %v1478_v6 = vadd.f32 1.0, %v1477_v57  ;;  %v3677_v4 = vmin.f32 %v3165_v16, %v3421_v54 }
 0x251   : > { %16020 = vst [vmem:[#allocation171_spill] sm:$0xff] %v10366_v14  ;;  %7388 = vpow2.f32 %v1061_v56  ;;  %v10369_v52 = vpop.eup %7370  ;;  %v10371_v29 = vmax.f32 %v3164_v37, %v3420_v2  ;;  %v3676_v50 = vmin.f32 %v3164_v37, %v3420_v2  ;;  %v1480_v53 = vand.u32 2147483647, %v10325_v45  ;;  %v843_v37 = vld [vmem:[%s9026_s3 + $0x50] sm:$0xff] }
 0x252   : > { %2820 = vmatpush1.xpose.msra.mxu1 %v10357_v13  ;;  %v10374_v12 = vadd.f32 1.0, %v4508_v18  ;;  %v3159_v51 = vsub.f32 -1.6120857, %v3031_v43  ;;  %v3415_v61 = vsub.f32 4.387914, %v3287_v27  ;;  %v1465_v48 = vadd.f32 1.0, %v10369_v52  ;;  %v10377_v3 = vpop.eup %7372 }
 0x253   : > { %16021 = vst [vmem:[#allocation172_spill] sm:$0xff] %v10371_v29  ;;  %16023 = vst [vmem:[#allocation174_spill] sm:$0xff] %v10377_v3  ;;  %v10379_v34 = vmul.f32 0.6931472, %v7367_v39  ;;  %7390 = vlog2.f32 %v4496_v0  ;;  %v4442_v57 = vadd.f32 1.0, %v10363_v9  ;;  %v3030_v56 = vmul.f32 0.5, %v2902_v58 }
 0x254   : > { %16022 = vst [vmem:[#allocation173_spill] sm:$0xff] %v10374_v12  ;;  %v10382_v16 = vadd.f32 1.0, %v4499_v63  ;;  %v3286_v54 = vmul.f32 81377.4, %v2902_v58  ;;  %v1479_v2 = vmul.f32 %v10325_v45, %v1478_v6  ;;  %7392 = vlog2.f32 %v1465_v48 }
 0x255   : > { %16024 = vst [vmem:[#allocation175_spill] sm:$0xff] %v10379_v34  ;;  %v3805_v43 = vsub.f32 %v3677_v4, %v10366_v14  ;;  %v3804_v27 = vsub.f32 %v3676_v50, %v10371_v29  ;;  %v918_v41 = vunpack.c.h.bf16 %v843_v37  ;;  %vm1481_vm0 = vcmp.lt.f32.partialorder %v1480_v53, 0.0004427343  ;;  %v598_v53 = vld [vmem:[%s9016_s28 + $0xa8] sm:$0xff] }
 0x256   : > { %16025 = vst [vmem:[#allocation176_spill] sm:$0xff] %v10382_v16  ;;  %v10390_v0 = vmax.f32 %v3159_v51, %v3415_v61  ;;  %v3671_v59 = vmin.f32 %v3159_v51, %v3415_v61  ;;  %v6025_v63 = vmul.f32 %v10337_v46, %v10337_v46  ;;  %v10397_v45 = vadd.f32 1.0, %v10377_v3 }
 0x257   : > { %v7375_v18 = vpop.eup %7374  ;;  %7394 = vlog2.f32 %v4442_v57  ;;  %v3158_v48 = vsub.f32 -1.6120857, %v3030_v56  ;;  %v2905_v6 = vmul.f32 %v10110_v33, %v10110_v33  ;;  %v3414_v50 = vsub.f32 4.387914, %v3286_v54 }
 0x258   : > { %v10388_v39 = vpop.eup %7376  ;;  %16026 = vst [vmem:[#allocation177_spill] sm:$0xff] %v10390_v0  ;;  %v1476_v58 = vmul.f32 0.6931472, %v7375_v18  ;;  %v1468_v61 = vmul.f32 -0.5, %v10369_v52  ;;  %v3968_v18 = vmul.f32 1.442695, %v3805_v43  ;;  %v3799_v57 = vsub.f32 %v3671_v59, %v10390_v0 }
 0x259   : > { %v10394_v16 = vpop.eup %7378  ;;  %v1492_v46 = vadd.f32 1.0, %v10388_v39  ;;  %v3966_v29 = vmul.f32 1.442695, %v3804_v27  ;;  %v6153_v33 = vmul.f32 0.5, %v6025_v63  ;;  %v10409_v10 = vmul.f32 0.5, %v2905_v6 }
 0x25a   : > { %16027 = vst [vmem:[#allocation178_spill] sm:$0xff] %v10394_v16  ;;  %v10401_v4 = vpop.eup %7380  ;;  %v1482_v14 = vsel %vm1481_vm0, %v1479_v2, %v1476_v58  ;;  %v10411_v54 = vmul.f32 81377.4, %v2905_v6  ;;  %v10418_v43 = vmax.f32 %v3158_v48, %v3414_v50  ;;  %v4454_v59 = vmul.f32 -0.5, %v10377_v3 }
 0x25b   : > { %v7383_v51 = vpop.eup %7382  ;;  %v2469_v11 = vmul.f32 %v1482_v14, %v918_v41  ;;  %7396 = vlog2.f32 %v1482_v14  ;;  %v1483_v58 = vadd.f32 1.0, %v10401_v4  ;;  %v3670_v14 = vmin.f32 %v3158_v48, %v3414_v50 }
 0x25c   : > { %v10406_v34 = vpop.eup %7384  ;;  %v5668_v56 = vmul.f32 0.6931472, %v7383_v51  ;;  %7398 = vlog2.f32 %v1492_v46  ;;  %16029 = vst [vmem:[#allocation180_spill] sm:$0xff] %v10418_v43  ;;  %v4445_v63 = vmul.f32 -0.5, %v10363_v9  ;;  %v3956_v6 = vmul.f32 1.442695, %v3799_v57 }
 0x25d   : > { %16028 = vst [vmem:[#allocation179_spill] sm:$0xff] %v10406_v34  ;;  %v10413_v2 = vadd.f32 %v2469_v11, %v598_v53  ;;  %v10416_v31 = vpop.eup %7386  ;;  %v1469_v34 = vadd.f32 1.0, %v1468_v61  ;;  %v1471_v11 = vand.u32 2147483647, %v10369_v52  ;;  %7400 = vlog2.f32 %v1483_v58 }
 0x25e   : > { %v5897_v27 = vsub.f32 -0.9189385, %v5668_v56  ;;  %v10420_v12 = vpop.eup %7388  ;;  %7402 = vpow2.f32 %v3968_v18  ;;  %v1495_v46 = vmul.f32 -0.5, %v10388_v39  ;;  %v3161_v48 = vsub.f32 -1.6120857, %v10409_v10 }
 0x25f   : > { %2750 = vmatprep.subr.mxu0 %v10413_v2  ;;  %7404 = vpow2.f32 %v3966_v29  ;;  %v3417_v50 = vsub.f32 4.387914, %v10411_v54  ;;  %v1438_v61 = vadd.f32 1.0, %v10416_v31  ;;  %v3798_v56 = vsub.f32 %v3670_v14, %v10418_v43 }
 0x260   : > { %v10426_v53 = vsub.f32 %v5897_v27, %v6153_v33  ;;  %v10432_v51 = vpop.eup %7390  ;;  %v6020_v28 = vmul.f32 %v918_v41, %v918_v41  ;;  %v1470_v58 = vmul.f32 %v10369_v52, %v1469_v34  ;;  %v1429_v18 = vadd.f32 1.0, %v10420_v12 }
 0x261   : > { %16031 = vst [vmem:[#allocation182_spill] sm:$0xff] %v10432_v51  ;;  %v7393_v57 = vpop.eup %7392  ;;  %v917_v33 = vunpack.c.l.bf16 %v843_v37  ;;  %vm10437_vm2 = vcmp.lt.f32.partialorder %v1471_v11, 0.0004427343  ;;  %v1486_v10 = vmul.f32 -0.5, %v10401_v4  ;;  %7406 = vlog2.f32 %v1438_v61 }
 0x262   : > { %16030 = vst [vmem:[#allocation181_spill] sm:$0xff] %v10426_v53  ;;  %v1467_v27 = vmul.f32 0.6931472, %v7393_v57  ;;  %v1496_v14 = vadd.f32 1.0, %v1495_v46  ;;  %7408 = vlog2.f32 %v1429_v18  ;;  %v10443_v41 = vadd.f32 1.0, %v4454_v59  ;;  %v597_v57 = vld [vmem:[%s9016_s28 + $0xa0] sm:$0xff] }
 0x263   : > { %v10445_v34 = vadd.f32 1.0, %v4445_v63  ;;  %7410 = vpow2.f32 %v3956_v6  ;;  %v1498_v52 = vand.u32 2147483647, %v10388_v39  ;;  %v3954_v11 = vmul.f32 1.442695, %v3798_v56  ;;  %v844_v63 = vld [vmem:[%s9026_s3 + $0x58] sm:$0xff] }
 0x264   : > { %v10448_v37 = vpop.eup %7394  ;;  %v10450_v51 = vmax.f32 %v3161_v48, %v3417_v50  ;;  %v2904_v61 = vmul.f32 %v10180_v35, %v10180_v35  ;;  %v1473_v46 = vsel %vm10437_vm2, %v1470_v58, %v1467_v27  ;;  %v6148_v59 = vmul.f32 0.5, %v6020_v28 }
 0x265   : > { %v2468_v18 = vmul.f32 %v1473_v46, %v917_v33  ;;  %7412 = vlog2.f32 %v1473_v46  ;;  %v1487_v6 = vadd.f32 1.0, %v1486_v10  ;;  %v10458_v36 = vunpack.c.h.bf16 %v844_v63 }
 0x266   : > { %16034 = vst [vmem:[#allocation183_spill] sm:$0xff] %v10450_v51  ;;  %v1497_v16 = vmul.f32 %v10388_v39, %v1496_v14  ;;  %v1441_v56 = vmul.f32 -0.5, %v10416_v31  ;;  %v1432_v0 = vmul.f32 -0.5, %v10420_v12  ;;  %vm1499_vm3 = vcmp.lt.f32.partialorder %v1498_v52, 0.0004427343 }
 0x267   : > { %v10464_v29 = vadd.f32 %v2468_v18, %v597_v57  ;;  %v1489_v28 = vand.u32 2147483647, %v10401_v4  ;;  %7414 = vpow2.f32 %v3954_v11  ;;  %v10467_v58 = vmin.f32 %v3161_v48, %v3417_v50  ;;  %v600_v57 = vld [vmem:[%s9016_s28 + $0xb8] sm:$0xff] }
 0x268   : > { %v7397_v54 = vpop.eup %7396  ;;  %v10469_v10 = vmul.f32 0.5, %v2904_v61  ;;  %v10472_v14 = vunpack.c.l.bf16 %v844_v63  ;;  %v1488_v46 = vmul.f32 %v10401_v4, %v1487_v6  ;;  %v1067_v44 = vmul.f32 1.442695, %v724_v40 }
 0x269   : > { %v7399_v35 = vpop.eup %7398  ;;  %v5658_v43 = vmul.f32 0.6931472, %v7397_v54  ;;  %2751 = vmatpush1.xpose.msra.mxu0 %v10464_v29  ;;  %v1442_v18 = vadd.f32 1.0, %v1441_v56  ;;  %v1444_v48 = vand.u32 2147483647, %v10416_v31  ;;  %v1433_v50 = vadd.f32 1.0, %v1432_v0 }
 0x26a   : > { %v1494_v27 = vmul.f32 0.6931472, %v7399_v35  ;;  %v7401_v54 = vpop.eup %7400  ;;  %vm1490_vm4 = vcmp.lt.f32.partialorder %v1489_v28, 0.0004427343  ;;  %v1435_v4 = vand.u32 2147483647, %v10420_v12  ;;  %v2898_v6 = vmul.f32 %v10256_v42, %v10256_v42 }
 0x26b   : > { %v5892_v39 = vsub.f32 -0.9189385, %v5658_v43  ;;  %v10477_v11 = vpop.eup %7402  ;;  %v3288_v63 = vmul.f32 81377.4, %v2904_v61  ;;  %v1485_v0 = vmul.f32 0.6931472, %v7401_v54  ;;  %v1443_v61 = vmul.f32 %v10416_v31, %v1442_v18 }
 0x26c   : > { %v1500_v52 = vsel %vm1499_vm3, %v1497_v16, %v1494_v27  ;;  %16035 = vst [vmem:[#allocation184_spill] sm:$0xff] %v10477_v11  ;;  %v10483_v40 = vpop.eup %7404  ;;  %v2899_v16 = vmul.f32 %v10218_v1, %v10218_v1  ;;  %v841_v56 = vld [vmem:[%s9026_s3 + $0x40] sm:$0xff]  ;;  %v723_v27 = vld [vmem:[%s9023_s13 + $0x90] sm:$0xff]  ;;  %vm10497_vm6 = vcmp.lt.f32.partialorder %v1444_v48, 0.0004427343  ;;  %v1434_v1 = vmul.f32 %v10420_v12, %v1433_v50 }
 0x26d   : > { %v10479_v35 = vsub.f32 %v5892_v39, %v6148_v59  ;;  %v2471_v43 = vmul.f32 %v1500_v52, %v10458_v36  ;;  %16037 = vst [vmem:[#allocation186_spill] sm:$0xff] %v10483_v40  ;;  %v6019_v59 = vmul.f32 %v917_v33, %v917_v33  ;;  %7416 = vlog2.f32 %v1500_v52 }
 0x26e   : > { %v10493_v23 = vunpack.c.h.bf16 %v841_v56  ;;  %v7407_v28 = vpop.eup %7406  ;;  %v1491_v5 = vsel %vm1490_vm4, %v1488_v46, %v1485_v0  ;;  %vm10504_vm8 = vcmp.lt.f32.partialorder %v1435_v4, 0.0004427343  ;;  %7418 = vpow2.f32 %v1067_v44 }
 0x26f   : > { %16036 = vst [vmem:[#allocation185_spill] sm:$0xff] %v10479_v35  ;;  %v10491_v39 = vadd.f32 %v2471_v43, %v600_v57  ;;  %v7409_v42 = vpop.eup %7408  ;;  %v2470_v33 = vmul.f32 %v1491_v5, %v10472_v14  ;;  %v1065_v57 = vmul.f32 1.442695, %v723_v27  ;;  %7420 = vlog2.f32 %v1491_v5 }
 0x270   : > { %v10508_v46 = vpop.eup %7410  ;;  %v1440_v31 = vmul.f32 0.6931472, %v7407_v28  ;;  %v10510_v52 = vunpack.c.l.bf16 %v841_v56  ;;  %v1431_v18 = vmul.f32 0.6931472, %v7409_v42  ;;  %v3801_v12 = vsub.f32 %v10467_v58, %v10450_v51  ;;  %v594_v58 = vld [vmem:[%s9016_s28 + $0x88] sm:$0xff] }
 0x271   : > { %2821 = vmatprep.subr.mxu1 %v10491_v39  ;;  %v3160_v48 = vsub.f32 -1.6120857, %v10469_v10  ;;  %v3416_v50 = vsub.f32 4.387914, %v3288_v63  ;;  %v10515_v43 = vadd.f32 %v2470_v33, %v599_v62  ;;  %v3027_v44 = vmul.f32 0.5, %v2899_v16  ;;  %v593_v63 = vld [vmem:[%s9016_s28 + $0x80] sm:$0xff] }
 0x272   : > { %v7413_v4 = vpop.eup %7412  ;;  %v3283_v0 = vmul.f32 81377.4, %v2899_v16  ;;  %v1446_v5 = vsel %vm10497_vm6, %v1443_v61, %v1440_v31  ;;  %v1437_v56 = vsel %vm10504_vm8, %v1434_v1, %v1431_v18  ;;  %v3026_v27 = vmul.f32 0.5, %v2898_v6 }
 0x273   : > { %v5656_v28 = vmul.f32 0.6931472, %v7413_v4  ;;  %v6147_v42 = vmul.f32 0.5, %v6019_v59  ;;  %2822 = vmatpush1.xpose.msra.mxu1 %v10515_v43  ;;  %7422 = vpow2.f32 %v1065_v57  ;;  %v3282_v10 = vmul.f32 81377.4, %v2898_v6 }
 0x274   : > { %v2465_v62 = vmul.f32 %v1446_v5, %v10493_v23  ;;  %7424 = vlog2.f32 %v1446_v5  ;;  %v2464_v16 = vmul.f32 %v1437_v56, %v10510_v52  ;;  %v10526_v33 = vpop.eup %7414  ;;  %v4469_v15 = vadd.f32 1.0, %v10477_v11 }
 0x275   : > { %v3960_v61 = vmul.f32 1.442695, %v3801_v12  ;;  %v10529_v1 = vmax.f32 %v3160_v48, %v3416_v50  ;;  %v5891_v54 = vsub.f32 -0.9189385, %v5656_v28  ;;  %v3672_v59 = vmin.f32 %v3160_v48, %v3416_v50 }
 0x276   : > { %v3155_v31 = vsub.f32 -1.6120857, %v3027_v44  ;;  %v3411_v18 = vsub.f32 4.387914, %v3283_v0  ;;  %v10531_v4 = vadd.f32 %v2465_v62, %v594_v58  ;;  %7426 = vlog2.f32 %v10397_v45 }
 0x277   : > { %16042 = vst [vmem:[#allocation187_spill] sm:$0xff] %v10529_v1  ;;  %v10534_v6 = vsub.f32 %v5891_v54, %v6147_v42  ;;  %v6022_v57 = vmul.f32 %v10458_v36, %v10458_v36  ;;  %v10538_v5 = vadd.f32 %v2464_v16, %v593_v63  ;;  %v10542_v12 = vmul.f32 %v10377_v3, %v10443_v41 }
 0x278   : > { %v4460_v28 = vadd.f32 1.0, %v10483_v40  ;;  %v3154_v48 = vsub.f32 -1.6120857, %v3026_v27  ;;  %v3410_v50 = vsub.f32 4.387914, %v3282_v10  ;;  %2752 = vmatprep.subr.mxu0 %v10531_v4  ;;  %v10551_v45 = vmul.f32 %v10363_v9, %v10445_v34  ;;  %v596_v9 = vld [vmem:[%s9016_s28 + $0x98] sm:$0xff] }
 0x279   : > { %16043 = vst [vmem:[#allocation188_spill] sm:$0xff] %v10534_v6  ;;  %16044 = vst [vmem:[#allocation189_spill] sm:$0xff] %v10542_v12  ;;  %v10547_v44 = vmul.f32 0.6931472, %v10448_v37  ;;  %7428 = vlog2.f32 %v4469_v15  ;;  %2753 = vmatpush1.xpose.msra.mxu0 %v10538_v5  ;;  %v3800_v0 = vsub.f32 %v3672_v59, %v10529_v1  ;;  %v10556_v27 = vmax.f32 %v3155_v31, %v3411_v18 }
 0x27a   : > { %16046 = vst [vmem:[#allocation191_spill] sm:$0xff] %v10551_v45  ;;  %v7417_v41 = vpop.eup %7416  ;;  %7430 = vpow2.f32 %v3960_v61  ;;  %v6021_v42 = vmul.f32 %v10472_v14, %v10472_v14  ;;  %v3667_v37 = vmin.f32 %v3155_v31, %v3411_v18  ;;  %v2901_v58 = vmul.f32 %v10274_v38, %v10274_v38 }
 0x27b   : > { %16045 = vst [vmem:[#allocation190_spill] sm:$0xff] %v10547_v44  ;;  %v5662_v34 = vmul.f32 0.6931472, %v7417_v41  ;;  %v6150_v10 = vmul.f32 0.5, %v6022_v57  ;;  %v10562_v62 = vpop.eup %7418  ;;  %7432 = vlog2.f32 %v4460_v28  ;;  %v4415_v63 = vadd.f32 1.0, %v10508_v46  ;;  %v718_v44 = vld [vmem:[%s9023_s13 + $0x68] sm:$0xff] }
 0x27c   : > { %v10565_v16 = vmax.f32 %v3154_v48, %v3410_v50  ;;  %v3666_v15 = vmin.f32 %v3154_v48, %v3410_v50  ;;  %v7421_v61 = vpop.eup %7420  ;;  %v2900_v54 = vmul.f32 %v10357_v13, %v10357_v13  ;;  %v2895_v14 = vmul.f32 %v10413_v2, %v10413_v2 }
 0x27d   : > { %v5894_v59 = vsub.f32 -0.9189385, %v5662_v34  ;;  %v6016_v38 = vmul.f32 %v10493_v23, %v10493_v23  ;;  %v4406_v31 = vadd.f32 1.0, %v10526_v33  ;;  %v5660_v18 = vmul.f32 0.6931472, %v7421_v61 }
 0x27e   : > { %v6149_v57 = vmul.f32 0.5, %v6021_v42  ;;  %7434 = vlog2.f32 %v1437_v56  ;;  %v3958_v28 = vmul.f32 1.442695, %v3800_v0  ;;  %v3795_v41 = vsub.f32 %v3667_v37, %v10556_v27 }
 0x27f   : > { %v3029_v48 = vmul.f32 0.5, %v2901_v58  ;;  %v10575_v50 = vsub.f32 %v5894_v59, %v6150_v10  ;;  %v3794_v13 = vsub.f32 %v3666_v15, %v10565_v16  ;;  %v3285_v2 = vmul.f32 81377.4, %v2901_v58 }
 0x280   : > { %v10577_v36 = vpop.eup %7422  ;;  %v5893_v34 = vsub.f32 -0.9189385, %v5660_v18  ;;  %v1456_v12 = vadd.f32 1.0, %v10562_v62  ;;  %v3028_v51 = vmul.f32 0.5, %v2900_v54  ;;  %v3284_v1 = vmul.f32 81377.4, %v2900_v54 }
 0x281   : > { %16047 = vst [vmem:[#allocation192_spill] sm:$0xff] %v10575_v50  ;;  %v7425_v23 = vpop.eup %7424  ;;  %v3023_v61 = vmul.f32 0.5, %v2895_v14  ;;  %v6144_v42 = vmul.f32 0.5, %v6016_v38  ;;  %v3279_v56 = vmul.f32 81377.4, %v2895_v14  ;;  %v4418_v10 = vmul.f32 -0.5, %v10508_v46 }
 0x282   : > { %v10581_v0 = vsub.f32 %v5893_v34, %v6149_v57  ;;  %v5650_v37 = vmul.f32 0.6931472, %v7425_v23  ;;  %7436 = vlog2.f32 %v1456_v12  ;;  %v3948_v59 = vmul.f32 1.442695, %v3795_v41 }
 0x283   : > { %7438 = vlog2.f32 %v4415_v63  ;;  %v1447_v58 = vadd.f32 1.0, %v10577_v36  ;;  %v10585_v15 = vpop.eup %7426  ;;  %v3157_v18 = vsub.f32 -1.6120857, %v3029_v48  ;;  %v3413_v45 = vsub.f32 4.387914, %v3285_v2 }
 0x284   : > { %16048 = vst [vmem:[#allocation193_spill] sm:$0xff] %v10581_v0  ;;  %16049 = vst [vmem:[#allocation194_spill] sm:$0xff] %v10585_v15  ;;  %7440 = vlog2.f32 %v4406_v31  ;;  %v5888_v54 = vsub.f32 -0.9189385, %v5650_v37  ;;  %v3946_v38 = vmul.f32 1.442695, %v3794_v13  ;;  %v2890_v25 = vmul.f32 %v10538_v5, %v10538_v5 }
 0x285   : > { %7442 = vpow2.f32 %v3958_v28  ;;  %v3156_v14 = vsub.f32 -1.6120857, %v3028_v51  ;;  %v3412_v57 = vsub.f32 4.387914, %v3284_v1  ;;  %v3151_v12 = vsub.f32 -1.6120857, %v3023_v61 }
 0x286   : > { %v10587_v34 = vpop.eup %7428  ;;  %v3407_v63 = vsub.f32 4.387914, %v3279_v56  ;;  %v10589_v23 = vsub.f32 %v5888_v54, %v6144_v42  ;;  %v1459_v41 = vmul.f32 -0.5, %v10562_v62  ;;  %v10596_v31 = vmul.f32 -0.5, %v10477_v11  ;;  %v717_v54 = vld [vmem:[%s9023_s13 + $0x60] sm:$0xff] }
 0x287   : > { %16050 = vst [vmem:[#allocation195_spill] sm:$0xff] %v10587_v34  ;;  %v10593_v3 = vpop.eup %7430  ;;  %v4463_v28 = vmul.f32 -0.5, %v10483_v40  ;;  %7444 = vlog2.f32 %v1447_v58  ;;  %v4419_v1 = vadd.f32 1.0, %v4418_v10  ;;  %v10600_v48 = vmax.f32 %v3157_v18, %v3413_v45  ;;  %v720_v10 = vld [vmem:[%s9023_s13 + $0x78] sm:$0xff] }
 0x288   : > { %16051 = vst [vmem:[#allocation196_spill] sm:$0xff] %v10589_v23  ;;  %16052 = vst [vmem:[#allocation197_spill] sm:$0xff] %v10593_v3  ;;  %7446 = vpow2.f32 %v3948_v59  ;;  %v3669_v13 = vmin.f32 %v3157_v18, %v3413_v45  ;;  %v10602_v2 = vpop.eup %7432  ;;  %v10604_v61 = vmax.f32 %v3156_v14, %v3412_v57  ;;  %v3668_v42 = vmin.f32 %v3156_v14, %v3412_v57 }
 0x289   : > { %16053 = vst [vmem:[#allocation198_spill] sm:$0xff] %v10596_v31  ;;  %16054 = vst [vmem:[#allocation199_spill] sm:$0xff] %v10600_v48  ;;  %v6015_v56 = vmul.f32 %v10510_v52, %v10510_v52  ;;  %v1055_v37 = vmul.f32 1.442695, %v718_v44  ;;  %7448 = vpow2.f32 %v3946_v38  ;;  %v10609_v34 = vmax.f32 %v3151_v12, %v3407_v63 }
 0x28a   : > { %16055 = vst [vmem:[#allocation200_spill] sm:$0xff] %v10602_v2  ;;  %16056 = vst [vmem:[#allocation201_spill] sm:$0xff] %v10604_v61  ;;  %v3663_v51 = vmin.f32 %v3151_v12, %v3407_v63  ;;  %v1460_v58 = vadd.f32 1.0, %v1459_v41  ;;  %v10612_v40 = vadd.f32 1.0, %v4463_v28  ;;  %v4421_v45 = vand.u32 2147483647, %v10508_v46 }
 0x28b   : > { %16057 = vst [vmem:[#allocation202_spill] sm:$0xff] %v10609_v34  ;;  %v7435_v59 = vpop.eup %7434  ;;  %v1462_v18 = vand.u32 2147483647, %v10562_v62  ;;  %v1450_v14 = vmul.f32 -0.5, %v10577_v36  ;;  %v10618_v52 = vmul.f32 %v10508_v46, %v4419_v1  ;;  %v4409_v44 = vmul.f32 -0.5, %v10526_v33  ;;  %v842_v2 = vld [vmem:[%s9026_s3 + $0x48] sm:$0xff] }
 0x28c   : > { %16058 = vst [vmem:[#allocation203_spill] sm:$0xff] %v10612_v40  ;;  %v5648_v38 = vmul.f32 0.6931472, %v7435_v59  ;;  %v1053_v57 = vmul.f32 1.442695, %v717_v54  ;;  %v3797_v12 = vsub.f32 %v3669_v13, %v10600_v48  ;;  %v3796_v63 = vsub.f32 %v3668_v42, %v10604_v61 }
 0x28d   : > { %16059 = vst [vmem:[#allocation204_spill] sm:$0xff] %v10618_v52  ;;  %v6143_v41 = vmul.f32 0.5, %v6015_v56  ;;  %7450 = vpow2.f32 %v1055_v37  ;;  %v3791_v28 = vsub.f32 %v3663_v51, %v10609_v34  ;;  %v2894_v40 = vmul.f32 %v10464_v29, %v10464_v29 }
 0x28e   : > { %v1461_v11 = vmul.f32 %v10562_v62, %v1460_v58  ;;  %v1059_v46 = vmul.f32 1.442695, %v720_v10  ;;  %v5887_v31 = vsub.f32 -0.9189385, %v5648_v38  ;;  %v10628_v15 = vunpack.c.h.bf16 %v842_v2 }
 0x28f   : > { %v7437_v1 = vpop.eup %7436  ;;  %vm10630_vm9 = vcmp.lt.f32.partialorder %v1462_v18, 0.0004427343  ;;  %v1451_v13 = vadd.f32 1.0, %v1450_v14  ;;  %v4412_v51 = vand.u32 2147483647, %v10526_v33  ;;  %7452 = vpow2.f32 %v1053_v57 }
 0x290   : > { %v7439_v42 = vpop.eup %7438  ;;  %v1458_v56 = vmul.f32 0.6931472, %v7437_v1  ;;  %v1453_v29 = vand.u32 2147483647, %v10577_v36  ;;  %v4436_v62 = vmul.f32 -0.5, %v10593_v3  ;;  %v10637_v59 = vsub.f32 %v5887_v31, %v6143_v41 }
 0x291   : > { %v7441_v37 = vpop.eup %7440  ;;  %v3952_v58 = vmul.f32 1.442695, %v3797_v12  ;;  %v3950_v10 = vmul.f32 1.442695, %v3796_v63  ;;  %vm10641_vm10 = vcmp.lt.f32.partialorder %v4421_v45, 0.0004427343  ;;  %7454 = vpow2.f32 %v1059_v46 }
 0x292   : > { %16062 = vst [vmem:[#allocation205_spill] sm:$0xff] %v10637_v59  ;;  %v10639_v18 = vpop.eup %7442  ;;  %v16064_v38 = vmov 0  ;;  %v3940_v14 = vmul.f32 1.442695, %v3791_v28  ;;  %v3022_v48 = vmul.f32 0.5, %v2894_v40  ;;  %v1464_v1 = vsel %vm10630_vm9, %v1461_v11, %v1458_v56 }
 0x293   : > { %16063 = vst [vmem:[#allocation206_spill] sm:$0xff] %v10639_v18  ;;  %v16065_v38 = vsel %vm10641_vm10, 4294967295, %v16064_v38  ;;  %v3278_v57 = vmul.f32 81377.4, %v2894_v40  ;;  %v2467_v61 = vmul.f32 %v1464_v1, %v10628_v15  ;;  %7456 = vlog2.f32 %v1464_v1 }
 0x294   : > { %16066 = vst [vmem:[#allocation207_spill] sm:$0xff] %v16065_v38  ;;  %v1452_v31 = vmul.f32 %v10577_v36, %v1451_v13  ;;  %v7445_v12 = vpop.eup %7444  ;;  %v4410_v63 = vadd.f32 1.0, %v4409_v44  ;;  %vm10650_vm11 = vcmp.lt.f32.partialorder %v4412_v51, 0.0004427343  ;;  %v16067_v45 = vmov 0 }
 0x295   : > { %v16068_v45 = vsel %vm10650_vm11, 4294967295, %v16067_v45  ;;  %v915_v41 = vunpack.c.l.bf16 %v842_v2  ;;  %vm10654_vm12 = vcmp.lt.f32.partialorder %v1453_v29, 0.0004427343  ;;  %v10658_v11 = vpop.eup %7446  ;;  %v4433_v40 = vadd.f32 1.0, %v10593_v3  ;;  %v595_v29 = vld [vmem:[%s9016_s28 + $0x90] sm:$0xff] }
 0x296   : > { %16069 = vst [vmem:[#allocation208_spill] sm:$0xff] %v16068_v45  ;;  %7458 = vpow2.f32 %v3952_v58  ;;  %v10661_v46 = vadd.f32 %v2467_v61, %v596_v9  ;;  %v1449_v36 = vmul.f32 0.6931472, %v7445_v12  ;;  %v4437_v54 = vadd.f32 1.0, %v4436_v62  ;;  %v10665_v2 = vpop.eup %7448 }
 0x297   : > { %v4424_v13 = vadd.f32 1.0, %v10639_v18  ;;  %7460 = vpow2.f32 %v3950_v10  ;;  %v3150_v51 = vsub.f32 -1.6120857, %v3022_v48  ;;  %v3406_v56 = vsub.f32 4.387914, %v3278_v57 }
 0x298   : > { %7462 = vpow2.f32 %v3940_v14  ;;  %2823 = vmatprep.subr.mxu1 %v10661_v46  ;;  %v1455_v58 = vsel %vm10654_vm12, %v1452_v31, %v1449_v36  ;;  %v10672_v9 = vmul.f32 %v10526_v33, %v4410_v63  ;;  %v2897_v61 = vmul.f32 %v10491_v39, %v10491_v39 }
 0x299   : > { %v2466_v62 = vmul.f32 %v1455_v58, %v915_v41  ;;  %7464 = vlog2.f32 %v1455_v58  ;;  %v10676_v10 = vmul.f32 0.6931472, %v7439_v42  ;;  %v10678_v1 = vmul.f32 0.6931472, %v7441_v37 }
 0x29a   : > { %16072 = vst [vmem:[#allocation209_spill] sm:$0xff] %v10672_v9  ;;  %7466 = vlog2.f32 %v4433_v40  ;;  %v4379_v48 = vadd.f32 1.0, %v10658_v11  ;;  %v10681_v14 = vpop.eup %7450  ;;  %v4427_v57 = vmul.f32 -0.5, %v10639_v18  ;;  %v4382_v31 = vmul.f32 -0.5, %v10658_v11 }
 0x29b   : > { %16073 = vst [vmem:[#allocation210_spill] sm:$0xff] %v10676_v10  ;;  %16074 = vst [vmem:[#allocation211_spill] sm:$0xff] %v10678_v1  ;;  %v4370_v33 = vadd.f32 1.0, %v10665_v2  ;;  %v10686_v12 = vadd.f32 %v2466_v62, %v595_v29  ;;  %v10689_v39 = vmul.f32 %v10593_v3, %v4437_v54  ;;  %7468 = vlog2.f32 %v4424_v13 }
 0x29c   : > { %v4373_v42 = vmul.f32 -0.5, %v10665_v2  ;;  %v10692_v37 = vmax.f32 %v3150_v51, %v3406_v56  ;;  %v3662_v63 = vmin.f32 %v3150_v51, %v3406_v56  ;;  %v3025_v28 = vmul.f32 0.5, %v2897_v61  ;;  %v10696_v58 = vpop.eup %7452 }
 0x29d   : > { %16075 = vst [vmem:[#allocation212_spill] sm:$0xff] %v10689_v39  ;;  %v3281_v40 = vmul.f32 81377.4, %v2897_v61  ;;  %2824 = vmatpush1.xpose.msra.mxu1 %v10686_v12  ;;  %v1402_v36 = vadd.f32 1.0, %v10681_v14  ;;  %7470 = vlog2.f32 %v4379_v48  ;;  %v2896_v13 = vmul.f32 %v10515_v43, %v10515_v43 }
 0x29e   : > { %16076 = vst [vmem:[#allocation213_spill] sm:$0xff] %v10692_v37  ;;  %v6018_v51 = vmul.f32 %v10628_v15, %v10628_v15  ;;  %v10710_v29 = vadd.f32 1.0, %v4427_v57  ;;  %v4383_v61 = vadd.f32 1.0, %v4382_v31  ;;  %7472 = vlog2.f32 %v4370_v33  ;;  %v10712_v62 = vpop.eup %7454 }
 0x29f   : > { %v4385_v54 = vand.u32 2147483647, %v10658_v11  ;;  %v4374_v48 = vadd.f32 1.0, %v4373_v42  ;;  %v6017_v44 = vmul.f32 %v915_v41, %v915_v41  ;;  %7474 = vlog2.f32 %v1402_v36 }
 0x2a0   : > { %v7457_v43 = vpop.eup %7456  ;;  %v3790_v39 = vsub.f32 %v3662_v63, %v10692_v37  ;;  %v3153_v15 = vsub.f32 -1.6120857, %v3025_v28  ;;  %v3409_v10 = vsub.f32 4.387914, %v3281_v40  ;;  %v1393_v52 = vadd.f32 1.0, %v10696_v58 }
 0x2a1   : > { %v3024_v38 = vmul.f32 0.5, %v2896_v13  ;;  %v3280_v56 = vmul.f32 81377.4, %v2896_v13  ;;  %v5654_v57 = vmul.f32 0.6931472, %v7457_v43  ;;  %v6146_v1 = vmul.f32 0.5, %v6018_v51 }
 0x2a2   : > { %v10720_v33 = vmul.f32 %v10658_v11, %v4383_v61  ;;  %v2891_v41 = vmul.f32 %v10531_v4, %v10531_v4  ;;  %7476 = vlog2.f32 %v1393_v52  ;;  %v10728_v28 = vmul.f32 %v10665_v2, %v4374_v48 }
 0x2a3   : > { %v10717_v31 = vpop.eup %7458  ;;  %v5890_v40 = vsub.f32 -0.9189385, %v5654_v57  ;;  %v1405_v36 = vmul.f32 -0.5, %v10681_v14  ;;  %v1420_v13 = vadd.f32 1.0, %v10712_v62  ;;  %v3938_v11 = vmul.f32 1.442695, %v3790_v39 }
 0x2a4   : > { %16077 = vst [vmem:[#allocation214_spill] sm:$0xff] %v10717_v31  ;;  %v10725_v63 = vpop.eup %7460  ;;  %v10734_v61 = vmax.f32 %v3153_v15, %v3409_v10  ;;  %v3665_v43 = vmin.f32 %v3153_v15, %v3409_v10  ;;  %v6145_v42 = vmul.f32 0.5, %v6017_v44  ;;  %v3152_v4 = vsub.f32 -1.6120857, %v3024_v38 }
 0x2a5   : > { %v10732_v51 = vpop.eup %7462  ;;  %v3408_v52 = vsub.f32 4.387914, %v3280_v56  ;;  %v10736_v45 = vsub.f32 %v5890_v40, %v6146_v1  ;;  %7478 = vlog2.f32 %v1420_v13  ;;  %v3019_v57 = vmul.f32 0.5, %v2891_v41 }
 0x2a6   : > { %16078 = vst [vmem:[#allocation215_spill] sm:$0xff] %v10734_v61  ;;  %v7465_v9 = vpop.eup %7464  ;;  %v3275_v3 = vmul.f32 81377.4, %v2891_v41  ;;  %v4397_v39 = vadd.f32 1.0, %v10717_v31  ;;  %v4388_v7 = vadd.f32 1.0, %v10725_v63  ;;  %v1406_v10 = vadd.f32 1.0, %v1405_v36 }
 0x2a7   : > { %16079 = vst [vmem:[#allocation216_spill] sm:$0xff] %v10736_v45  ;;  %v10738_v48 = vpop.eup %7466  ;;  %v5652_v21 = vmul.f32 0.6931472, %v7465_v9  ;;  %v1396_v44 = vmul.f32 -0.5, %v10696_v58  ;;  %v4343_v1 = vadd.f32 1.0, %v10732_v51  ;;  %7480 = vpow2.f32 %v3938_v11  ;;  %v839_v11 = vld [vmem:[%s9026_s3 + $0x30] sm:$0xff] }
 0x2a8   : > { %16080 = vst [vmem:[#allocation217_spill] sm:$0xff] %v10738_v48  ;;  %v10745_v38 = vpop.eup %7468  ;;  %v1408_v15 = vand.u32 2147483647, %v10681_v14  ;;  %v3793_v41 = vsub.f32 %v3665_v43, %v10734_v61  ;;  %v10750_v5 = vmax.f32 %v3152_v4, %v3408_v52  ;;  %v3664_v9 = vmin.f32 %v3152_v4, %v3408_v52 }
 0x2a9   : > { %16081 = vst [vmem:[#allocation218_spill] sm:$0xff] %v10745_v38  ;;  %v5889_v56 = vsub.f32 -0.9189385, %v5652_v21  ;;  %v1423_v40 = vmul.f32 -0.5, %v10712_v62  ;;  %v3147_v36 = vsub.f32 -1.6120857, %v3019_v57  ;;  %7482 = vlog2.f32 %v4397_v39 }
 0x2aa   : > { %16082 = vst [vmem:[#allocation219_spill] sm:$0xff] %v10750_v5  ;;  %v7471_v13 = vpop.eup %7470  ;;  %v3403_v48 = vsub.f32 4.387914, %v3275_v3  ;;  %v3018_v30 = vmul.f32 0.5, %v2890_v25  ;;  %v3274_v17 = vmul.f32 81377.4, %v2890_v25  ;;  %v1407_v21 = vmul.f32 %v10681_v14, %v1406_v10 }
 0x2ab   : > { %v10753_v22 = vsub.f32 %v5889_v56, %v6145_v42  ;;  %v7473_v38 = vpop.eup %7472  ;;  %v1397_v20 = vadd.f32 1.0, %v1396_v44  ;;  %vm10757_vm13 = vcmp.lt.f32.partialorder %v4385_v54, 0.0004427343  ;;  %7484 = vlog2.f32 %v4388_v7  ;;  %v590_v56 = vld [vmem:[%s9016_s28 + $0x68] sm:$0xff] }
 0x2ac   : > { %v7475_v55 = vpop.eup %7474  ;;  %v10761_v4 = vunpack.c.h.bf16 %v839_v11  ;;  %vm1409_vm15 = vcmp.lt.f32.partialorder %v1408_v15, 0.0004427343  ;;  %v1399_v3 = vand.u32 2147483647, %v10696_v58  ;;  %7486 = vlog2.f32 %v4343_v1 }
 0x2ad   : > { %16083 = vst [vmem:[#allocation220_spill] sm:$0xff] %v10753_v22  ;;  %v3944_v42 = vmul.f32 1.442695, %v3793_v41  ;;  %v1404_v52 = vmul.f32 0.6931472, %v7475_v55  ;;  %v1424_v25 = vadd.f32 1.0, %v1423_v40  ;;  %v3792_v57 = vsub.f32 %v3664_v9, %v10750_v5 }
 0x2ae   : > { %v10765_v14 = vmax.f32 %v3147_v36, %v3403_v48  ;;  %v3146_v54 = vsub.f32 -1.6120857, %v3018_v30  ;;  %v1426_v39 = vand.u32 2147483647, %v10712_v62  ;;  %v3659_v44 = vmin.f32 %v3147_v36, %v3403_v48  ;;  %v10775_v30 = vld [vmem:[%s9026_s3 + $0x38] sm:$0xff] }
 0x2af   : > { %v7477_v10 = vpop.eup %7476  ;;  %v3402_v7 = vsub.f32 4.387914, %v3274_v17  ;;  %v1410_v24 = vsel %vm1409_vm15, %v1407_v21, %v1404_v52  ;;  %v1398_v15 = vmul.f32 %v10696_v58, %v1397_v20  ;;  %vm1400_vm0 = vcmp.lt.f32.partialorder %v1399_v3, 0.0004427343 }
 0x2b0   : > { %16086 = vst [vmem:[#allocation221_spill] sm:$0xff] %v10765_v14  ;;  %v2461_v1 = vmul.f32 %v1410_v24, %v10761_v4  ;;  %7488 = vlog2.f32 %v1410_v24  ;;  %v1395_v55 = vmul.f32 0.6931472, %v7477_v10  ;;  %v4400_v41 = vmul.f32 -0.5, %v10717_v31 }
 0x2b1   : > { %7490 = vpow2.f32 %v3944_v42  ;;  %v10772_v9 = vunpack.c.l.bf16 %v839_v11  ;;  %v1425_v48 = vmul.f32 %v10712_v62, %v1424_v25  ;;  %v3942_v40 = vmul.f32 1.442695, %v3792_v57 }
 0x2b2   : > { %v7479_v17 = vpop.eup %7478  ;;  %v10778_v36 = vadd.f32 %v2461_v1, %v590_v56  ;;  %v10781_v20 = vunpack.c.h.bf16 %v10775_v30  ;;  %vm10783_vm2 = vcmp.lt.f32.partialorder %v1426_v39, 0.0004427343  ;;  %v4381_v58 = vmul.f32 0.6931472, %v7471_v13  ;;  %v589_v39 = vld [vmem:[%s9016_s28 + $0x60] sm:$0xff] }
 0x2b3   : > { %v4372_v11 = vmul.f32 0.6931472, %v7473_v38  ;;  %v1401_v21 = vsel %vm1400_vm0, %v1398_v15, %v1395_v55  ;;  %v1422_v3 = vmul.f32 0.6931472, %v7479_v17  ;;  %v16089_v42 = vand.u32 2147483647, %v10665_v2 }
 0x2b4   : > { %v3787_v52 = vsub.f32 %v3659_v44, %v10765_v14  ;;  %v10794_v25 = vmax.f32 %v3146_v54, %v3402_v7  ;;  %v3658_v57 = vmin.f32 %v3146_v54, %v3402_v7  ;;  %2754 = vmatprep.subr.mxu0 %v10778_v36  ;;  %v10798_v10 = vpop.eup %7480  ;;  %v4391_v38 = vmul.f32 -0.5, %v10725_v63  ;;  %v592_v2 = vld [vmem:[%s9016_s28 + $0x78] sm:$0xff] }
 0x2b5   : > { %vm10789_vm3 = vcmp.lt.f32.partialorder %v16089_v42, 0.0004427343  ;;  %v2460_v13 = vmul.f32 %v1401_v21, %v10772_v9  ;;  %7492 = vlog2.f32 %v1401_v21  ;;  %v1428_v56 = vsel %vm10783_vm2, %v1425_v48, %v1422_v3 }
 0x2b6   : > { %16092 = vst [vmem:[#allocation222_spill] sm:$0xff] %v10794_v25  ;;  %v4401_v15 = vadd.f32 1.0, %v4400_v41  ;;  %7494 = vpow2.f32 %v3942_v40  ;;  %v2463_v54 = vmul.f32 %v1428_v56, %v10781_v20  ;;  %v4387_v7 = vsel %vm10757_vm13, %v10720_v33, %v4381_v58  ;;  %v7483_v24 = vpop.eup %7482  ;;  %v705_v40 = vld [vmem:[%s9023_s13] sm:$0xff] }
 0x2b7   : > { %v4378_v1 = vsel %vm10789_vm3, %v10728_v28, %v4372_v11  ;;  %v4346_v55 = vmul.f32 -0.5, %v10732_v51  ;;  %v10814_v17 = vadd.f32 %v2460_v13, %v589_v39  ;;  %v3932_v48 = vmul.f32 1.442695, %v3787_v52  ;;  %v707_v39 = vld [vmem:[%s9023_s13 + $0x10] sm:$0xff] }
 0x2b8   : > { %v3786_v21 = vsub.f32 %v3658_v57, %v10794_v25  ;;  %v10817_v41 = vadd.f32 %v2463_v54, %v592_v2  ;;  %7496 = vlog2.f32 %v1428_v56  ;;  %v7485_v43 = vpop.eup %7484  ;;  %v10822_v33 = vmul.f32 %v10639_v18, %v10710_v29  ;;  %v706_v57 = vld [vmem:[%s9023_s13 + $0x8] sm:$0xff]  ;;  %v708_v2 = vld [vmem:[%s9023_s13 + $0x18] sm:$0xff] }
 0x2b9   : > { %v4392_v58 = vadd.f32 1.0, %v4391_v38  ;;  %v4349_v11 = vand.u32 2147483647, %v10732_v51  ;;  %2755 = vmatpush1.xpose.msra.mxu0 %v10814_v17  ;;  %v7487_v3 = vpop.eup %7486  ;;  %v10828_v42 = vadd.f32 %v4387_v7, %v10556_v27  ;;  %v10831_v62 = vmul.f32 %v10717_v31, %v4401_v15 }
 0x2ba   : > { %16093 = vst [vmem:[#allocation223_spill] sm:$0xff] %v10822_v33  ;;  %v4334_v52 = vadd.f32 1.0, %v10798_v10  ;;  %v6012_v29 = vmul.f32 %v10761_v4, %v10761_v4  ;;  %2825 = vmatprep.subr.mxu1 %v10817_v41  ;;  %v10840_v38 = vadd.f32 %v4378_v1, %v10565_v16  ;;  %v10842_v13 = vmul.f32 0.6931472, %v7483_v24  ;;  %v709_v4 = vld [vmem:[%s9023_s13 + $0x20] sm:$0xff] }
 0x2bb   : > { %16094 = vst [vmem:[#allocation224_spill] sm:$0xff] %v10828_v42  ;;  %16095 = vst [vmem:[#allocation225_spill] sm:$0xff] %v10831_v62  ;;  %v4337_v27 = vmul.f32 -0.5, %v10798_v10  ;;  %v1029_v56 = vmul.f32 1.442695, %v705_v40  ;;  %v4347_v54 = vadd.f32 1.0, %v4346_v55  ;;  %7498 = vpow2.f32 %v3932_v48 }
 0x2bc   : > { %16096 = vst [vmem:[#allocation226_spill] sm:$0xff] %v10840_v38  ;;  %16097 = vst [vmem:[#allocation227_spill] sm:$0xff] %v10842_v13  ;;  %v3930_v7 = vmul.f32 1.442695, %v3786_v21  ;;  %v10848_v28 = vmul.f32 0.6931472, %v7485_v43  ;;  %v10851_v33 = vmul.f32 %v10725_v63, %v4392_v58  ;;  %7500 = vlog2.f32 %v4334_v52 }
 0x2bd   : > { %v7489_v44 = vpop.eup %7488  ;;  %vm10853_vm4 = vcmp.lt.f32.partialorder %v4349_v11, 0.0004427343  ;;  %v16100_v16 = vmov 0  ;;  %v1031_v1 = vmul.f32 1.442695, %v706_v57  ;;  %v6140_v55 = vmul.f32 0.5, %v6012_v29 }
 0x2be   : > { %16098 = vst [vmem:[#allocation228_spill] sm:$0xff] %v10848_v28  ;;  %16099 = vst [vmem:[#allocation229_spill] sm:$0xff] %v10851_v33  ;;  %v16101_v16 = vsel %vm10853_vm4, 4294967295, %v16100_v16  ;;  %v10857_v24 = vpop.eup %7490  ;;  %v5642_v40 = vmul.f32 0.6931472, %v7489_v44  ;;  %v4338_v48 = vadd.f32 1.0, %v4337_v27  ;;  %v6011_v21 = vmul.f32 %v10772_v9, %v10772_v9 }
 0x2bf   : > { %16102 = vst [vmem:[#allocation230_spill] sm:$0xff] %v16101_v16  ;;  %v1033_v15 = vmul.f32 1.442695, %v707_v39  ;;  %v710_v43 = vld [vmem:[%s9023_s13 + $0x28] sm:$0xff]  ;;  %7502 = vpow2.f32 %v1029_v56  ;;  %v1035_v58 = vmul.f32 1.442695, %v708_v2  ;;  %v10866_v52 = vmul.f32 %v10732_v51, %v4347_v54 }
 0x2c0   : > { %v4364_v11 = vmul.f32 -0.5, %v10857_v24  ;;  %7504 = vpow2.f32 %v3930_v7  ;;  %v5884_v42 = vsub.f32 -0.9189385, %v5642_v40  ;;  %v1037_v18 = vmul.f32 1.442695, %v709_v4  ;;  %v711_v27 = vld [vmem:[%s9023_s13 + $0x30] sm:$0xff] }
 0x2c1   : > { %v10863_v57 = vmul.f32 0.6931472, %v7487_v3  ;;  %16104 = vst [vmem:[#allocation232_spill] sm:$0xff] %v10866_v52  ;;  %v4340_v44 = vand.u32 2147483647, %v10798_v10  ;;  %7506 = vpow2.f32 %v1031_v1  ;;  %v6014_v9 = vmul.f32 %v10781_v20, %v10781_v20  ;;  %v712_v1 = vld [vmem:[%s9023_s13 + $0x38] sm:$0xff] }
 0x2c2   : > { %v7493_v29 = vpop.eup %7492  ;;  %v10869_v39 = vsub.f32 %v5884_v42, %v6140_v55  ;;  %7508 = vpow2.f32 %v1033_v15  ;;  %v1039_v2 = vmul.f32 1.442695, %v710_v43  ;;  %v4361_v3 = vadd.f32 1.0, %v10857_v24  ;;  %v834_v62 = vld [vmem:[%s9026_s3 + $0x8] sm:$0xff] }
 0x2c3   : > { %16103 = vst [vmem:[#allocation231_spill] sm:$0xff] %v10863_v57  ;;  %v10874_v56 = vpop.eup %7494  ;;  %v5640_v51 = vmul.f32 0.6931472, %v7493_v29  ;;  %v6139_v54 = vmul.f32 0.5, %v6011_v21  ;;  %7510 = vpow2.f32 %v1035_v58  ;;  %v10878_v7 = vmul.f32 %v10798_v10, %v4338_v48  ;;  %v713_v21 = vld [vmem:[%s9023_s13 + $0x40] sm:$0xff] }
 0x2c4   : > { %16105 = vst [vmem:[#allocation233_spill] sm:$0xff] %v10869_v39  ;;  %v4365_v42 = vadd.f32 1.0, %v4364_v11  ;;  %7512 = vpow2.f32 %v1037_v18  ;;  %v4355_v40 = vmul.f32 -0.5, %v10874_v56  ;;  %v1041_v43 = vmul.f32 1.442695, %v711_v27  ;;  %v714_v11 = vld [vmem:[%s9023_s13 + $0x48] sm:$0xff] }
 0x2c5   : > { %16106 = vst [vmem:[#allocation234_spill] sm:$0xff] %v10878_v7  ;;  %v7497_v20 = vpop.eup %7496  ;;  %v5883_v55 = vsub.f32 -0.9189385, %v5640_v51  ;;  %v4352_v10 = vadd.f32 1.0, %v10874_v56  ;;  %v6142_v58 = vmul.f32 0.5, %v6014_v9  ;;  %7514 = vpow2.f32 %v1039_v2  ;;  %v833_v51 = vld [vmem:[%s9026_s3] sm:$0xff] }
 0x2c6   : > { %v5646_v48 = vmul.f32 0.6931472, %v7497_v20  ;;  %vm10890_vm6 = vcmp.lt.f32.partialorder %v4340_v44, 0.0004427343  ;;  %v16107_v18 = vmov 0  ;;  %7516 = vlog2.f32 %v4361_v3  ;;  %v715_v2 = vld [vmem:[%s9023_s13 + $0x50] sm:$0xff] }
 0x2c7   : > { %v16108_v18 = vsel %vm10890_vm6, 4294967295, %v16107_v18  ;;  %v2893_v29 = vmul.f32 %v10661_v46, %v10661_v46  ;;  %v10896_v15 = vsub.f32 %v5883_v55, %v6139_v54  ;;  %v1043_v27 = vmul.f32 1.442695, %v712_v1  ;;  %v716_v1 = vld [vmem:[%s9023_s13 + $0x58] sm:$0xff] }
 0x2c8   : > { %16109 = vst [vmem:[#allocation235_spill] sm:$0xff] %v16108_v18  ;;  %v10900_v20 = vmul.f32 %v10857_v24, %v4365_v42  ;;  %v2892_v44 = vmul.f32 %v10686_v12, %v10686_v12  ;;  %v5886_v9 = vsub.f32 -0.9189385, %v5646_v48  ;;  %v1045_v4 = vmul.f32 1.442695, %v713_v21  ;;  %v10905_v3 = vpop.eup %7498  ;;  %v719_v42 = vld [vmem:[%s9023_s13 + $0x70] sm:$0xff] }
 0x2c9   : > { %16110 = vst [vmem:[#allocation236_spill] sm:$0xff] %v10896_v15  ;;  %16112 = vst [vmem:[#allocation238_spill] sm:$0xff] %v10905_v3  ;;  %v4356_v46 = vadd.f32 1.0, %v4355_v40  ;;  %7518 = vpow2.f32 %v1041_v43  ;;  %v1047_v55 = vmul.f32 1.442695, %v714_v11  ;;  %v10913_v13 = vunpack.c.l.bf16 %v833_v51  ;;  %v7501_v48 = vpop.eup %7500 }
 0x2ca   : > { %16111 = vst [vmem:[#allocation237_spill] sm:$0xff] %v10900_v20  ;;  %7520 = vlog2.f32 %v4352_v10  ;;  %v10908_v38 = vsub.f32 %v5886_v9, %v6142_v58  ;;  %v10915_v12 = vunpack.c.h.bf16 %v833_v51  ;;  %v3021_v21 = vmul.f32 0.5, %v2893_v29 }
 0x2cb   : > { %16114 = vst [vmem:[#allocation240_spill] sm:$0xff] %v10913_v13  ;;  %v3277_v31 = vmul.f32 81377.4, %v2893_v29  ;;  %7522 = vpow2.f32 %v1043_v27  ;;  %v1049_v40 = vmul.f32 1.442695, %v715_v2  ;;  %v4307_v43 = vadd.f32 1.0, %v10905_v3 }
 0x2cc   : > { %16113 = vst [vmem:[#allocation239_spill] sm:$0xff] %v10908_v38  ;;  %v10918_v32 = vpop.eup %7502  ;;  %v3020_v10 = vmul.f32 0.5, %v2892_v44  ;;  %v3276_v58 = vmul.f32 81377.4, %v2892_v44  ;;  %7524 = vpow2.f32 %v1045_v4  ;;  %v10924_v9 = vmul.f32 %v10874_v56, %v4356_v46 }
 0x2cd   : > { %v10921_v11 = vpop.eup %7504  ;;  %v10926_v51 = vunpack.c.l.bf16 %v834_v62  ;;  %7526 = vpow2.f32 %v1047_v55  ;;  %v1051_v54 = vmul.f32 1.442695, %v716_v1  ;;  %v10930_v27 = vmul.f32 0.6931472, %v7501_v48 }
 0x2ce   : > { %16115 = vst [vmem:[#allocation241_spill] sm:$0xff] %v10921_v11  ;;  %16116 = vst [vmem:[#allocation242_spill] sm:$0xff] %v10924_v9  ;;  %v10928_v29 = vpop.eup %7506  ;;  %v10932_v2 = vunpack.c.h.bf16 %v834_v62  ;;  %v1057_v8 = vmul.f32 1.442695, %v719_v42  ;;  %v3149_v4 = vsub.f32 -1.6120857, %v3021_v21  ;;  %7528 = vpow2.f32 %v1049_v40 }
 0x2cf   : > { %16117 = vst [vmem:[#allocation243_spill] sm:$0xff] %v10926_v51  ;;  %16118 = vst [vmem:[#allocation244_spill] sm:$0xff] %v10930_v27  ;;  %v10936_v44 = vpop.eup %7508  ;;  %v3405_v60 = vsub.f32 4.387914, %v3277_v31  ;;  %v1285_v46 = vadd.f32 1.0, %v10918_v32  ;;  %7530 = vlog2.f32 %v4307_v43  ;;  %v4298_v55 = vadd.f32 1.0, %v10921_v11 }
 0x2d0   : > { %16119 = vst [vmem:[#allocation245_spill] sm:$0xff] %v10932_v2  ;;  %v10939_v53 = vpop.eup %7510  ;;  %v3148_v1 = vsub.f32 -1.6120857, %v3020_v10  ;;  %v3404_v48 = vsub.f32 4.387914, %v3276_v58  ;;  %v4310_v47 = vmul.f32 -0.5, %v10905_v3  ;;  %7532 = vpow2.f32 %v1051_v54 }
 0x2d1   : > { %v10942_v62 = vpop.eup %7512  ;;  %v1294_v31 = vadd.f32 1.0, %v10928_v29  ;;  %v836_v40 = vld [vmem:[%s9026_s3 + $0x18] sm:$0xff]  ;;  %v10952_v43 = vunpack.c.h.bf16 %v835_v19  ;;  %7534 = vpow2.f32 %v1057_v8  ;;  %v1303_v10 = vadd.f32 1.0, %v10936_v44  ;;  %v10969_v19 = vld [vmem:[%s9026_s3 + $0x20] sm:$0xff] }
 0x2d2   : > { %v10955_v58 = vpop.eup %7514  ;;  %v10957_v26 = vmax.f32 %v3149_v4, %v3405_v60  ;;  %v10959_v42 = vmin.f32 %v3149_v4, %v3405_v60  ;;  %7536 = vlog2.f32 %v1285_v46  ;;  %v1312_v54 = vadd.f32 1.0, %v10939_v53 }
 0x2d3   : > { %v10962_v50 = vpop.eup %7516  ;;  %7538 = vlog2.f32 %v4298_v55  ;;  %v10964_v0 = vmax.f32 %v3148_v1, %v3404_v48  ;;  %v10966_v21 = vmin.f32 %v3148_v1, %v3404_v48  ;;  %v1321_v8 = vadd.f32 1.0, %v10942_v62 }
 0x2d4   : > { %16120 = vst [vmem:[#allocation246_spill] sm:$0xff] %v10957_v26  ;;  %16121 = vst [vmem:[#allocation247_spill] sm:$0xff] %v10962_v50  ;;  %v10972_v35 = vadd.f32 1.0, %v4310_v47  ;;  %v2887_v60 = vmul.f32 %v10778_v36, %v10778_v36  ;;  %v10976_v4 = vunpack.c.l.bf16 %v836_v40  ;;  %7540 = vlog2.f32 %v1294_v31 }
 0x2d5   : > { %16122 = vst [vmem:[#allocation248_spill] sm:$0xff] %v10964_v0  ;;  %v10980_v6 = vunpack.c.h.bf16 %v836_v40  ;;  %v1288_v55 = vmul.f32 -0.5, %v10918_v32  ;;  %7542 = vlog2.f32 %v1303_v10  ;;  %v1330_v1 = vadd.f32 1.0, %v10955_v58 }
 0x2d6   : > { %16123 = vst [vmem:[#allocation249_spill] sm:$0xff] %v10972_v35  ;;  %16124 = vst [vmem:[#allocation250_spill] sm:$0xff] %v10976_v4  ;;  %v10978_v46 = vpop.eup %7518  ;;  %v2886_v36 = vmul.f32 %v10814_v17, %v10814_v17  ;;  %v10991_v45 = vunpack.c.l.bf16 %v10969_v19  ;;  %7544 = vlog2.f32 %v1312_v54  ;;  %v1291_v10 = vand.u32 2147483647, %v10918_v32 }
 0x2d7   : > { %v10984_v48 = vpop.eup %7520  ;;  %v1297_v22 = vmul.f32 -0.5, %v10928_v29  ;;  %7546 = vlog2.f32 %v1321_v8  ;;  %v11001_v47 = vmul.f32 0.5, %v2887_v60  ;;  %v11004_v17 = vunpack.c.l.bf16 %v10775_v30 }
 0x2d8   : > { %16125 = vst [vmem:[#allocation251_spill] sm:$0xff] %v10984_v48  ;;  %v10993_v31 = vpop.eup %7522  ;;  %v1306_v59 = vmul.f32 -0.5, %v10936_v44  ;;  %v1339_v54 = vadd.f32 1.0, %v10978_v46  ;;  %v11010_v25 = vmul.f32 81377.4, %v2887_v60  ;;  %v1289_v40 = vadd.f32 1.0, %v1288_v55 }
 0x2d9   : > { %v10999_v23 = vpop.eup %7524  ;;  %v1300_v39 = vand.u32 2147483647, %v10928_v29  ;;  %7548 = vlog2.f32 %v1330_v1  ;;  %v11013_v8 = vmul.f32 0.5, %v2886_v36  ;;  %v11015_v15 = vmul.f32 81377.4, %v2886_v36 }
 0x2da   : > { %v11008_v38 = vpop.eup %7526  ;;  %v1315_v14 = vmul.f32 -0.5, %v10939_v53  ;;  %v1348_v30 = vadd.f32 1.0, %v10993_v31  ;;  %vm11021_vm8 = vcmp.lt.f32.partialorder %v1291_v10, 0.0004427343  ;;  %v1298_v60 = vadd.f32 1.0, %v1297_v22 }
 0x2db   : > { %v11019_v5 = vpop.eup %7528  ;;  %v1309_v55 = vand.u32 2147483647, %v10936_v44  ;;  %v1357_v9 = vadd.f32 1.0, %v10999_v23  ;;  %v1307_v27 = vadd.f32 1.0, %v1306_v59  ;;  %v1324_v36 = vmul.f32 -0.5, %v10942_v62 }
 0x2dc   : > { %v11027_v1 = vpop.eup %7530  ;;  %7550 = vlog2.f32 %v1339_v54  ;;  %v1366_v7 = vadd.f32 1.0, %v11008_v38  ;;  %v1290_v10 = vmul.f32 %v10918_v32, %v1289_v40  ;;  %vm11034_vm9 = vcmp.lt.f32.partialorder %v1300_v39, 0.0004427343 }
 0x2dd   : > { %16128 = vst [vmem:[#allocation252_spill] sm:$0xff] %v11027_v1  ;;  %v11031_v18 = vpop.eup %7532  ;;  %v1318_v22 = vand.u32 2147483647, %v10939_v53  ;;  %v1333_v57 = vmul.f32 -0.5, %v10955_v58  ;;  %v1316_v59 = vadd.f32 1.0, %v1315_v14  ;;  %7552 = vlog2.f32 %v1348_v30 }
 0x2de   : > { %v11040_v52 = vpop.eup %7534  ;;  %v1327_v16 = vand.u32 2147483647, %v10942_v62  ;;  %v1375_v54 = vadd.f32 1.0, %v11019_v5  ;;  %v1299_v33 = vmul.f32 %v10928_v29, %v1298_v60  ;;  %vm11045_vm12 = vcmp.lt.f32.partialorder %v1309_v55, 0.0004427343 }
 0x2df   : > { %v7537_v34 = vpop.eup %7536  ;;  %v1342_v39 = vmul.f32 -0.5, %v10978_v46  ;;  %7554 = vlog2.f32 %v1357_v9  ;;  %v1308_v28 = vmul.f32 %v10936_v44, %v1307_v27  ;;  %v1325_v14 = vadd.f32 1.0, %v1324_v36 }
 0x2e0   : > { %v11050_v40 = vpop.eup %7538  ;;  %v1336_v20 = vand.u32 2147483647, %v10955_v58  ;;  %7556 = vlog2.f32 %v1366_v7  ;;  %vm11054_vm13 = vcmp.lt.f32.partialorder %v1318_v22, 0.0004427343  ;;  %v1334_v29 = vadd.f32 1.0, %v1333_v57 }
 0x2e1   : > { %16133 = vst [vmem:[#allocation253_spill] sm:$0xff] %v11050_v40  ;;  %v7541_v30 = vpop.eup %7540  ;;  %7558 = vlog2.f32 %v1375_v54  ;;  %v1384_v60 = vadd.f32 1.0, %v11031_v18  ;;  %v1287_v1 = vmul.f32 0.6931472, %v7537_v34  ;;  %v1317_v9 = vmul.f32 %v10939_v53, %v1316_v59 }
 0x2e2   : > { %v7543_v55 = vpop.eup %7542  ;;  %vm11060_vm15 = vcmp.lt.f32.partialorder %v1327_v16, 0.0004427343  ;;  %v1411_v27 = vadd.f32 1.0, %v11040_v52  ;;  %v1343_v44 = vadd.f32 1.0, %v1342_v39  ;;  %v1351_v36 = vmul.f32 -0.5, %v10993_v31 }
 0x2e3   : > { %v7545_v7 = vpop.eup %7544  ;;  %v1360_v22 = vmul.f32 -0.5, %v10999_v23  ;;  %7560 = vlog2.f32 %v1384_v60  ;;  %v1296_v54 = vmul.f32 0.6931472, %v7541_v30  ;;  %v1326_v48 = vmul.f32 %v10942_v62, %v1325_v14 }
 0x2e4   : > { %v7547_v57 = vpop.eup %7546  ;;  %vm11068_vm0 = vcmp.lt.f32.partialorder %v1336_v20, 0.0004427343  ;;  %v1345_v53 = vand.u32 2147483647, %v10978_v46  ;;  %v1305_v16 = vmul.f32 0.6931472, %v7543_v55  ;;  %v1335_v59 = vmul.f32 %v10955_v58, %v1334_v29 }
 0x2e5   : > { %v1354_v39 = vand.u32 2147483647, %v10993_v31  ;;  %7562 = vlog2.f32 %v1411_v27  ;;  %v11077_v60 = vsel %vm11021_vm8, %v1290_v10, %v1287_v1  ;;  %v1314_v30 = vmul.f32 0.6931472, %v7545_v7 }
 0x2e6   : > { %v7549_v3 = vpop.eup %7548  ;;  %16140 = vst [vmem:[#allocation254_spill] sm:$0xff] %v11077_v60  ;;  %v1363_v62 = vand.u32 2147483647, %v10999_v23  ;;  %v1369_v20 = vmul.f32 -0.5, %v11008_v38  ;;  %v1323_v14 = vmul.f32 0.6931472, %v7547_v57  ;;  %v1344_v50 = vmul.f32 %v10978_v46, %v1343_v44 }
 0x2e7   : > { %v1352_v11 = vadd.f32 1.0, %v1351_v36  ;;  %v1361_v55 = vadd.f32 1.0, %v1360_v22  ;;  %v11084_v58 = vsel %vm11034_vm9, %v1299_v33, %v1296_v54  ;;  %vm11086_vm2 = vcmp.lt.f32.partialorder %v1345_v53, 0.0004427343 }
 0x2e8   : > { %v1372_v61 = vand.u32 2147483647, %v11008_v38  ;;  %v1378_v1 = vmul.f32 -0.5, %v11019_v5  ;;  %v11094_v27 = vsel %vm11045_vm12, %v1308_v28, %v1305_v16  ;;  %v1332_v46 = vmul.f32 0.6931472, %v7549_v3 }
 0x2e9   : > { %v7551_v10 = vpop.eup %7550  ;;  %16143 = vst [vmem:[#allocation255_spill] sm:$0xff] %v11094_v27  ;;  %v1387_v7 = vmul.f32 -0.5, %v11031_v18  ;;  %v1414_v37 = vmul.f32 -0.5, %v11040_v52  ;;  %v11100_v33 = vsel %vm11054_vm13, %v1317_v9, %v1314_v30  ;;  %vm11102_vm3 = vcmp.lt.f32.partialorder %v1354_v39, 0.0004427343 }
 0x2ea   : > { %16144 = vst [vmem:[#allocation256_spill] sm:$0xff] %v11100_v33  ;;  %vm11106_vm8 = vcmp.lt.f32.partialorder %v1363_v62, 0.0004427343  ;;  %v1370_v32 = vadd.f32 1.0, %v1369_v20  ;;  %v7553_v28 = vpop.eup %7552  ;;  %v11112_v3 = vsel %vm11060_vm15, %v1326_v48, %v1323_v14  ;;  %v1353_v22 = vmul.f32 %v10993_v31, %v1352_v11 }
 0x2eb   : > { %v1362_v35 = vmul.f32 %v10999_v23, %v1361_v55  ;;  %v1381_v9 = vand.u32 2147483647, %v11019_v5  ;;  %v1341_v54 = vmul.f32 0.6931472, %v7551_v10  ;;  %vm11117_vm9 = vcmp.lt.f32.partialorder %v1372_v61, 0.0004427343 }
 0x2ec   : > { %v7555_v57 = vpop.eup %7554  ;;  %v1379_v16 = vadd.f32 1.0, %v1378_v1  ;;  %7564 = vlog2.f32 %v11077_v60  ;;  %v11124_v48 = vsel %vm11068_vm0, %v1335_v59, %v1332_v46  ;;  %v1388_v40 = vadd.f32 1.0, %v1387_v7 }
 0x2ed   : > { %v7557_v39 = vpop.eup %7556  ;;  %v1415_v11 = vadd.f32 1.0, %v1414_v37  ;;  %7566 = vlog2.f32 %v11084_v58  ;;  %v1350_v31 = vmul.f32 0.6931472, %v7553_v28  ;;  %v1371_v30 = vmul.f32 %v11008_v38, %v1370_v32 }
 0x2ee   : > { %v7559_v23 = vpop.eup %7558  ;;  %v1417_v62 = vand.u32 2147483647, %v11040_v52  ;;  %7568 = vlog2.f32 %v11094_v27  ;;  %v1359_v20 = vmul.f32 0.6931472, %v7555_v57  ;;  %vm11130_vm12 = vcmp.lt.f32.partialorder %v1381_v9, 0.0004427343 }
 0x2ef   : > { %v1390_v34 = vand.u32 2147483647, %v11031_v18  ;;  %7570 = vlog2.f32 %v11100_v33  ;;  %v11138_v55 = vsel %vm11086_vm2, %v1344_v50, %v1341_v54  ;;  %v1368_v61 = vmul.f32 0.6931472, %v7557_v39 }
 0x2f0   : > { %v7561_v59 = vpop.eup %7560  ;;  %16153 = vst [vmem:[#allocation257_spill] sm:$0xff] %v11138_v55  ;;  %v1380_v38 = vmul.f32 %v11019_v5, %v1379_v16  ;;  %7572 = vlog2.f32 %v11112_v3  ;;  %v1377_v1 = vmul.f32 0.6931472, %v7559_v23  ;;  %v1389_v10 = vmul.f32 %v11031_v18, %v1388_v40 }
 0x2f1   : > { %v1416_v46 = vmul.f32 %v11040_v52, %v1415_v11  ;;  %7574 = vlog2.f32 %v11124_v48  ;;  %v11147_v29 = vsel %vm11102_vm3, %v1353_v22, %v1350_v31  ;;  %v1386_v50 = vmul.f32 0.6931472, %v7561_v59  ;;  %v591_v22 = vld [vmem:[%s9016_s28 + $0x70] sm:$0xff] }
 0x2f2   : > { %v7563_v7 = vpop.eup %7562  ;;  %16154 = vst [vmem:[#allocation258_spill] sm:$0xff] %v11147_v29  ;;  %vm1418_vm13 = vcmp.lt.f32.partialorder %v1417_v62, 0.0004427343  ;;  %7576 = vlog2.f32 %v11138_v55  ;;  %v11152_v5 = vsel %vm11106_vm8, %v1362_v35, %v1359_v20  ;;  %vm1391_vm15 = vcmp.lt.f32.partialorder %v1390_v34, 0.0004427343  ;;  %v838_v35 = vld [vmem:[%s9026_s3 + $0x28] sm:$0xff] }
 0x2f3   : > { %v1413_v18 = vmul.f32 0.6931472, %v7563_v7  ;;  %7578 = vlog2.f32 %v11147_v29  ;;  %v16155_v52 = vsub.f32 %v10959_v42, %v10957_v26  ;;  %v16156_v44 = vsub.f32 %v10966_v21, %v10964_v0 }
 0x2f4   : > { %v11163_v28 = vsel %vm11117_vm9, %v1371_v30, %v1368_v61  ;;  %7580 = vlog2.f32 %v11152_v5  ;;  %v3143_v36 = vsub.f32 -1.6120857, %v11001_v47  ;;  %v11171_v9 = vsel %vm11130_vm12, %v1380_v38, %v1377_v1 }
 0x2f5   : > { %v3936_v37 = vmul.f32 1.442695, %v16155_v52  ;;  %v3934_v32 = vmul.f32 1.442695, %v16156_v44  ;;  %v1419_v42 = vsel %vm1418_vm13, %v1416_v46, %v1413_v18  ;;  %7582 = vlog2.f32 %v11163_v28 }
 0x2f6   : > { %v3399_v21 = vsub.f32 4.387914, %v11010_v25  ;;  %v11175_v57 = vsel %vm1391_vm15, %v1389_v10, %v1386_v50  ;;  %v2462_v54 = vmul.f32 %v1419_v42, %v11004_v17  ;;  %7584 = vlog2.f32 %v11171_v9 }
 0x2f7   : > { %v15614_v53 = vsub.f32 -1.6120857, %v11013_v8  ;;  %v15615_v47 = vsub.f32 4.387914, %v11015_v15  ;;  %v11182_v16 = vunpack.c.h.bf16 %v10969_v19  ;;  %7586 = vlog2.f32 %v11175_v57 }
 0x2f8   : > { %v11185_v39 = vunpack.c.l.bf16 %v838_v35  ;;  %v11187_v40 = vadd.f32 %v2462_v54, %v591_v22  ;;  %7588 = vlog2.f32 %v1419_v42  ;;  %v5999_v25 = vmul.f32 %v10913_v13, %v10913_v13 }
 0x2f9   : > { %v7565_v11 = vpop.eup %7564  ;;  %7590 = vpow2.f32 %v3936_v37  ;;  %v11191_v23 = vunpack.c.h.bf16 %v838_v35  ;;  %v6000_v31 = vmul.f32 %v10915_v12, %v10915_v12  ;;  %v6001_v19 = vmul.f32 %v10926_v51, %v10926_v51 }
 0x2fa   : > { %v7567_v30 = vpop.eup %7566  ;;  %7592 = vpow2.f32 %v3934_v32  ;;  %v11197_v62 = vmax.f32 %v3143_v36, %v3399_v21  ;;  %2826 = vmatpush1.xpose.msra.mxu1 %v11187_v40  ;;  %v6002_v20 = vmul.f32 %v10932_v2, %v10932_v2  ;;  %v6003_v14 = vmul.f32 %v10934_v49, %v10934_v49 }
 0x2fb   : > { %v7569_v34 = vpop.eup %7568  ;;  %v11204_v59 = vmin.f32 %v3143_v36, %v3399_v21  ;;  %v11210_v61 = vmax.f32 %v15614_v53, %v15615_v47  ;;  %v6004_v38 = vmul.f32 %v10952_v43, %v10952_v43  ;;  %v6005_v1 = vmul.f32 %v10976_v4, %v10976_v4 }
 0x2fc   : > { %16157 = vst [vmem:[#allocation259_spill] sm:$0xff] %v11197_v62  ;;  %v7571_v10 = vpop.eup %7570  ;;  %v6006_v46 = vmul.f32 %v10980_v6, %v10980_v6  ;;  %v6007_v7 = vmul.f32 %v10991_v45, %v10991_v45  ;;  %v6008_v50 = vmul.f32 %v11182_v16, %v11182_v16  ;;  %v6127_v18 = vmul.f32 0.5, %v5999_v25 }
 0x2fd   : > { %16158 = vst [vmem:[#allocation260_spill] sm:$0xff] %v11210_v61  ;;  %v7573_v52 = vpop.eup %7572  ;;  %v5616_v37 = vmul.f32 0.6931472, %v7565_v11  ;;  %v5618_v44 = vmul.f32 0.6931472, %v7567_v30  ;;  %v6128_v32 = vmul.f32 0.5, %v6000_v31  ;;  %v2889_v60 = vmul.f32 %v10817_v41, %v10817_v41 }
 0x2fe   : > { %v6129_v36 = vmul.f32 0.5, %v6001_v19  ;;  %v7575_v22 = vpop.eup %7574  ;;  %v5620_v35 = vmul.f32 0.6931472, %v7569_v34  ;;  %v11222_v42 = vmul.f32 0.6931472, %v7571_v10  ;;  %v11224_v21 = vmul.f32 0.5, %v6002_v20 }
 0x2ff   : > { %v6131_v54 = vmul.f32 0.5, %v6003_v14  ;;  %v7577_v53 = vpop.eup %7576  ;;  %v5624_v47 = vmul.f32 0.6931472, %v7573_v52  ;;  %v5626_v0 = vmul.f32 0.6931472, %v7575_v22  ;;  %v6132_v26 = vmul.f32 0.5, %v6004_v38 }
 0x300   : > { %v6133_v27 = vmul.f32 0.5, %v6005_v1  ;;  %v7579_v51 = vpop.eup %7578  ;;  %v5628_v55 = vmul.f32 0.6931472, %v7577_v53  ;;  %v6134_v25 = vmul.f32 0.5, %v6006_v46  ;;  %v6135_v4 = vmul.f32 0.5, %v6007_v7 }
 0x301   : > { %v6136_v11 = vmul.f32 0.5, %v6008_v50  ;;  %v7581_v30 = vpop.eup %7580  ;;  %v5630_v31 = vmul.f32 0.6931472, %v7579_v51  ;;  %v5871_v19 = vsub.f32 -0.9189385, %v5616_v37  ;;  %v6009_v34 = vmul.f32 %v11185_v39, %v11185_v39 }
 0x302   : > { %v5872_v33 = vsub.f32 -0.9189385, %v5618_v44  ;;  %v7583_v20 = vpop.eup %7582  ;;  %v5632_v10 = vmul.f32 0.6931472, %v7581_v30  ;;  %v5873_v14 = vsub.f32 -0.9189385, %v5620_v35  ;;  %v6010_v38 = vmul.f32 %v11191_v23, %v11191_v23 }
 0x303   : > { %v5874_v52 = vsub.f32 -0.9189385, %v11222_v42  ;;  %v7585_v1 = vpop.eup %7584  ;;  %v5634_v53 = vmul.f32 0.6931472, %v7583_v20  ;;  %v5875_v46 = vsub.f32 -0.9189385, %v5624_v47  ;;  %v6013_v51 = vmul.f32 %v11004_v17, %v11004_v17 }
 0x304   : > { %v5876_v7 = vsub.f32 -0.9189385, %v5626_v0  ;;  %v7587_v50 = vpop.eup %7586  ;;  %v16159_v37 = vsub.f32 4.387914, %v11015_v15  ;;  %v16160_v44 = vsub.f32 -1.6120857, %v11013_v8  ;;  %v6255_v41 = vsub.f32 %v5871_v19, %v6127_v18 }
 0x305   : > { %v5636_v30 = vmul.f32 0.6931472, %v7585_v1  ;;  %v5877_v35 = vsub.f32 -0.9189385, %v5628_v55  ;;  %v5878_v2 = vsub.f32 -0.9189385, %v5630_v31  ;;  %v7589_v42 = vpop.eup %7588 }
 0x306   : > { %v3654_v22 = vmin.f32 %v16160_v44, %v16159_v37  ;;  %v5638_v13 = vmul.f32 0.6931472, %v7587_v50  ;;  %v5879_v20 = vsub.f32 -0.9189385, %v5632_v10  ;;  %v5880_v47 = vsub.f32 -0.9189385, %v5634_v53  ;;  %v11239_v0 = vpop.eup %7590 }
 0x307   : > { %v16161_v17 = vand.u32 2147483647, %v10857_v24  ;;  %v5644_v15 = vmul.f32 0.6931472, %v7589_v42  ;;  %v5881_v8 = vsub.f32 -0.9189385, %v5636_v30  ;;  %v11247_v31 = vpop.eup %7592  ;;  %v6256_v50 = vsub.f32 %v5872_v33, %v6128_v32 }
 0x308   : > { %v6137_v1 = vmul.f32 0.5, %v6009_v34  ;;  %v6138_v55 = vmul.f32 0.5, %v6010_v38  ;;  %v5882_v37 = vsub.f32 -0.9189385, %v5638_v13  ;;  %v6141_v44 = vmul.f32 0.5, %v6013_v51 }
 0x309   : > { %vm11243_vm0 = vcmp.lt.f32.partialorder %v16161_v17, 0.0004427343  ;;  %v16164_v10 = vand.u32 2147483647, %v10725_v63  ;;  %v16165_v53 = vmov 0  ;;  %v3783_v24 = vsub.f32 %v11204_v59, %v11197_v62 }
 0x30a   : > { %v3782_v42 = vsub.f32 %v3654_v22, %v11210_v61  ;;  %v5885_v34 = vsub.f32 -0.9189385, %v5644_v15  ;;  %v6259_v38 = vsub.f32 %v5875_v46, %v6131_v54  ;;  %v16168_v13 = vand.u32 2147483647, %v10874_v56  ;;  %v16171_v54 = vld [vmem:[#allocation241_spill] sm:$0xff] }
 0x30b   : > { %vm11251_vm2 = vcmp.lt.f32.partialorder %v16164_v10, 0.0004427343  ;;  %v6257_v63 = vsub.f32 %v5873_v14, %v6129_v36  ;;  %v6260_v33 = vsub.f32 %v5876_v7, %v6132_v26  ;;  %v6261_v32 = vsub.f32 %v5877_v35, %v6133_v27  ;;  %v586_v36 = vld [vmem:[%s9016_s28 + $0x48] sm:$0xff]  ;;  %v588_v14 = vld [vmem:[%s9016_s28 + $0x58] sm:$0xff] }
 0x30c   : > { %v16166_v53 = vsel %vm11251_vm2, 4294967295, %v16165_v53  ;;  %vm11260_vm3 = vcmp.lt.f32.partialorder %v16168_v13, 0.0004427343  ;;  %v6262_v19 = vsub.f32 %v5878_v2, %v6134_v25  ;;  %v11264_v51 = vsub.f32 %v5879_v20, %v6135_v4  ;;  %v16172_v26 = vld [vmem:[#allocation247_spill] sm:$0xff]  ;;  %v585_v4 = vld [vmem:[%s9016_s28 + $0x40] sm:$0xff] }
 0x30d   : > { %16167 = vst [vmem:[#allocation261_spill] sm:$0xff] %v16166_v53  ;;  %v11266_v59 = vsub.f32 %v5880_v47, %v6136_v11  ;;  %v11268_v22 = vsub.f32 %v5881_v8, %v6137_v1  ;;  %v11270_v30 = vsub.f32 %v5882_v37, %v6138_v55  ;;  %v4301_v46 = vmul.f32 -0.5, %v16171_v54  ;;  %v16173_v55 = vld [vmem:[#allocation238_spill] sm:$0xff]  ;;  %v16178_v37 = vld [vmem:[#allocation252_spill] sm:$0xff]  ;;  %v16180_v10 = vld [vmem:[#allocation237_spill] sm:$0xff] }
 0x30e   : > { %v6258_v56 = vsub.f32 %v5874_v52, %v11224_v21  ;;  %v11274_v17 = vsub.f32 %v5885_v34, %v6141_v44  ;;  %v6383_v15 = vadd.f32 %v6256_v50, %v6255_v41  ;;  %v4363_v27 = vmul.f32 0.6931472, %v16172_v26  ;;  %v16179_v41 = vld [vmem:[#allocation249_spill] sm:$0xff] }
 0x30f   : > { %v2457_v2 = vmul.f32 %v11163_v28, %v11182_v16  ;;  %v2456_v25 = vmul.f32 %v11152_v5, %v10991_v45  ;;  %v2459_v11 = vmul.f32 %v11175_v57, %v11191_v23  ;;  %v3924_v7 = vmul.f32 1.442695, %v3783_v24  ;;  %v16177_v23 = vld [vmem:[#allocation251_spill] sm:$0xff] }
 0x310   : > { %v3017_v35 = vmul.f32 0.5, %v2889_v60  ;;  %v3273_v21 = vmul.f32 81377.4, %v2889_v60  ;;  %v6384_v52 = vadd.f32 %v6383_v15, %v6257_v63  ;;  %v3922_v20 = vmul.f32 1.442695, %v3782_v42 }
 0x311   : > { %v2888_v47 = vmul.f32 %v11187_v40, %v11187_v40  ;;  %v2585_v8 = vadd.f32 %v2457_v2, %v586_v36  ;;  %v11288_v1 = vadd.f32 %v2459_v11, %v588_v14  ;;  %v16174_v28 = vand.u32 2147483647, %v16173_v55  ;;  %v16183_v14 = vld [vmem:[#allocation202_spill] sm:$0xff]  ;;  %v16185_v2 = vld [vmem:[#allocation232_spill] sm:$0xff] }
 0x312   : > { %v4304_v45 = vand.u32 2147483647, %v16171_v54  ;;  %v6385_v5 = vadd.f32 %v6384_v52, %v6258_v56  ;;  %v2584_v57 = vadd.f32 %v2456_v25, %v585_v4  ;;  %v4354_v60 = vmul.f32 0.6931472, %v16177_v23  ;;  %v16186_v4 = vld [vmem:[#allocation231_spill] sm:$0xff]  ;;  %v16189_v25 = vld [vmem:[#allocation213_spill] sm:$0xff] }
 0x313   : > { %vm11292_vm8 = vcmp.lt.f32.partialorder %v16174_v28, 0.0004427343  ;;  %v4309_v44 = vmul.f32 0.6931472, %v16178_v37  ;;  %v4312_v40 = vmul.f32 %v16173_v55, %v16179_v41  ;;  %v4302_v50 = vadd.f32 1.0, %v4301_v46  ;;  %2756 = vmatprep.subr.mxu0 %v2585_v8  ;;  %2827 = vmatprep.subr.mxu1 %v11288_v1  ;;  %v16191_v11 = vld [vmem:[#allocation234_spill] sm:$0xff] }
 0x314   : > { %v4369_v24 = vsel %vm11243_vm0, %v16180_v10, %v4363_v27  ;;  %7594 = vpow2.f32 %v3924_v7  ;;  %v3145_v42 = vsub.f32 -1.6120857, %v3017_v35  ;;  %v6386_v34 = vadd.f32 %v6385_v5, %v6259_v38  ;;  %2757 = vmatpush1.xpose.msra.mxu0 %v2584_v57  ;;  %v16192_v7 = vld [vmem:[#allocation244_spill] sm:$0xff]  ;;  %v16196_v28 = vld [vmem:[#allocation253_spill] sm:$0xff]  ;;  %v16197_v37 = vld [vmem:[#allocation215_spill] sm:$0xff] }
 0x315   : > { %7596 = vpow2.f32 %v3922_v20  ;;  %v3401_v13 = vsub.f32 4.387914, %v3273_v21  ;;  %v3016_v63 = vmul.f32 0.5, %v2888_v47  ;;  %v3272_v56 = vmul.f32 81377.4, %v2888_v47  ;;  %v16195_v20 = vld [vmem:[#allocation242_spill] sm:$0xff] }
 0x316   : > { %v16187_v29 = vsel %vm10853_vm4, %v16185_v2, %v16186_v4  ;;  %v16193_v35 = vsel %vm10890_vm6, %v16191_v11, %v16192_v7  ;;  %v6387_v52 = vadd.f32 %v6386_v34, %v6260_v33  ;;  %v4360_v47 = vsel %vm11260_vm3, %v16195_v20, %v4354_v60  ;;  %v16202_v34 = vld [vmem:[#allocation219_spill] sm:$0xff]  ;;  %v584_v20 = vld [vmem:[%s9016_s28 + $0x38] sm:$0xff] }
 0x317   : > { %v11315_v27 = vadd.f32 %v16187_v29, %v16183_v14  ;;  %v11323_v21 = vadd.f32 %v16193_v35, %v16189_v25  ;;  %v4315_v55 = vsel %vm11292_vm8, %v4312_v40, %v4309_v44  ;;  %v11331_v5 = vmul.f32 0.6931472, %v16196_v28  ;;  %v581_v29 = vld [vmem:[%s9016_s28 + $0x20] sm:$0xff]  ;;  %v578_v38 = vld [vmem:[%s9016_s28 + $0x8] sm:$0xff]  ;;  %v587_v11 = vld [vmem:[%s9016_s28 + $0x50] sm:$0xff] }
 0x318   : > { %v11334_v23 = vmul.f32 %v16171_v54, %v4302_v50  ;;  %v11337_v41 = vadd.f32 %v4369_v24, %v16197_v37  ;;  %vm11339_vm4 = vcmp.lt.f32.partialorder %v4304_v45, 0.0004427343  ;;  %v4325_v33 = vadd.f32 1.0, %v11239_v0  ;;  %v16204_v50 = vld [vmem:[#allocation221_spill] sm:$0xff]  ;;  %v16220_v10 = vld [vmem:[#allocation239_spill] sm:$0xff] }
 0x319   : > { %16188 = vst [vmem:[#allocation241_spill] sm:$0xff] %v11315_v27  ;;  %16194 = vst [vmem:[#allocation247_spill] sm:$0xff] %v11323_v21  ;;  %v6388_v18 = vadd.f32 %v6387_v52, %v6261_v32  ;;  %v11344_v60 = vmax.f32 %v3145_v42, %v3401_v13  ;;  %v3657_v16 = vmin.f32 %v3145_v42, %v3401_v13  ;;  %v3144_v44 = vsub.f32 -1.6120857, %v3016_v63 }
 0x31a   : > { %16198 = vst [vmem:[#allocation238_spill] sm:$0xff] %v11337_v41  ;;  %v3400_v40 = vsub.f32 4.387914, %v3272_v56  ;;  %v11347_v54 = vadd.f32 %v4360_v47, %v16202_v34  ;;  %v11350_v24 = vadd.f32 %v4315_v55, %v16204_v50  ;;  %v2883_v14 = vmul.f32 %v2585_v8, %v2585_v8  ;;  %v582_v8 = vld [vmem:[%s9016_s28 + $0x28] sm:$0xff]  ;;  %v16211_v55 = vld [vmem:[#allocation256_spill] sm:$0xff] }
 0x31b   : > { %16201 = vst [vmem:[#allocation251_spill] sm:$0xff] %v11344_v60  ;;  %v6389_v45 = vadd.f32 %v6388_v18, %v6262_v19  ;;  %v4306_v32 = vsel %vm11339_vm4, %v11334_v23, %v11331_v5  ;;  %v11357_v26 = vmul.f32 -0.5, %v11239_v0  ;;  %v2882_v42 = vmul.f32 %v2584_v57, %v2584_v57  ;;  %v577_v18 = vld [vmem:[%s9016_s28] sm:$0xff] }
 0x31c   : > { %16203 = vst [vmem:[#allocation252_spill] sm:$0xff] %v11347_v54  ;;  %16205 = vst [vmem:[#allocation249_spill] sm:$0xff] %v11350_v24  ;;  %v2453_v13 = vmul.f32 %v11124_v48, %v10952_v43  ;;  %7598 = vlog2.f32 %v4325_v33  ;;  %v4316_v63 = vadd.f32 1.0, %v11247_v31  ;;  %v2452_v56 = vmul.f32 %v11112_v3, %v10934_v49  ;;  %v16207_v49 = vld [vmem:[#allocation258_spill] sm:$0xff] }
 0x31d   : > { %v6390_v19 = vadd.f32 %v6389_v45, %v11264_v51  ;;  %v3785_v2 = vsub.f32 %v3657_v16, %v11344_v60  ;;  %v11367_v4 = vmax.f32 %v3144_v44, %v3400_v40  ;;  %v2449_v57 = vmul.f32 %v11084_v58, %v10915_v12  ;;  %v16208_v58 = vld [vmem:[#allocation240_spill] sm:$0xff]  ;;  %v16212_v16 = vld [vmem:[#allocation250_spill] sm:$0xff] }
 0x31e   : > { %v2458_v43 = vmul.f32 %v11171_v9, %v11185_v39  ;;  %v3011_v25 = vmul.f32 0.5, %v2883_v14  ;;  %v3267_v51 = vmul.f32 81377.4, %v2883_v14  ;;  %v2455_v3 = vmul.f32 %v16207_v49, %v10980_v6  ;;  %v16209_v9 = vld [vmem:[#allocation254_spill] sm:$0xff] }
 0x31f   : > { %16206 = vst [vmem:[#allocation237_spill] sm:$0xff] %v11367_v4  ;;  %v6391_v48 = vadd.f32 %v6390_v19, %v11266_v59  ;;  %v3656_v7 = vmin.f32 %v3144_v44, %v3400_v40  ;;  %v3010_v35 = vmul.f32 0.5, %v2882_v42  ;;  %v3266_v52 = vmul.f32 81377.4, %v2882_v42  ;;  %v16210_v59 = vld [vmem:[#allocation245_spill] sm:$0xff]  ;;  %v583_v19 = vld [vmem:[%s9016_s28 + $0x30] sm:$0xff] }
 0x320   : > { %v11380_v47 = vadd.f32 %v2453_v13, %v582_v8  ;;  %v2448_v39 = vmul.f32 %v16209_v9, %v16208_v58  ;;  %v2451_v28 = vmul.f32 %v16211_v55, %v16210_v59  ;;  %v11387_v37 = vadd.f32 %v2452_v56, %v581_v29  ;;  %v16213_v44 = vld [vmem:[#allocation257_spill] sm:$0xff] }
 0x321   : > { %v6392_v12 = vadd.f32 %v6391_v48, %v11268_v22  ;;  %v11389_v33 = vpop.eup %7594  ;;  %v2885_v6 = vmul.f32 %v11288_v1, %v11288_v1  ;;  %v2454_v40 = vmul.f32 %v16213_v44, %v16212_v16  ;;  %v2577_v34 = vadd.f32 %v2449_v57, %v578_v38  ;;  %v580_v13 = vld [vmem:[%s9016_s28 + $0x18] sm:$0xff]  ;;  %v16214_v57 = vld [vmem:[#allocation243_spill] sm:$0xff] }
 0x322   : > { %v11396_v22 = vadd.f32 %v2458_v43, %v587_v11  ;;  %2758 = vmatprep.subr.mxu0 %v11380_v47  ;;  %v11399_v50 = vpop.eup %7596  ;;  %v3139_v14 = vsub.f32 -1.6120857, %v3011_v25  ;;  %v3395_v42 = vsub.f32 4.387914, %v3267_v51  ;;  %v2583_v8 = vadd.f32 %v2455_v3, %v584_v20  ;;  %v16215_v43 = vld [vmem:[#allocation255_spill] sm:$0xff]  ;;  %v16216_v25 = vld [vmem:[#allocation236_spill] sm:$0xff] }
 0x323   : > { %v6393_v45 = vadd.f32 %v6392_v12, %v11270_v30  ;;  %2759 = vmatpush1.xpose.msra.mxu0 %v11387_v37  ;;  %v3928_v1 = vmul.f32 1.442695, %v3785_v2  ;;  %v3138_v56 = vsub.f32 -1.6120857, %v3010_v35  ;;  %v3394_v29 = vsub.f32 4.387914, %v3266_v52 }
 0x324   : > { %v2450_v48 = vmul.f32 %v16215_v43, %v16214_v57  ;;  %2828 = vmatpush1.xpose.msra.mxu1 %v11396_v22  ;;  %2760 = vmatprep.subr.mxu0 %v2577_v34  ;;  %v4271_v38 = vadd.f32 1.0, %v11389_v33  ;;  %v3784_v30 = vsub.f32 %v3656_v7, %v11367_v4  ;;  %v579_v11 = vld [vmem:[%s9016_s28 + $0x10] sm:$0xff]  ;;  %v2576_v49 = vadd.f32 %v2448_v39, %v577_v18  ;;  %v16217_v20 = vld [vmem:[#allocation233_spill] sm:$0xff]  ;;  %v16218_v39 = vld [vmem:[#allocation222_spill] sm:$0xff] }
 0x325   : > { %v6394_v51 = vadd.f32 %v6393_v45, %v16216_v25  ;;  %2829 = vmatprep.subr.mxu1 %v2583_v8  ;;  %v4262_v3 = vadd.f32 1.0, %v11399_v50  ;;  %v3013_v2 = vmul.f32 0.5, %v2885_v6  ;;  %v3269_v35 = vmul.f32 81377.4, %v2885_v6 }
 0x326   : > { %v2582_v52 = vadd.f32 %v2454_v40, %v583_v19  ;;  %v11414_v58 = vmax.f32 %v3139_v14, %v3395_v42  ;;  %v3651_v9 = vmin.f32 %v3139_v14, %v3395_v42  ;;  %v2579_v59 = vadd.f32 %v2451_v28, %v580_v13  ;;  %v16221_v19 = vld [vmem:[#allocation205_spill] sm:$0xff] }
 0x327   : > { %v6395_v12 = vadd.f32 %v6394_v51, %v16217_v20  ;;  %2761 = vmatpush1.xpose.msra.mxu0 %v2576_v49  ;;  %7600 = vlog2.f32 %v4316_v63  ;;  %v11416_v55 = vmax.f32 %v3138_v56, %v3394_v29  ;;  %v3650_v7 = vmin.f32 %v3138_v56, %v3394_v29 }
 0x328   : > { %v2578_v16 = vadd.f32 %v2450_v48, %v579_v11  ;;  %2830 = vmatpush1.xpose.msra.mxu1 %v2582_v52  ;;  %v11424_v6 = vadd.f32 %v4306_v32, %v16218_v39  ;;  %7602 = vpow2.f32 %v3928_v1  ;;  %v3926_v18 = vmul.f32 1.442695, %v3784_v30 }
 0x329   : > { %v6396_v44 = vadd.f32 %v6395_v12, %v11274_v17  ;;  %2831 = vmatprep.subr.mxu1 %v2579_v59  ;;  %v11427_v28 = vpop.eup %7598  ;;  %7604 = vlog2.f32 %v4271_v38  ;;  %v3141_v40 = vsub.f32 -1.6120857, %v3013_v2  ;;  %v3397_v45 = vsub.f32 4.387914, %v3269_v35  ;;  %v16223_v38 = vld [vmem:[#allocation196_spill] sm:$0xff] }
 0x32a   : > { %16219 = vst [vmem:[#allocation202_spill] sm:$0xff] %v11424_v6  ;;  %v11431_v14 = vadd.f32 1.0, %v11357_v26  ;;  %7606 = vlog2.f32 %v4262_v3  ;;  %v3779_v23 = vsub.f32 %v3651_v9, %v11414_v58  ;;  %v3778_v32 = vsub.f32 %v3650_v7, %v11416_v55 }
 0x32b   : > { %v6397_v5 = vadd.f32 %v6396_v44, %v16220_v10  ;;  %v2874_v42 = vmul.f32 %v2576_v49, %v2576_v49  ;;  %v2875_v17 = vmul.f32 %v2577_v34, %v2577_v34  ;;  %v2876_v13 = vmul.f32 %v2578_v16, %v2578_v16 }
 0x32c   : > { %2832 = vmatpush1.xpose.msra.mxu1 %v2578_v16  ;;  %7608 = vpow2.f32 %v3926_v18  ;;  %v2877_v56 = vmul.f32 %v2579_v59, %v2579_v59  ;;  %v2878_v29 = vmul.f32 %v11387_v37, %v11387_v37  ;;  %v11439_v26 = vmax.f32 %v3141_v40, %v3397_v45  ;;  %v16224_v37 = vld [vmem:[#allocation220_spill] sm:$0xff] }
 0x32d   : > { %v6398_v1 = vadd.f32 %v6397_v5, %v16221_v19  ;;  %v11441_v57 = vmin.f32 %v3141_v40, %v3397_v45  ;;  %v2879_v43 = vmul.f32 %v11380_v47, %v11380_v47  ;;  %v2880_v48 = vmul.f32 %v2582_v52, %v2582_v52  ;;  %v16225_v16 = vld [vmem:[#allocation216_spill] sm:$0xff] }
 0x32e   : > { %16222 = vst [vmem:[#allocation230_spill] sm:$0xff] %v11439_v26  ;;  %v3916_v34 = vmul.f32 1.442695, %v3779_v23  ;;  %v2881_v25 = vmul.f32 %v2583_v8, %v2583_v8  ;;  %v2884_v51 = vmul.f32 %v11396_v22, %v11396_v22  ;;  %v3914_v11 = vmul.f32 1.442695, %v3778_v32  ;;  %v16226_v5 = vld [vmem:[#allocation188_spill] sm:$0xff] }
 0x32f   : > { %v6399_v30 = vadd.f32 %v6398_v1, %v16223_v38  ;;  %v3002_v49 = vmul.f32 0.5, %v2874_v42  ;;  %v3003_v3 = vmul.f32 0.5, %v2875_v17  ;;  %v3004_v2 = vmul.f32 0.5, %v2876_v13 }
 0x330   : > { %v3005_v20 = vmul.f32 0.5, %v2877_v56  ;;  %v3006_v12 = vmul.f32 0.5, %v2878_v29  ;;  %v3258_v9 = vmul.f32 81377.4, %v2874_v42  ;;  %v3007_v59 = vmul.f32 0.5, %v2879_v43 }
 0x331   : > { %v6400_v35 = vadd.f32 %v6399_v30, %v16224_v37  ;;  %v3008_v7 = vmul.f32 0.5, %v2880_v48  ;;  %v3259_v47 = vmul.f32 81377.4, %v2875_v17  ;;  %v3260_v52 = vmul.f32 81377.4, %v2876_v13 }
 0x332   : > { %v11450_v18 = vmul.f32 0.5, %v2881_v25  ;;  %v11452_v8 = vmul.f32 0.5, %v2884_v51  ;;  %v3261_v22 = vmul.f32 81377.4, %v2877_v56  ;;  %7610 = vpow2.f32 %v3914_v11  ;;  %v16227_v11 = vld [vmem:[#allocation185_spill] sm:$0xff] }
 0x333   : > { %v6401_v39 = vadd.f32 %v6400_v35, %v16225_v16  ;;  %v3130_v44 = vsub.f32 -1.6120857, %v3002_v49  ;;  %v3131_v40 = vsub.f32 -1.6120857, %v3003_v3  ;;  %v3262_v45 = vmul.f32 81377.4, %v2878_v29 }
 0x334   : > { %v11454_v10 = vpop.eup %7600  ;;  %v3132_v32 = vsub.f32 -1.6120857, %v3004_v2  ;;  %v3263_v42 = vmul.f32 81377.4, %v2879_v43  ;;  %v3386_v19 = vsub.f32 4.387914, %v3258_v9  ;;  %v3781_v13 = vsub.f32 %v11441_v57, %v11439_v26 }
 0x335   : > { %v6402_v23 = vadd.f32 %v6401_v39, %v16226_v5  ;;  %v11457_v17 = vpop.eup %7602  ;;  %v3264_v1 = vmul.f32 81377.4, %v2880_v48  ;;  %v3387_v38 = vsub.f32 4.387914, %v3259_v47  ;;  %v3388_v30 = vsub.f32 4.387914, %v3260_v52 }
 0x336   : > { %v11461_v56 = vpop.eup %7604  ;;  %v3133_v29 = vsub.f32 -1.6120857, %v3005_v20  ;;  %v3134_v3 = vsub.f32 -1.6120857, %v3006_v12  ;;  %v3389_v37 = vsub.f32 4.387914, %v3261_v22  ;;  %7612 = vpow2.f32 %v3916_v34 }
 0x337   : > { %v6403_v49 = vadd.f32 %v6402_v23, %v16227_v11  ;;  %v11464_v35 = vpop.eup %7606  ;;  %v3135_v43 = vsub.f32 -1.6120857, %v3007_v59  ;;  %v3136_v2 = vsub.f32 -1.6120857, %v3008_v7  ;;  %v3390_v9 = vsub.f32 4.387914, %v3262_v45 }
 0x338   : > { %v16228_v16 = vld [vmem:[#allocation193_spill] sm:$0xff]  ;;  %v3265_v5 = vmul.f32 81377.4, %v2881_v25  ;;  %v3268_v57 = vmul.f32 81377.4, %v2884_v51  ;;  %v11467_v48 = vmax.f32 %v3130_v44, %v3386_v19  ;;  %v11471_v23 = vmax.f32 %v3131_v40, %v3387_v38  ;;  %v16229_v12 = vld [vmem:[#allocation192_spill] sm:$0xff] }
 0x339   : > { %v6404_v39 = vadd.f32 %v6403_v49, %v16228_v16  ;;  %v11469_v47 = vpop.eup %7608  ;;  %v3391_v52 = vsub.f32 4.387914, %v3263_v42  ;;  %v3392_v46 = vsub.f32 4.387914, %v3264_v1  ;;  %v11473_v20 = vmax.f32 %v3132_v32, %v3388_v30  ;;  %v16230_v49 = vld [vmem:[#allocation164_spill] sm:$0xff] }
 0x33a   : > { %v11476_v34 = vmax.f32 %v3133_v29, %v3389_v37  ;;  %v3642_v59 = vmin.f32 %v3130_v44, %v3386_v19  ;;  %v3643_v7 = vmin.f32 %v3131_v40, %v3387_v38  ;;  %v11478_v45 = vmax.f32 %v3134_v3, %v3390_v9  ;;  %v16231_v44 = vld [vmem:[#allocation163_spill] sm:$0xff] }
 0x33b   : > { %v6405_v22 = vadd.f32 %v6404_v39, %v16229_v12  ;;  %v3644_v25 = vmin.f32 %v3132_v32, %v3388_v30  ;;  %v3645_v51 = vmin.f32 %v3133_v29, %v3389_v37  ;;  %v3646_v11 = vmin.f32 %v3134_v3, %v3390_v9  ;;  %v16232_v37 = vld [vmem:[#allocation181_spill] sm:$0xff] }
 0x33c   : > { %v3920_v63 = vmul.f32 1.442695, %v3781_v13  ;;  %v3137_v42 = vsub.f32 -1.6120857, %v11450_v18  ;;  %v3393_v1 = vsub.f32 4.387914, %v3265_v5  ;;  %v11483_v15 = vmax.f32 %v3135_v43, %v3391_v52 }
 0x33d   : > { %v6406_v16 = vadd.f32 %v6405_v22, %v16230_v49  ;;  %v3140_v41 = vsub.f32 -1.6120857, %v11452_v8  ;;  %v3396_v54 = vsub.f32 4.387914, %v3268_v57  ;;  %v3770_v39 = vsub.f32 %v3642_v59, %v11467_v48  ;;  %v16234_v22 = vld [vmem:[#allocation165_spill] sm:$0xff] }
 0x33e   : > { %v3647_v19 = vmin.f32 %v3135_v43, %v3391_v52  ;;  %v3771_v32 = vsub.f32 %v3643_v7, %v11471_v23  ;;  %v3772_v38 = vsub.f32 %v3644_v25, %v11473_v20  ;;  %v11489_v30 = vmax.f32 %v3136_v2, %v3392_v46 }
 0x33f   : > { %v6407_v40 = vadd.f32 %v6406_v16, %v16231_v44  ;;  %v3648_v13 = vmin.f32 %v3136_v2, %v3392_v46  ;;  %v3773_v18 = vsub.f32 %v3645_v51, %v11476_v34  ;;  %v3774_v29 = vsub.f32 %v3646_v11, %v11478_v45  ;;  %v11493_v8 = vpop.eup %7610  ;;  %v16235_v16 = vld [vmem:[#allocation137_spill] sm:$0xff] }
 0x340   : > { %v4319_v3 = vmul.f32 -0.5, %v11247_v31  ;;  %7614 = vpow2.f32 %v3920_v63  ;;  %v11497_v5 = vmax.f32 %v3137_v42, %v3393_v1  ;;  %v11499_v43 = vmax.f32 %v3140_v41, %v3396_v54 }
 0x341   : > { %v6408_v9 = vadd.f32 %v6407_v40, %v16232_v37  ;;  %v3649_v57 = vmin.f32 %v3137_v42, %v3393_v1  ;;  %v3652_v52 = vmin.f32 %v3140_v41, %v3396_v54  ;;  %v3898_v12 = vmul.f32 1.442695, %v3770_v39  ;;  %v16237_v39 = vld [vmem:[#allocation132_spill] sm:$0xff]  ;;  %v16238_v37 = vld [vmem:[#allocation147_spill] sm:$0xff] }
 0x342   : > { %16233 = vst [vmem:[#allocation232_spill] sm:$0xff] %v11499_v43  ;;  %v3775_v2 = vsub.f32 %v3647_v19, %v11483_v15  ;;  %v3900_v59 = vmul.f32 1.442695, %v3771_v32  ;;  %v3902_v7 = vmul.f32 1.442695, %v3772_v38  ;;  %v3776_v25 = vsub.f32 %v3648_v13, %v11489_v30 }
 0x343   : > { %v6409_v46 = vadd.f32 %v6408_v9, %v16234_v22  ;;  %7616 = vpow2.f32 %v3898_v12  ;;  %v3904_v51 = vmul.f32 1.442695, %v3773_v18  ;;  %v3906_v11 = vmul.f32 1.442695, %v3774_v29  ;;  %v11504_v49 = vpop.eup %7612 }
 0x344   : > { %v4274_v63 = vmul.f32 -0.5, %v11389_v33  ;;  %v4226_v41 = vadd.f32 1.0, %v11493_v8  ;;  %7618 = vpow2.f32 %v3900_v59  ;;  %v11511_v54 = vmul.f32 %v11239_v0, %v11431_v14 }
 0x345   : > { %v6410_v44 = vadd.f32 %v6409_v46, %v16235_v16  ;;  %v4320_v42 = vadd.f32 1.0, %v4319_v3  ;;  %v4265_v1 = vmul.f32 -0.5, %v11399_v50  ;;  %7620 = vpow2.f32 %v3902_v7  ;;  %v16242_v46 = vld [vmem:[#allocation139_spill] sm:$0xff] }
 0x346   : > { %16236 = vst [vmem:[#allocation231_spill] sm:$0xff] %v11511_v54  ;;  %v3777_v19 = vsub.f32 %v3649_v57, %v11497_v5  ;;  %7622 = vpow2.f32 %v3904_v51  ;;  %v3908_v32 = vmul.f32 1.442695, %v3775_v2  ;;  %v4292_v38 = vmul.f32 -0.5, %v11457_v17 }
 0x347   : > { %v6411_v40 = vadd.f32 %v6410_v44, %v16237_v39  ;;  %v3780_v13 = vsub.f32 %v3652_v52, %v11499_v43  ;;  %7624 = vpow2.f32 %v3906_v11  ;;  %v3910_v18 = vmul.f32 1.442695, %v3776_v25  ;;  %v16244_v11 = vld [vmem:[#allocation119_spill] sm:$0xff] }
 0x348   : > { %v4275_v14 = vadd.f32 1.0, %v4274_v63  ;;  %7626 = vlog2.f32 %v4226_v41  ;;  %v11521_v9 = vmul.f32 0.6931472, %v11427_v28  ;;  %v11524_v12 = vmul.f32 0.6931472, %v11454_v10 }
 0x349   : > { %v6412_v3 = vadd.f32 %v6411_v40, %v16238_v37  ;;  %v11527_v57 = vmul.f32 %v11247_v31, %v4320_v42  ;;  %v4289_v22 = vadd.f32 1.0, %v11457_v17  ;;  %v4266_v52 = vadd.f32 1.0, %v4265_v1  ;;  %v16245_v40 = vld [vmem:[#allocation104_spill] sm:$0xff] }
 0x34a   : > { %16239 = vst [vmem:[#allocation213_spill] sm:$0xff] %v11521_v9  ;;  %16240 = vst [vmem:[#allocation235_spill] sm:$0xff] %v11524_v12  ;;  %7628 = vpow2.f32 %v3908_v32  ;;  %v3912_v59 = vmul.f32 1.442695, %v3777_v19  ;;  %v4293_v25 = vadd.f32 1.0, %v4292_v38  ;;  %v11533_v28 = vmul.f32 %v11389_v33, %v4275_v14 }
 0x34b   : > { %16241 = vst [vmem:[#allocation234_spill] sm:$0xff] %v11527_v57  ;;  %v6413_v2 = vadd.f32 %v6412_v3, %v16242_v46  ;;  %7630 = vpow2.f32 %v3910_v18  ;;  %v3918_v51 = vmul.f32 1.442695, %v3780_v13  ;;  %v4238_v16 = vmul.f32 -0.5, %v11504_v49  ;;  %v16262_v57 = vld [vmem:[#allocation65_spill] sm:$0xff] }
 0x34c   : > { %16243 = vst [vmem:[#allocation244_spill] sm:$0xff] %v11533_v28  ;;  %7632 = vlog2.f32 %v4289_v22  ;;  %v4280_v42 = vadd.f32 1.0, %v11469_v47  ;;  %v4229_v1 = vmul.f32 -0.5, %v11493_v8  ;;  %v11544_v39 = vmul.f32 %v11399_v50, %v4266_v52  ;;  %v16248_v22 = vld [vmem:[#allocation131_spill] sm:$0xff] }
 0x34d   : > { %v6414_v63 = vadd.f32 %v6413_v2, %v16244_v11  ;;  %v11538_v44 = vpop.eup %7614  ;;  %v4235_v32 = vadd.f32 1.0, %v11504_v49  ;;  %7634 = vpow2.f32 %v3912_v59  ;;  %v11549_v38 = vmul.f32 0.6931472, %v11461_v56 }
 0x34e   : > { %v11552_v13 = vmul.f32 %v11457_v17, %v4293_v25  ;;  %v4256_v18 = vmul.f32 -0.5, %v11538_v44  ;;  %7636 = vpow2.f32 %v3918_v51  ;;  %v11556_v37 = vmul.f32 0.6931472, %v11464_v35 }
 0x34f   : > { %v6415_v19 = vadd.f32 %v6414_v63, %v16245_v40  ;;  %16246 = vst [vmem:[#allocation242_spill] sm:$0xff] %v11549_v38  ;;  %v11559_v3 = vmul.f32 -0.5, %v11469_v47  ;;  %v4239_v46 = vadd.f32 1.0, %v4238_v16  ;;  %7638 = vlog2.f32 %v4280_v42  ;;  %v16249_v63 = vld [vmem:[#allocation128_spill] sm:$0xff]  ;;  %v16250_v42 = vld [vmem:[#allocation89_spill] sm:$0xff] }
 0x350   : > { %16247 = vst [vmem:[#allocation253_spill] sm:$0xff] %v11552_v13  ;;  %v7617_v14 = vpop.eup %7616  ;;  %v4230_v59 = vadd.f32 1.0, %v4229_v1  ;;  %7640 = vlog2.f32 %v4235_v32  ;;  %v4253_v29 = vadd.f32 1.0, %v11538_v44  ;;  %v4257_v7 = vadd.f32 1.0, %v4256_v18  ;;  %v16251_v18 = vld [vmem:[#allocation85_spill] sm:$0xff] }
 0x351   : > { %v6416_v52 = vadd.f32 %v6415_v19, %v16248_v22  ;;  %v7619_v2 = vpop.eup %7618  ;;  %v4154_v25 = vadd.f32 1.0, %v7617_v14  ;;  %v11572_v1 = vmul.f32 %v11504_v49, %v4239_v46  ;;  %v4157_v10 = vmul.f32 -0.5, %v7617_v14 }
 0x352   : > { %v7621_v11 = vpop.eup %7620  ;;  %v4163_v35 = vadd.f32 1.0, %v7619_v2  ;;  %v4166_v56 = vmul.f32 -0.5, %v7619_v2  ;;  %v4160_v51 = vand.u32 2147483647, %v7617_v14  ;;  %v11583_v46 = vmul.f32 %v11538_v44, %v4257_v7  ;;  %v16253_v7 = vld [vmem:[#allocation91_spill] sm:$0xff] }
 0x353   : > { %v6417_v40 = vadd.f32 %v6416_v52, %v16249_v63  ;;  %v11565_v41 = vpop.eup %7622  ;;  %7642 = vlog2.f32 %v4154_v25  ;;  %v4172_v16 = vadd.f32 1.0, %v7621_v11  ;;  %v11575_v52 = vmul.f32 %v11493_v8, %v4230_v59  ;;  %v16252_v63 = vld [vmem:[#allocation101_spill] sm:$0xff] }
 0x354   : > { %v11568_v19 = vpop.eup %7624  ;;  %7644 = vlog2.f32 %v4163_v35  ;;  %v4175_v36 = vmul.f32 -0.5, %v7621_v11  ;;  %v4181_v53 = vadd.f32 1.0, %v11565_v41  ;;  %v4169_v35 = vand.u32 2147483647, %v7619_v2 }
 0x355   : > { %v6418_v22 = vadd.f32 %v6417_v40, %v16250_v42  ;;  %v7627_v32 = vpop.eup %7626  ;;  %7646 = vlog2.f32 %v4172_v16  ;;  %v4190_v59 = vadd.f32 1.0, %v11568_v19  ;;  %v4178_v21 = vand.u32 2147483647, %v7621_v11 }
 0x356   : > { %7648 = vlog2.f32 %v4253_v29  ;;  %v11589_v16 = vmul.f32 0.6931472, %v7627_v32  ;;  %v4184_v24 = vmul.f32 -0.5, %v11565_v41  ;;  %vm11595_vm6 = vcmp.lt.f32.partialorder %v4160_v51, 0.0004427343  ;;  %v16258_v51 = vld [vmem:[#allocation74_spill] sm:$0xff] }
 0x357   : > { %v6419_v25 = vadd.f32 %v6418_v22, %v16251_v18  ;;  %v11580_v40 = vpop.eup %7628  ;;  %v4158_v22 = vadd.f32 1.0, %v4157_v10  ;;  %7650 = vlog2.f32 %v4181_v53  ;;  %v4167_v18 = vadd.f32 1.0, %v4166_v56 }
 0x358   : > { %v11586_v42 = vpop.eup %7630  ;;  %7652 = vlog2.f32 %v4190_v59  ;;  %v4176_v60 = vadd.f32 1.0, %v4175_v36  ;;  %vm11602_vm9 = vcmp.lt.f32.partialorder %v4169_v35, 0.0004427343  ;;  %v4187_v10 = vand.u32 2147483647, %v11565_v41 }
 0x359   : > { %v6420_v27 = vadd.f32 %v6419_v25, %v16252_v63  ;;  %v11592_v29 = vpop.eup %7632  ;;  %v4199_v63 = vadd.f32 1.0, %v11580_v40  ;;  %v4193_v56 = vmul.f32 -0.5, %v11568_v19  ;;  %v4208_v25 = vadd.f32 1.0, %v11586_v42 }
 0x35a   : > { %v11600_v32 = vpop.eup %7634  ;;  %v4202_v36 = vmul.f32 -0.5, %v11580_v40  ;;  %v4168_v62 = vmul.f32 %v7619_v2, %v4167_v18  ;;  %vm11613_vm12 = vcmp.lt.f32.partialorder %v4178_v21, 0.0004427343  ;;  %v4185_v13 = vadd.f32 1.0, %v4184_v24 }
 0x35b   : > { %v6421_v6 = vadd.f32 %v6420_v27, %v16253_v7  ;;  %v11609_v27 = vpop.eup %7636  ;;  %v4159_v7 = vmul.f32 %v7617_v14, %v4158_v22  ;;  %7654 = vlog2.f32 %v4199_v63  ;;  %v4177_v28 = vmul.f32 %v7621_v11, %v4176_v60  ;;  %v16265_v63 = vld [vmem:[#allocation81_spill] sm:$0xff] }
 0x35c   : > { %7656 = vlog2.f32 %v4208_v25  ;;  %v11617_v61 = vpop.eup %7638  ;;  %v4196_v38 = vand.u32 2147483647, %v11568_v19  ;;  %vm11624_vm13 = vcmp.lt.f32.partialorder %v4187_v10, 0.0004427343  ;;  %v4194_v21 = vadd.f32 1.0, %v4193_v56  ;;  %v16266_v56 = vld [vmem:[#allocation77_spill] sm:$0xff] }
 0x35d   : > { %v6422_v59 = vadd.f32 %v6421_v6, %v16258_v51  ;;  %16261 = vst [vmem:[#allocation215_spill] sm:$0xff] %v11617_v61  ;;  %v4217_v6 = vadd.f32 1.0, %v11600_v32  ;;  %v11622_v14 = vpop.eup %7640  ;;  %v4211_v2 = vmul.f32 -0.5, %v11586_v42  ;;  %v4244_v24 = vadd.f32 1.0, %v11609_v27 }
 0x35e   : > { %v4205_v60 = vand.u32 2147483647, %v11580_v40  ;;  %v4220_v10 = vmul.f32 -0.5, %v11600_v32  ;;  %v4186_v61 = vmul.f32 %v11565_v41, %v4185_v13  ;;  %vm11636_vm15 = vcmp.lt.f32.partialorder %v4196_v38, 0.0004427343  ;;  %v16272_v41 = vld [vmem:[#allocation47_spill] sm:$0xff] }
 0x35f   : > { %v6423_v12 = vadd.f32 %v6422_v59, %v16262_v57  ;;  %v4203_v57 = vadd.f32 1.0, %v4202_v36  ;;  %7658 = vlog2.f32 %v4217_v6  ;;  %v4214_v59 = vand.u32 2147483647, %v11586_v42 }
 0x360   : > { %v7643_v18 = vpop.eup %7642  ;;  %7660 = vlog2.f32 %v4244_v24  ;;  %vm11654_vm3 = vcmp.lt.f32.partialorder %v4205_v60, 0.0004427343 }
 0x361   : > { %v6424_v25 = vadd.f32 %v6423_v12, %v16265_v63  ;;  %v7645_v11 = vpop.eup %7644  ;;  %v4156_v51 = vmul.f32 0.6931472, %v7643_v18  ;;  %v16269_v12 = vand.u32 2147483647, %v11493_v8  ;;  %v4195_v18 = vmul.f32 %v11568_v19, %v4194_v21 }
 0x362   : > { %v7647_v54 = vpop.eup %7646  ;;  %v4165_v26 = vmul.f32 0.6931472, %v7645_v11  ;;  %v4212_v63 = vadd.f32 1.0, %v4211_v2  ;;  %v4223_v11 = vand.u32 2147483647, %v11600_v32  ;;  %v4204_v19 = vmul.f32 %v11580_v40, %v4203_v57 }
 0x363   : > { %v6425_v9 = vadd.f32 %v6424_v25, %v16266_v56  ;;  %vm11642_vm0 = vcmp.lt.f32.partialorder %v16269_v12, 0.0004427343  ;;  %v4162_v6 = vsel %vm11595_vm6, %v4159_v7, %v4156_v51  ;;  %v4174_v24 = vmul.f32 0.6931472, %v7647_v54  ;;  %v11649_v25 = vpop.eup %7648  ;;  %v16281_v56 = vld [vmem:[#allocation62_spill] sm:$0xff] }
 0x364   : > { %v4171_v13 = vsel %vm11602_vm9, %v4168_v62, %v4165_v26  ;;  %v7651_v4 = vpop.eup %7650  ;;  %vm11662_vm8 = vcmp.lt.f32.partialorder %v4214_v59, 0.0004427343  ;;  %v16277_v26 = vld [vmem:[#allocation46_spill] sm:$0xff]  ;;  %v4247_v2 = vmul.f32 -0.5, %v11609_v27  ;;  %v5306_v60 = vadd.f32 %v4162_v6, %v11467_v48 }
 0x365   : > { %v6426_v38 = vadd.f32 %v6425_v9, %v16272_v41  ;;  %v4180_v54 = vsel %vm11613_vm12, %v4177_v28, %v4174_v24  ;;  %v4221_v9 = vadd.f32 1.0, %v4220_v10  ;;  %v7653_v62 = vpop.eup %7652  ;;  %v4183_v21 = vmul.f32 0.6931472, %v7651_v4  ;;  %v830_v10 = vld [vmem:[%s9023_s13 + $0x3e8] sm:$0xff]  ;;  %v829_v24 = vld [vmem:[%s9023_s13 + $0x3e0] sm:$0xff] }
 0x366   : > { %v16278_v51 = vand.u32 2147483647, %v11504_v49  ;;  %v4192_v40 = vmul.f32 0.6931472, %v7653_v62  ;;  %v4213_v35 = vmul.f32 %v11586_v42, %v4212_v63  ;;  %v5307_v57 = vadd.f32 %v4171_v13, %v11471_v23  ;;  %v16284_v4 = vld [vmem:[#allocation54_spill] sm:$0xff] }
 0x367   : > { %v6427_v53 = vadd.f32 %v6426_v38, %v16277_v26  ;;  %v5308_v59 = vadd.f32 %v4180_v54, %v11473_v20  ;;  %v4189_v48 = vsel %vm11624_vm13, %v4186_v61, %v4183_v21  ;;  %vm11682_vm6 = vcmp.lt.f32.partialorder %v4223_v11, 0.0004427343  ;;  %v832_v38 = vld [vmem:[%s9023_s13 + $0x3f8] sm:$0xff] }
 0x368   : > { %vm11671_vm4 = vcmp.lt.f32.partialorder %v16278_v51, 0.0004427343  ;;  %v1279_v6 = vmul.f32 1.442695, %v830_v10  ;;  %v7655_v41 = vpop.eup %7654  ;;  %v4198_v42 = vsel %vm11636_vm15, %v4195_v18, %v4192_v40  ;;  %v4222_v23 = vmul.f32 %v11600_v32, %v4221_v9  ;;  %v16288_v9 = vld [vmem:[#allocation40_spill] sm:$0xff] }
 0x369   : > { %v6428_v12 = vadd.f32 %v6427_v53, %v16281_v56  ;;  %v5309_v20 = vadd.f32 %v4189_v48, %v11476_v34  ;;  %v5434_v63 = vadd.f32 %v5307_v57, %v5306_v60  ;;  %v7657_v13 = vpop.eup %7656  ;;  %v4201_v61 = vmul.f32 0.6931472, %v7655_v41 }
 0x36a   : > { %v4248_v11 = vadd.f32 1.0, %v4247_v2  ;;  %7662 = vpow2.f32 %v1279_v6  ;;  %v16285_v54 = vand.u32 2147483647, %v11399_v50  ;;  %v4210_v43 = vmul.f32 0.6931472, %v7657_v13  ;;  %v16299_v6 = vld [vmem:[#allocation45_spill] sm:$0xff] }
 0x36b   : > { %v6429_v22 = vadd.f32 %v6428_v12, %v16284_v4  ;;  %v5310_v32 = vadd.f32 %v4198_v42, %v11478_v45  ;;  %v5435_v18 = vadd.f32 %v5434_v63, %v5308_v59  ;;  %v1277_v34 = vmul.f32 1.442695, %v829_v24  ;;  %v831_v45 = vld [vmem:[%s9023_s13 + $0x3f0] sm:$0xff]  ;;  %v16289_v59 = vld [vmem:[#allocation37_spill] sm:$0xff]  ;;  %v826_v12 = vld [vmem:[%s9023_s13 + $0x3c8] sm:$0xff] }
 0x36c   : > { %vm11695_vm9 = vcmp.lt.f32.partialorder %v16285_v54, 0.0004427343  ;;  %v4207_v53 = vsel %vm11654_vm3, %v4204_v19, %v4201_v61  ;;  %v4250_v21 = vand.u32 2147483647, %v11609_v27  ;;  %v1283_v2 = vmul.f32 1.442695, %v832_v38  ;;  %v7659_v60 = vpop.eup %7658 }
 0x36d   : > { %v6430_v26 = vadd.f32 %v6429_v22, %v16288_v9  ;;  %v4216_v50 = vsel %vm11662_vm8, %v4213_v35, %v4210_v43  ;;  %v5311_v51 = vadd.f32 %v4207_v53, %v11483_v15  ;;  %v5436_v40 = vadd.f32 %v5435_v18, %v5309_v20  ;;  %v7661_v57 = vpop.eup %7660  ;;  %v825_v13 = vld [vmem:[%s9023_s13 + $0x3c0] sm:$0xff]  ;;  %v16305_v4 = vld [vmem:[#allocation43_spill] sm:$0xff]  ;;  %v828_v22 = vld [vmem:[%s9023_s13 + $0x3d8] sm:$0xff] }
 0x36e   : > { %7664 = vpow2.f32 %v1277_v34  ;;  %v4237_v56 = vmul.f32 0.6931472, %v11622_v14  ;;  %v4234_v8 = vsel %vm11642_vm0, %v11575_v52, %v11589_v16  ;;  %v4219_v19 = vmul.f32 0.6931472, %v7659_v60 }
 0x36f   : > { %v6431_v10 = vadd.f32 %v6430_v26, %v16289_v59  ;;  %v16290_v7 = vand.u32 2147483647, %v11239_v0  ;;  %v16293_v15 = vand.u32 2147483647, %v11389_v33  ;;  %v4249_v14 = vmul.f32 %v11609_v27, %v4248_v11  ;;  %v16310_v26 = vld [vmem:[#allocation35_spill] sm:$0xff]  ;;  %v16316_v59 = vld [vmem:[#allocation230_spill] sm:$0xff] }
 0x370   : > { %v5312_v36 = vadd.f32 %v4216_v50, %v11489_v30  ;;  %v5437_v52 = vadd.f32 %v5436_v40, %v5310_v32  ;;  %7666 = vpow2.f32 %v1283_v2  ;;  %v16296_v16 = vand.u32 2147483647, %v11247_v31  ;;  %v16309_v32 = vld [vmem:[#allocation75_spill] sm:$0xff]  ;;  %v16325_v31 = vld [vmem:[#allocation253_spill] sm:$0xff]  ;;  %v16327_v0 = vld [vmem:[#allocation246_spill] sm:$0xff] }
 0x371   : > { %vm11717_vm12 = vcmp.lt.f32.partialorder %v16290_v7, 0.0004427343  ;;  %vm11723_vm13 = vcmp.lt.f32.partialorder %v16293_v15, 0.0004427343  ;;  %v6432_v33 = vadd.f32 %v6431_v10, %v16299_v6  ;;  %v4225_v24 = vsel %vm11682_vm6, %v4222_v23, %v4219_v19  ;;  %v16312_v40 = vld [vmem:[#allocation215_spill] sm:$0xff]  ;;  %v16317_v19 = vld [vmem:[#allocation213_spill] sm:$0xff] }
 0x372   : > { %vm11731_vm15 = vcmp.lt.f32.partialorder %v16296_v16, 0.0004427343  ;;  %v4246_v41 = vmul.f32 0.6931472, %v7661_v57  ;;  %v1281_v42 = vmul.f32 1.442695, %v831_v45  ;;  %v5313_v20 = vadd.f32 %v4225_v24, %v11497_v5 }
 0x373   : > { %v16300_v27 = vand.u32 2147483647, %v11457_v17  ;;  %vm11744_vm3 = vcmp.lt.f32.partialorder %v4250_v21, 0.0004427343  ;;  %v5438_v63 = vadd.f32 %v5437_v52, %v5311_v51  ;;  %v1271_v38 = vmul.f32 1.442695, %v826_v12 }
 0x374   : > { %v6433_v49 = vadd.f32 %v6432_v33, %v16305_v4  ;;  %v4243_v23 = vsel %vm11671_vm4, %v11572_v1, %v4237_v56  ;;  %v4255_v17 = vmul.f32 0.6931472, %v11649_v25  ;;  %7668 = vpow2.f32 %v1281_v42  ;;  %v827_v21 = vld [vmem:[%s9023_s13 + $0x3d0] sm:$0xff]  ;;  %v16319_v7 = vld [vmem:[#allocation242_spill] sm:$0xff] }
 0x375   : > { %vm11740_vm0 = vcmp.lt.f32.partialorder %v16300_v27, 0.0004427343  ;;  %v5314_v61 = vadd.f32 %v4234_v8, %v11416_v55  ;;  %v16306_v11 = vand.u32 2147483647, %v11538_v44  ;;  %v5439_v54 = vadd.f32 %v5438_v63, %v5312_v36  ;;  %v16318_v12 = vld [vmem:[#allocation231_spill] sm:$0xff]  ;;  %v16320_v15 = vld [vmem:[#allocation244_spill] sm:$0xff] }
 0x376   : > { %7670 = vpow2.f32 %v1271_v38  ;;  %v4284_v43 = vadd.f32 1.0, %v11559_v3  ;;  %v6434_v28 = vadd.f32 %v6433_v49, %v16309_v32  ;;  %v4252_v1 = vsel %vm11744_vm3, %v4249_v14, %v4246_v41  ;;  %v16321_v36 = vld [vmem:[#allocation97_spill] sm:$0xff]  ;;  %v16322_v16 = vld [vmem:[#allocation235_spill] sm:$0xff]  ;;  %v16323_v6 = vld [vmem:[#allocation234_spill] sm:$0xff] }
 0x377   : > { %vm11759_vm8 = vcmp.lt.f32.partialorder %v16306_v11, 0.0004427343  ;;  %v1269_v25 = vmul.f32 1.442695, %v825_v13  ;;  %v4286_v18 = vand.u32 2147483647, %v11469_v47  ;;  %v5315_v55 = vadd.f32 %v4243_v23, %v11414_v58  ;;  %v11778_v2 = vpop.eup %7662 }
 0x378   : > { %v5440_v44 = vadd.f32 %v5439_v54, %v5313_v20  ;;  %v1275_v34 = vmul.f32 1.442695, %v828_v22  ;;  %v4270_v9 = vsel %vm11695_vm9, %v11544_v39, %v11556_v37  ;;  %v6435_v53 = vadd.f32 %v6434_v28, %v16310_v26  ;;  %v16311_v58 = vld [vmem:[#allocation232_spill] sm:$0xff]  ;;  %v16328_v49 = vld [vmem:[#allocation259_spill] sm:$0xff] }
 0x379   : > { %v4261_v3 = vsel %vm11759_vm8, %v11583_v46, %v4255_v17  ;;  %7672 = vpow2.f32 %v1269_v25  ;;  %v4291_v60 = vmul.f32 0.6931472, %v11592_v29  ;;  %v5316_v50 = vadd.f32 %v4252_v1, %v16311_v58  ;;  %v16313_v37 = vld [vmem:[#allocation36_spill] sm:$0xff]  ;;  %v16330_v11 = vld [vmem:[#allocation31_spill] sm:$0xff]  ;;  %v16332_v25 = vld [vmem:[#allocation237_spill] sm:$0xff] }
 0x37a   : > { %v5441_v51 = vadd.f32 %v5440_v44, %v5314_v61  ;;  %7674 = vpow2.f32 %v1275_v34  ;;  %v4282_v45 = vmul.f32 0.6931472, %v16312_v40  ;;  %v4285_v39 = vmul.f32 %v11469_v47, %v4284_v43  ;;  %v16324_v24 = vld [vmem:[#allocation260_spill] sm:$0xff]  ;;  %v16331_v28 = vld [vmem:[#allocation251_spill] sm:$0xff] }
 0x37b   : > { %v6436_v62 = vadd.f32 %v6435_v53, %v16313_v37  ;;  %v2410_v57 = vadd.f32 1.0, %v11778_v2  ;;  %vm11786_vm4 = vcmp.lt.f32.partialorder %v4286_v18, 0.0004427343  ;;  %v5317_v10 = vadd.f32 %v4261_v3, %v16316_v59  ;;  %v11791_v8 = vpop.eup %7664  ;;  %v16326_v63 = vld [vmem:[#allocation32_spill] sm:$0xff]  ;;  %v11847_v37 = vld [vmem:[%s9026_s3 + $0x1e0] sm:$0xff] }
 0x37c   : > { %v5442_v29 = vadd.f32 %v5441_v51, %v5315_v55  ;;  %v1273_v56 = vmul.f32 1.442695, %v827_v21  ;;  %v4333_v47 = vsel %vm11717_vm12, %v16318_v12, %v16317_v19  ;;  %v4279_v14 = vsel %vm11723_vm13, %v16320_v15, %v16319_v7  ;;  %v895_v13 = vld [vmem:[%s9026_s3 + $0x1f0] sm:$0xff]  ;;  %v896_v54 = vld [vmem:[%s9026_s3 + $0x1f8] sm:$0xff] }
 0x37d   : > { %v6437_v52 = vadd.f32 %v6436_v62, %v16321_v36  ;;  %7676 = vlog2.f32 %v2410_v57  ;;  %v4324_v33 = vsel %vm11731_vm15, %v16323_v6, %v16322_v16  ;;  %v5318_v41 = vadd.f32 %v4270_v9, %v16324_v24  ;;  %v11808_v27 = vpop.eup %7666  ;;  %v16329_v22 = vld [vmem:[#allocation248_spill] sm:$0xff]  ;;  %v16334_v9 = vld [vmem:[#allocation34_spill] sm:$0xff]  ;;  %v16336_v51 = vld [vmem:[#allocation33_spill] sm:$0xff] }
 0x37e   : > { %v5443_v42 = vadd.f32 %v5442_v29, %v5316_v50  ;;  %v2401_v35 = vadd.f32 1.0, %v11791_v8  ;;  %v4297_v48 = vsel %vm11740_vm0, %v16325_v31, %v4291_v60  ;;  %v4288_v20 = vsel %vm11786_vm4, %v4285_v39, %v4282_v45 }
 0x37f   : > { %v6438_v38 = vadd.f32 %v6437_v52, %v16326_v63  ;;  %7678 = vpow2.f32 %v1273_v56  ;;  %v11818_v4 = vadd.f32 %v4333_v47, %v16327_v0  ;;  %v5319_v23 = vadd.f32 %v4279_v14, %v16328_v49  ;;  %v16338_v56 = vld [vmem:[#allocation28_spill] sm:$0xff]  ;;  %v16341_v52 = vld [vmem:[#allocation27_spill] sm:$0xff] }
 0x380   : > { %v5444_v17 = vadd.f32 %v5443_v42, %v5317_v10  ;;  %7680 = vlog2.f32 %v2401_v35  ;;  %v11822_v61 = vadd.f32 %v4324_v33, %v16329_v22  ;;  %v2413_v5 = vmul.f32 -0.5, %v11778_v2  ;;  %v16344_v42 = vld [vmem:[#allocation202_spill] sm:$0xff]  ;;  %v16350_v22 = vld [vmem:[#allocation249_spill] sm:$0xff] }
 0x381   : > { %v6439_v30 = vadd.f32 %v6438_v38, %v16330_v11  ;;  %v2428_v43 = vadd.f32 1.0, %v11808_v27  ;;  %v11828_v32 = vpop.eup %7668  ;;  %v5321_v1 = vadd.f32 %v4297_v48, %v16331_v28  ;;  %v5320_v18 = vadd.f32 %v4288_v20, %v16332_v25  ;;  %v16345_v20 = vld [vmem:[#allocation214_spill] sm:$0xff]  ;;  %v16351_v28 = vld [vmem:[#allocation29_spill] sm:$0xff] }
 0x382   : > { %v5445_v55 = vadd.f32 %v5444_v17, %v5318_v41  ;;  %v11832_v44 = vunpack.c.h.bf16 %v895_v13  ;;  %v11837_v53 = vunpack.c.l.bf16 %v895_v13  ;;  %v2404_v3 = vmul.f32 -0.5, %v11791_v8  ;;  %v16349_v38 = vld [vmem:[#allocation30_spill] sm:$0xff] }
 0x383   : > { %v11834_v34 = vpop.eup %7670  ;;  %v6440_v26 = vadd.f32 %v6439_v30, %v16334_v9  ;;  %7682 = vlog2.f32 %v2428_v43  ;;  %v2416_v60 = vand.u32 2147483647, %v11778_v2  ;;  %v11841_v58 = vunpack.c.h.bf16 %v896_v54  ;;  %v702_v25 = vld [vmem:[%s9016_s28 + $0x3e8] sm:$0xff] }
 0x384   : > { %16333 = vst [vmem:[#allocation219_spill] sm:$0xff] %v11832_v44  ;;  %v5446_v21 = vadd.f32 %v5445_v55, %v5319_v23  ;;  %v2419_v50 = vadd.f32 1.0, %v11828_v32  ;;  %v2414_v45 = vadd.f32 1.0, %v2413_v5  ;;  %v2407_v39 = vand.u32 2147483647, %v11791_v8 }
 0x385   : > { %16335 = vst [vmem:[#allocation221_spill] sm:$0xff] %v11841_v58  ;;  %v6441_v40 = vadd.f32 %v6440_v26, %v16336_v51  ;;  %v2374_v62 = vadd.f32 1.0, %v11834_v34  ;;  %v11852_v59 = vunpack.c.l.bf16 %v896_v54  ;;  %v11855_v10 = vunpack.c.h.bf16 %v11847_v37  ;;  %v822_v54 = vld [vmem:[%s9023_s13 + $0x3a8] sm:$0xff] }
 0x386   : > { %v11850_v57 = vpop.eup %7672  ;;  %v5447_v46 = vadd.f32 %v5446_v21, %v5320_v18  ;;  %7684 = vlog2.f32 %v2419_v50  ;;  %v2405_v12 = vadd.f32 1.0, %v2404_v3  ;;  %v2431_v47 = vmul.f32 -0.5, %v11808_v27 }
 0x387   : > { %16337 = vst [vmem:[#allocation258_spill] sm:$0xff] %v11852_v59  ;;  %v11857_v29 = vpop.eup %7674  ;;  %v6442_v19 = vadd.f32 %v6441_v40, %v16338_v56  ;;  %7686 = vlog2.f32 %v2374_v62  ;;  %vm11861_vm6 = vcmp.lt.f32.partialorder %v2416_v60, 0.0004427343  ;;  %v2422_v14 = vmul.f32 -0.5, %v11828_v32  ;;  %v701_v62 = vld [vmem:[%s9016_s28 + $0x3e0] sm:$0xff] }
 0x388   : > { %v5448_v7 = vadd.f32 %v5447_v46, %v5321_v1  ;;  %v2365_v36 = vadd.f32 1.0, %v11850_v57  ;;  %v2415_v6 = vmul.f32 %v11778_v2, %v2414_v45  ;;  %vm11869_vm9 = vcmp.lt.f32.partialorder %v2407_v39, 0.0004427343  ;;  %v703_v2 = vld [vmem:[%s9016_s28 + $0x3f0] sm:$0xff] }
 0x389   : > { %v6443_v16 = vadd.f32 %v6442_v19, %v16341_v52  ;;  %v2377_v24 = vmul.f32 -0.5, %v11834_v34  ;;  %v2434_v31 = vand.u32 2147483647, %v11808_v27  ;;  %v2392_v48 = vadd.f32 1.0, %v11857_v29 }
 0x38a   : > { %v7677_v41 = vpop.eup %7676  ;;  %v5449_v35 = vadd.f32 %v5448_v7, %v16344_v42  ;;  %7688 = vlog2.f32 %v2365_v36  ;;  %v16346_v63 = vand.u32 2147483647, %v16345_v20  ;;  %v2406_v49 = vmul.f32 %v11791_v8, %v2405_v12 }
 0x38b   : > { %v6444_v13 = vadd.f32 %v6443_v16, %v16349_v38  ;;  %v2412_v0 = vmul.f32 0.6931472, %v7677_v41  ;;  %v2432_v23 = vadd.f32 1.0, %v2431_v47  ;;  %v2423_v30 = vadd.f32 1.0, %v2422_v14  ;;  %v704_v16 = vld [vmem:[%s9016_s28 + $0x3f8] sm:$0xff]  ;;  %v16382_v14 = vld [vmem:[#allocation174_spill] sm:$0xff] }
 0x38c   : > { %vm11879_vm12 = vcmp.lt.f32.partialorder %v16346_v63, 0.0004427343  ;;  %v11885_v17 = vpop.eup %7678  ;;  %v5450_v11 = vadd.f32 %v5449_v35, %v16350_v22  ;;  %v2425_v5 = vand.u32 2147483647, %v11828_v32  ;;  %7690 = vlog2.f32 %v2392_v48  ;;  %v16361_v38 = vld [vmem:[#allocation197_spill] sm:$0xff] }
 0x38d   : > { %v7681_v43 = vpop.eup %7680  ;;  %v11891_v1 = vadd.f32 %v6444_v13, %v16351_v28  ;;  %v11896_v18 = vsel %vm11861_vm6, %v2415_v6, %v2412_v0  ;;  %v2378_v8 = vadd.f32 1.0, %v2377_v24  ;;  %v2383_v55 = vadd.f32 1.0, %v11885_v17 }
 0x38e   : > { %v5451_v9 = vadd.f32 %v5450_v11, %v11822_v61  ;;  %v2573_v26 = vmul.f32 %v11896_v18, %v11832_v44  ;;  %v2403_v3 = vmul.f32 0.6931472, %v7681_v43  ;;  %v2380_v21 = vand.u32 2147483647, %v11834_v34  ;;  %v16367_v11 = vld [vmem:[#allocation201_spill] sm:$0xff] }
 0x38f   : > { %v2433_v60 = vmul.f32 %v11808_v27, %v2432_v23  ;;  %vm11904_vm13 = vcmp.lt.f32.partialorder %v2434_v31, 0.0004427343  ;;  %v2368_v51 = vmul.f32 -0.5, %v11850_v57  ;;  %v1263_v40 = vmul.f32 1.442695, %v822_v54  ;;  %v16366_v23 = vld [vmem:[#allocation225_spill] sm:$0xff] }
 0x390   : > { %v7683_v45 = vpop.eup %7682  ;;  %v5452_v39 = vadd.f32 %v5451_v9, %v11818_v4  ;;  %v11910_v61 = vadd.f32 %v2573_v26, %v702_v25  ;;  %v11915_v46 = vsel %vm11869_vm9, %v2406_v49, %v2403_v3  ;;  %7692 = vlog2.f32 %v2383_v55  ;;  %v16356_v4 = vld [vmem:[#allocation247_spill] sm:$0xff]  ;;  %v16370_v54 = vld [vmem:[#allocation228_spill] sm:$0xff]  ;;  %v16373_v3 = vld [vmem:[#allocation170_spill] sm:$0xff] }
 0x391   : > { %v2572_v27 = vmul.f32 %v11915_v46, %v11837_v53  ;;  %v2430_v56 = vmul.f32 0.6931472, %v7683_v45  ;;  %vm11919_vm15 = vcmp.lt.f32.partialorder %v2425_v5, 0.0004427343  ;;  %v2395_v12 = vmul.f32 -0.5, %v11857_v29  ;;  %v16365_v49 = vld [vmem:[#allocation227_spill] sm:$0xff] }
 0x392   : > { %v5453_v47 = vadd.f32 %v5452_v39, %v16356_v4  ;;  %2762 = vmatprep.subr.mxu0 %v11910_v61  ;;  %v2424_v7 = vmul.f32 %v11828_v32, %v2423_v30  ;;  %v2379_v15 = vmul.f32 %v11834_v34, %v2378_v8  ;;  %vm11928_vm0 = vcmp.lt.f32.partialorder %v2380_v21, 0.0004427343  ;;  %v16360_v32 = vld [vmem:[#allocation241_spill] sm:$0xff]  ;;  %v16372_v25 = vld [vmem:[#allocation252_spill] sm:$0xff]  ;;  %v894_v9 = vld [vmem:[%s9026_s3 + $0x1e8] sm:$0xff] }
 0x393   : > { %v7685_v36 = vpop.eup %7684  ;;  %v11932_v52 = vadd.f32 %v2572_v27, %v701_v62  ;;  %v11937_v6 = vsel %vm11904_vm13, %v2433_v60, %v2430_v56  ;;  %v2371_v33 = vand.u32 2147483647, %v11850_v57  ;;  %7694 = vpow2.f32 %v1263_v40  ;;  %v16369_v5 = vld [vmem:[#allocation229_spill] sm:$0xff]  ;;  %v16377_v39 = vld [vmem:[#allocation238_spill] sm:$0xff]  ;;  %v699_v60 = vld [vmem:[%s9016_s28 + $0x3d0] sm:$0xff] }
 0x394   : > { %16359 = vst [vmem:[#allocation240_spill] sm:$0xff] %v11937_v6  ;;  %v7687_v24 = vpop.eup %7686  ;;  %v5454_v41 = vadd.f32 %v5453_v47, %v16360_v32  ;;  %v2575_v34 = vmul.f32 %v11937_v6, %v11841_v58  ;;  %v2369_v42 = vadd.f32 1.0, %v2368_v51  ;;  %v2398_v35 = vand.u32 2147483647, %v11857_v29  ;;  %v698_v56 = vld [vmem:[%s9016_s28 + $0x3c8] sm:$0xff] }
 0x395   : > { %2763 = vmatpush2.xpose.msra.mxu0 %v11932_v52  ;;  %v2421_v31 = vmul.f32 0.6931472, %v7685_v36  ;;  %v2376_v48 = vmul.f32 0.6931472, %v7687_v24  ;;  %v2396_v20 = vadd.f32 1.0, %v2395_v12  ;;  %v2386_v63 = vmul.f32 -0.5, %v11885_v17 }
 0x396   : > { %v16362_v13 = vand.u32 2147483647, %v16361_v38  ;;  %v4405_v22 = vsel %vm11879_vm12, %v16366_v23, %v16365_v49  ;;  %v16371_v43 = vsel %vm11251_vm2, %v16369_v5, %v16370_v54  ;;  %v5455_v8 = vadd.f32 %v5454_v41, %v16372_v25  ;;  %v16387_v41 = vld [vmem:[#allocation218_spill] sm:$0xff]  ;;  %v16394_v5 = vld [vmem:[#allocation217_spill] sm:$0xff] }
 0x397   : > { %v5332_v28 = vadd.f32 %v16371_v43, %v16367_v11  ;;  %v11963_v55 = vadd.f32 %v2575_v34, %v704_v16  ;;  %v7689_v26 = vpop.eup %7688  ;;  %v16374_v21 = vand.u32 2147483647, %v16373_v3  ;;  %v11975_v50 = vsel %vm11919_vm15, %v2424_v7, %v2421_v31  ;;  %v16388_v31 = vld [vmem:[#allocation206_spill] sm:$0xff]  ;;  %v700_v25 = vld [vmem:[%s9016_s28 + $0x3d8] sm:$0xff] }
 0x398   : > { %vm11948_vm3 = vcmp.lt.f32.partialorder %v16362_v13, 0.0004427343  ;;  %v2382_v51 = vsel %vm11928_vm0, %v2379_v15, %v2376_v48  ;;  %v11980_v40 = vunpack.c.l.bf16 %v11847_v37  ;;  %v11982_v45 = vunpack.c.h.bf16 %v894_v9  ;;  %v16393_v13 = vld [vmem:[#allocation224_spill] sm:$0xff]  ;;  %v697_v23 = vld [vmem:[%s9016_s28 + $0x3c0] sm:$0xff]  ;;  %v642_v6 = vld [vmem:[%s9016_s28 + $0x208] sm:$0xff] }
 0x399   : > { %vm11968_vm8 = vcmp.lt.f32.partialorder %v16374_v21, 0.0004427343  ;;  %v5456_v62 = vadd.f32 %v5455_v8, %v16377_v39  ;;  %2833 = vmatprep.subr.mxu1 %v11963_v55  ;;  %v2574_v27 = vmul.f32 %v11975_v50, %v11852_v59  ;;  %v2370_v19 = vmul.f32 %v11850_v57, %v2369_v42  ;;  %v7691_v4 = vpop.eup %7690  ;;  %v16386_v57 = vld [vmem:[#allocation226_spill] sm:$0xff]  ;;  %v16395_v8 = vld [vmem:[#allocation151_spill] sm:$0xff]  ;;  %v16399_v21 = vld [vmem:[#allocation180_spill] sm:$0xff] }
 0x39a   : > { %vm11990_vm2 = vcmp.lt.f32.partialorder %v2371_v33, 0.0004427343  ;;  %v2569_v37 = vmul.f32 %v2382_v51, %v11855_v10  ;;  %v2397_v47 = vmul.f32 %v11857_v29, %v2396_v20  ;;  %vm11996_vm4 = vcmp.lt.f32.partialorder %v2398_v35, 0.0004427343  ;;  %v16402_v39 = vld [vmem:[#allocation211_spill] sm:$0xff]  ;;  %v16408_v7 = vld [vmem:[#allocation177_spill] sm:$0xff] }
 0x39b   : > { %v2387_v15 = vadd.f32 1.0, %v2386_v63  ;;  %v16383_v36 = vand.u32 2147483647, %v16382_v14  ;;  %v5457_v33 = vadd.f32 %v5456_v62, %v16386_v57  ;;  %v12007_v24 = vadd.f32 %v2574_v27, %v703_v2  ;;  %v16392_v63 = vld [vmem:[#allocation199_spill] sm:$0xff]  ;;  %v16411_v57 = vld [vmem:[#allocation210_spill] sm:$0xff]  ;;  %v16417_v20 = vld [vmem:[#allocation212_spill] sm:$0xff] }
 0x39c   : > { %7696 = vlog2.f32 %v2382_v51  ;;  %v2367_v32 = vmul.f32 0.6931472, %v7689_v26  ;;  %v4426_v29 = vmul.f32 0.6931472, %v16387_v41  ;;  %v12010_v34 = vadd.f32 %v2569_v37, %v698_v56  ;;  %v16401_v51 = vld [vmem:[#allocation209_spill] sm:$0xff]  ;;  %v16413_v41 = vld [vmem:[#allocation223_spill] sm:$0xff] }
 0x39d   : > { %vm12002_vm6 = vcmp.lt.f32.partialorder %v16383_v36, 0.0004427343  ;;  %v2394_v42 = vmul.f32 0.6931472, %v7691_v4  ;;  %v2389_v35 = vand.u32 2147483647, %v11885_v17  ;;  %v5333_v38 = vadd.f32 %v4405_v22, %v16392_v63  ;;  %2834 = vmatpush2.xpose.msra.mxu1 %v12007_v24  ;;  %v7693_v30 = vpop.eup %7692 }
 0x39e   : > { %v16389_v48 = vand.u32 2147483647, %v16388_v31  ;;  %v5458_v49 = vadd.f32 %v5457_v33, %v16393_v13  ;;  %v2373_v11 = vsel %vm11990_vm2, %v2370_v19, %v2367_v32  ;;  %v4435_v54 = vmul.f32 0.6931472, %v16394_v5  ;;  %2764 = vmatprep.subr.mxu0 %v12010_v34  ;;  %v16404_v4 = vld [vmem:[#allocation154_spill] sm:$0xff]  ;;  %v16410_v36 = vld [vmem:[#allocation204_spill] sm:$0xff] }
 0x39f   : > { %v2568_v43 = vmul.f32 %v2373_v11, %v11980_v40  ;;  %7698 = vlog2.f32 %v2373_v11  ;;  %v12031_v22 = vsel %vm11996_vm4, %v2397_v47, %v2394_v42  ;;  %v16396_v26 = vand.u32 2147483647, %v16395_v8  ;;  %v16414_v13 = vld [vmem:[#allocation194_spill] sm:$0xff]  ;;  %v16416_v8 = vld [vmem:[#allocation184_spill] sm:$0xff]  ;;  %v16452_v3 = vld [vmem:[#allocation169_spill] sm:$0xff] }
 0x3a0   : > { %vm12015_vm9 = vcmp.lt.f32.partialorder %v16389_v48, 0.0004427343  ;;  %v16403_v62 = vsel %vm10650_vm11, %v16401_v51, %v16402_v39  ;;  %v5459_v56 = vadd.f32 %v5458_v49, %v5332_v28  ;;  %v2571_v19 = vmul.f32 %v12031_v22, %v11982_v45  ;;  %v16415_v11 = vld [vmem:[#allocation198_spill] sm:$0xff]  ;;  %v16422_v51 = vld [vmem:[#allocation203_spill] sm:$0xff] }
 0x3a1   : > { %vm12035_vm12 = vcmp.lt.f32.partialorder %v16396_v26, 0.0004427343  ;;  %v5334_v27 = vadd.f32 %v16403_v62, %v16399_v21  ;;  %v2388_v12 = vmul.f32 %v11885_v17, %v2387_v15  ;;  %v16405_v37 = vand.u32 2147483647, %v16404_v4  ;;  %v12065_v17 = vpop.eup %7694  ;;  %v16421_v21 = vld [vmem:[#allocation200_spill] sm:$0xff]  ;;  %v16423_v39 = vld [vmem:[#allocation186_spill] sm:$0xff] }
 0x3a2   : > { %v16412_v33 = vsel %vm10641_vm10, %v16410_v36, %v16411_v57  ;;  %v4432_v28 = vsel %vm12015_vm9, %v16413_v41, %v4426_v29  ;;  %v12063_v42 = vadd.f32 %v2568_v43, %v697_v23  ;;  %vm2390_vm11 = vcmp.lt.f32.partialorder %v2389_v35, 0.0004427343  ;;  %v16418_v35 = vld [vmem:[#allocation190_spill] sm:$0xff]  ;;  %v16429_v36 = vld [vmem:[#allocation189_spill] sm:$0xff] }
 0x3a3   : > { %vm12050_vm13 = vcmp.lt.f32.partialorder %v16405_v37, 0.0004427343  ;;  %v5335_v32 = vadd.f32 %v16412_v33, %v16408_v7  ;;  %v5460_v15 = vadd.f32 %v5459_v56, %v5333_v38  ;;  %v12067_v31 = vadd.f32 %v2571_v19, %v700_v25  ;;  %v16419_v38 = vld [vmem:[#allocation191_spill] sm:$0xff]  ;;  %v16428_v7 = vld [vmem:[#allocation178_spill] sm:$0xff] }
 0x3a4   : > { %v12069_v48 = vunpack.c.l.bf16 %v894_v9  ;;  %v2385_v63 = vmul.f32 0.6931472, %v7693_v30  ;;  %v4453_v49 = vmul.f32 0.6931472, %v16414_v13  ;;  %v4473_v5 = vadd.f32 1.0, %v16415_v11  ;;  %2765 = vmatpush2.xpose.msra.mxu0 %v12063_v42  ;;  %v16420_v9 = vld [vmem:[#allocation187_spill] sm:$0xff] }
 0x3a5   : > { %v4475_v26 = vand.u32 2147483647, %v16416_v8  ;;  %v4441_v29 = vsel %vm11948_vm3, %v16417_v20, %v4435_v54  ;;  %v4450_v23 = vsel %vm11968_vm8, %v16419_v38, %v16418_v35  ;;  %v5336_v43 = vadd.f32 %v4432_v28, %v16420_v9  ;;  %2835 = vmatprep.subr.mxu1 %v12067_v31  ;;  %v16427_v19 = vld [vmem:[#allocation183_spill] sm:$0xff]  ;;  %v16439_v35 = vld [vmem:[#allocation162_spill] sm:$0xff]  ;;  %v16440_v9 = vld [vmem:[#allocation156_spill] sm:$0xff] }
 0x3a6   : > { %v5461_v30 = vadd.f32 %v5460_v15, %v5334_v27  ;;  %v12084_v25 = vsel %vm2390_vm11, %v2388_v12, %v2385_v63  ;;  %v4462_v2 = vmul.f32 0.6931472, %v16421_v21  ;;  %v4465_v0 = vmul.f32 %v16423_v39, %v16422_v51  ;;  %v16430_v33 = vld [vmem:[#allocation195_spill] sm:$0xff]  ;;  %v16431_v15 = vld [vmem:[#allocation141_spill] sm:$0xff] }
 0x3a7   : > { %v16424_v54 = vand.u32 2147483647, %v16423_v39  ;;  %v2338_v56 = vadd.f32 1.0, %v12065_v17  ;;  %v5337_v27 = vadd.f32 %v4441_v29, %v16427_v19  ;;  %v6120_v12 = vmul.f32 %v11855_v10, %v11855_v10  ;;  %v16435_v10 = vld [vmem:[#allocation152_spill] sm:$0xff]  ;;  %v16442_v51 = vld [vmem:[#allocation161_spill] sm:$0xff]  ;;  %v16455_v11 = vld [vmem:[#allocation179_spill] sm:$0xff] }
 0x3a8   : > { %v5462_v4 = vadd.f32 %v5461_v30, %v5335_v32  ;;  %v2570_v37 = vmul.f32 %v12084_v25, %v12069_v48  ;;  %v4480_v14 = vmul.f32 0.6931472, %v16428_v7  ;;  %v4459_v57 = vsel %vm12002_vm6, %v16429_v36, %v4453_v49  ;;  %v16438_v49 = vld [vmem:[#allocation173_spill] sm:$0xff]  ;;  %v16448_v19 = vld [vmem:[#allocation136_spill] sm:$0xff]  ;;  %v866_v59 = vld [vmem:[%s9026_s3 + $0x108] sm:$0xff] }
 0x3a9   : > { %vm12091_vm10 = vcmp.lt.f32.partialorder %v16424_v54, 0.0004427343  ;;  %v4471_v41 = vmul.f32 0.6931472, %v16430_v33  ;;  %v4474_v28 = vmul.f32 %v16416_v8, %v4473_v5  ;;  %v16432_v63 = vand.u32 2147483647, %v16431_v15  ;;  %v7697_v16 = vpop.eup %7696 }
 0x3aa   : > { %v5338_v13 = vadd.f32 %v4450_v23, %v16435_v10  ;;  %vm12115_vm0 = vcmp.lt.f32.partialorder %v4475_v26, 0.0004427343  ;;  %v5463_v20 = vadd.f32 %v5462_v4, %v5336_v43  ;;  %v12119_v29 = vadd.f32 %v2570_v37, %v699_v60  ;;  %v16441_v43 = vld [vmem:[#allocation175_spill] sm:$0xff]  ;;  %v16443_v54 = vld [vmem:[#allocation176_spill] sm:$0xff]  ;;  %v16454_v33 = vld [vmem:[#allocation182_spill] sm:$0xff] }
 0x3ab   : > { %vm12110_vm15 = vcmp.lt.f32.partialorder %v16432_v63, 0.0004427343  ;;  %v4510_v38 = vmul.f32 %v16439_v35, %v16438_v49  ;;  %v4468_v5 = vsel %vm12091_vm10, %v4465_v0, %v4462_v2  ;;  %v6119_v8 = vmul.f32 %v11980_v40, %v11980_v40  ;;  %v16444_v60 = vld [vmem:[#allocation168_spill] sm:$0xff]  ;;  %v821_v47 = vld [vmem:[%s9023_s13 + $0x3a0] sm:$0xff]  ;;  %v16471_v40 = vld [vmem:[#allocation159_spill] sm:$0xff] }
 0x3ac   : > { %7700 = vlog2.f32 %v2338_v56  ;;  %v5339_v23 = vadd.f32 %v4459_v57, %v16440_v9  ;;  %v5464_v26 = vadd.f32 %v5463_v20, %v5337_v27  ;;  %v5858_v30 = vmul.f32 0.6931472, %v7697_v16  ;;  %2836 = vmatpush2.xpose.msra.mxu1 %v12119_v29  ;;  %v7699_v56 = vpop.eup %7698  ;;  %v16453_v37 = vld [vmem:[#allocation172_spill] sm:$0xff]  ;;  %v16456_v16 = vld [vmem:[#allocation171_spill] sm:$0xff] }
 0x3ad   : > { %v6248_v21 = vmul.f32 0.5, %v6120_v12  ;;  %v4495_v39 = vsel %vm12035_vm12, %v16442_v51, %v16441_v43  ;;  %v4501_v62 = vmul.f32 %v16444_v60, %v16443_v54  ;;  %v16445_v2 = vand.u32 2147483647, %v16444_v60  ;;  %v824_v54 = vld [vmem:[%s9023_s13 + $0x3b8] sm:$0xff]  ;;  %v16463_v60 = vld [vmem:[#allocation158_spill] sm:$0xff] }
 0x3ae   : > { %v4477_v0 = vsel %vm12115_vm0, %v4474_v28, %v4471_v41  ;;  %v16449_v27 = vand.u32 2147483647, %v16448_v19  ;;  %v4486_v12 = vsel %vm12050_vm13, %v16452_v3, %v4480_v14  ;;  %v5340_v7 = vadd.f32 %v4468_v5, %v16453_v37  ;;  %v16458_v14 = vld [vmem:[#allocation157_spill] sm:$0xff]  ;;  %v823_v37 = vld [vmem:[%s9023_s13 + $0x3b0] sm:$0xff] }
 0x3af   : > { %vm12137_vm3 = vcmp.lt.f32.partialorder %v16445_v2, 0.0004427343  ;;  %v5465_v36 = vadd.f32 %v5464_v26, %v5338_v13  ;;  %v5992_v57 = vsub.f32 -0.9189385, %v5858_v30  ;;  %v4498_v63 = vmul.f32 0.6931472, %v16454_v33 }
 0x3b0   : > { %vm12145_vm8 = vcmp.lt.f32.partialorder %v16449_v27, 0.0004427343  ;;  %v5856_v10 = vmul.f32 0.6931472, %v7699_v56  ;;  %v6247_v41 = vmul.f32 0.5, %v6119_v8  ;;  %v2341_v28 = vmul.f32 -0.5, %v12065_v17 }
 0x3b1   : > { %v4507_v20 = vmul.f32 0.6931472, %v16455_v11  ;;  %v5341_v49 = vadd.f32 %v4477_v0, %v16456_v16  ;;  %v5466_v9 = vadd.f32 %v5465_v36, %v5339_v23  ;;  %v12157_v43 = vsub.f32 %v5992_v57, %v6248_v21  ;;  %v16459_v13 = vld [vmem:[#allocation148_spill] sm:$0xff]  ;;  %v16464_v23 = vld [vmem:[#allocation135_spill] sm:$0xff]  ;;  %v16465_v21 = vld [vmem:[#allocation138_spill] sm:$0xff] }
 0x3b2   : > { %v4519_v5 = vmul.f32 %v16431_v15, %v16458_v14  ;;  %v4544_v26 = vmul.f32 -0.5, %v16459_v13  ;;  %v16460_v30 = vand.u32 2147483647, %v16439_v35  ;;  %v5991_v51 = vsub.f32 -0.9189385, %v5856_v10  ;;  %v16467_v36 = vld [vmem:[#allocation114_spill] sm:$0xff] }
 0x3b3   : > { %16457 = vst [vmem:[#allocation254_spill] sm:$0xff] %v12157_v43  ;;  %v4536_v2 = vadd.f32 1.0, %v16463_v60  ;;  %v5343_v0 = vadd.f32 %v4495_v39, %v16464_v23  ;;  %v5342_v56 = vadd.f32 %v4486_v12, %v16465_v21  ;;  %v5467_v19 = vadd.f32 %v5466_v9, %v5340_v7  ;;  %v16476_v16 = vld [vmem:[#allocation108_spill] sm:$0xff]  ;;  %v16481_v14 = vld [vmem:[#allocation167_spill] sm:$0xff]  ;;  %v16504_v11 = vld [vmem:[#allocation129_spill] sm:$0xff] }
 0x3b4   : > { %vm12165_vm2 = vcmp.lt.f32.partialorder %v16460_v30, 0.0004427343  ;;  %v4504_v15 = vsel %vm12137_vm3, %v4501_v62, %v4498_v63  ;;  %v12175_v27 = vsub.f32 %v5991_v51, %v6247_v41  ;;  %v2342_v3 = vadd.f32 1.0, %v2341_v28  ;;  %v16472_v41 = vld [vmem:[#allocation149_spill] sm:$0xff]  ;;  %v16482_v30 = vld [vmem:[#allocation143_spill] sm:$0xff]  ;;  %v16613_v43 = vld [vmem:[#allocation42_spill] sm:$0xff] }
 0x3b5   : > { %v1261_v35 = vmul.f32 1.442695, %v821_v47  ;;  %v16468_v57 = vand.u32 2147483647, %v16467_v36  ;;  %v4513_v39 = vsel %vm12165_vm2, %v4510_v38, %v4507_v20  ;;  %v5468_v12 = vadd.f32 %v5467_v19, %v5341_v49  ;;  %v16480_v49 = vld [vmem:[#allocation145_spill] sm:$0xff]  ;;  %v12207_v51 = vld [vmem:[%s9026_s3 + $0x1d0] sm:$0xff] }
 0x3b6   : > { %16466 = vst [vmem:[#allocation245_spill] sm:$0xff] %v12175_v27  ;;  %v2344_v7 = vand.u32 2147483647, %v12065_v17  ;;  %v1267_v62 = vmul.f32 1.442695, %v824_v54  ;;  %v4522_v63 = vsel %vm12110_vm15, %v4519_v5, %v16471_v40  ;;  %v4545_v10 = vadd.f32 1.0, %v4544_v26 }
 0x3b7   : > { %vm12180_vm4 = vcmp.lt.f32.partialorder %v16468_v57, 0.0004427343  ;;  %v16473_v28 = vand.u32 2147483647, %v16472_v41  ;;  %7702 = vpow2.f32 %v1261_v35  ;;  %v16477_v38 = vand.u32 2147483647, %v16476_v16 }
 0x3b8   : > { %v5344_v9 = vadd.f32 %v4504_v15, %v16480_v49  ;;  %v5469_v47 = vadd.f32 %v5468_v12, %v5342_v56  ;;  %7704 = vpow2.f32 %v1267_v62  ;;  %v1265_v32 = vmul.f32 1.442695, %v823_v37  ;;  %v818_v60 = vld [vmem:[%s9023_s13 + $0x388] sm:$0xff]  ;;  %v16486_v15 = vld [vmem:[#allocation153_spill] sm:$0xff] }
 0x3b9   : > { %vm12192_vm6 = vcmp.lt.f32.partialorder %v16473_v28, 0.0004427343  ;;  %vm12198_vm9 = vcmp.lt.f32.partialorder %v16477_v38, 0.0004427343  ;;  %v4534_v5 = vmul.f32 0.6931472, %v16481_v14  ;;  %v4537_v26 = vmul.f32 %v16472_v41, %v4536_v2  ;;  %v7701_v23 = vpop.eup %7700 }
 0x3ba   : > { %v5345_v8 = vadd.f32 %v4513_v39, %v16482_v30  ;;  %v2343_v54 = vmul.f32 %v12065_v17, %v2342_v3  ;;  %v5470_v21 = vadd.f32 %v5469_v47, %v5343_v0  ;;  %v12212_v19 = vunpack.c.h.bf16 %v12207_v51  ;;  %v16485_v2 = vld [vmem:[#allocation155_spill] sm:$0xff]  ;;  %v16487_v37 = vld [vmem:[#allocation166_spill] sm:$0xff]  ;;  %v16497_v38 = vld [vmem:[#allocation140_spill] sm:$0xff] }
 0x3bb   : > { %vm12214_vm12 = vcmp.lt.f32.partialorder %v2344_v7, 0.0004427343  ;;  %7706 = vpow2.f32 %v1265_v32  ;;  %v4531_v35 = vsel %vm12145_vm8, %v16486_v15, %v16485_v2  ;;  %v4543_v17 = vmul.f32 0.6931472, %v16487_v37  ;;  %v16488_v0 = vld [vmem:[#allocation102_spill] sm:$0xff]  ;;  %v16492_v12 = vld [vmem:[#allocation127_spill] sm:$0xff] }
 0x3bc   : > { %v4546_v3 = vmul.f32 %v16459_v13, %v4545_v10  ;;  %v2340_v36 = vmul.f32 0.6931472, %v7701_v23  ;;  %v16489_v57 = vand.u32 2147483647, %v16488_v0  ;;  %v5346_v7 = vadd.f32 %v4522_v63, %v16492_v12  ;;  %v817_v28 = vld [vmem:[%s9023_s13 + $0x380] sm:$0xff]  ;;  %v694_v32 = vld [vmem:[%s9016_s28 + $0x3a8] sm:$0xff] }
 0x3bd   : > { %v16493_v62 = vand.u32 2147483647, %v16459_v13  ;;  %v5471_v4 = vadd.f32 %v5470_v21, %v5344_v9  ;;  %v1255_v41 = vmul.f32 1.442695, %v818_v60  ;;  %v16496_v16 = vld [vmem:[#allocation150_spill] sm:$0xff]  ;;  %v4540_v47 = vsel %vm12192_vm6, %v4537_v26, %v4534_v5  ;;  %v16502_v9 = vld [vmem:[#allocation125_spill] sm:$0xff] }
 0x3be   : > { %vm12226_vm13 = vcmp.lt.f32.partialorder %v16489_v57, 0.0004427343  ;;  %v4572_v10 = vadd.f32 1.0, %v16496_v16  ;;  %v4574_v49 = vand.u32 2147483647, %v16497_v38  ;;  %v2346_v63 = vsel %vm12214_vm12, %v2343_v54, %v2340_v36  ;;  %v16498_v14 = vld [vmem:[#allocation90_spill] sm:$0xff] }
 0x3bf   : > { %vm12233_vm11 = vcmp.lt.f32.partialorder %v16493_v62, 0.0004427343  ;;  %v16499_v13 = vand.u32 2147483647, %v16498_v14  ;;  %v5347_v60 = vadd.f32 %v4531_v35, %v16502_v9  ;;  %v5472_v23 = vadd.f32 %v5471_v4, %v5345_v8  ;;  %v16503_v2 = vld [vmem:[#allocation144_spill] sm:$0xff]  ;;  %v16505_v56 = vld [vmem:[#allocation134_spill] sm:$0xff] }
 0x3c0   : > { %v2565_v21 = vmul.f32 %v2346_v63, %v12212_v19  ;;  %7708 = vlog2.f32 %v2346_v63  ;;  %v4581_v15 = vadd.f32 1.0, %v16503_v2  ;;  %v4583_v5 = vand.u32 2147483647, %v16504_v11  ;;  %v16506_v57 = vld [vmem:[#allocation115_spill] sm:$0xff]  ;;  %v16507_v8 = vld [vmem:[#allocation142_spill] sm:$0xff]  ;;  %v16509_v4 = vld [vmem:[#allocation160_spill] sm:$0xff] }
 0x3c1   : > { %vm12247_vm10 = vcmp.lt.f32.partialorder %v16499_v13, 0.0004427343  ;;  %v4549_v26 = vsel %vm12233_vm11, %v4546_v3, %v4543_v17  ;;  %v1253_v54 = vmul.f32 1.442695, %v817_v28  ;;  %v5348_v37 = vadd.f32 %v4540_v47, %v16505_v56  ;;  %v16508_v12 = vld [vmem:[#allocation126_spill] sm:$0xff]  ;;  %v16512_v3 = vld [vmem:[#allocation133_spill] sm:$0xff] }
 0x3c2   : > { %v5473_v36 = vadd.f32 %v5472_v23, %v5346_v7  ;;  %v12258_v0 = vadd.f32 %v2565_v21, %v694_v32  ;;  %7710 = vpow2.f32 %v1255_v41  ;;  %v4608_v35 = vadd.f32 1.0, %v16506_v57  ;;  %v16513_v41 = vld [vmem:[#allocation120_spill] sm:$0xff]  ;;  %v16514_v47 = vld [vmem:[#allocation130_spill] sm:$0xff]  ;;  %v16521_v20 = vld [vmem:[#allocation113_spill] sm:$0xff] }
 0x3c3   : > { %v4558_v62 = vsel %vm12180_vm4, %v16508_v12, %v16507_v8  ;;  %v4570_v16 = vmul.f32 0.6931472, %v16509_v4  ;;  %v4573_v63 = vmul.f32 %v16497_v38, %v4572_v10  ;;  %vm12267_vm15 = vcmp.lt.f32.partialorder %v4574_v49, 0.0004427343  ;;  %v16515_v32 = vld [vmem:[#allocation122_spill] sm:$0xff]  ;;  %v16517_v49 = vld [vmem:[#allocation105_spill] sm:$0xff] }
 0x3c4   : > { %v5349_v7 = vadd.f32 %v4549_v26, %v16512_v3  ;;  %v5474_v40 = vadd.f32 %v5473_v36, %v5347_v60  ;;  %2766 = vmatprep.subr.mxu0 %v12258_v0  ;;  %7712 = vpow2.f32 %v1253_v54  ;;  %v4588_v28 = vmul.f32 0.6931472, %v16513_v41  ;;  %v16516_v14 = vld [vmem:[#allocation146_spill] sm:$0xff]  ;;  %v12280_v38 = vpop.eup %7702  ;;  %v16518_v60 = vld [vmem:[#allocation92_spill] sm:$0xff]  ;;  %v16522_v56 = vld [vmem:[#allocation107_spill] sm:$0xff] }
 0x3c5   : > { %v4567_v33 = vsel %vm12198_vm9, %v16515_v32, %v16514_v47  ;;  %v4579_v13 = vmul.f32 0.6931472, %v16516_v14  ;;  %v4582_v10 = vmul.f32 %v16504_v11, %v4581_v15  ;;  %v4619_v9 = vand.u32 2147483647, %v16517_v49  ;;  %v12288_v26 = vpop.eup %7704  ;;  %v16526_v8 = vld [vmem:[#allocation87_spill] sm:$0xff]  ;;  %v820_v4 = vld [vmem:[%s9023_s13 + $0x398] sm:$0xff] }
 0x3c6   : > { %v5350_v23 = vadd.f32 %v4558_v62, %v16518_v60  ;;  %vm12284_vm0 = vcmp.lt.f32.partialorder %v4583_v5, 0.0004427343  ;;  %v5475_v2 = vadd.f32 %v5474_v40, %v5348_v37  ;;  %v4617_v54 = vadd.f32 1.0, %v16521_v20  ;;  %v16527_v40 = vld [vmem:[#allocation98_spill] sm:$0xff]  ;;  %v16531_v17 = vld [vmem:[#allocation112_spill] sm:$0xff]  ;;  %v16538_v21 = vld [vmem:[#allocation121_spill] sm:$0xff] }
 0x3c7   : > { %v16523_v36 = vand.u32 2147483647, %v16522_v56  ;;  %v4576_v15 = vsel %vm12267_vm15, %v4573_v63, %v4570_v16  ;;  %v2329_v11 = vadd.f32 1.0, %v12280_v38  ;;  %v4609_v5 = vmul.f32 %v16522_v56, %v4608_v35  ;;  %v16532_v63 = vld [vmem:[#allocation123_spill] sm:$0xff]  ;;  %v16533_v32 = vld [vmem:[#allocation124_spill] sm:$0xff]  ;;  %v16535_v20 = vld [vmem:[#allocation110_spill] sm:$0xff] }
 0x3c8   : > { %v5351_v12 = vadd.f32 %v4567_v33, %v16526_v8  ;;  %v5476_v37 = vadd.f32 %v5475_v2, %v5349_v7  ;;  %v2356_v62 = vadd.f32 1.0, %v12288_v26  ;;  %v12304_v3 = vpop.eup %7706  ;;  %v16528_v41 = vand.u32 2147483647, %v16527_v40  ;;  %v16534_v2 = vld [vmem:[#allocation111_spill] sm:$0xff]  ;;  %v16540_v8 = vld [vmem:[#allocation88_spill] sm:$0xff] }
 0x3c9   : > { %vm12293_vm3 = vcmp.lt.f32.partialorder %v16523_v36, 0.0004427343  ;;  %v4594_v16 = vsel %vm12226_vm13, %v16531_v17, %v4588_v28  ;;  %v4606_v35 = vmul.f32 0.6931472, %v16532_v63  ;;  %v4585_v7 = vsel %vm12284_vm0, %v4582_v10, %v4579_v13  ;;  %v16539_v36 = vld [vmem:[#allocation117_spill] sm:$0xff] }
 0x3ca   : > { %vm12308_vm8 = vcmp.lt.f32.partialorder %v16528_v41, 0.0004427343  ;;  %7714 = vlog2.f32 %v2329_v11  ;;  %v5352_v33 = vadd.f32 %v4576_v15, %v16533_v32  ;;  %v5477_v14 = vadd.f32 %v5476_v37, %v5350_v23  ;;  %v769_v17 = vld [vmem:[%s9023_s13 + $0x200] sm:$0xff] }
 0x3cb   : > { %v6116_v60 = vmul.f32 %v12212_v19, %v12212_v19  ;;  %7716 = vlog2.f32 %v2356_v62  ;;  %v4603_v39 = vsel %vm12247_vm10, %v16535_v20, %v16534_v2  ;;  %vm12325_vm2 = vcmp.lt.f32.partialorder %v4619_v9, 0.0004427343  ;;  %v16544_v9 = vld [vmem:[#allocation82_spill] sm:$0xff]  ;;  %v16546_v2 = vld [vmem:[#allocation109_spill] sm:$0xff] }
 0x3cc   : > { %v2347_v13 = vadd.f32 1.0, %v12304_v3  ;;  %v1259_v10 = vmul.f32 1.442695, %v820_v4  ;;  %v4615_v56 = vmul.f32 0.6931472, %v16538_v21  ;;  %v4618_v23 = vmul.f32 %v16517_v49, %v4617_v54  ;;  %v16545_v32 = vld [vmem:[#allocation118_spill] sm:$0xff] }
 0x3cd   : > { %v5353_v19 = vadd.f32 %v4585_v7, %v16539_v36  ;;  %v5478_v15 = vadd.f32 %v5477_v14, %v5351_v12  ;;  %v7709_v11 = vpop.eup %7708  ;;  %v16541_v37 = vand.u32 2147483647, %v16540_v8  ;;  %v5354_v62 = vadd.f32 %v4594_v16, %v16544_v9  ;;  %v16547_v16 = vld [vmem:[#allocation79_spill] sm:$0xff] }
 0x3ce   : > { %v4612_v41 = vsel %vm12293_vm3, %v4609_v5, %v4606_v35  ;;  %v2332_v4 = vmul.f32 -0.5, %v12280_v38  ;;  %7718 = vlog2.f32 %v2347_v13  ;;  %v5850_v54 = vmul.f32 0.6931472, %v7709_v11  ;;  %v16548_v5 = vld [vmem:[#allocation86_spill] sm:$0xff] }
 0x3cf   : > { %vm12335_vm4 = vcmp.lt.f32.partialorder %v16541_v37, 0.0004427343  ;;  %v5479_v49 = vadd.f32 %v5478_v15, %v5352_v33  ;;  %v6244_v63 = vmul.f32 0.5, %v6116_v60  ;;  %v2359_v12 = vmul.f32 -0.5, %v12288_v26  ;;  %v12345_v7 = vpop.eup %7710  ;;  %v16549_v37 = vld [vmem:[#allocation53_spill] sm:$0xff] }
 0x3d0   : > { %v4642_v14 = vmul.f32 0.6931472, %v16545_v32  ;;  %v4645_v20 = vmul.f32 %v16527_v40, %v16546_v2  ;;  %v5355_v21 = vadd.f32 %v4603_v39, %v16547_v16  ;;  %7720 = vpow2.f32 %v1259_v10 }
 0x3d1   : > { %v4621_v57 = vsel %vm12325_vm2, %v4618_v23, %v4615_v56  ;;  %v5356_v35 = vadd.f32 %v4612_v41, %v16548_v5  ;;  %v5480_v33 = vadd.f32 %v5479_v49, %v5353_v19  ;;  %v5988_v13 = vsub.f32 -0.9189385, %v5850_v54  ;;  %v12354_v60 = vpop.eup %7712  ;;  %v16554_v19 = vld [vmem:[#allocation70_spill] sm:$0xff]  ;;  %v16560_v49 = vld [vmem:[#allocation100_spill] sm:$0xff]  ;;  %v16561_v54 = vld [vmem:[#allocation103_spill] sm:$0xff] }
 0x3d2   : > { %v1157_v36 = vmul.f32 1.442695, %v769_v17  ;;  %v2333_v15 = vadd.f32 1.0, %v2332_v4  ;;  %v2350_v11 = vmul.f32 -0.5, %v12304_v3  ;;  %v2302_v8 = vadd.f32 1.0, %v12345_v7  ;;  %v16558_v4 = vld [vmem:[#allocation68_spill] sm:$0xff] }
 0x3d3   : > { %v16550_v40 = vand.u32 2147483647, %v16549_v37  ;;  %v5481_v28 = vadd.f32 %v5480_v33, %v5354_v62  ;;  %v12364_v10 = vsub.f32 %v5988_v13, %v6244_v63  ;;  %v2335_v56 = vand.u32 2147483647, %v12280_v38  ;;  %v16564_v33 = vld [vmem:[#allocation83_spill] sm:$0xff]  ;;  %v16596_v41 = vld [vmem:[#allocation73_spill] sm:$0xff] }
 0x3d4   : > { %v2360_v23 = vadd.f32 1.0, %v2359_v12  ;;  %v16555_v9 = vand.u32 2147483647, %v16554_v19  ;;  %v16562_v32 = vsel %vm9883_vm1, %v16560_v49, %v16561_v54  ;;  %v2362_v62 = vand.u32 2147483647, %v12288_v26  ;;  %v16563_v12 = vld [vmem:[#allocation116_spill] sm:$0xff] }
 0x3d5   : > { %vm12360_vm6 = vcmp.lt.f32.partialorder %v16550_v40, 0.0004427343  ;;  %16553 = vst [vmem:[#allocation256_spill] sm:$0xff] %v12364_v10  ;;  %v5358_v2 = vadd.f32 %v16562_v32, %v16558_v4  ;;  %7722 = vlog2.f32 %v2302_v8  ;;  %v2293_v63 = vadd.f32 1.0, %v12354_v60  ;;  %v16565_v40 = vld [vmem:[#allocation64_spill] sm:$0xff] }
 0x3d6   : > { %vm12369_vm9 = vcmp.lt.f32.partialorder %v16555_v9, 0.0004427343  ;;  %v4651_v16 = vmul.f32 0.6931472, %v16563_v12  ;;  %v4648_v5 = vsel %vm12308_vm8, %v4645_v20, %v4642_v14  ;;  %v5357_v13 = vadd.f32 %v4621_v57, %v16564_v33  ;;  %v892_v14 = vld [vmem:[%s9026_s3 + $0x1d8] sm:$0xff]  ;;  %v693_v12 = vld [vmem:[%s9016_s28 + $0x3a0] sm:$0xff] }
 0x3d7   : > { %v5482_v37 = vadd.f32 %v5481_v28, %v5355_v21  ;;  %v16566_v19 = vand.u32 2147483647, %v16565_v40  ;;  %7724 = vpow2.f32 %v1157_v36  ;;  %v2334_v4 = vmul.f32 %v12280_v38, %v2333_v15  ;;  %v7715_v49 = vpop.eup %7714  ;;  %v16571_v38 = vld [vmem:[#allocation51_spill] sm:$0xff]  ;;  %v16576_v32 = vld [vmem:[#allocation80_spill] sm:$0xff]  ;;  %v16599_v9 = vld [vmem:[#allocation69_spill] sm:$0xff] }
 0x3d8   : > { %v2351_v8 = vadd.f32 1.0, %v2350_v11  ;;  %v2353_v17 = vand.u32 2147483647, %v12304_v3  ;;  %v12394_v47 = vunpack.c.l.bf16 %v12207_v51  ;;  %vm2336_vm1 = vcmp.lt.f32.partialorder %v2335_v56, 0.0004427343  ;;  %v7717_v21 = vpop.eup %7716  ;;  %v16575_v51 = vld [vmem:[#allocation106_spill] sm:$0xff] }
 0x3d9   : > { %vm12387_vm12 = vcmp.lt.f32.partialorder %v16566_v19, 0.0004427343  ;;  %v5483_v54 = vadd.f32 %v5482_v37, %v5356_v35  ;;  %v2361_v20 = vmul.f32 %v12288_v26, %v2360_v23  ;;  %v2331_v57 = vmul.f32 0.6931472, %v7715_v49  ;;  %v16579_v49 = vld [vmem:[#allocation49_spill] sm:$0xff]  ;;  %v16584_v36 = vld [vmem:[#allocation99_spill] sm:$0xff] }
 0x3da   : > { %v12398_v28 = vunpack.c.h.bf16 %v892_v14  ;;  %vm12400_vm13 = vcmp.lt.f32.partialorder %v2362_v62, 0.0004427343  ;;  %7726 = vlog2.f32 %v2293_v63  ;;  %v16572_v35 = vand.u32 2147483647, %v16571_v38 }
 0x3db   : > { %v4657_v26 = vsel %vm12335_vm4, %v16575_v51, %v4651_v16  ;;  %v5484_v11 = vadd.f32 %v5483_v54, %v5357_v13  ;;  %v2358_v56 = vmul.f32 0.6931472, %v7717_v21  ;;  %v2305_v23 = vmul.f32 -0.5, %v12345_v7  ;;  %v7719_v40 = vpop.eup %7718  ;;  %v696_v16 = vld [vmem:[%s9016_s28 + $0x3b8] sm:$0xff] }
 0x3dc   : > { %vm12406_vm11 = vcmp.lt.f32.partialorder %v16572_v35, 0.0004427343  ;;  %v5360_v62 = vadd.f32 %v4648_v5, %v16576_v32  ;;  %v2337_v33 = vsel %vm2336_vm1, %v2334_v4, %v2331_v57  ;;  %v2352_v63 = vmul.f32 %v12304_v3, %v2351_v8  ;;  %v16583_v21 = vld [vmem:[#allocation76_spill] sm:$0xff] }
 0x3dd   : > { %vm12417_vm10 = vcmp.lt.f32.partialorder %v2353_v17, 0.0004427343  ;;  %v5485_v19 = vadd.f32 %v5484_v11, %v5358_v2  ;;  %v2564_v30 = vmul.f32 %v2337_v33, %v12394_v47  ;;  %7728 = vlog2.f32 %v2337_v33  ;;  %v819_v2 = vld [vmem:[%s9023_s13 + $0x390] sm:$0xff]  ;;  %v12435_v17 = vpop.eup %7720 }
 0x3de   : > { %v2364_v13 = vsel %vm12400_vm13, %v2361_v20, %v2358_v56  ;;  %v16580_v5 = vand.u32 2147483647, %v16579_v49  ;;  %v12432_v4 = vunpack.c.l.bf16 %v892_v14  ;;  %v2349_v8 = vmul.f32 0.6931472, %v7719_v40  ;;  %v16585_v51 = vld [vmem:[#allocation72_spill] sm:$0xff]  ;;  %v16586_v11 = vld [vmem:[#allocation67_spill] sm:$0xff] }
 0x3df   : > { %v2567_v3 = vmul.f32 %v2364_v13, %v12398_v28  ;;  %7730 = vlog2.f32 %v2364_v13  ;;  %v5361_v57 = vadd.f32 %v4657_v26, %v16583_v21  ;;  %v5486_v20 = vadd.f32 %v5485_v19, %v16584_v36  ;;  %v16587_v40 = vld [vmem:[#allocation48_spill] sm:$0xff]  ;;  %v16589_v26 = vld [vmem:[#allocation71_spill] sm:$0xff]  ;;  %v16590_v19 = vld [vmem:[#allocation78_spill] sm:$0xff] }
 0x3e0   : > { %vm12427_vm15 = vcmp.lt.f32.partialorder %v16580_v5, 0.0004427343  ;;  %v12439_v38 = vadd.f32 %v2564_v30, %v693_v12  ;;  %v2306_v35 = vadd.f32 1.0, %v2305_v23  ;;  %v4675_v56 = vsel %vm12360_vm6, %v16586_v11, %v16585_v51  ;;  %v16592_v30 = vld [vmem:[#allocation95_spill] sm:$0xff]  ;;  %v16593_v49 = vld [vmem:[#allocation93_spill] sm:$0xff]  ;;  %v16594_v36 = vld [vmem:[#allocation44_spill] sm:$0xff] }
 0x3e1   : > { %v12445_v32 = vadd.f32 %v2567_v3, %v696_v16  ;;  %v2355_v14 = vsel %vm12417_vm10, %v2352_v63, %v2349_v8  ;;  %v2308_v33 = vand.u32 2147483647, %v12345_v7  ;;  %v16591_v12 = vsel %vm9793_vm14, %v16589_v26, %v16590_v19  ;;  %v695_v63 = vld [vmem:[%s9016_s28 + $0x3b0] sm:$0xff]  ;;  %v16595_v11 = vld [vmem:[#allocation94_spill] sm:$0xff] }
 0x3e2   : > { %v5362_v23 = vadd.f32 %v16591_v12, %v16587_v40  ;;  %v4684_v39 = vsel %vm12369_vm9, %v16593_v49, %v16592_v30  ;;  %v5487_v16 = vadd.f32 %v5486_v20, %v5360_v62  ;;  %2767 = vmatpush2.xpose.msra.mxu0 %v12439_v38  ;;  %v1257_v37 = vmul.f32 1.442695, %v819_v2  ;;  %v7723_v21 = vpop.eup %7722  ;;  %v889_v2 = vld [vmem:[%s9026_s3 + $0x1c0] sm:$0xff]  ;;  %v16597_v13 = vld [vmem:[#allocation63_spill] sm:$0xff] }
 0x3e3   : > { %2837 = vmatprep.subr.mxu1 %v12445_v32  ;;  %v2566_v5 = vmul.f32 %v2355_v14, %v12432_v4  ;;  %7732 = vlog2.f32 %v2355_v14  ;;  %v2296_v3 = vmul.f32 -0.5, %v12354_v60  ;;  %v2320_v8 = vadd.f32 1.0, %v12435_v17  ;;  %v16598_v19 = vld [vmem:[#allocation55_spill] sm:$0xff] }
 0x3e4   : > { %v5363_v51 = vadd.f32 %v4675_v56, %v16594_v36  ;;  %v4693_v62 = vsel %vm12387_vm12, %v16596_v41, %v16595_v11  ;;  %v5488_v20 = vadd.f32 %v5487_v16, %v5361_v57  ;;  %v2307_v40 = vmul.f32 %v12345_v7, %v2306_v35  ;;  %v12475_v30 = vpop.eup %7724  ;;  %v16600_v11 = vld [vmem:[#allocation66_spill] sm:$0xff] }
 0x3e5   : > { %v4723_v26 = vmul.f32 0.6931472, %v16597_v13  ;;  %v5364_v14 = vadd.f32 %v4684_v39, %v16598_v19  ;;  %v1010_v12 = vunpack.c.h.bf16 %v889_v2  ;;  %vm2309_vm14 = vcmp.lt.f32.partialorder %v2308_v33, 0.0004427343  ;;  %v16601_v7 = vld [vmem:[#allocation50_spill] sm:$0xff]  ;;  %v16607_v13 = vld [vmem:[#allocation39_spill] sm:$0xff] }
 0x3e6   : > { %v5489_v49 = vadd.f32 %v5488_v20, %v5362_v23  ;;  %v12477_v56 = vadd.f32 %v2566_v5, %v695_v63  ;;  %v2304_v36 = vmul.f32 0.6931472, %v7723_v21  ;;  %7734 = vpow2.f32 %v1257_v37  ;;  %v690_v23 = vld [vmem:[%s9016_s28 + $0x388] sm:$0xff] }
 0x3e7   : > { %v4720_v57 = vsel %vm12406_vm11, %v16600_v11, %v16599_v9  ;;  %v5365_v35 = vadd.f32 %v4693_v62, %v16601_v7  ;;  %v2297_v16 = vadd.f32 1.0, %v2296_v3  ;;  %7736 = vlog2.f32 %v2320_v8  ;;  %v7727_v39 = vpop.eup %7726  ;;  %v16602_v3 = vld [vmem:[#allocation38_spill] sm:$0xff]  ;;  %v16612_v11 = vld [vmem:[#allocation57_spill] sm:$0xff] }
 0x3e8   : > { %v5490_v41 = vadd.f32 %v5489_v49, %v5363_v51  ;;  %v6115_v33 = vmul.f32 %v12394_v47, %v12394_v47  ;;  %2838 = vmatpush2.xpose.msra.mxu1 %v12477_v56  ;;  %v2310_v63 = vsel %vm2309_vm14, %v2307_v40, %v2304_v36  ;;  %v2299_v37 = vand.u32 2147483647, %v12354_v60  ;;  %v16604_v51 = vld [vmem:[#allocation52_spill] sm:$0xff]  ;;  %v16605_v62 = vld [vmem:[#allocation58_spill] sm:$0xff]  ;;  %v16610_v49 = vld [vmem:[#allocation59_spill] sm:$0xff] }
 0x3e9   : > { %v1861_v5 = vadd.f32 1.0, %v12475_v30  ;;  %v6118_v15 = vmul.f32 %v12398_v28, %v12398_v28  ;;  %v2561_v21 = vmul.f32 %v2310_v63, %v1010_v12  ;;  %7738 = vlog2.f32 %v2310_v63  ;;  %v16609_v40 = vld [vmem:[#allocation56_spill] sm:$0xff] }
 0x3ea   : > { %v16606_v47 = vsel %vm9527_vm5, %v16604_v51, %v16605_v62  ;;  %v16611_v36 = vsel %vm9545_vm7, %v16609_v40, %v16610_v49  ;;  %v4729_v28 = vsel %vm12427_vm15, %v16612_v11, %v4723_v26  ;;  %v5491_v7 = vadd.f32 %v5490_v41, %v5364_v14  ;;  %v7729_v63 = vpop.eup %7728  ;;  %v814_v51 = vld [vmem:[%s9023_s13 + $0x368] sm:$0xff] }
 0x3eb   : > { %v5367_v20 = vadd.f32 %v16606_v47, %v16602_v3  ;;  %v5366_v9 = vadd.f32 %v16611_v36, %v16607_v13  ;;  %v5368_v27 = vadd.f32 %v4720_v57, %v16613_v43  ;;  %v12508_v8 = vadd.f32 %v2561_v21, %v690_v23  ;;  %v689_v21 = vld [vmem:[%s9016_s28 + $0x380] sm:$0xff] }
 0x3ec   : > { %v2295_v10 = vmul.f32 0.6931472, %v7727_v39  ;;  %v2298_v3 = vmul.f32 %v12354_v60, %v2297_v16  ;;  %v7731_v62 = vpop.eup %7730  ;;  %v5492_v47 = vadd.f32 %v5491_v7, %v5365_v35  ;;  %v5848_v19 = vmul.f32 0.6931472, %v7729_v63  ;;  %v16614_v35 = vld [vmem:[#allocation41_spill] sm:$0xff] }
 0x3ed   : > { %v6243_v58 = vmul.f32 0.5, %v6115_v33  ;;  %vm2300_vm5 = vcmp.lt.f32.partialorder %v2299_v37, 0.0004427343  ;;  %7740 = vlog2.f32 %v1861_v5  ;;  %v5854_v13 = vmul.f32 0.6931472, %v7731_v62  ;;  %2768 = vmatprep.subr.mxu0 %v12508_v8 }
 0x3ee   : > { %v6246_v40 = vmul.f32 0.5, %v6118_v15  ;;  %v6117_v54 = vmul.f32 %v12432_v4, %v12432_v4  ;;  %v5493_v43 = vadd.f32 %v5492_v47, %v5366_v9  ;;  %v5987_v26 = vsub.f32 -0.9189385, %v5848_v19 }
 0x3ef   : > { %v1009_v14 = vunpack.c.l.bf16 %v889_v2  ;;  %v1247_v57 = vmul.f32 1.442695, %v814_v51  ;;  %v5990_v60 = vsub.f32 -0.9189385, %v5854_v13  ;;  %v2301_v16 = vsel %vm2300_vm5, %v2298_v3, %v2295_v10  ;;  %v890_v3 = vld [vmem:[%s9026_s3 + $0x1c8] sm:$0xff] }
 0x3f0   : > { %v7733_v39 = vpop.eup %7732  ;;  %v5369_v41 = vadd.f32 %v4729_v28, %v16614_v35  ;;  %v5494_v33 = vadd.f32 %v5493_v43, %v5367_v20  ;;  %v12516_v23 = vsub.f32 %v5987_v26, %v6243_v58  ;;  %v2323_v37 = vmul.f32 -0.5, %v12435_v17 }
 0x3f1   : > { %v12519_v5 = vsub.f32 %v5990_v60, %v6246_v40  ;;  %v5852_v4 = vmul.f32 0.6931472, %v7733_v39  ;;  %v6245_v15 = vmul.f32 0.5, %v6117_v54  ;;  %v6112_v36 = vmul.f32 %v1010_v12, %v1010_v12  ;;  %v692_v60 = vld [vmem:[%s9016_s28 + $0x398] sm:$0xff] }
 0x3f2   : > { %16615 = vst [vmem:[#allocation250_spill] sm:$0xff] %v12516_v23  ;;  %v5495_v49 = vadd.f32 %v5494_v33, %v5368_v27  ;;  %v2560_v2 = vmul.f32 %v2301_v16, %v1009_v14  ;;  %7742 = vpow2.f32 %v1247_v57  ;;  %v1864_v20 = vmul.f32 -0.5, %v12475_v30  ;;  %v12539_v33 = vld [vmem:[%s9026_s3 + $0x100] sm:$0xff] }
 0x3f3   : > { %16616 = vst [vmem:[#allocation257_spill] sm:$0xff] %v12519_v5  ;;  %v7735_v9 = vpop.eup %7734  ;;  %v5989_v10 = vsub.f32 -0.9189385, %v5852_v4  ;;  %7744 = vlog2.f32 %v2301_v16  ;;  %v2324_v7 = vadd.f32 1.0, %v2323_v37  ;;  %v6240_v27 = vmul.f32 0.5, %v6112_v36 }
 0x3f4   : > { %v7737_v11 = vpop.eup %7736  ;;  %v12523_v58 = vadd.f32 %v5495_v49, %v5369_v41  ;;  %v12525_v28 = vadd.f32 %v2560_v2, %v689_v21  ;;  %v1012_v12 = vunpack.c.h.bf16 %v890_v3  ;;  %v2326_v13 = vand.u32 2147483647, %v12435_v17  ;;  %v770_v49 = vld [vmem:[%s9023_s13 + $0x208] sm:$0xff] }
 0x3f5   : > { %v12527_v63 = vsub.f32 %v5989_v10, %v6245_v15  ;;  %v2322_v62 = vmul.f32 0.6931472, %v7737_v11  ;;  %v2325_v19 = vmul.f32 %v12435_v17, %v2324_v7  ;;  %v2311_v40 = vadd.f32 1.0, %v7735_v9  ;;  %v813_v10 = vld [vmem:[%s9023_s13 + $0x360] sm:$0xff] }
 0x3f6   : > { %16617 = vst [vmem:[#allocation243_spill] sm:$0xff] %v12523_v58  ;;  %v7739_v51 = vpop.eup %7738  ;;  %2769 = vmatpush2.xpose.msra.mxu0 %v12525_v28  ;;  %v1865_v54 = vadd.f32 1.0, %v1864_v20  ;;  %vm2327_vm7 = vcmp.lt.f32.partialorder %v2326_v13, 0.0004427343  ;;  %v1867_v57 = vand.u32 2147483647, %v12475_v30  ;;  %v6111_v37 = vmul.f32 %v1009_v14, %v1009_v14 }
 0x3f7   : > { %16618 = vst [vmem:[#allocation255_spill] sm:$0xff] %v12527_v63  ;;  %v5842_v47 = vmul.f32 0.6931472, %v7739_v51  ;;  %7746 = vlog2.f32 %v2311_v40  ;;  %v2328_v16 = vsel %vm2327_vm7, %v2325_v19, %v2322_v62  ;;  %v2314_v15 = vmul.f32 -0.5, %v7735_v9  ;;  %v771_v62 = vld [vmem:[%s9023_s13 + $0x210] sm:$0xff]  ;;  %v641_v40 = vld [vmem:[%s9016_s28 + $0x200] sm:$0xff] }
 0x3f8   : > { %v2563_v35 = vmul.f32 %v2328_v16, %v1012_v12  ;;  %7748 = vlog2.f32 %v2328_v16  ;;  %v1866_v41 = vmul.f32 %v12475_v30, %v1865_v54  ;;  %vm1868_vm0 = vcmp.lt.f32.partialorder %v1867_v57, 0.0004427343 }
 0x3f9   : > { %v5984_v43 = vsub.f32 -0.9189385, %v5842_v47  ;;  %v12546_v2 = vunpack.c.l.bf16 %v12539_v33  ;;  %v6239_v20 = vmul.f32 0.5, %v6111_v37  ;;  %v2315_v14 = vadd.f32 1.0, %v2314_v15 }
 0x3fa   : > { %v7741_v26 = vpop.eup %7740  ;;  %v12541_v4 = vadd.f32 %v2563_v35, %v692_v60  ;;  %v1159_v7 = vmul.f32 1.442695, %v770_v49  ;;  %v2317_v51 = vand.u32 2147483647, %v7735_v9  ;;  %v1245_v19 = vmul.f32 1.442695, %v813_v10 }
 0x3fb   : > { %v12535_v39 = vsub.f32 %v5984_v43, %v6240_v27  ;;  %v1863_v17 = vmul.f32 0.6931472, %v7741_v26  ;;  %v6114_v43 = vmul.f32 %v1012_v12, %v1012_v12  ;;  %v2316_v26 = vmul.f32 %v7735_v9, %v2315_v14  ;;  %v691_v9 = vld [vmem:[%s9016_s28 + $0x390] sm:$0xff] }
 0x3fc   : > { %2839 = vmatprep.subr.mxu1 %v12541_v4  ;;  %v1161_v60 = vmul.f32 1.442695, %v771_v62  ;;  %vm2318_vm3 = vcmp.lt.f32.partialorder %v2317_v51, 0.0004427343  ;;  %v1011_v16 = vunpack.c.l.bf16 %v890_v3 }
 0x3fd   : > { %16619 = vst [vmem:[#allocation236_spill] sm:$0xff] %v12535_v39  ;;  %v12549_v30 = vsel %vm1868_vm0, %v1866_v41, %v1863_v17  ;;  %v816_v41 = vld [vmem:[%s9023_s13 + $0x378] sm:$0xff] }
 0x3fe   : > { %v2512_v13 = vmul.f32 %v12549_v30, %v12546_v2  ;;  %v1251_v12 = vmul.f32 1.442695, %v816_v41 }
 0x3ff   : > { %v7743_v21 = vpop.eup %7742 }
 0x400   : > { %v7745_v36 = vpop.eup %7744  ;;  %v2266_v27 = vadd.f32 1.0, %v7743_v21  ;;  %v12558_v37 = vadd.f32 %v2512_v13, %v641_v40  ;;  %v2269_v15 = vmul.f32 -0.5, %v7743_v21  ;;  %v2272_v62 = vand.u32 2147483647, %v7743_v21  ;;  %v887_v13 = vld [vmem:[%s9026_s3 + $0x1b0] sm:$0xff] }
 0x401   : > { %v5840_v11 = vmul.f32 0.6931472, %v7745_v36  ;;  %v6242_v36 = vmul.f32 0.5, %v6114_v43 }
 0x402   : > { %7750 = vlog2.f32 %v2266_v27  ;;  %16621 = vst [vmem:[#allocation222_spill] sm:$0xff] %v12558_v37  ;;  %v2938_v3 = vmul.f32 %v12558_v37, %v12558_v37  ;;  %v2270_v14 = vadd.f32 1.0, %v2269_v15  ;;  %vm2273_vm8 = vcmp.lt.f32.partialorder %v2272_v62, 0.0004427343  ;;  %v686_v15 = vld [vmem:[%s9016_s28 + $0x368] sm:$0xff] }
 0x403   : > { %v5983_v47 = vsub.f32 -0.9189385, %v5840_v11  ;;  %7752 = vpow2.f32 %v1159_v7  ;;  %v815_v7 = vld [vmem:[%s9023_s13 + $0x370] sm:$0xff] }
 0x404   : > { %v7747_v57 = vpop.eup %7746  ;;  %7754 = vpow2.f32 %v1245_v19  ;;  %v3066_v19 = vmul.f32 0.5, %v2938_v3  ;;  %v2271_v40 = vmul.f32 %v7743_v21, %v2270_v14 }
 0x405   : > { %v12555_v54 = vsub.f32 %v5983_v47, %v6239_v20  ;;  %v2313_v35 = vmul.f32 0.6931472, %v7747_v57  ;;  %v7749_v17 = vpop.eup %7748  ;;  %7756 = vpow2.f32 %v1161_v60  ;;  %v1249_v47 = vmul.f32 1.442695, %v815_v7 }
 0x406   : > { %v5846_v49 = vmul.f32 0.6931472, %v7749_v17  ;;  %v1006_v57 = vunpack.c.h.bf16 %v887_v13  ;;  %v3194_v17 = vsub.f32 -1.6120857, %v3066_v19 }
 0x407   : > { %16620 = vst [vmem:[#allocation233_spill] sm:$0xff] %v12555_v54  ;;  %v2319_v10 = vsel %vm2318_vm3, %v2316_v26, %v2313_v35  ;;  %v3322_v26 = vmul.f32 81377.4, %v2938_v3 }
 0x408   : > { %v5986_v11 = vsub.f32 -0.9189385, %v5846_v49  ;;  %v2562_v20 = vmul.f32 %v2319_v10, %v1011_v16  ;;  %7758 = vlog2.f32 %v2319_v10 }
 0x409   : > { %7760 = vpow2.f32 %v1251_v12  ;;  %v3450_v10 = vsub.f32 4.387914, %v3322_v26 }
 0x40a   : > { %v12564_v51 = vsub.f32 %v5986_v11, %v6242_v36  ;;  %v12566_v27 = vadd.f32 %v2562_v20, %v691_v9  ;;  %7762 = vpow2.f32 %v1249_v47  ;;  %v810_v36 = vld [vmem:[%s9023_s13 + $0x348] sm:$0xff]  ;;  %v6113_v11 = vmul.f32 %v1011_v16, %v1011_v16 }
 0x40b   : > { %v1239_v14 = vmul.f32 1.442695, %v810_v36  ;;  %v12579_v62 = vmax.f32 %v3194_v17, %v3450_v10  ;;  %v3706_v47 = vmin.f32 %v3194_v17, %v3450_v10  ;;  %v6108_v10 = vmul.f32 %v1006_v57, %v1006_v57 }
 0x40c   : > { %16622 = vst [vmem:[#allocation239_spill] sm:$0xff] %v12564_v51  ;;  %2840 = vmatpush2.xpose.msra.mxu1 %v12566_v27  ;;  %v6241_v16 = vmul.f32 0.5, %v6113_v11 }
 0x40f   : > { %v7751_v43 = vpop.eup %7750 }
 0x410   : > { %v2268_v60 = vmul.f32 0.6931472, %v7751_v43  ;;  %v12570_v35 = vpop.eup %7752 }
 0x411   : > { %v7755_v41 = vpop.eup %7754  ;;  %v1870_v21 = vadd.f32 1.0, %v12570_v35  ;;  %v1873_v5 = vmul.f32 -0.5, %v12570_v35 }
 0x412   : > { %v2274_v49 = vsel %vm2273_vm8, %v2271_v40, %v2268_v60  ;;  %v2257_v12 = vadd.f32 1.0, %v7755_v41  ;;  %v12574_v20 = vpop.eup %7756  ;;  %v2260_v60 = vmul.f32 -0.5, %v7755_v41  ;;  %v2263_v11 = vand.u32 2147483647, %v7755_v41 }
 0x413   : > { %v2557_v9 = vmul.f32 %v2274_v49, %v1006_v57  ;;  %7764 = vlog2.f32 %v2274_v49  ;;  %v1879_v40 = vadd.f32 1.0, %v12574_v20  ;;  %v3834_v49 = vsub.f32 %v3706_v47, %v12579_v62 }
 0x414   : > { %7766 = vlog2.f32 %v2257_v12  ;;  %vm2264_vm2 = vcmp.lt.f32.partialorder %v2263_v11, 0.0004427343  ;;  %v1874_v51 = vadd.f32 1.0, %v1873_v5  ;;  %v1876_v11 = vand.u32 2147483647, %v12570_v35 }
 0x415   : > { %v12577_v3 = vadd.f32 %v2557_v9, %v686_v15  ;;  %v7759_v7 = vpop.eup %7758  ;;  %7768 = vpow2.f32 %v1239_v14  ;;  %v809_v15 = vld [vmem:[%s9023_s13 + $0x340] sm:$0xff]  ;;  %v2261_v9 = vadd.f32 1.0, %v2260_v60  ;;  %v1005_v60 = vunpack.c.l.bf16 %v887_v13 }
 0x416   : > { %v5844_v19 = vmul.f32 0.6931472, %v7759_v7  ;;  %v12583_v43 = vpop.eup %7760  ;;  %7770 = vlog2.f32 %v1870_v21  ;;  %v1237_v12 = vmul.f32 1.442695, %v809_v15  ;;  %v4026_v7 = vmul.f32 1.442695, %v3834_v49 }
 0x417   : > { %2770 = vmatprep.subr.mxu0 %v12577_v3  ;;  %7772 = vlog2.f32 %v1879_v40  ;;  %v2284_v17 = vadd.f32 1.0, %v12583_v43  ;;  %v12590_v14 = vpop.eup %7762  ;;  %v6236_v40 = vmul.f32 0.5, %v6108_v10  ;;  %v812_v15 = vld [vmem:[%s9023_s13 + $0x358] sm:$0xff]  ;;  %v2287_v63 = vmul.f32 -0.5, %v12583_v43 }
 0x418   : > { %v5985_v26 = vsub.f32 -0.9189385, %v5844_v19  ;;  %v2275_v21 = vadd.f32 1.0, %v12590_v14  ;;  %vm1877_vm4 = vcmp.lt.f32.partialorder %v1876_v11, 0.0004427343 }
 0x419   : > { %7774 = vlog2.f32 %v2284_v17 }
 0x41a   : > { %v12587_v36 = vsub.f32 %v5985_v26, %v6241_v16  ;;  %7776 = vpow2.f32 %v1237_v12  ;;  %v2262_v16 = vmul.f32 %v7755_v41, %v2261_v9  ;;  %v1882_v26 = vmul.f32 -0.5, %v12574_v20  ;;  %v685_v41 = vld [vmem:[%s9016_s28 + $0x360] sm:$0xff] }
 0x41b   : > { %7778 = vlog2.f32 %v2275_v21  ;;  %v2278_v12 = vmul.f32 -0.5, %v12590_v14 }
 0x41c   : > { %16623 = vst [vmem:[#allocation205_spill] sm:$0xff] %v12587_v36  ;;  %7780 = vpow2.f32 %v4026_v7  ;;  %v2288_v36 = vadd.f32 1.0, %v2287_v63 }
 0x420   : > { %v7765_v19 = vpop.eup %7764 }
 0x421   : > { %v5834_v47 = vmul.f32 0.6931472, %v7765_v19  ;;  %v7767_v57 = vpop.eup %7766  ;;  %v1243_v19 = vmul.f32 1.442695, %v812_v15  ;;  %v1875_v15 = vmul.f32 %v12570_v35, %v1874_v51 }
 0x422   : > { %v2259_v49 = vmul.f32 0.6931472, %v7767_v57  ;;  %v12597_v23 = vpop.eup %7768  ;;  %v1885_v57 = vand.u32 2147483647, %v12574_v20 }
 0x423   : > { %v5980_v17 = vsub.f32 -0.9189385, %v5834_v47  ;;  %v2230_v21 = vadd.f32 1.0, %v12597_v23  ;;  %v7771_v13 = vpop.eup %7770  ;;  %v1883_v47 = vadd.f32 1.0, %v1882_v26  ;;  %v2281_v26 = vand.u32 2147483647, %v12590_v14 }
 0x424   : > { %v2265_v9 = vsel %vm2264_vm2, %v2262_v16, %v2259_v49  ;;  %v7773_v16 = vpop.eup %7772  ;;  %v2279_v49 = vadd.f32 1.0, %v2278_v12  ;;  %vm12613_vm6 = vcmp.lt.f32.partialorder %v1885_v57, 0.0004427343  ;;  %v2233_v35 = vmul.f32 -0.5, %v12597_v23 }
 0x425   : > { %v12600_v10 = vsub.f32 %v5980_v17, %v6236_v40  ;;  %v2556_v7 = vmul.f32 %v2265_v9, %v1005_v60  ;;  %7782 = vlog2.f32 %v2265_v9  ;;  %v2290_v40 = vand.u32 2147483647, %v12583_v43 }
 0x426   : > { %7784 = vlog2.f32 %v2230_v21  ;;  %v1872_v17 = vmul.f32 0.6931472, %v7771_v13  ;;  %v7775_v9 = vpop.eup %7774  ;;  %v1884_v63 = vmul.f32 %v12574_v20, %v1883_v47  ;;  %v811_v13 = vld [vmem:[%s9023_s13 + $0x350] sm:$0xff]  ;;  %v1881_v39 = vmul.f32 0.6931472, %v7773_v16 }
 0x427   : > { %16624 = vst [vmem:[#allocation196_spill] sm:$0xff] %v12600_v10  ;;  %v12606_v5 = vadd.f32 %v2556_v7, %v685_v41  ;;  %7786 = vpow2.f32 %v1243_v19  ;;  %v888_v41 = vld [vmem:[%s9026_s3 + $0x1b8] sm:$0xff]  ;;  %v2289_v7 = vmul.f32 %v12583_v43, %v2288_v36  ;;  %vm2291_vm9 = vcmp.lt.f32.partialorder %v2290_v40, 0.0004427343  ;;  %v12621_v12 = vpop.eup %7776  ;;  %v806_v10 = vld [vmem:[%s9023_s13 + $0x328] sm:$0xff] }
 0x428   : > { %v1008_v51 = vunpack.c.h.bf16 %v888_v41  ;;  %v12623_v19 = vsel %vm1877_vm4, %v1875_v15, %v1872_v17  ;;  %7788 = vlog2.f32 %v12549_v30  ;;  %v2286_v20 = vmul.f32 0.6931472, %v7775_v9  ;;  %v7779_v47 = vpop.eup %7778  ;;  %v688_v15 = vld [vmem:[%s9016_s28 + $0x378] sm:$0xff] }
 0x429   : > { %2771 = vmatpush2.xpose.msra.mxu0 %v12606_v5  ;;  %v2280_v11 = vmul.f32 %v12590_v14, %v2279_v49  ;;  %7790 = vlog2.f32 %v12623_v19  ;;  %vm2282_vm12 = vcmp.lt.f32.partialorder %v2281_v26, 0.0004427343  ;;  %v2221_v43 = vadd.f32 1.0, %v12621_v12  ;;  %v12629_v17 = vpop.eup %7780 }
 0x42a   : > { %v1241_v36 = vmul.f32 1.442695, %v811_v13  ;;  %v6107_v57 = vmul.f32 %v1005_v60, %v1005_v60  ;;  %v2292_v40 = vsel %vm2291_vm9, %v2289_v7, %v2286_v20  ;;  %v1007_v16 = vunpack.c.l.bf16 %v888_v41  ;;  %v687_v60 = vld [vmem:[%s9016_s28 + $0x370] sm:$0xff] }
 0x42b   : > { %v2277_v54 = vmul.f32 0.6931472, %v7779_v47  ;;  %v2559_v30 = vmul.f32 %v2292_v40, %v1008_v51  ;;  %7792 = vlog2.f32 %v2292_v40  ;;  %v2234_v9 = vadd.f32 1.0, %v2233_v35 }
 0x42c   : > { %v2236_v14 = vand.u32 2147483647, %v12597_v23  ;;  %7794 = vlog2.f32 %v2221_v43  ;;  %v12636_v26 = vsel %vm12613_vm6, %v1884_v63, %v1881_v39  ;;  %v4730_v7 = vadd.f32 1.0, %v12629_v17  ;;  %v885_v63 = vld [vmem:[%s9026_s3 + $0x1a0] sm:$0xff] }
 0x42d   : > { %v2283_v49 = vsel %vm2282_vm12, %v2280_v11, %v2277_v54  ;;  %7796 = vpow2.f32 %v1241_v36  ;;  %v12640_v13 = vadd.f32 %v2559_v30, %v688_v15  ;;  %v6235_v47 = vmul.f32 0.5, %v6107_v57 }
 0x42e   : > { %v2558_v20 = vmul.f32 %v2283_v49, %v1007_v16  ;;  %7798 = vlog2.f32 %v2283_v49  ;;  %v2235_v54 = vmul.f32 %v12597_v23, %v2234_v9  ;;  %vm2237_vm1 = vcmp.lt.f32.partialorder %v2236_v14, 0.0004427343  ;;  %v682_v9 = vld [vmem:[%s9016_s28 + $0x348] sm:$0xff] }
 0x42f   : > { %v1231_v11 = vmul.f32 1.442695, %v806_v10  ;;  %2841 = vmatprep.subr.mxu1 %v12640_v13  ;;  %v2224_v36 = vmul.f32 -0.5, %v12621_v12  ;;  %7800 = vlog2.f32 %v12636_v26  ;;  %v1002_v15 = vunpack.c.h.bf16 %v885_v63 }
 0x430   : > { %v12644_v39 = vadd.f32 %v2558_v20, %v687_v60  ;;  %v6110_v60 = vmul.f32 %v1008_v51, %v1008_v51  ;;  %v2227_v20 = vand.u32 2147483647, %v12621_v12 }
 0x431   : > { %7802 = vpow2.f32 %v1231_v11  ;;  %v2225_v14 = vadd.f32 1.0, %v2224_v36  ;;  %v6109_v11 = vmul.f32 %v1007_v16, %v1007_v16 }
 0x432   : > { %v7783_v41 = vpop.eup %7782  ;;  %16627 = vst [vmem:[#allocation220_spill] sm:$0xff] %v12644_v39  ;;  %2842 = vmatpush2.xpose.msra.mxu1 %v12644_v39  ;;  %7804 = vlog2.f32 %v4730_v7  ;;  %vm2228_vm13 = vcmp.lt.f32.partialorder %v2227_v20, 0.0004427343 }
 0x433   : > { %v7785_v35 = vpop.eup %7784  ;;  %v5832_v43 = vmul.f32 0.6931472, %v7783_v41  ;;  %v2226_v7 = vmul.f32 %v12621_v12, %v2225_v14  ;;  %v4733_v14 = vmul.f32 -0.5, %v12629_v17  ;;  %v6237_v20 = vmul.f32 0.5, %v6109_v11 }
 0x434   : > { %v2232_v21 = vmul.f32 0.6931472, %v7785_v35  ;;  %v12648_v40 = vpop.eup %7786  ;;  %v6104_v11 = vmul.f32 %v1002_v15, %v1002_v15 }
 0x435   : > { %v5979_v57 = vsub.f32 -0.9189385, %v5832_v43  ;;  %v2248_v10 = vadd.f32 1.0, %v12648_v40  ;;  %v7789_v49 = vpop.eup %7788 }
 0x436   : > { %v2238_v23 = vsel %vm2237_vm1, %v2235_v54, %v2232_v21  ;;  %v7791_v35 = vpop.eup %7790  ;;  %v962_v21 = vunpack.c.h.bf16 %v12539_v33 }
 0x437   : > { %v12653_v30 = vsub.f32 %v5979_v57, %v6235_v47  ;;  %v2553_v41 = vmul.f32 %v2238_v23, %v1002_v15  ;;  %7806 = vlog2.f32 %v2238_v23  ;;  %v963_v57 = vunpack.c.l.bf16 %v866_v59 }
 0x438   : > { %7808 = vlog2.f32 %v2248_v10  ;;  %v7793_v54 = vpop.eup %7792  ;;  %v6063_v23 = vmul.f32 %v12546_v2, %v12546_v2  ;;  %v6064_v16 = vmul.f32 %v962_v21, %v962_v21  ;;  %v2251_v59 = vmul.f32 -0.5, %v12648_v40 }
 0x439   : > { %16628 = vst [vmem:[#allocation216_spill] sm:$0xff] %v12653_v30  ;;  %v12658_v43 = vadd.f32 %v2553_v41, %v682_v9  ;;  %v7795_v47 = vpop.eup %7794  ;;  %v5838_v36 = vmul.f32 0.6931472, %v7793_v54  ;;  %v6238_v30 = vmul.f32 0.5, %v6110_v60  ;;  %v12667_v9 = vunpack.c.l.bf16 %v885_v63 }
 0x43a   : > { %v12663_v51 = vpop.eup %7796  ;;  %v2223_v10 = vmul.f32 0.6931472, %v7795_v47  ;;  %v6065_v41 = vmul.f32 %v963_v57, %v963_v57  ;;  %v2513_v44 = vmul.f32 %v12623_v19, %v962_v21  ;;  %v2514_v2 = vmul.f32 %v12636_v26, %v963_v57 }
 0x43b   : > { %16629 = vst [vmem:[#allocation188_spill] sm:$0xff] %v12658_v43  ;;  %2772 = vmatprep.subr.mxu0 %v12658_v43  ;;  %v7799_v33 = vpop.eup %7798  ;;  %v5982_v12 = vsub.f32 -0.9189385, %v5838_v36  ;;  %v12673_v63 = vmul.f32 0.6931472, %v7789_v49  ;;  %v2239_v43 = vadd.f32 1.0, %v12663_v51 }
 0x43c   : > { %v5836_v60 = vmul.f32 0.6931472, %v7799_v33  ;;  %v2229_v54 = vsel %vm2228_vm13, %v2226_v7, %v2223_v10  ;;  %v7801_v47 = vpop.eup %7800  ;;  %v6191_v33 = vmul.f32 0.5, %v6063_v23  ;;  %v6192_v39 = vmul.f32 0.5, %v6064_v16  ;;  %v681_v7 = vld [vmem:[%s9016_s28 + $0x340] sm:$0xff] }
 0x43d   : > { %v12675_v37 = vsub.f32 %v5982_v12, %v6238_v30  ;;  %v2552_v36 = vmul.f32 %v2229_v54, %v12667_v9  ;;  %7810 = vlog2.f32 %v2229_v54  ;;  %v2252_v10 = vadd.f32 1.0, %v2251_v59 }
 0x43e   : > { %v5981_v58 = vsub.f32 -0.9189385, %v5836_v60  ;;  %v12681_v19 = vpop.eup %7802  ;;  %v6193_v26 = vmul.f32 0.5, %v6065_v41  ;;  %v4734_v30 = vadd.f32 1.0, %v4733_v14  ;;  %v2254_v21 = vand.u32 2147483647, %v12648_v40 }
 0x43f   : > { %16630 = vst [vmem:[#allocation185_spill] sm:$0xff] %v12675_v37  ;;  %v7805_v57 = vpop.eup %7804  ;;  %v12686_v12 = vadd.f32 %v2513_v44, %v642_v6  ;;  %v5746_v60 = vmul.f32 0.6931472, %v7791_v35  ;;  %v5748_v23 = vmul.f32 0.6931472, %v7801_v47  ;;  %v2995_v54 = vmul.f32 %v12010_v34, %v12010_v34  ;;  %v643_v14 = vld [vmem:[%s9016_s28 + $0x210] sm:$0xff] }
 0x440   : > { %v12683_v49 = vsub.f32 %v5981_v58, %v6237_v20  ;;  %v5935_v15 = vsub.f32 -0.9189385, %v12673_v63  ;;  %v4736_v59 = vand.u32 2147483647, %v12629_v17  ;;  %v12692_v41 = vadd.f32 %v2552_v36, %v681_v7  ;;  %v805_v58 = vld [vmem:[%s9023_s13 + $0x320] sm:$0xff] }
 0x441   : > { %16632 = vst [vmem:[#allocation192_spill] sm:$0xff] %v12686_v12  ;;  %7812 = vlog2.f32 %v2239_v43  ;;  %v6232_v37 = vmul.f32 0.5, %v6104_v11  ;;  %v2253_v44 = vmul.f32 %v12648_v40, %v2252_v10  ;;  %v2194_v6 = vadd.f32 1.0, %v12681_v19 }
 0x442   : > { %16631 = vst [vmem:[#allocation193_spill] sm:$0xff] %v12683_v49  ;;  %v12697_v49 = vld [vmem:[%s9026_s3 + $0x1a8] sm:$0xff]  ;;  %v4732_v63 = vmul.f32 0.6931472, %v7805_v57  ;;  %v4735_v47 = vmul.f32 %v12629_v17, %v4734_v30  ;;  %2773 = vmatpush2.xpose.msra.mxu0 %v12692_v41  ;;  %vm2255_vm11 = vcmp.lt.f32.partialorder %v2254_v21, 0.0004427343  ;;  %v12704_v7 = vadd.f32 %v2514_v2, %v643_v14 }
 0x443   : > { %v1004_v34 = vunpack.c.h.bf16 %v12697_v49  ;;  %7814 = vlog2.f32 %v2194_v6  ;;  %v1229_v11 = vmul.f32 1.442695, %v805_v58  ;;  %v5937_v40 = vsub.f32 -0.9189385, %v5748_v23 }
 0x444   : > { %v7807_v16 = vpop.eup %7806  ;;  %16633 = vst [vmem:[#allocation164_spill] sm:$0xff] %v12704_v7  ;;  %vm12706_vm10 = vcmp.lt.f32.partialorder %v4736_v59, 0.0004427343  ;;  %v12712_v17 = vmul.f32 %v12686_v12, %v12686_v12  ;;  %v3123_v30 = vmul.f32 0.5, %v2995_v54  ;;  %v2242_v2 = vmul.f32 -0.5, %v12663_v51  ;;  %v676_v12 = vld [vmem:[%s9016_s28 + $0x318] sm:$0xff] }
 0x445   : > { %v5826_v20 = vmul.f32 0.6931472, %v7807_v16  ;;  %v7809_v35 = vpop.eup %7808  ;;  %v5936_v16 = vsub.f32 -0.9189385, %v5746_v60  ;;  %v4738_v60 = vsel %vm12706_vm10, %v4735_v47, %v4732_v63  ;;  %v2994_v23 = vmul.f32 %v12063_v42, %v12063_v42 }
 0x446   : > { %v2250_v36 = vmul.f32 0.6931472, %v7809_v35  ;;  %16636 = vst [vmem:[#allocation163_spill] sm:$0xff] %v12712_v17  ;;  %v684_v35 = vld [vmem:[%s9016_s28 + $0x358] sm:$0xff]  ;;  %v6103_v59 = vmul.f32 %v12667_v9, %v12667_v9  ;;  %v6122_v14 = vmul.f32 %v11982_v45, %v11982_v45  ;;  %v3251_v63 = vsub.f32 -1.6120857, %v3123_v30 }
 0x447   : > { %v5976_v43 = vsub.f32 -0.9189385, %v5826_v20  ;;  %v3379_v20 = vmul.f32 81377.4, %v2995_v54  ;;  %v12724_v58 = vsub.f32 %v5936_v16, %v6192_v39  ;;  %v12726_v54 = vsub.f32 %v5937_v40, %v6193_v26  ;;  %v808_v9 = vld [vmem:[%s9023_s13 + $0x338] sm:$0xff]  ;;  %v673_v17 = vld [vmem:[%s9016_s28 + $0x300] sm:$0xff] }
 0x448   : > { %v2256_v21 = vsel %vm2255_vm11, %v2253_v44, %v2250_v36  ;;  %v2197_v42 = vmul.f32 -0.5, %v12681_v19  ;;  %v3122_v45 = vmul.f32 0.5, %v2994_v23  ;;  %v6231_v36 = vmul.f32 0.5, %v6103_v59 }
 0x449   : > { %v12714_v57 = vsub.f32 %v5976_v43, %v6232_v37  ;;  %v2555_v6 = vmul.f32 %v2256_v21, %v1004_v34  ;;  %7816 = vlog2.f32 %v2256_v21  ;;  %v6319_v37 = vsub.f32 %v5935_v15, %v6191_v33 }
 0x44a   : > { %7818 = vpow2.f32 %v1229_v11  ;;  %v7811_v44 = vpop.eup %7810  ;;  %v12732_v43 = vmul.f32 %v11837_v53, %v11837_v53  ;;  %v12739_v33 = vadd.f32 %v4738_v60, %v12579_v62  ;;  %v3507_v39 = vsub.f32 4.387914, %v3379_v20 }
 0x44b   : > { %16637 = vst [vmem:[#allocation181_spill] sm:$0xff] %v12714_v57  ;;  %v12734_v47 = vadd.f32 %v2555_v6, %v684_v35  ;;  %v5824_v26 = vmul.f32 0.6931472, %v7811_v44  ;;  %v2243_v15 = vadd.f32 1.0, %v2242_v2  ;;  %7820 = vlog2.f32 %v11896_v18 }
 0x44c   : > { %v2245_v53 = vand.u32 2147483647, %v12663_v51  ;;  %v12745_v11 = vadd.f32 %v11891_v1, %v6319_v37  ;;  %7822 = vlog2.f32 %v11915_v46  ;;  %v12748_v16 = vmul.f32 0.5, %v6122_v14 }
 0x44d   : > { %2843 = vmatprep.subr.mxu1 %v12734_v47  ;;  %v1235_v62 = vmul.f32 1.442695, %v808_v9  ;;  %v2999_v10 = vmul.f32 %v11910_v61, %v11910_v61  ;;  %v3378_v30 = vmul.f32 81377.4, %v2994_v23  ;;  %v5975_v18 = vsub.f32 -0.9189385, %v5824_v26 }
 0x44e   : > { %v7813_v40 = vpop.eup %7812  ;;  %v2198_v21 = vadd.f32 1.0, %v2197_v42  ;;  %v12752_v20 = vmax.f32 %v3251_v63, %v3507_v39  ;;  %v2997_v35 = vmul.f32 %v12067_v31, %v12067_v31  ;;  %v2244_v1 = vmul.f32 %v12663_v51, %v2243_v15  ;;  %v12766_v51 = vld [vmem:[%s9026_s3 + $0x190] sm:$0xff] }
 0x44f   : > { %v2200_v46 = vand.u32 2147483647, %v12681_v19  ;;  %v3250_v6 = vsub.f32 -1.6120857, %v3122_v45  ;;  %v2991_v2 = vmul.f32 %v12258_v0, %v12258_v0  ;;  %v12760_v60 = vsub.f32 %v5975_v18, %v6231_v36  ;;  %v683_v45 = vld [vmem:[%s9016_s28 + $0x350] sm:$0xff] }
 0x450   : > { %16638 = vst [vmem:[#allocation165_spill] sm:$0xff] %v12752_v20  ;;  %vm2246_vm15 = vcmp.lt.f32.partialorder %v2245_v53, 0.0004427343  ;;  %v7815_v61 = vpop.eup %7814  ;;  %v6106_v23 = vmul.f32 %v1004_v34, %v1004_v34  ;;  %v12763_v59 = vunpack.c.l.bf16 %v12697_v49  ;;  %v2241_v37 = vmul.f32 0.6931472, %v7813_v40 }
 0x451   : > { %16639 = vst [vmem:[#allocation137_spill] sm:$0xff] %v12760_v60  ;;  %7824 = vpow2.f32 %v1235_v62  ;;  %v3763_v31 = vmin.f32 %v3251_v63, %v3507_v39  ;;  %v3506_v14 = vsub.f32 4.387914, %v3378_v30  ;;  %v2196_v44 = vmul.f32 0.6931472, %v7815_v61 }
 0x452   : > { %v2199_v42 = vmul.f32 %v12681_v19, %v2198_v21  ;;  %v12769_v9 = vmul.f32 0.5, %v2999_v10  ;;  %v2247_v0 = vsel %vm2246_vm15, %v2244_v1, %v2241_v37  ;;  %v12772_v26 = vunpack.c.h.bf16 %v12766_v51  ;;  %v807_v1 = vld [vmem:[%s9023_s13 + $0x330] sm:$0xff] }
 0x453   : > { %vm2201_vm14 = vcmp.lt.f32.partialorder %v2200_v46, 0.0004427343  ;;  %v2998_v34 = vmul.f32 %v11932_v52, %v11932_v52  ;;  %v3125_v15 = vmul.f32 0.5, %v2997_v35  ;;  %v3119_v63 = vmul.f32 0.5, %v2991_v2 }
 0x454   : > { %16640 = vst [vmem:[#allocation132_spill] sm:$0xff] %v12769_v9  ;;  %v3375_v39 = vmul.f32 81377.4, %v2991_v2  ;;  %v6234_v53 = vmul.f32 0.5, %v6106_v23  ;;  %v2554_v62 = vmul.f32 %v2247_v0, %v12763_v59  ;;  %7826 = vlog2.f32 %v2247_v0  ;;  %v678_v2 = vld [vmem:[%s9016_s28 + $0x328] sm:$0xff] }
 0x455   : > { %v3891_v40 = vsub.f32 %v3763_v31, %v12752_v20  ;;  %v12781_v30 = vmax.f32 %v3250_v6, %v3506_v14  ;;  %v3381_v18 = vmul.f32 81377.4, %v2997_v35  ;;  %v2202_v21 = vsel %vm2201_vm14, %v2199_v42, %v2196_v44 }
 0x456   : > { %v7817_v49 = vpop.eup %7816  ;;  %v3762_v52 = vmin.f32 %v3250_v6, %v3506_v14  ;;  %v12784_v61 = vadd.f32 %v2554_v62, %v683_v45  ;;  %v2549_v37 = vmul.f32 %v2202_v21, %v12772_v26  ;;  %v3247_v57 = vsub.f32 -1.6120857, %v3119_v63 }
 0x457   : > { %v12777_v36 = vpop.eup %7818  ;;  %v5830_v19 = vmul.f32 0.6931472, %v7817_v49  ;;  %16641 = vst [vmem:[#allocation147_spill] sm:$0xff] %v12781_v30  ;;  %v3503_v49 = vsub.f32 4.387914, %v3375_v39  ;;  %7828 = vlog2.f32 %v2202_v21  ;;  %v2996_v35 = vmul.f32 %v12119_v29, %v12119_v29 }
 0x458   : > { %v2185_v23 = vadd.f32 1.0, %v12777_v36  ;;  %v12789_v0 = vpop.eup %7820  ;;  %v12791_v31 = vmul.f32 81377.4, %v2999_v10  ;;  %2844 = vmatpush2.xpose.msra.mxu1 %v12784_v61  ;;  %v1233_v6 = vmul.f32 1.442695, %v807_v1  ;;  %v6447_v42 = vadd.f32 %v12745_v11, %v12724_v58 }
 0x459   : > { %v5978_v46 = vsub.f32 -0.9189385, %v5830_v19  ;;  %16642 = vst [vmem:[#allocation139_spill] sm:$0xff] %v12789_v0  ;;  %v12798_v14 = vpop.eup %7822  ;;  %v6121_v63 = vmul.f32 %v12069_v48, %v12069_v48  ;;  %v12804_v39 = vadd.f32 %v2549_v37, %v678_v2  ;;  %v15641_v10 = vsub.f32 -1.6120857, %v12769_v9 }
 0x45a   : > { %16643 = vst [vmem:[#allocation119_spill] sm:$0xff] %v12791_v31  ;;  %7830 = vlog2.f32 %v2185_v23  ;;  %v12807_v45 = vmul.f32 0.5, %v2998_v34  ;;  %v3890_v29 = vsub.f32 %v3762_v52, %v12781_v30  ;;  %v3253_v19 = vsub.f32 -1.6120857, %v3125_v15 }
 0x45b   : > { %v12795_v44 = vsub.f32 %v5978_v46, %v6234_v53  ;;  %v4140_v53 = vmul.f32 1.442695, %v3891_v40  ;;  %v3509_v62 = vsub.f32 4.387914, %v3381_v18  ;;  %v12810_v21 = vmax.f32 %v3247_v57, %v3503_v49  ;;  %2774 = vmatprep.subr.mxu0 %v12804_v39 }
 0x45c   : > { %16645 = vst [vmem:[#allocation131_spill] sm:$0xff] %v12807_v45  ;;  %v3759_v1 = vmin.f32 %v3247_v57, %v3503_v49  ;;  %v15642_v48 = vsub.f32 4.387914, %v12791_v31  ;;  %v3124_v58 = vmul.f32 0.5, %v2996_v35  ;;  %v3380_v11 = vmul.f32 81377.4, %v2996_v35 }
 0x45d   : > { %16644 = vst [vmem:[#allocation104_spill] sm:$0xff] %v12795_v44  ;;  %16646 = vst [vmem:[#allocation128_spill] sm:$0xff] %v12810_v21  ;;  %7832 = vpow2.f32 %v1233_v6  ;;  %v12816_v2 = vmul.f32 81377.4, %v2998_v34  ;;  %v12819_v15 = vmul.f32 0.5, %v6121_v63  ;;  %v2188_v40 = vmul.f32 -0.5, %v12777_v36 }
 0x45e   : > { %v12814_v46 = vpop.eup %7824  ;;  %7834 = vlog2.f32 %v12084_v25  ;;  %v12823_v18 = vadd.f32 %v6447_v42, %v12726_v54  ;;  %v4138_v52 = vmul.f32 1.442695, %v3890_v29  ;;  %v6105_v37 = vmul.f32 %v12763_v59, %v12763_v59  ;;  %v802_v49 = vld [vmem:[%s9023_s13 + $0x308] sm:$0xff] }
 0x45f   : > { %16647 = vst [vmem:[#allocation89_spill] sm:$0xff] %v12816_v2  ;;  %7836 = vpow2.f32 %v4140_v53  ;;  %v12829_v23 = vmax.f32 %v3253_v19, %v3509_v62  ;;  %v3765_v34 = vmin.f32 %v3253_v19, %v3509_v62  ;;  %v3887_v25 = vsub.f32 %v3759_v1, %v12810_v21 }
 0x460   : > { %v12836_v35 = vmin.f32 %v15641_v10, %v15642_v48  ;;  %v3252_v54 = vsub.f32 -1.6120857, %v3124_v58  ;;  %v3508_v6 = vsub.f32 4.387914, %v3380_v11  ;;  %v2212_v42 = vadd.f32 1.0, %v12814_v46 }
 0x461   : > { %16648 = vst [vmem:[#allocation85_spill] sm:$0xff] %v12829_v23  ;;  %v7827_v63 = vpop.eup %7826  ;;  %7838 = vlog2.f32 %v12031_v22  ;;  %v6100_v59 = vmul.f32 %v12772_v26, %v12772_v26  ;;  %v2189_v29 = vadd.f32 1.0, %v2188_v40  ;;  %v1223_v19 = vmul.f32 1.442695, %v802_v49  ;;  %v801_v49 = vld [vmem:[%s9023_s13 + $0x300] sm:$0xff] }
 0x462   : > { %16649 = vst [vmem:[#allocation101_spill] sm:$0xff] %v12836_v35  ;;  %7840 = vpow2.f32 %v4138_v52  ;;  %v5828_v53 = vmul.f32 0.6931472, %v7827_v63  ;;  %v6233_v62 = vmul.f32 0.5, %v6105_v37  ;;  %v2191_v1 = vand.u32 2147483647, %v12777_v36 }
 0x463   : > { %v3893_v58 = vsub.f32 %v3765_v34, %v12829_v23  ;;  %v4132_v11 = vmul.f32 1.442695, %v3887_v25  ;;  %7842 = vlog2.f32 %v2212_v42  ;;  %v12845_v57 = vmax.f32 %v3252_v54, %v3508_v6 }
 0x464   : > { %v7829_v48 = vpop.eup %7828  ;;  %v3764_v22 = vmin.f32 %v3252_v54, %v3508_v6  ;;  %v2990_v26 = vmul.f32 %v12439_v38, %v12439_v38  ;;  %v5977_v40 = vsub.f32 -0.9189385, %v5828_v53  ;;  %v6228_v63 = vmul.f32 0.5, %v6100_v59 }
 0x465   : > { %16650 = vst [vmem:[#allocation91_spill] sm:$0xff] %v12845_v57  ;;  %v5818_v52 = vmul.f32 0.6931472, %v7829_v48  ;;  %v2190_v37 = vmul.f32 %v12777_v36, %v2189_v29  ;;  %7844 = vpow2.f32 %v1223_v19  ;;  %v12854_v34 = vunpack.c.l.bf16 %v12766_v51 }
 0x466   : > { %v12851_v10 = vsub.f32 %v5977_v40, %v6233_v62  ;;  %vm2192_vm5 = vcmp.lt.f32.partialorder %v2191_v1, 0.0004427343  ;;  %v2215_v25 = vmul.f32 -0.5, %v12814_v46  ;;  %7846 = vpow2.f32 %v4132_v11  ;;  %v677_v62 = vld [vmem:[%s9016_s28 + $0x320] sm:$0xff] }
 0x467   : > { %v7831_v30 = vpop.eup %7830  ;;  %v5972_v54 = vsub.f32 -0.9189385, %v5818_v52  ;;  %v1221_v6 = vmul.f32 1.442695, %v801_v49  ;;  %v16652_v48 = vsub.f32 4.387914, %v12816_v2  ;;  %v12865_v59 = vmul.f32 %v11963_v55, %v11963_v55 }
 0x468   : > { %16651 = vst [vmem:[#allocation74_spill] sm:$0xff] %v12851_v10  ;;  %v2187_v38 = vmul.f32 0.6931472, %v7831_v30  ;;  %v16653_v42 = vsub.f32 -1.6120857, %v12807_v45  ;;  %v3000_v51 = vmul.f32 %v12007_v24, %v12007_v24  ;;  %7848 = vlog2.f32 %v11975_v50  ;;  %v804_v52 = vld [vmem:[%s9023_s13 + $0x318] sm:$0xff] }
 0x469   : > { %16655 = vst [vmem:[#allocation81_spill] sm:$0xff] %v12865_v59  ;;  %v4144_v30 = vmul.f32 1.442695, %v3893_v58  ;;  %v3892_v19 = vsub.f32 %v3764_v22, %v12845_v57  ;;  %v12873_v53 = vsub.f32 %v5972_v54, %v6228_v63  ;;  %v3118_v40 = vmul.f32 0.5, %v2990_v26  ;;  %v884_v57 = vld [vmem:[%s9026_s3 + $0x198] sm:$0xff] }
 0x46a   : > { %v12861_v36 = vmin.f32 %v16653_v42, %v16652_v48  ;;  %v12870_v29 = vpop.eup %7832  ;;  %v2193_v1 = vsel %vm2192_vm5, %v2190_v37, %v2187_v38  ;;  %v2993_v55 = vmul.f32 %v12445_v32, %v12445_v32  ;;  %7850 = vpow2.f32 %v1221_v6  ;;  %v803_v38 = vld [vmem:[%s9023_s13 + $0x310] sm:$0xff] }
 0x46b   : > { %16656 = vst [vmem:[#allocation77_spill] sm:$0xff] %v12873_v53  ;;  %v7835_v11 = vpop.eup %7834  ;;  %v2548_v24 = vmul.f32 %v2193_v1, %v12854_v34  ;;  %v3374_v50 = vmul.f32 81377.4, %v2990_v26  ;;  %7852 = vlog2.f32 %v2193_v1  ;;  %v2216_v49 = vadd.f32 1.0, %v2215_v25 }
 0x46c   : > { %16654 = vst [vmem:[#allocation65_spill] sm:$0xff] %v12861_v36  ;;  %v2203_v58 = vadd.f32 1.0, %v12870_v29  ;;  %v12881_v22 = vpop.eup %7836  ;;  %v12883_v63 = vmul.f32 0.5, %v3000_v51  ;;  %v12885_v37 = vmul.f32 81377.4, %v3000_v51 }
 0x46d   : > { %16657 = vst [vmem:[#allocation47_spill] sm:$0xff] %v12881_v22  ;;  %v12887_v54 = vadd.f32 %v2548_v24, %v677_v62  ;;  %v2218_v32 = vand.u32 2147483647, %v12814_v46  ;;  %v5246_v6 = vmul.f32 -0.5, %v12881_v22  ;;  %v4142_v26 = vmul.f32 1.442695, %v3892_v19 }
 0x46e   : > { %16658 = vst [vmem:[#allocation46_spill] sm:$0xff] %v12883_v63  ;;  %16659 = vst [vmem:[#allocation62_spill] sm:$0xff] %v12885_v37  ;;  %v12892_v48 = vmul.f32 0.6931472, %v7835_v11  ;;  %7854 = vlog2.f32 %v2203_v58  ;;  %v7839_v25 = vpop.eup %7838  ;;  %v3246_v42 = vsub.f32 -1.6120857, %v3118_v40  ;;  %v2217_v20 = vmul.f32 %v12814_v46, %v2216_v49 }
 0x46f   : > { %7856 = vpow2.f32 %v4144_v30  ;;  %v3377_v1 = vmul.f32 81377.4, %v2993_v55  ;;  %2775 = vmatpush2.xpose.msra.mxu0 %v12887_v54  ;;  %v1227_v51 = vmul.f32 1.442695, %v804_v52  ;;  %v12895_v23 = vpop.eup %7840  ;;  %v3502_v62 = vsub.f32 4.387914, %v3374_v50 }
 0x470   : > { %16660 = vst [vmem:[#allocation54_spill] sm:$0xff] %v12895_v23  ;;  %v3121_v24 = vmul.f32 0.5, %v2993_v55  ;;  %v1225_v21 = vmul.f32 1.442695, %v803_v38  ;;  %v7843_v35 = vpop.eup %7842  ;;  %v2992_v19 = vmul.f32 %v12477_v56, %v12477_v56  ;;  %v12901_v11 = vunpack.c.h.bf16 %v884_v57  ;;  %v680_v40 = vld [vmem:[%s9016_s28 + $0x338] sm:$0xff]  ;;  %v881_v63 = vld [vmem:[%s9026_s3 + $0x180] sm:$0xff] }
 0x471   : > { %vm2219_vm7 = vcmp.lt.f32.partialorder %v2218_v32, 0.0004427343  ;;  %7858 = vpow2.f32 %v1227_v51  ;;  %v12903_v30 = vmul.f32 0.6931472, %v7839_v25  ;;  %v2214_v58 = vmul.f32 0.6931472, %v7843_v35 }
 0x472   : > { %7860 = vpow2.f32 %v1225_v21  ;;  %v12906_v55 = vpop.eup %7844  ;;  %v5243_v46 = vadd.f32 1.0, %v12881_v22  ;;  %v5247_v50 = vadd.f32 1.0, %v5246_v6  ;;  %v2206_v49 = vmul.f32 -0.5, %v12870_v29 }
 0x473   : > { %7862 = vpow2.f32 %v4142_v26  ;;  %v3249_v52 = vsub.f32 -1.6120857, %v3121_v24  ;;  %v2220_v32 = vsel %vm2219_vm7, %v2217_v20, %v2214_v58  ;;  %v2158_v38 = vadd.f32 1.0, %v12906_v55  ;;  %v12912_v25 = vpop.eup %7846 }
 0x474   : > { %16661 = vst [vmem:[#allocation40_spill] sm:$0xff] %v12912_v25  ;;  %v12914_v51 = vmax.f32 %v3246_v42, %v3502_v62  ;;  %v3505_v35 = vsub.f32 4.387914, %v3377_v1  ;;  %v3120_v21 = vmul.f32 0.5, %v2992_v19  ;;  %v2551_v36 = vmul.f32 %v2220_v32, %v12901_v11 }
 0x475   : > { %v12918_v9 = vpop.eup %7848  ;;  %v3758_v6 = vmin.f32 %v3246_v42, %v3502_v62  ;;  %v3376_v26 = vmul.f32 81377.4, %v2992_v19  ;;  %v6099_v56 = vmul.f32 %v12854_v34, %v12854_v34  ;;  %7864 = vlog2.f32 %v2220_v32 }
 0x476   : > { %16662 = vst [vmem:[#allocation37_spill] sm:$0xff] %v12914_v51  ;;  %16663 = vst [vmem:[#allocation45_spill] sm:$0xff] %v12918_v9  ;;  %7866 = vlog2.f32 %v5243_v46  ;;  %v12923_v20 = vmul.f32 %v12881_v22, %v5247_v50  ;;  %v5234_v24 = vadd.f32 1.0, %v12895_v23  ;;  %v2207_v58 = vadd.f32 1.0, %v2206_v49 }
 0x477   : > { %v12926_v1 = vpop.eup %7850  ;;  %v5207_v31 = vadd.f32 1.0, %v12912_v25  ;;  %v12929_v45 = vadd.f32 %v2551_v36, %v680_v40  ;;  %v2209_v42 = vand.u32 2147483647, %v12870_v29  ;;  %7868 = vlog2.f32 %v2158_v38 }
 0x478   : > { %16664 = vst [vmem:[#allocation43_spill] sm:$0xff] %v12923_v20  ;;  %v7853_v62 = vpop.eup %7852  ;;  %v5237_v34 = vmul.f32 -0.5, %v12895_v23  ;;  %v12933_v19 = vmax.f32 %v3249_v52, %v3505_v35  ;;  %v3761_v46 = vmin.f32 %v3249_v52, %v3505_v35  ;;  %v3248_v50 = vsub.f32 -1.6120857, %v3120_v21 }
 0x479   : > { %v3886_v32 = vsub.f32 %v3758_v6, %v12914_v51  ;;  %v3504_v20 = vsub.f32 4.387914, %v3376_v26  ;;  %v5816_v49 = vmul.f32 0.6931472, %v7853_v62  ;;  %v6227_v22 = vmul.f32 0.5, %v6099_v56  ;;  %2845 = vmatprep.subr.mxu1 %v12929_v45  ;;  %v679_v62 = vld [vmem:[%s9016_s28 + $0x330] sm:$0xff] }
 0x47a   : > { %16665 = vst [vmem:[#allocation75_spill] sm:$0xff] %v12933_v19  ;;  %7870 = vlog2.f32 %v5234_v24  ;;  %v2987_v36 = vmul.f32 %v12508_v8, %v12508_v8  ;;  %v2208_v40 = vmul.f32 %v12870_v29, %v2207_v58  ;;  %v2149_v38 = vadd.f32 1.0, %v12926_v1 }
 0x47b   : > { %v7855_v2 = vpop.eup %7854  ;;  %7872 = vlog2.f32 %v5207_v31  ;;  %v5971_v52 = vsub.f32 -0.9189385, %v5816_v49  ;;  %v12943_v35 = vunpack.c.l.bf16 %v884_v57  ;;  %vm2210_vm0 = vcmp.lt.f32.partialorder %v2209_v42, 0.0004427343 }
 0x47c   : > { %v12941_v37 = vpop.eup %7856  ;;  %v2986_v56 = vmul.f32 %v12525_v28, %v12525_v28  ;;  %v2205_v21 = vmul.f32 0.6931472, %v7855_v2  ;;  %v2161_v6 = vmul.f32 -0.5, %v12906_v55  ;;  %7874 = vlog2.f32 %v2149_v38 }
 0x47d   : > { %16666 = vst [vmem:[#allocation35_spill] sm:$0xff] %v12941_v37  ;;  %v4130_v29 = vmul.f32 1.442695, %v3886_v32  ;;  %v3889_v26 = vsub.f32 %v3761_v46, %v12933_v19  ;;  %v12951_v24 = vmax.f32 %v3248_v50, %v3504_v20  ;;  %v12953_v31 = vsub.f32 %v5971_v52, %v6227_v22 }
 0x47e   : > { %v12948_v8 = vpop.eup %7858  ;;  %v3115_v57 = vmul.f32 0.5, %v2987_v36  ;;  %v3371_v42 = vmul.f32 81377.4, %v2987_v36  ;;  %v2211_v49 = vsel %vm2210_vm0, %v2208_v40, %v2205_v21  ;;  %v12961_v38 = vmin.f32 %v3248_v50, %v3504_v20 }
 0x47f   : > { %16667 = vst [vmem:[#allocation232_spill] sm:$0xff] %v12951_v24  ;;  %16668 = vst [vmem:[#allocation215_spill] sm:$0xff] %v12953_v31  ;;  %v12955_v58 = vpop.eup %7860  ;;  %v2176_v28 = vadd.f32 1.0, %v12948_v8  ;;  %v6102_v32 = vmul.f32 %v12901_v11, %v12901_v11  ;;  %v2550_v46 = vmul.f32 %v2211_v49, %v12943_v35  ;;  %7876 = vlog2.f32 %v2211_v49 }
 0x480   : > { %v12959_v2 = vpop.eup %7862  ;;  %v3114_v22 = vmul.f32 0.5, %v2986_v56  ;;  %v3370_v52 = vmul.f32 81377.4, %v2986_v56  ;;  %v2162_v19 = vadd.f32 1.0, %v2161_v6  ;;  %v2164_v36 = vand.u32 2147483647, %v12906_v55 }
 0x481   : > { %16669 = vst [vmem:[#allocation36_spill] sm:$0xff] %v12959_v2  ;;  %7878 = vlog2.f32 %v2176_v28  ;;  %v12966_v51 = vadd.f32 %v2550_v46, %v679_v62  ;;  %v2152_v40 = vmul.f32 -0.5, %v12926_v1  ;;  %v2167_v21 = vadd.f32 1.0, %v12955_v58 }
 0x482   : > { %v7865_v20 = vpop.eup %7864  ;;  %v12971_v50 = vadd.f32 1.0, %v5237_v34  ;;  %7880 = vpow2.f32 %v4130_v29  ;;  %v3243_v11 = vsub.f32 -1.6120857, %v3115_v57  ;;  %v3499_v49 = vsub.f32 4.387914, %v3371_v42  ;;  %v798_v57 = vld [vmem:[%s9023_s13 + $0x2e8] sm:$0xff] }
 0x483   : > { %v12973_v37 = vpop.eup %7866  ;;  %v12975_v56 = vmul.f32 1.442695, %v3889_v26  ;;  %v5822_v6 = vmul.f32 0.6931472, %v7865_v20  ;;  %v6230_v62 = vmul.f32 0.5, %v6102_v32  ;;  %2846 = vmatpush2.xpose.msra.mxu1 %v12966_v51  ;;  %7882 = vlog2.f32 %v2167_v21 }
 0x484   : > { %v7869_v28 = vpop.eup %7868  ;;  %v3242_v2 = vsub.f32 -1.6120857, %v3114_v22  ;;  %v3498_v34 = vsub.f32 4.387914, %v3370_v52  ;;  %v2163_v29 = vmul.f32 %v12906_v55, %v2162_v19  ;;  %vm2165_vm3 = vcmp.lt.f32.partialorder %v2164_v36, 0.0004427343 }
 0x485   : > { %v5974_v42 = vsub.f32 -0.9189385, %v5822_v6  ;;  %v2153_v59 = vadd.f32 1.0, %v2152_v40  ;;  %v2179_v26 = vmul.f32 -0.5, %v12948_v8  ;;  %v12984_v20 = vmax.f32 %v3243_v11, %v3499_v49 }
 0x486   : > { %v12986_v32 = vunpack.c.h.bf16 %v881_v63  ;;  %v2160_v21 = vmul.f32 0.6931472, %v7869_v28  ;;  %v2155_v44 = vand.u32 2147483647, %v12926_v1  ;;  %v12991_v22 = vmin.f32 %v3243_v11, %v3499_v49  ;;  %v674_v49 = vld [vmem:[%s9016_s28 + $0x308] sm:$0xff] }
 0x487   : > { %16670 = vst [vmem:[#allocation230_spill] sm:$0xff] %v12984_v20  ;;  %v12989_v46 = vpop.eup %7870  ;;  %v2989_v55 = vmul.f32 %v12541_v4, %v12541_v4  ;;  %v12995_v19 = vsub.f32 %v5974_v42, %v6230_v62  ;;  %v2170_v52 = vmul.f32 -0.5, %v12955_v58  ;;  %v13000_v40 = vmax.f32 %v3242_v2, %v3498_v34 }
 0x488   : > { %v12998_v36 = vpop.eup %7872  ;;  %v13002_v6 = vmin.f32 %v3242_v2, %v3498_v34  ;;  %v2166_v28 = vsel %vm2165_vm3, %v2163_v29, %v2160_v21  ;;  %v1215_v10 = vmul.f32 1.442695, %v798_v57  ;;  %v6101_v11 = vmul.f32 %v12943_v35, %v12943_v35 }
 0x489   : > { %16671 = vst [vmem:[#allocation213_spill] sm:$0xff] %v12995_v19  ;;  %16672 = vst [vmem:[#allocation231_spill] sm:$0xff] %v13000_v40  ;;  %v7875_v60 = vpop.eup %7874  ;;  %v13007_v53 = vunpack.c.l.bf16 %v881_v63  ;;  %v2154_v4 = vmul.f32 %v12926_v1, %v2153_v59  ;;  %v2180_v62 = vadd.f32 1.0, %v2179_v26  ;;  %v2545_v42 = vmul.f32 %v2166_v28, %v12986_v32 }
 0x48a   : > { %7884 = vlog2.f32 %v2166_v28  ;;  %vm13011_vm8 = vcmp.lt.f32.partialorder %v2155_v44, 0.0004427343  ;;  %v2182_v34 = vand.u32 2147483647, %v12948_v8  ;;  %v3117_v29 = vmul.f32 0.5, %v2989_v55  ;;  %v797_v44 = vld [vmem:[%s9023_s13 + $0x2e0] sm:$0xff] }
 0x48b   : > { %v3373_v35 = vmul.f32 81377.4, %v2989_v55  ;;  %v2151_v57 = vmul.f32 0.6931472, %v7875_v60  ;;  %v2171_v63 = vadd.f32 1.0, %v2170_v52  ;;  %v2988_v59 = vmul.f32 %v12566_v27, %v12566_v27  ;;  %v882_v55 = vld [vmem:[%s9026_s3 + $0x188] sm:$0xff] }
 0x48c   : > { %v7877_v21 = vpop.eup %7876  ;;  %v13018_v1 = vadd.f32 %v2545_v42, %v674_v49  ;;  %v2173_v26 = vand.u32 2147483647, %v12955_v58  ;;  %7886 = vpow2.f32 %v1215_v10  ;;  %v6229_v31 = vmul.f32 0.5, %v6101_v11 }
 0x48d   : > { %v5820_v19 = vmul.f32 0.6931472, %v7877_v21  ;;  %v2157_v9 = vsel %vm13011_vm8, %v2154_v4, %v2151_v57  ;;  %v2181_v60 = vmul.f32 %v12948_v8, %v2180_v62  ;;  %v13029_v52 = vunpack.c.h.bf16 %v882_v55 }
 0x48e   : > { %v7879_v28 = vpop.eup %7878  ;;  %2776 = vmatprep.subr.mxu0 %v13018_v1  ;;  %v2544_v27 = vmul.f32 %v2157_v9, %v13007_v53  ;;  %7888 = vlog2.f32 %v2157_v9  ;;  %vm2183_vm2 = vcmp.lt.f32.partialorder %v2182_v34, 0.0004427343  ;;  %v2172_v42 = vmul.f32 %v12955_v58, %v2171_v63 }
 0x48f   : > { %v13031_v10 = vpop.eup %7880  ;;  %v5973_v49 = vsub.f32 -0.9189385, %v5820_v19  ;;  %v2178_v11 = vmul.f32 0.6931472, %v7879_v28  ;;  %v1213_v2 = vmul.f32 1.442695, %v797_v44  ;;  %v13041_v58 = vunpack.c.l.bf16 %v882_v55 }
 0x490   : > { %16675 = vst [vmem:[#allocation242_spill] sm:$0xff] %v13031_v10  ;;  %v7883_v4 = vpop.eup %7882  ;;  %v3245_v57 = vsub.f32 -1.6120857, %v3117_v29  ;;  %v3501_v21 = vsub.f32 4.387914, %v3373_v35  ;;  %v13034_v8 = vadd.f32 %v2544_v27, %v673_v17  ;;  %v3116_v62 = vmul.f32 0.5, %v2988_v59 }
 0x491   : > { %vm2174_vm4 = vcmp.lt.f32.partialorder %v2173_v26, 0.0004427343  ;;  %v13036_v0 = vsub.f32 %v5973_v49, %v6229_v31  ;;  %v2184_v9 = vsel %vm2183_vm2, %v2181_v60, %v2178_v11  ;;  %v2169_v7 = vmul.f32 0.6931472, %v7883_v4 }
 0x492   : > { %v3372_v34 = vmul.f32 81377.4, %v2988_v59  ;;  %2777 = vmatpush2.xpose.msra.mxu0 %v13034_v8  ;;  %v2547_v19 = vmul.f32 %v2184_v9, %v13029_v52  ;;  %7890 = vpow2.f32 %v1213_v2  ;;  %v2983_v17 = vmul.f32 %v12577_v3, %v12577_v3 }
 0x493   : > { %16676 = vst [vmem:[#allocation244_spill] sm:$0xff] %v13036_v0  ;;  %v6096_v29 = vmul.f32 %v12986_v32, %v12986_v32  ;;  %7892 = vlog2.f32 %v2184_v9  ;;  %v2175_v31 = vsel %vm2174_vm4, %v2172_v42, %v2169_v7  ;;  %v13049_v35 = vmul.f32 %v12895_v23, %v12971_v50  ;;  %v675_v50 = vld [vmem:[%s9016_s28 + $0x310] sm:$0xff]  ;;  %v880_v23 = vld [vmem:[%s9026_s3 + $0x178] sm:$0xff] }
 0x494   : > { %7894 = vpow2.f32 %v12975_v56  ;;  %v16678_v59 = vsub.f32 %v12961_v38, %v12951_v24  ;;  %v3883_v3 = vsub.f32 %v12991_v22, %v12984_v20  ;;  %v3882_v32 = vsub.f32 %v13002_v6, %v13000_v40  ;;  %v879_v20 = vld [vmem:[%s9026_s3 + $0x170] sm:$0xff] }
 0x495   : > { %16677 = vst [vmem:[#allocation97_spill] sm:$0xff] %v13049_v35  ;;  %v2982_v7 = vmul.f32 %v12606_v5, %v12606_v5  ;;  %v13062_v44 = vadd.f32 %v2547_v19, %v676_v12  ;;  %v13065_v28 = vmax.f32 %v3245_v57, %v3501_v21  ;;  %v3757_v55 = vmin.f32 %v3245_v57, %v3501_v21 }
 0x496   : > { %v4134_v26 = vmul.f32 1.442695, %v16678_v59  ;;  %v3244_v56 = vsub.f32 -1.6120857, %v3116_v62  ;;  %v2546_v60 = vmul.f32 %v2175_v31, %v13041_v58  ;;  %v3500_v27 = vsub.f32 4.387914, %v3372_v34 }
 0x497   : > { %16679 = vst [vmem:[#allocation235_spill] sm:$0xff] %v13065_v28  ;;  %v7885_v38 = vpop.eup %7884  ;;  %v3111_v49 = vmul.f32 0.5, %v2983_v17  ;;  %v3367_v11 = vmul.f32 81377.4, %v2983_v17  ;;  %v6224_v22 = vmul.f32 0.5, %v6096_v29  ;;  %2847 = vmatprep.subr.mxu1 %v13062_v44  ;;  %v6095_v5 = vmul.f32 %v13007_v53, %v13007_v53 }
 0x498   : > { %v5810_v6 = vmul.f32 0.6931472, %v7885_v38  ;;  %v13071_v12 = vadd.f32 %v2546_v60, %v675_v50  ;;  %7896 = vlog2.f32 %v2175_v31  ;;  %v4124_v2 = vmul.f32 1.442695, %v3883_v3 }
 0x499   : > { %v13073_v42 = vpop.eup %7886  ;;  %7898 = vpow2.f32 %v4134_v26  ;;  %v3110_v4 = vmul.f32 0.5, %v2982_v7  ;;  %v3366_v57 = vmul.f32 81377.4, %v2982_v7  ;;  %v4122_v21 = vmul.f32 1.442695, %v3882_v32 }
 0x49a   : > { %v3885_v62 = vsub.f32 %v3757_v55, %v13065_v28  ;;  %v2985_v9 = vmul.f32 %v12640_v13, %v12640_v13  ;;  %v5968_v34 = vsub.f32 -0.9189385, %v5810_v6  ;;  %2848 = vmatpush2.xpose.msra.mxu1 %v13071_v12  ;;  %v13079_v53 = vmax.f32 %v3244_v56, %v3500_v27 }
 0x49b   : > { %v7889_v19 = vpop.eup %7888  ;;  %v3756_v17 = vmin.f32 %v3244_v56, %v3500_v27  ;;  %v3239_v29 = vsub.f32 -1.6120857, %v3111_v49  ;;  %v2122_v31 = vadd.f32 1.0, %v13073_v42  ;;  %v3495_v59 = vsub.f32 4.387914, %v3367_v11  ;;  %v16682_v11 = vld [vmem:[#allocation220_spill] sm:$0xff] }
 0x49c   : > { %16680 = vst [vmem:[#allocation234_spill] sm:$0xff] %v13079_v53  ;;  %v13082_v26 = vsub.f32 %v5968_v34, %v6224_v22  ;;  %v5808_v3 = vmul.f32 0.6931472, %v7889_v19  ;;  %v6223_v32 = vmul.f32 0.5, %v6095_v5  ;;  %v3238_v7 = vsub.f32 -1.6120857, %v3110_v4 }
 0x49d   : > { %v3494_v50 = vsub.f32 4.387914, %v3366_v57  ;;  %v6098_v13 = vmul.f32 %v13029_v52, %v13029_v52  ;;  %7900 = vlog2.f32 %v2122_v31  ;;  %v5210_v55 = vmul.f32 -0.5, %v12912_v25 }
 0x49e   : > { %16681 = vst [vmem:[#allocation260_spill] sm:$0xff] %v13082_v26  ;;  %7902 = vpow2.f32 %v4124_v2  ;;  %v3113_v60 = vmul.f32 0.5, %v2985_v9  ;;  %v5967_v38 = vsub.f32 -0.9189385, %v5808_v3  ;;  %v4128_v27 = vmul.f32 1.442695, %v3885_v62 }
 0x49f   : > { %v13087_v56 = vpop.eup %7890  ;;  %7904 = vpow2.f32 %v4122_v21  ;;  %v3369_v49 = vmul.f32 81377.4, %v2985_v9  ;;  %v2984_v22 = vmul.f32 %v16682_v11, %v16682_v11  ;;  %v3884_v5 = vsub.f32 %v3756_v17, %v13079_v53 }
 0x4a0   : > { %v7893_v6 = vpop.eup %7892  ;;  %v13092_v4 = vmax.f32 %v3239_v29, %v3495_v59  ;;  %v3751_v52 = vmin.f32 %v3239_v29, %v3495_v59  ;;  %v13094_v57 = vsub.f32 %v5967_v38, %v6223_v32  ;;  %v13098_v2 = vmax.f32 %v3238_v7, %v3494_v50 }
 0x4a1   : > { %v13096_v34 = vpop.eup %7894  ;;  %v3750_v19 = vmin.f32 %v3238_v7, %v3494_v50  ;;  %v5814_v21 = vmul.f32 0.6931472, %v7893_v6  ;;  %v6226_v62 = vmul.f32 0.5, %v6098_v13  ;;  %v3241_v9 = vsub.f32 -1.6120857, %v3113_v60  ;;  %v800_v7 = vld [vmem:[%s9023_s13 + $0x2f8] sm:$0xff] }
 0x4a2   : > { %16683 = vst [vmem:[#allocation253_spill] sm:$0xff] %v13092_v4  ;;  %16684 = vst [vmem:[#allocation32_spill] sm:$0xff] %v13094_v57  ;;  %v6097_v31 = vmul.f32 %v13041_v58, %v13041_v58  ;;  %v2125_v3 = vmul.f32 -0.5, %v13073_v42  ;;  %v2113_v17 = vadd.f32 1.0, %v13087_v56  ;;  %7906 = vpow2.f32 %v4128_v27  ;;  %v16688_v58 = vld [vmem:[#allocation188_spill] sm:$0xff] }
 0x4a3   : > { %16685 = vst [vmem:[#allocation246_spill] sm:$0xff] %v13096_v34  ;;  %16686 = vst [vmem:[#allocation259_spill] sm:$0xff] %v13098_v2  ;;  %v3497_v29 = vsub.f32 4.387914, %v3369_v49  ;;  %v3112_v59 = vmul.f32 0.5, %v2984_v22  ;;  %v5211_v11 = vadd.f32 1.0, %v5210_v55  ;;  %v3879_v60 = vsub.f32 %v3751_v52, %v13092_v4 }
 0x4a4   : > { %v5970_v32 = vsub.f32 -0.9189385, %v5814_v21  ;;  %v13105_v38 = vmul.f32 0.6931472, %v12973_v37  ;;  %v3368_v63 = vmul.f32 81377.4, %v2984_v22  ;;  %7908 = vlog2.f32 %v2113_v17 }
 0x4a5   : > { %v7897_v50 = vpop.eup %7896  ;;  %v4126_v13 = vmul.f32 1.442695, %v3884_v5  ;;  %v2979_v6 = vmul.f32 %v16688_v58, %v16688_v58  ;;  %v3878_v49 = vsub.f32 %v3750_v19, %v13098_v2  ;;  %v6225_v21 = vmul.f32 0.5, %v6097_v31 }
 0x4a6   : > { %16687 = vst [vmem:[#allocation248_spill] sm:$0xff] %v13105_v38  ;;  %v13111_v24 = vsub.f32 %v5970_v32, %v6226_v62  ;;  %v13113_v27 = vpop.eup %7898  ;;  %v5812_v37 = vmul.f32 0.6931472, %v7897_v50  ;;  %v2126_v55 = vadd.f32 1.0, %v2125_v3  ;;  %v13116_v22 = vmax.f32 %v3241_v9, %v3497_v29  ;;  %v799_v32 = vld [vmem:[%s9023_s13 + $0x2f0] sm:$0xff] }
 0x4a7   : > { %16690 = vst [vmem:[#allocation251_spill] sm:$0xff] %v13113_v27  ;;  %v3240_v17 = vsub.f32 -1.6120857, %v3112_v59  ;;  %v2128_v5 = vand.u32 2147483647, %v13073_v42  ;;  %v3753_v35 = vmin.f32 %v3241_v9, %v3497_v29  ;;  %v2116_v62 = vmul.f32 -0.5, %v13087_v56 }
 0x4a8   : > { %16689 = vst [vmem:[#allocation31_spill] sm:$0xff] %v13111_v24  ;;  %16691 = vst [vmem:[#allocation237_spill] sm:$0xff] %v13116_v22  ;;  %v1219_v52 = vmul.f32 1.442695, %v800_v7  ;;  %v3496_v38 = vsub.f32 4.387914, %v3368_v63  ;;  %7910 = vpow2.f32 %v4126_v13  ;;  %v2127_v59 = vmul.f32 %v13073_v42, %v2126_v55 }
 0x4a9   : > { %v5969_v58 = vsub.f32 -0.9189385, %v5812_v37  ;;  %v4116_v28 = vmul.f32 1.442695, %v3879_v60  ;;  %v3107_v19 = vmul.f32 0.5, %v2979_v6  ;;  %v794_v7 = vld [vmem:[%s9023_s13 + $0x2c8] sm:$0xff]  ;;  %v13128_v63 = vunpack.c.h.bf16 %v879_v20 }
 0x4aa   : > { %v3363_v50 = vmul.f32 81377.4, %v2979_v6  ;;  %v7901_v31 = vpop.eup %7900  ;;  %v4114_v3 = vmul.f32 1.442695, %v3878_v49  ;;  %7912 = vpow2.f32 %v1219_v52  ;;  %vm2129_vm6 = vcmp.lt.f32.partialorder %v2128_v5, 0.0004427343 }
 0x4ab   : > { %v13121_v53 = vsub.f32 %v5969_v58, %v6225_v21  ;;  %v13126_v40 = vpop.eup %7902  ;;  %v2124_v9 = vmul.f32 0.6931472, %v7901_v31  ;;  %v1217_v29 = vmul.f32 1.442695, %v799_v32  ;;  %v3881_v60 = vsub.f32 %v3753_v35, %v13116_v22  ;;  %v670_v5 = vld [vmem:[%s9016_s28 + $0x2e8] sm:$0xff] }
 0x4ac   : > { %16693 = vst [vmem:[#allocation33_spill] sm:$0xff] %v13126_v40  ;;  %v13130_v13 = vpop.eup %7904  ;;  %v13133_v6 = vmax.f32 %v3240_v17, %v3496_v38  ;;  %v3752_v49 = vmin.f32 %v3240_v17, %v3496_v38  ;;  %v2117_v37 = vadd.f32 1.0, %v2116_v62  ;;  %7914 = vpow2.f32 %v4116_v28  ;;  %v793_v28 = vld [vmem:[%s9023_s13 + $0x2c0] sm:$0xff] }
 0x4ad   : > { %16692 = vst [vmem:[#allocation34_spill] sm:$0xff] %v13121_v53  ;;  %16694 = vst [vmem:[#allocation28_spill] sm:$0xff] %v13130_v13  ;;  %v3235_v42 = vsub.f32 -1.6120857, %v3107_v19  ;;  %v3491_v21 = vsub.f32 4.387914, %v3363_v50  ;;  %7916 = vpow2.f32 %v4114_v3  ;;  %v2130_v58 = vsel %vm2129_vm6, %v2127_v59, %v2124_v9 }
 0x4ae   : > { %16695 = vst [vmem:[#allocation27_spill] sm:$0xff] %v13133_v6  ;;  %v2119_v55 = vand.u32 2147483647, %v13087_v56  ;;  %v13137_v52 = vmul.f32 0.6931472, %v12989_v46  ;;  %v13141_v31 = vmul.f32 %v12912_v25, %v5211_v11  ;;  %v2541_v38 = vmul.f32 %v2130_v58, %v13128_v63 }
 0x4af   : > { %v1207_v32 = vmul.f32 1.442695, %v794_v7  ;;  %7918 = vpow2.f32 %v1217_v29  ;;  %v13146_v17 = vpop.eup %7906  ;;  %v4120_v62 = vmul.f32 1.442695, %v3881_v60  ;;  %v3880_v19 = vsub.f32 %v3752_v49, %v13133_v6  ;;  %v16700_v60 = vld [vmem:[#allocation243_spill] sm:$0xff] }
 0x4b0   : > { %16696 = vst [vmem:[#allocation202_spill] sm:$0xff] %v13137_v52  ;;  %16697 = vst [vmem:[#allocation214_spill] sm:$0xff] %v13141_v31  ;;  %7920 = vlog2.f32 %v2130_v58  ;;  %v2118_v46 = vmul.f32 %v13087_v56, %v2117_v37  ;;  %v13150_v3 = vmax.f32 %v3235_v42, %v3491_v21  ;;  %v3747_v11 = vmin.f32 %v3235_v42, %v3491_v21  ;;  %v796_v42 = vld [vmem:[%s9023_s13 + $0x2d8] sm:$0xff] }
 0x4b1   : > { %16698 = vst [vmem:[#allocation30_spill] sm:$0xff] %v13146_v17  ;;  %v7909_v50 = vpop.eup %7908  ;;  %v13152_v59 = vadd.f32 %v2541_v38, %v670_v5  ;;  %vm2120_vm9 = vcmp.lt.f32.partialorder %v2119_v55, 0.0004427343  ;;  %v13154_v7 = vunpack.c.l.bf16 %v879_v20  ;;  %7922 = vpow2.f32 %v1207_v32  ;;  %v669_v32 = vld [vmem:[%s9016_s28 + $0x2e0] sm:$0xff] }
 0x4b2   : > { %16699 = vst [vmem:[#allocation249_spill] sm:$0xff] %v13150_v3  ;;  %v2115_v9 = vmul.f32 0.6931472, %v7909_v50  ;;  %v1205_v29 = vmul.f32 1.442695, %v793_v28  ;;  %v13158_v49 = vadd.f32 %v16700_v60, %v12739_v33  ;;  %v5198_v56 = vadd.f32 1.0, %v13031_v10 }
 0x4b3   : > { %v13161_v58 = vmul.f32 0.6931472, %v12998_v36  ;;  %v5201_v37 = vmul.f32 -0.5, %v13031_v10  ;;  %2778 = vmatprep.subr.mxu0 %v13152_v59  ;;  %7924 = vpow2.f32 %v4120_v62  ;;  %v4118_v21 = vmul.f32 1.442695, %v3880_v19 }
 0x4b4   : > { %16701 = vst [vmem:[#allocation29_spill] sm:$0xff] %v13158_v49  ;;  %v2121_v55 = vsel %vm2120_vm9, %v2118_v46, %v2115_v9  ;;  %v5225_v5 = vadd.f32 1.0, %v13096_v34  ;;  %v3875_v33 = vsub.f32 %v3747_v11, %v13150_v3  ;;  %v2978_v36 = vmul.f32 %v12692_v41, %v12692_v41 }
 0x4b5   : > { %16702 = vst [vmem:[#allocation247_spill] sm:$0xff] %v13161_v58  ;;  %7926 = vpow2.f32 %v1205_v29  ;;  %v13173_v38 = vpop.eup %7910  ;;  %v5228_v28 = vmul.f32 -0.5, %v13096_v34  ;;  %v2540_v50 = vmul.f32 %v2121_v55, %v13154_v7  ;;  %v1211_v60 = vmul.f32 1.442695, %v796_v42 }
 0x4b6   : > { %16703 = vst [vmem:[#allocation241_spill] sm:$0xff] %v13173_v38  ;;  %7928 = vlog2.f32 %v2121_v55  ;;  %v5202_v19 = vadd.f32 1.0, %v5201_v37  ;;  %v5216_v11 = vadd.f32 1.0, %v13113_v27  ;;  %v5219_v41 = vmul.f32 -0.5, %v13113_v27 }
 0x4b7   : > { %v13177_v62 = vpop.eup %7912  ;;  %7930 = vlog2.f32 %v5198_v56  ;;  %v13182_v9 = vadd.f32 %v2540_v50, %v669_v32  ;;  %v4108_v20 = vmul.f32 1.442695, %v3875_v33  ;;  %v3106_v35 = vmul.f32 0.5, %v2978_v36 }
 0x4b8   : > { %7932 = vpow2.f32 %v4118_v21  ;;  %v2140_v29 = vadd.f32 1.0, %v13177_v62  ;;  %v3362_v52 = vmul.f32 81377.4, %v2978_v36  ;;  %v5171_v56 = vadd.f32 1.0, %v13126_v40 }
 0x4b9   : > { %7934 = vpow2.f32 %v1211_v60  ;;  %v13185_v42 = vpop.eup %7914  ;;  %v5174_v37 = vmul.f32 -0.5, %v13126_v40  ;;  %v6092_v55 = vmul.f32 %v13128_v63, %v13128_v63  ;;  %2779 = vmatpush2.xpose.msra.mxu0 %v13182_v9  ;;  %v13195_v32 = vmul.f32 %v13031_v10, %v5202_v19 }
 0x4ba   : > { %16704 = vst [vmem:[#allocation197_spill] sm:$0xff] %v13185_v42  ;;  %7936 = vlog2.f32 %v5225_v5  ;;  %v13192_v21 = vpop.eup %7916  ;;  %v13197_v33 = vadd.f32 1.0, %v5228_v28  ;;  %v5162_v36 = vadd.f32 1.0, %v13130_v13  ;;  %v13202_v50 = vadd.f32 1.0, %v5219_v41 }
 0x4bb   : > { %16705 = vst [vmem:[#allocation227_spill] sm:$0xff] %v13192_v21  ;;  %16706 = vst [vmem:[#allocation225_spill] sm:$0xff] %v13195_v32  ;;  %7938 = vlog2.f32 %v2140_v29  ;;  %v5189_v63 = vadd.f32 1.0, %v13146_v17  ;;  %v5180_v34 = vadd.f32 1.0, %v13173_v38  ;;  %v3234_v19 = vsub.f32 -1.6120857, %v3106_v35 }
 0x4bc   : > { %16707 = vst [vmem:[#allocation201_spill] sm:$0xff] %v13197_v33  ;;  %v13200_v5 = vpop.eup %7918  ;;  %7940 = vlog2.f32 %v5216_v11  ;;  %16708 = vst [vmem:[#allocation261_spill] sm:$0xff] %v13202_v50  ;;  %v3490_v32 = vsub.f32 4.387914, %v3362_v52  ;;  %v5175_v28 = vadd.f32 1.0, %v5174_v37  ;;  %v6220_v31 = vmul.f32 0.5, %v6092_v55 }
 0x4bd   : > { %v7921_v46 = vpop.eup %7920  ;;  %7942 = vpow2.f32 %v4108_v20  ;;  %v5165_v11 = vmul.f32 -0.5, %v13130_v13  ;;  %v5135_v41 = vadd.f32 1.0, %v13185_v42  ;;  %v2143_v60 = vmul.f32 -0.5, %v13177_v62 }
 0x4be   : > { %7944 = vlog2.f32 %v5171_v56  ;;  %v5802_v33 = vmul.f32 0.6931472, %v7921_v46  ;;  %v13207_v29 = vpop.eup %7922  ;;  %v6091_v20 = vmul.f32 %v13154_v7, %v13154_v7  ;;  %v2131_v52 = vadd.f32 1.0, %v13200_v5 }
 0x4bf   : > { %7946 = vlog2.f32 %v5162_v36  ;;  %v5126_v46 = vadd.f32 1.0, %v13192_v21  ;;  %v13218_v56 = vmax.f32 %v3234_v19, %v3490_v32  ;;  %v3746_v37 = vmin.f32 %v3234_v19, %v3490_v32 }
 0x4c0   : > { %7948 = vlog2.f32 %v5189_v63  ;;  %v5964_v58 = vsub.f32 -0.9189385, %v5802_v33  ;;  %v13215_v35 = vpop.eup %7924  ;;  %v2981_v36 = vmul.f32 %v12734_v47, %v12734_v47  ;;  %v2086_v7 = vadd.f32 1.0, %v13207_v29 }
 0x4c1   : > { %16709 = vst [vmem:[#allocation229_spill] sm:$0xff] %v13215_v35  ;;  %7950 = vlog2.f32 %v5180_v34  ;;  %16710 = vst [vmem:[#allocation228_spill] sm:$0xff] %v13218_v56  ;;  %v13228_v50 = vmul.f32 %v13126_v40, %v5175_v28  ;;  %v2144_v34 = vadd.f32 1.0, %v2143_v60  ;;  %v2146_v27 = vand.u32 2147483647, %v13177_v62 }
 0x4c2   : > { %v13220_v55 = vpop.eup %7926  ;;  %v13224_v63 = vsub.f32 %v5964_v58, %v6220_v31  ;;  %7952 = vlog2.f32 %v2131_v52  ;;  %v6219_v47 = vmul.f32 0.5, %v6091_v20  ;;  %v13236_v58 = vadd.f32 1.0, %v5165_v11 }
 0x4c3   : > { %v7929_v33 = vpop.eup %7928  ;;  %16712 = vst [vmem:[#allocation170_spill] sm:$0xff] %v13228_v50  ;;  %7954 = vlog2.f32 %v5135_v41  ;;  %v5153_v28 = vadd.f32 1.0, %v13215_v35  ;;  %v3874_v41 = vsub.f32 %v3746_v37, %v13218_v56  ;;  %v3109_v60 = vmul.f32 0.5, %v2981_v36 }
 0x4c4   : > { %16711 = vst [vmem:[#allocation252_spill] sm:$0xff] %v13224_v63  ;;  %v13231_v32 = vpop.eup %7930  ;;  %v5800_v22 = vmul.f32 0.6931472, %v7929_v33  ;;  %7956 = vlog2.f32 %v2086_v7  ;;  %16715 = vst [vmem:[#allocation226_spill] sm:$0xff] %v13236_v58  ;;  %v2077_v33 = vadd.f32 1.0, %v13220_v55  ;;  %v13247_v11 = vunpack.c.h.bf16 %v880_v23  ;;  %v672_v58 = vld [vmem:[%s9016_s28 + $0x2f8] sm:$0xff] }
 0x4c5   : > { %16713 = vst [vmem:[#allocation238_spill] sm:$0xff] %v13231_v32  ;;  %v13234_v31 = vpop.eup %7932  ;;  %7958 = vlog2.f32 %v5126_v46  ;;  %v2134_v32 = vmul.f32 -0.5, %v13200_v5  ;;  %v3365_v7 = vmul.f32 81377.4, %v2981_v36  ;;  %v2145_v46 = vmul.f32 %v13177_v62, %v2144_v34  ;;  %v795_v34 = vld [vmem:[%s9023_s13 + $0x2d0] sm:$0xff] }
 0x4c6   : > { %16714 = vst [vmem:[#allocation174_spill] sm:$0xff] %v13234_v31  ;;  %v13240_v52 = vpop.eup %7934  ;;  %v5963_v50 = vsub.f32 -0.9189385, %v5800_v22  ;;  %vm13250_vm12 = vcmp.lt.f32.partialorder %v2146_v27, 0.0004427343  ;;  %v2089_v22 = vmul.f32 -0.5, %v13207_v29  ;;  %7960 = vlog2.f32 %v2077_v33 }
 0x4c7   : > { %v13245_v20 = vpop.eup %7936  ;;  %v2104_v4 = vadd.f32 1.0, %v13240_v52  ;;  %v13261_v36 = vmul.f32 -0.5, %v13185_v42  ;;  %7962 = vlog2.f32 %v5153_v28  ;;  %v5144_v27 = vadd.f32 1.0, %v13234_v31 }
 0x4c8   : > { %16716 = vst [vmem:[#allocation218_spill] sm:$0xff] %v13245_v20  ;;  %v7939_v37 = vpop.eup %7938  ;;  %v13254_v6 = vsub.f32 %v5963_v50, %v6219_v47  ;;  %v4106_v50 = vmul.f32 1.442695, %v3874_v41  ;;  %v3237_v47 = vsub.f32 -1.6120857, %v3109_v60  ;;  %v2135_v25 = vadd.f32 1.0, %v2134_v32 }
 0x4c9   : > { %v13258_v10 = vpop.eup %7940  ;;  %v2142_v62 = vmul.f32 0.6931472, %v7939_v37  ;;  %7964 = vlog2.f32 %v2104_v4  ;;  %v3493_v13 = vsub.f32 4.387914, %v3365_v7  ;;  %v2137_v2 = vand.u32 2147483647, %v13200_v5 }
 0x4ca   : > { %16719 = vst [vmem:[#allocation206_spill] sm:$0xff] %v13254_v6  ;;  %16720 = vst [vmem:[#allocation199_spill] sm:$0xff] %v13258_v10  ;;  %v13265_v20 = vpop.eup %7942  ;;  %v2980_v10 = vmul.f32 %v12784_v61, %v12784_v61  ;;  %v2090_v41 = vadd.f32 1.0, %v2089_v22  ;;  %v1209_v32 = vmul.f32 1.442695, %v795_v34  ;;  %v2080_v22 = vmul.f32 -0.5, %v13220_v55 }
 0x4cb   : > { %v13267_v33 = vpop.eup %7944  ;;  %v2148_v28 = vsel %vm13250_vm12, %v2145_v46, %v2142_v62  ;;  %v5099_v61 = vadd.f32 1.0, %v13265_v20  ;;  %v2092_v7 = vand.u32 2147483647, %v13207_v29  ;;  %v2136_v62 = vmul.f32 %v13200_v5, %v2135_v25  ;;  %v776_v6 = vld [vmem:[%s9023_s13 + $0x238] sm:$0xff] }
 0x4cc   : > { %16721 = vst [vmem:[#allocation224_spill] sm:$0xff] %v13267_v33  ;;  %v13275_v37 = vpop.eup %7946  ;;  %v2543_v17 = vmul.f32 %v2148_v28, %v13247_v11  ;;  %7966 = vlog2.f32 %v2148_v28  ;;  %v13289_v28 = vmax.f32 %v3237_v47, %v3493_v13  ;;  %vm2138_vm1 = vcmp.lt.f32.partialorder %v2137_v2, 0.0004427343 }
 0x4cd   : > { %16722 = vst [vmem:[#allocation217_spill] sm:$0xff] %v13275_v37  ;;  %v13278_v4 = vpop.eup %7948  ;;  %7968 = vlog2.f32 %v5144_v27  ;;  %v13293_v27 = vunpack.c.l.bf16 %v880_v23  ;;  %v2091_v25 = vmul.f32 %v13207_v29, %v2090_v41  ;;  %vm13302_vm13 = vcmp.lt.f32.partialorder %v2092_v7, 0.0004427343  ;;  %v790_v7 = vld [vmem:[%s9023_s13 + $0x2a8] sm:$0xff] }
 0x4ce   : > { %16723 = vst [vmem:[#allocation151_spill] sm:$0xff] %v13278_v4  ;;  %v13283_v19 = vpop.eup %7950  ;;  %7970 = vpow2.f32 %v4106_v50  ;;  %v13285_v46 = vadd.f32 %v2543_v17, %v672_v58  ;;  %16725 = vst [vmem:[#allocation208_spill] sm:$0xff] %v13289_v28  ;;  %v13291_v4 = vmin.f32 %v3237_v47, %v3493_v13  ;;  %v3364_v58 = vmul.f32 81377.4, %v2980_v10  ;;  %v877_v13 = vld [vmem:[%s9026_s3 + $0x160] sm:$0xff]  ;;  %v671_v47 = vld [vmem:[%s9016_s28 + $0x2f0] sm:$0xff] }
 0x4cf   : > { %16724 = vst [vmem:[#allocation180_spill] sm:$0xff] %v13283_v19  ;;  %v7953_v34 = vpop.eup %7952  ;;  %v13297_v19 = vmul.f32 0.5, %v2980_v10  ;;  %7972 = vpow2.f32 %v1209_v32  ;;  %v2107_v23 = vmul.f32 -0.5, %v13240_v52  ;;  %v2081_v41 = vadd.f32 1.0, %v2080_v22 }
 0x4d0   : > { %v13295_v60 = vpop.eup %7954  ;;  %2849 = vmatprep.subr.mxu1 %v13285_v46  ;;  %v2133_v17 = vmul.f32 0.6931472, %v7953_v34  ;;  %7974 = vlog2.f32 %v5099_v61  ;;  %v13310_v34 = vunpack.c.h.bf16 %v877_v13  ;;  %v2975_v32 = vmul.f32 %v12804_v39, %v12804_v39 }
 0x4d1   : > { %16726 = vst [vmem:[#allocation209_spill] sm:$0xff] %v13295_v60  ;;  %v7957_v5 = vpop.eup %7956  ;;  %v2083_v61 = vand.u32 2147483647, %v13220_v55  ;;  %v3236_v38 = vsub.f32 -1.6120857, %v13297_v19  ;;  %v2108_v40 = vadd.f32 1.0, %v2107_v23  ;;  %v13337_v23 = vunpack.c.l.bf16 %v877_v13 }
 0x4d2   : > { %v13307_v2 = vpop.eup %7958  ;;  %v2139_v33 = vsel %vm2138_vm1, %v2136_v62, %v2133_v17  ;;  %v2088_v29 = vmul.f32 0.6931472, %v7957_v5  ;;  %v6094_v62 = vmul.f32 %v13247_v11, %v13247_v11  ;;  %v3492_v5 = vsub.f32 4.387914, %v3364_v58 }
 0x4d3   : > { %16729 = vst [vmem:[#allocation211_spill] sm:$0xff] %v13307_v2  ;;  %v2542_v10 = vmul.f32 %v2139_v33, %v13293_v27  ;;  %7976 = vlog2.f32 %v2139_v33  ;;  %v7961_v17 = vpop.eup %7960  ;;  %v666_v33 = vld [vmem:[%s9016_s28 + $0x2c8] sm:$0xff]  ;;  %v2110_v60 = vand.u32 2147483647, %v13240_v52  ;;  %v2082_v11 = vmul.f32 %v13220_v55, %v2081_v41 }
 0x4d4   : > { %v2094_v22 = vsel %vm13302_vm13, %v2091_v25, %v2088_v29  ;;  %v13328_v3 = vpop.eup %7962  ;;  %v1199_v37 = vmul.f32 1.442695, %v790_v7  ;;  %v13332_v25 = vmul.f32 0.5, %v2975_v32  ;;  %v2974_v58 = vmul.f32 %v12887_v54, %v12887_v54  ;;  %v789_v29 = vld [vmem:[%s9023_s13 + $0x2a0] sm:$0xff]  ;;  %v13347_v7 = vld [vmem:[%s9026_s3 + $0x168] sm:$0xff] }
 0x4d5   : > { %v13324_v39 = vadd.f32 %v2542_v10, %v671_v47  ;;  %16730 = vst [vmem:[#allocation154_spill] sm:$0xff] %v13328_v3  ;;  %v2537_v19 = vmul.f32 %v2094_v22, %v13310_v34  ;;  %7978 = vlog2.f32 %v2094_v22  ;;  %vm13339_vm11 = vcmp.lt.f32.partialorder %v2083_v61, 0.0004427343 }
 0x4d6   : > { %v7965_v50 = vpop.eup %7964  ;;  %v3359_v10 = vmul.f32 81377.4, %v2975_v32  ;;  %v6222_v22 = vmul.f32 0.5, %v6094_v62  ;;  %v2079_v41 = vmul.f32 0.6931472, %v7961_v17  ;;  %v13350_v54 = vunpack.c.h.bf16 %v13347_v7  ;;  %v665_v62 = vld [vmem:[%s9016_s28 + $0x2c0] sm:$0xff] }
 0x4d7   : > { %2850 = vmatpush2.xpose.msra.mxu1 %v13324_v39  ;;  %v13344_v55 = vadd.f32 %v2537_v19, %v666_v33  ;;  %v2106_v2 = vmul.f32 0.6931472, %v7965_v50  ;;  %v2109_v13 = vmul.f32 %v13240_v52, %v2108_v40  ;;  %vm13353_vm10 = vcmp.lt.f32.partialorder %v2110_v60, 0.0004427343 }
 0x4d8   : > { %v2085_v17 = vsel %vm13339_vm11, %v2082_v11, %v2079_v41  ;;  %7980 = vpow2.f32 %v1199_v37  ;;  %v1197_v33 = vmul.f32 1.442695, %v789_v29  ;;  %v3102_v50 = vmul.f32 0.5, %v2974_v58 }
 0x4d9   : > { %v7967_v3 = vpop.eup %7966  ;;  %2780 = vmatprep.subr.mxu0 %v13344_v55  ;;  %v3358_v40 = vmul.f32 81377.4, %v2974_v58  ;;  %v2536_v52 = vmul.f32 %v2085_v17, %v13337_v23  ;;  %7982 = vlog2.f32 %v2085_v17  ;;  %v13366_v60 = vmax.f32 %v3236_v38, %v3492_v5  ;;  %v668_v58 = vld [vmem:[%s9016_s28 + $0x2d8] sm:$0xff] }
 0x4da   : > { %v13357_v56 = vpop.eup %7968  ;;  %v5806_v32 = vmul.f32 0.6931472, %v7967_v3  ;;  %v3231_v3 = vsub.f32 -1.6120857, %v13332_v25  ;;  %v2977_v11 = vmul.f32 %v12929_v45, %v12929_v45  ;;  %v6093_v37 = vmul.f32 %v13293_v27, %v13293_v27 }
 0x4db   : > { %16735 = vst [vmem:[#allocation177_spill] sm:$0xff] %v13357_v56  ;;  %v13363_v19 = vpop.eup %7970  ;;  %16737 = vst [vmem:[#allocation204_spill] sm:$0xff] %v13366_v60  ;;  %v3748_v56 = vmin.f32 %v3236_v38, %v3492_v5  ;;  %v13375_v47 = vadd.f32 %v2536_v52, %v665_v62  ;;  %v2112_v29 = vsel %vm13353_vm10, %v2109_v13, %v2106_v2  ;;  %v3487_v38 = vsub.f32 4.387914, %v3359_v10 }
 0x4dc   : > { %16736 = vst [vmem:[#allocation207_spill] sm:$0xff] %v13363_v19  ;;  %v5966_v49 = vsub.f32 -0.9189385, %v5806_v32  ;;  %v13369_v0 = vpop.eup %7972  ;;  %v2539_v25 = vmul.f32 %v2112_v29, %v13350_v54  ;;  %7984 = vpow2.f32 %v1197_v33  ;;  %v13386_v32 = vadd.f32 1.0, %v13261_v36 }
 0x4dd   : > { %v13380_v41 = vpop.eup %7974  ;;  %v3230_v45 = vsub.f32 -1.6120857, %v3102_v50  ;;  %v3486_v17 = vsub.f32 4.387914, %v3358_v40  ;;  %2781 = vmatpush2.xpose.msra.mxu0 %v13375_v47  ;;  %7986 = vlog2.f32 %v2112_v29  ;;  %v16739_v2 = vsub.f32 %v13291_v4, %v13289_v28 }
 0x4de   : > { %v13382_v5 = vsub.f32 %v5966_v49, %v6222_v22  ;;  %v6088_v49 = vmul.f32 %v13310_v34, %v13310_v34  ;;  %v13394_v10 = vadd.f32 %v2539_v25, %v668_v58  ;;  %v2095_v22 = vadd.f32 1.0, %v13369_v0 }
 0x4df   : > { %v4112_v13 = vmul.f32 1.442695, %v16739_v2  ;;  %v3105_v61 = vmul.f32 0.5, %v2977_v11  ;;  %v3361_v36 = vmul.f32 81377.4, %v2977_v11  ;;  %v6221_v33 = vmul.f32 0.5, %v6093_v37 }
 0x4e0   : > { %16738 = vst [vmem:[#allocation210_spill] sm:$0xff] %v13382_v5  ;;  %v7977_v27 = vpop.eup %7976  ;;  %v5090_v50 = vadd.f32 1.0, %v13363_v19  ;;  %v3876_v40 = vsub.f32 %v3748_v56, %v13366_v60  ;;  %v13399_v52 = vmax.f32 %v3231_v3, %v3487_v38  ;;  %v2976_v4 = vmul.f32 %v12966_v51, %v12966_v51  ;;  %2851 = vmatprep.subr.mxu1 %v13394_v10 }
 0x4e1   : > { %v5804_v62 = vmul.f32 0.6931472, %v7977_v27  ;;  %v3743_v58 = vmin.f32 %v3231_v3, %v3487_v38  ;;  %v13404_v29 = vmax.f32 %v3230_v45, %v3486_v17  ;;  %v2971_v11 = vmul.f32 %v13018_v1, %v13018_v1 }
 0x4e2   : > { %16740 = vst [vmem:[#allocation223_spill] sm:$0xff] %v13399_v52  ;;  %v7979_v34 = vpop.eup %7978  ;;  %v3742_v37 = vmin.f32 %v3230_v45, %v3486_v17  ;;  %v6216_v2 = vmul.f32 0.5, %v6088_v49  ;;  %7988 = vlog2.f32 %v2095_v22  ;;  %v3233_v56 = vsub.f32 -1.6120857, %v3105_v61 }
 0x4e3   : > { %16741 = vst [vmem:[#allocation194_spill] sm:$0xff] %v13404_v29  ;;  %v5965_v25 = vsub.f32 -0.9189385, %v5804_v62  ;;  %v5794_v27 = vmul.f32 0.6931472, %v7979_v34  ;;  %v6087_v51 = vmul.f32 %v13337_v23, %v13337_v23  ;;  %7990 = vpow2.f32 %v4112_v13 }
 0x4e4   : > { %v3489_v28 = vsub.f32 4.387914, %v3361_v36  ;;  %v3104_v24 = vmul.f32 0.5, %v2976_v4  ;;  %v3360_v3 = vmul.f32 81377.4, %v2976_v4  ;;  %7992 = vlog2.f32 %v5090_v50 }
 0x4e5   : > { %v13408_v60 = vsub.f32 %v5965_v25, %v6221_v33  ;;  %v5960_v38 = vsub.f32 -0.9189385, %v5794_v27  ;;  %v13412_v53 = vpop.eup %7980  ;;  %v4110_v1 = vmul.f32 1.442695, %v3876_v40  ;;  %v3871_v45 = vsub.f32 %v3743_v58, %v13399_v52 }
 0x4e6   : > { %v3099_v17 = vmul.f32 0.5, %v2971_v11  ;;  %v7983_v49 = vpop.eup %7982  ;;  %v3355_v22 = vmul.f32 81377.4, %v2971_v11  ;;  %v2970_v61 = vmul.f32 %v13034_v8, %v13034_v8  ;;  %v2098_v23 = vmul.f32 -0.5, %v13369_v0 }
 0x4e7   : > { %16742 = vst [vmem:[#allocation198_spill] sm:$0xff] %v13408_v60  ;;  %v13417_v36 = vsub.f32 %v5960_v38, %v6216_v2  ;;  %v3870_v13 = vsub.f32 %v3742_v37, %v13404_v29  ;;  %v5792_v62 = vmul.f32 0.6931472, %v7983_v49  ;;  %v6215_v33 = vmul.f32 0.5, %v6087_v51 }
 0x4e8   : > { %v6090_v50 = vmul.f32 %v13350_v54, %v13350_v54  ;;  %v13423_v40 = vmax.f32 %v3233_v56, %v3489_v28  ;;  %v3745_v4 = vmin.f32 %v3233_v56, %v3489_v28  ;;  %v3232_v34 = vsub.f32 -1.6120857, %v3104_v24 }
 0x4e9   : > { %16743 = vst [vmem:[#allocation184_spill] sm:$0xff] %v13417_v36  ;;  %v3488_v58 = vsub.f32 4.387914, %v3360_v3  ;;  %v13425_v11 = vpop.eup %7984  ;;  %7994 = vpow2.f32 %v4110_v1  ;;  %v3227_v8 = vsub.f32 -1.6120857, %v3099_v17  ;;  %v2050_v27 = vadd.f32 1.0, %v13412_v53 }
 0x4ea   : > { %16744 = vst [vmem:[#allocation212_spill] sm:$0xff] %v13423_v40  ;;  %v5959_v25 = vsub.f32 -0.9189385, %v5792_v62  ;;  %v7987_v2 = vpop.eup %7986  ;;  %v3483_v38 = vsub.f32 4.387914, %v3355_v22  ;;  %v3098_v37 = vmul.f32 0.5, %v2970_v61  ;;  %v3873_v3 = vsub.f32 %v3745_v4, %v13423_v40 }
 0x4eb   : > { %v3354_v49 = vmul.f32 81377.4, %v2970_v61  ;;  %v2099_v51 = vadd.f32 1.0, %v2098_v23  ;;  %v5798_v54 = vmul.f32 0.6931472, %v7987_v2  ;;  %v6218_v29 = vmul.f32 0.5, %v6090_v50 }
 0x4ec   : > { %v13428_v52 = vsub.f32 %v5959_v25, %v6215_v33  ;;  %v2101_v24 = vand.u32 2147483647, %v13369_v0  ;;  %v4100_v28 = vmul.f32 1.442695, %v3871_v45  ;;  %v4098_v56 = vmul.f32 1.442695, %v3870_v13 }
 0x4ed   : > { %7996 = vlog2.f32 %v2050_v27  ;;  %v13432_v1 = vmax.f32 %v3232_v34, %v3488_v58  ;;  %v3744_v17 = vmin.f32 %v3232_v34, %v3488_v58  ;;  %v5962_v62 = vsub.f32 -0.9189385, %v5798_v54  ;;  %v792_v50 = vld [vmem:[%s9023_s13 + $0x2b8] sm:$0xff] }
 0x4ee   : > { %16745 = vst [vmem:[#allocation190_spill] sm:$0xff] %v13428_v52  ;;  %v2041_v22 = vadd.f32 1.0, %v13425_v11  ;;  %v13435_v61 = vmax.f32 %v3227_v8, %v3483_v38  ;;  %v3739_v23 = vmin.f32 %v3227_v8, %v3483_v38  ;;  %v3226_v33 = vsub.f32 -1.6120857, %v3098_v37  ;;  %v667_v37 = vld [vmem:[%s9016_s28 + $0x2d0] sm:$0xff] }
 0x4ef   : > { %16746 = vst [vmem:[#allocation191_spill] sm:$0xff] %v13432_v1  ;;  %v2100_v25 = vmul.f32 %v13369_v0, %v2099_v51  ;;  %v7989_v2 = vpop.eup %7988  ;;  %v3482_v26 = vsub.f32 4.387914, %v3354_v49  ;;  %v13439_v45 = vsub.f32 %v5962_v62, %v6218_v29  ;;  %v13442_v13 = vunpack.c.l.bf16 %v13347_v7  ;;  %v791_v51 = vld [vmem:[%s9023_s13 + $0x2b0] sm:$0xff] }
 0x4f0   : > { %16747 = vst [vmem:[#allocation187_spill] sm:$0xff] %v13435_v61  ;;  %vm2102_vm15 = vcmp.lt.f32.partialorder %v2101_v24, 0.0004427343  ;;  %v13446_v4 = vmul.f32 %v13185_v42, %v13386_v32  ;;  %v2973_v34 = vmul.f32 %v13062_v44, %v13062_v44  ;;  %v2097_v58 = vmul.f32 0.6931472, %v7989_v2  ;;  %v13450_v0 = vpop.eup %7990 }
 0x4f1   : > { %16748 = vst [vmem:[#allocation200_spill] sm:$0xff] %v13439_v45  ;;  %7998 = vlog2.f32 %v2041_v22  ;;  %16750 = vst [vmem:[#allocation186_spill] sm:$0xff] %v13450_v0  ;;  %v5129_v29 = vmul.f32 -0.5, %v13192_v21  ;;  %v2053_v8 = vmul.f32 -0.5, %v13412_v53  ;;  %v1203_v7 = vmul.f32 1.442695, %v792_v50  ;;  %v13454_v27 = vpop.eup %7992 }
 0x4f2   : > { %16749 = vst [vmem:[#allocation203_spill] sm:$0xff] %v13446_v4  ;;  %8000 = vpow2.f32 %v4100_v28  ;;  %16751 = vst [vmem:[#allocation183_spill] sm:$0xff] %v13454_v27  ;;  %v4104_v38 = vmul.f32 1.442695, %v3873_v3  ;;  %v3872_v32 = vsub.f32 %v3744_v17, %v13432_v1  ;;  %v2103_v49 = vsel %vm2102_vm15, %v2100_v25, %v2097_v58  ;;  %v661_v1 = vld [vmem:[%s9016_s28 + $0x2a0] sm:$0xff] }
 0x4f3   : > { %8002 = vpow2.f32 %v4098_v56  ;;  %v3867_v44 = vsub.f32 %v3739_v23, %v13435_v61  ;;  %v13460_v54 = vmax.f32 %v3226_v33, %v3482_v26  ;;  %v2538_v24 = vmul.f32 %v2103_v49, %v13442_v13  ;;  %v875_v23 = vld [vmem:[%s9026_s3 + $0x150] sm:$0xff] }
 0x4f4   : > { %8004 = vlog2.f32 %v2103_v49  ;;  %v3738_v28 = vmin.f32 %v3226_v33, %v3482_v26  ;;  %v3101_v62 = vmul.f32 0.5, %v2973_v34  ;;  %v3357_v22 = vmul.f32 81377.4, %v2973_v34  ;;  %v786_v33 = vld [vmem:[%s9023_s13 + $0x288] sm:$0xff] }
 0x4f5   : > { %16752 = vst [vmem:[#allocation178_spill] sm:$0xff] %v13460_v54  ;;  %v2972_v56 = vmul.f32 %v13071_v12, %v13071_v12  ;;  %v13465_v3 = vadd.f32 %v2538_v24, %v667_v37  ;;  %v2054_v17 = vadd.f32 1.0, %v2053_v8  ;;  %8006 = vpow2.f32 %v1203_v7 }
 0x4f6   : > { %v1201_v25 = vmul.f32 1.442695, %v791_v51  ;;  %v13467_v50 = vpop.eup %7994  ;;  %8008 = vpow2.f32 %v4104_v38  ;;  %v2056_v2 = vand.u32 2147483647, %v13412_v53  ;;  %v2044_v26 = vmul.f32 -0.5, %v13425_v11 }
 0x4f7   : > { %16753 = vst [vmem:[#allocation189_spill] sm:$0xff] %v13467_v50  ;;  %v13473_v34 = vadd.f32 1.0, %v5129_v29  ;;  %v5102_v12 = vmul.f32 -0.5, %v13265_v20  ;;  %v4102_v58 = vmul.f32 1.442695, %v3872_v32  ;;  %2852 = vmatpush2.xpose.msra.mxu1 %v13465_v3  ;;  %v3866_v7 = vsub.f32 %v3738_v28, %v13460_v54 }
 0x4f8   : > { %8010 = vpow2.f32 %v1201_v25  ;;  %v4092_v8 = vmul.f32 1.442695, %v3867_v44  ;;  %v3229_v37 = vsub.f32 -1.6120857, %v3101_v62  ;;  %v3485_v38 = vsub.f32 4.387914, %v3357_v22 }
 0x4f9   : > { %16754 = vst [vmem:[#allocation195_spill] sm:$0xff] %v13473_v34  ;;  %v3100_v51 = vmul.f32 0.5, %v2972_v56  ;;  %v3356_v24 = vmul.f32 81377.4, %v2972_v56  ;;  %v2055_v4 = vmul.f32 %v13412_v53, %v2054_v17  ;;  %v1191_v29 = vmul.f32 1.442695, %v786_v33 }
 0x4fa   : > { %v7997_v49 = vpop.eup %7996  ;;  %v13480_v42 = vunpack.c.h.bf16 %v875_v23  ;;  %vm2057_vm14 = vcmp.lt.f32.partialorder %v2056_v2, 0.0004427343  ;;  %v2045_v21 = vadd.f32 1.0, %v2044_v26  ;;  %v5103_v25 = vadd.f32 1.0, %v5102_v12  ;;  %v785_v62 = vld [vmem:[%s9023_s13 + $0x280] sm:$0xff] }
 0x4fb   : > { %v2052_v32 = vmul.f32 0.6931472, %v7997_v49  ;;  %v5105_v44 = vand.u32 2147483647, %v13265_v20  ;;  %8012 = vpow2.f32 %v4102_v58  ;;  %v2047_v28 = vand.u32 2147483647, %v13425_v11 }
 0x4fc   : > { %8014 = vpow2.f32 %v4092_v8  ;;  %v4090_v22 = vmul.f32 1.442695, %v3866_v7  ;;  %v13485_v56 = vmax.f32 %v3229_v37, %v3485_v38  ;;  %v3741_v34 = vmin.f32 %v3229_v37, %v3485_v38  ;;  %v662_v49 = vld [vmem:[%s9016_s28 + $0x2a8] sm:$0xff] }
 0x4fd   : > { %v3228_v17 = vsub.f32 -1.6120857, %v3100_v51  ;;  %v6089_v33 = vmul.f32 %v13442_v13, %v13442_v13  ;;  %v2058_v2 = vsel %vm2057_vm14, %v2055_v4, %v2052_v32  ;;  %8016 = vpow2.f32 %v1191_v29 }
 0x4fe   : > { %16755 = vst [vmem:[#allocation141_spill] sm:$0xff] %v13485_v56  ;;  %v7999_v53 = vpop.eup %7998  ;;  %v3484_v12 = vsub.f32 4.387914, %v3356_v24  ;;  %v2533_v58 = vmul.f32 %v2058_v2, %v13480_v42  ;;  %v2046_v40 = vmul.f32 %v13425_v11, %v2045_v21  ;;  %v1189_v8 = vmul.f32 1.442695, %v785_v62 }
 0x4ff   : > { %v13490_v26 = vpop.eup %8000  ;;  %v5093_v37 = vmul.f32 -0.5, %v13363_v19  ;;  %8018 = vlog2.f32 %v2058_v2  ;;  %v13497_v38 = vunpack.c.l.bf16 %v875_v23  ;;  %vm13499_vm5 = vcmp.lt.f32.partialorder %v2047_v28, 0.0004427343 }
 0x500   : > { %v13494_v7 = vpop.eup %8002  ;;  %vm13503_vm7 = vcmp.lt.f32.partialorder %v5105_v44, 0.0004427343  ;;  %v16759_v51 = vmov 0  ;;  %v3869_v21 = vsub.f32 %v3741_v34, %v13485_v56  ;;  %v2967_v11 = vmul.f32 %v13152_v59, %v13152_v59 }
 0x501   : > { %16756 = vst [vmem:[#allocation152_spill] sm:$0xff] %v13494_v7  ;;  %v8005_v4 = vpop.eup %8004  ;;  %v16760_v51 = vsel %vm13503_vm7, 4294967295, %v16759_v51  ;;  %v13510_v24 = vadd.f32 %v2533_v58, %v662_v49  ;;  %v2043_v29 = vmul.f32 0.6931472, %v7999_v53  ;;  %v5117_v23 = vadd.f32 1.0, %v13450_v0 }
 0x502   : > { %16761 = vst [vmem:[#allocation173_spill] sm:$0xff] %v16760_v51  ;;  %8020 = vpow2.f32 %v4090_v22  ;;  %v5796_v32 = vmul.f32 0.6931472, %v8005_v4  ;;  %v6217_v28 = vmul.f32 0.5, %v6089_v33  ;;  %v13513_v62 = vpop.eup %8006  ;;  %v13515_v2 = vmax.f32 %v3228_v17, %v3484_v12 }
 0x503   : > { %v3740_v44 = vmin.f32 %v3228_v17, %v3484_v12  ;;  %2782 = vmatprep.subr.mxu0 %v13510_v24  ;;  %v2049_v34 = vsel %vm13499_vm5, %v2046_v40, %v2043_v29  ;;  %8022 = vpow2.f32 %v1189_v8  ;;  %v13521_v59 = vpop.eup %8008  ;;  %v5108_v53 = vadd.f32 1.0, %v13467_v50 }
 0x504   : > { %16762 = vst [vmem:[#allocation162_spill] sm:$0xff] %v13515_v2  ;;  %16763 = vst [vmem:[#allocation156_spill] sm:$0xff] %v13521_v59  ;;  %v5961_v49 = vsub.f32 -0.9189385, %v5796_v32  ;;  %v2532_v22 = vmul.f32 %v2049_v34, %v13497_v38  ;;  %8024 = vlog2.f32 %v2049_v34  ;;  %v4096_v58 = vmul.f32 1.442695, %v3869_v21 }
 0x505   : > { %v13525_v33 = vpop.eup %8010  ;;  %v3095_v4 = vmul.f32 0.5, %v2967_v11  ;;  %v3351_v17 = vmul.f32 81377.4, %v2967_v11  ;;  %v2068_v12 = vadd.f32 1.0, %v13513_v62  ;;  %v13529_v27 = vmul.f32 %v13265_v20, %v5103_v25 }
 0x506   : > { %8026 = vlog2.f32 %v5117_v23  ;;  %v13531_v40 = vsub.f32 %v5961_v49, %v6217_v28  ;;  %v13533_v8 = vadd.f32 %v2532_v22, %v661_v1  ;;  %v5094_v13 = vadd.f32 1.0, %v5093_v37 }
 0x507   : > { %16764 = vst [vmem:[#allocation175_spill] sm:$0xff] %v13529_v27  ;;  %v5063_v29 = vadd.f32 1.0, %v13490_v26  ;;  %v3868_v32 = vsub.f32 %v3740_v44, %v13515_v2  ;;  %8028 = vlog2.f32 %v2068_v12  ;;  %v13538_v21 = vmul.f32 0.6931472, %v13380_v41 }
 0x508   : > { %16765 = vst [vmem:[#allocation161_spill] sm:$0xff] %v13531_v40  ;;  %8030 = vlog2.f32 %v5108_v53  ;;  %v5054_v11 = vadd.f32 1.0, %v13494_v7  ;;  %2783 = vmatpush2.xpose.msra.mxu0 %v13533_v8  ;;  %v2059_v20 = vadd.f32 1.0, %v13525_v33  ;;  %v13543_v25 = vpop.eup %8012  ;;  %v5081_v1 = vadd.f32 1.0, %v13521_v59 }
 0x509   : > { %16766 = vst [vmem:[#allocation176_spill] sm:$0xff] %v13538_v21  ;;  %16767 = vst [vmem:[#allocation168_spill] sm:$0xff] %v13543_v25  ;;  %8032 = vpow2.f32 %v4096_v58  ;;  %v3223_v37 = vsub.f32 -1.6120857, %v3095_v4  ;;  %v3479_v23 = vsub.f32 4.387914, %v3351_v17  ;;  %v13546_v28 = vpop.eup %8014  ;;  %v6084_v34 = vmul.f32 %v13480_v42, %v13480_v42 }
 0x50a   : > { %16768 = vst [vmem:[#allocation136_spill] sm:$0xff] %v13546_v28  ;;  %v13549_v44 = vmul.f32 -0.5, %v13215_v35  ;;  %v13552_v41 = vmul.f32 -0.5, %v13234_v31  ;;  %8034 = vlog2.f32 %v2059_v20  ;;  %v13556_v53 = vpop.eup %8016  ;;  %v4094_v22 = vmul.f32 1.442695, %v3868_v32 }
 0x50b   : > { %8036 = vlog2.f32 %v5063_v29  ;;  %v2071_v58 = vmul.f32 -0.5, %v13513_v62  ;;  %v13565_v17 = vmul.f32 %v13363_v19, %v5094_v13  ;;  %v5066_v12 = vmul.f32 -0.5, %v13490_v26  ;;  %v873_v19 = vld [vmem:[%s9026_s3 + $0x140] sm:$0xff] }
 0x50c   : > { %16769 = vst [vmem:[#allocation169_spill] sm:$0xff] %v13549_v44  ;;  %16770 = vst [vmem:[#allocation172_spill] sm:$0xff] %v13552_v41  ;;  %8038 = vlog2.f32 %v5054_v11  ;;  %v8019_v42 = vpop.eup %8018  ;;  %v5072_v20 = vadd.f32 1.0, %v13543_v25  ;;  %v13569_v49 = vmax.f32 %v3223_v37, %v3479_v23  ;;  %v3735_v29 = vmin.f32 %v3223_v37, %v3479_v23 }
 0x50d   : > { %16771 = vst [vmem:[#allocation182_spill] sm:$0xff] %v13565_v17  ;;  %8040 = vlog2.f32 %v5081_v1  ;;  %v5786_v32 = vmul.f32 0.6931472, %v8019_v42  ;;  %v6212_v35 = vmul.f32 0.5, %v6084_v34  ;;  %v2062_v44 = vmul.f32 -0.5, %v13525_v33 }
 0x50e   : > { %16772 = vst [vmem:[#allocation179_spill] sm:$0xff] %v13569_v49  ;;  %v2014_v51 = vadd.f32 1.0, %v13556_v53  ;;  %v13576_v13 = vmul.f32 -0.5, %v13450_v0  ;;  %8042 = vpow2.f32 %v4094_v22  ;;  %v6083_v11 = vmul.f32 %v13497_v38, %v13497_v38 }
 0x50f   : > { %v13573_v4 = vpop.eup %8020  ;;  %v2072_v1 = vadd.f32 1.0, %v2071_v58  ;;  %v5027_v37 = vadd.f32 1.0, %v13546_v28  ;;  %v5956_v23 = vsub.f32 -0.9189385, %v5786_v32  ;;  %v2074_v34 = vand.u32 2147483647, %v13513_v62 }
 0x510   : > { %16773 = vst [vmem:[#allocation171_spill] sm:$0xff] %v13573_v4  ;;  %16774 = vst [vmem:[#allocation157_spill] sm:$0xff] %v13576_v13  ;;  %v13580_v21 = vpop.eup %8022  ;;  %8044 = vlog2.f32 %v2014_v51  ;;  %v13585_v27 = vmul.f32 -0.5, %v13467_v50  ;;  %v5067_v31 = vadd.f32 1.0, %v5066_v12  ;;  %v3863_v38 = vsub.f32 %v3735_v29, %v13569_v49  ;;  %v876_v13 = vld [vmem:[%s9026_s3 + $0x158] sm:$0xff] }
 0x511   : > { %v8025_v42 = vpop.eup %8024  ;;  %8046 = vlog2.f32 %v5072_v20  ;;  %v13589_v58 = vsub.f32 %v5956_v23, %v6212_v35  ;;  %v2063_v0 = vadd.f32 1.0, %v2062_v44  ;;  %v6211_v32 = vmul.f32 0.5, %v6083_v11  ;;  %v788_v12 = vld [vmem:[%s9023_s13 + $0x298] sm:$0xff] }
 0x512   : > { %16775 = vst [vmem:[#allocation148_spill] sm:$0xff] %v13585_v27  ;;  %v5784_v41 = vmul.f32 0.6931472, %v8025_v42  ;;  %v2073_v51 = vmul.f32 %v13513_v62, %v2072_v1  ;;  %v2065_v56 = vand.u32 2147483647, %v13525_v33  ;;  %v2005_v50 = vadd.f32 1.0, %v13580_v21 }
 0x513   : > { %16776 = vst [vmem:[#allocation158_spill] sm:$0xff] %v13589_v58  ;;  %v13591_v17 = vpop.eup %8026  ;;  %8048 = vlog2.f32 %v5027_v37  ;;  %v13598_v20 = vunpack.c.h.bf16 %v876_v13  ;;  %vm2075_vm0 = vcmp.lt.f32.partialorder %v2074_v34, 0.0004427343  ;;  %v2017_v35 = vmul.f32 -0.5, %v13556_v53 }
 0x514   : > { %16777 = vst [vmem:[#allocation135_spill] sm:$0xff] %v13591_v17  ;;  %v8029_v27 = vpop.eup %8028  ;;  %v5018_v29 = vadd.f32 1.0, %v13573_v4  ;;  %v2966_v62 = vmul.f32 %v13182_v9, %v13182_v9  ;;  %v5955_v11 = vsub.f32 -0.9189385, %v5784_v41  ;;  %v4084_v42 = vmul.f32 1.442695, %v3863_v38 }
 0x515   : > { %v13601_v44 = vpop.eup %8030  ;;  %v2070_v1 = vmul.f32 0.6931472, %v8029_v27  ;;  %v13608_v37 = vunpack.c.l.bf16 %v876_v13  ;;  %v2064_v22 = vmul.f32 %v13525_v33, %v2063_v0  ;;  %v1195_v34 = vmul.f32 1.442695, %v788_v12  ;;  %v787_v9 = vld [vmem:[%s9023_s13 + $0x290] sm:$0xff] }
 0x516   : > { %16778 = vst [vmem:[#allocation138_spill] sm:$0xff] %v13601_v44  ;;  %v13606_v23 = vpop.eup %8032  ;;  %v13611_v2 = vsub.f32 %v5955_v11, %v6211_v32  ;;  %v664_v44 = vld [vmem:[%s9016_s28 + $0x2b8] sm:$0xff]  ;;  %vm13614_vm3 = vcmp.lt.f32.partialorder %v2065_v56, 0.0004427343  ;;  %8050 = vlog2.f32 %v2005_v50  ;;  %v2018_v38 = vadd.f32 1.0, %v2017_v35  ;;  %v663_v12 = vld [vmem:[%s9016_s28 + $0x2b0] sm:$0xff] }
 0x517   : > { %16779 = vst [vmem:[#allocation114_spill] sm:$0xff] %v13606_v23  ;;  %v8035_v17 = vpop.eup %8034  ;;  %v2076_v61 = vsel %vm2075_vm0, %v2073_v51, %v2070_v1  ;;  %v13623_v33 = vmul.f32 %v13490_v26, %v5067_v31  ;;  %v5045_v56 = vadd.f32 1.0, %v13606_v23  ;;  %v2020_v32 = vand.u32 2147483647, %v13556_v53 }
 0x518   : > { %16780 = vst [vmem:[#allocation159_spill] sm:$0xff] %v13611_v2  ;;  %v8037_v27 = vpop.eup %8036  ;;  %v2535_v41 = vmul.f32 %v2076_v61, %v13598_v20  ;;  %8052 = vlog2.f32 %v2076_v61  ;;  %v2061_v13 = vmul.f32 0.6931472, %v8035_v17  ;;  %v1193_v17 = vmul.f32 1.442695, %v787_v9 }
 0x519   : > { %v13620_v0 = vpop.eup %8038  ;;  %16783 = vst [vmem:[#allocation149_spill] sm:$0xff] %v13623_v33  ;;  %8054 = vlog2.f32 %v5018_v29  ;;  %v3094_v35 = vmul.f32 0.5, %v2966_v62  ;;  %v3350_v11 = vmul.f32 81377.4, %v2966_v62  ;;  %v782_v29 = vld [vmem:[%s9023_s13 + $0x268] sm:$0xff]  ;;  %v2968_v62 = vmul.f32 %v13324_v39, %v13324_v39 }
 0x51a   : > { %v13627_v51 = vpop.eup %8040  ;;  %v13629_v50 = vadd.f32 %v2535_v41, %v664_v44  ;;  %v2067_v61 = vsel %vm13614_vm3, %v2064_v22, %v2061_v13  ;;  %8056 = vpow2.f32 %v1195_v34  ;;  %v13638_v54 = vmul.f32 0.6931472, %v8037_v27 }
 0x51b   : > { %16784 = vst [vmem:[#allocation108_spill] sm:$0xff] %v13627_v51  ;;  %v2534_v31 = vmul.f32 %v2067_v61, %v13608_v37  ;;  %8058 = vlog2.f32 %v2067_v61  ;;  %v13636_v1 = vpop.eup %8042  ;;  %v2969_v44 = vmul.f32 %v13285_v46, %v13285_v46  ;;  %v2019_v22 = vmul.f32 %v13556_v53, %v2018_v38 }
 0x51c   : > { %16785 = vst [vmem:[#allocation145_spill] sm:$0xff] %v13636_v1  ;;  %16786 = vst [vmem:[#allocation167_spill] sm:$0xff] %v13638_v54  ;;  %8060 = vpow2.f32 %v4084_v42  ;;  %2853 = vmatprep.subr.mxu1 %v13629_v50  ;;  %v13649_v41 = vunpack.c.h.bf16 %v873_v19  ;;  %vm2021_vm8 = vcmp.lt.f32.partialorder %v2020_v32, 0.0004427343  ;;  %v2008_v46 = vmul.f32 -0.5, %v13580_v21 }
 0x51d   : > { %v8045_v34 = vpop.eup %8044  ;;  %v13647_v9 = vadd.f32 %v2534_v31, %v663_v12  ;;  %8062 = vpow2.f32 %v1193_v17  ;;  %v1183_v13 = vmul.f32 1.442695, %v782_v29  ;;  %v16788_v61 = vand.u32 2147483647, %v13490_v26 }
 0x51e   : > { %v13651_v27 = vpop.eup %8046  ;;  %v2016_v42 = vmul.f32 0.6931472, %v8045_v34  ;;  %v16789_v53 = vmov 0  ;;  %8064 = vlog2.f32 %v5045_v56  ;;  %v3222_v39 = vsub.f32 -1.6120857, %v3094_v35  ;;  %v658_v34 = vld [vmem:[%s9016_s28 + $0x288] sm:$0xff] }
 0x51f   : > { %16787 = vst [vmem:[#allocation143_spill] sm:$0xff] %v13651_v27  ;;  %vm13656_vm2 = vcmp.lt.f32.partialorder %v16788_v61, 0.0004427343  ;;  %v3478_v38 = vsub.f32 4.387914, %v3350_v11  ;;  %2854 = vmatpush2.xpose.msra.mxu1 %v13647_v9  ;;  %v5036_v32 = vadd.f32 1.0, %v13636_v1  ;;  %v2963_v26 = vmul.f32 %v13344_v55, %v13344_v55 }
 0x520   : > { %v16790_v53 = vsel %vm13656_vm2, 4294967295, %v16789_v53  ;;  %v3097_v12 = vmul.f32 0.5, %v2969_v44  ;;  %v3353_v31 = vmul.f32 81377.4, %v2969_v44  ;;  %v2022_v51 = vsel %vm2021_vm8, %v2019_v22, %v2016_v42  ;;  %v13663_v27 = vpop.eup %8048 }
 0x521   : > { %16791 = vst [vmem:[#allocation155_spill] sm:$0xff] %v16790_v53  ;;  %16792 = vst [vmem:[#allocation153_spill] sm:$0xff] %v13663_v27  ;;  %v3096_v17 = vmul.f32 0.5, %v2968_v62  ;;  %v3352_v29 = vmul.f32 81377.4, %v2968_v62  ;;  %v2529_v61 = vmul.f32 %v2022_v51, %v13649_v41  ;;  %v6086_v35 = vmul.f32 %v13598_v20, %v13598_v20 }
 0x522   : > { %v2009_v11 = vadd.f32 1.0, %v2008_v46  ;;  %8066 = vpow2.f32 %v1183_v13  ;;  %v13674_v44 = vmax.f32 %v3222_v39, %v3478_v38  ;;  %v3734_v22 = vmin.f32 %v3222_v39, %v3478_v38 }
 0x523   : > { %v13676_v42 = vadd.f32 %v2529_v61, %v658_v34  ;;  %v2011_v62 = vand.u32 2147483647, %v13580_v21  ;;  %v8051_v55 = vpop.eup %8050  ;;  %v5057_v27 = vmul.f32 -0.5, %v13494_v7  ;;  %8068 = vlog2.f32 %v5036_v32 }
 0x524   : > { %16793 = vst [vmem:[#allocation166_spill] sm:$0xff] %v13674_v44  ;;  %v3225_v49 = vsub.f32 -1.6120857, %v3097_v12  ;;  %v3481_v1 = vsub.f32 4.387914, %v3353_v31  ;;  %v3091_v33 = vmul.f32 0.5, %v2963_v26  ;;  %v6085_v20 = vmul.f32 %v13608_v37, %v13608_v37 }
 0x525   : > { %v8053_v53 = vpop.eup %8052  ;;  %v3224_v56 = vsub.f32 -1.6120857, %v3096_v17  ;;  %v3480_v54 = vsub.f32 4.387914, %v3352_v29  ;;  %2784 = vmatprep.subr.mxu0 %v13676_v42  ;;  %v6214_v39 = vmul.f32 0.5, %v6086_v35  ;;  %8070 = vlog2.f32 %v2022_v51 }
 0x526   : > { %v13683_v46 = vpop.eup %8054  ;;  %v5790_v13 = vmul.f32 0.6931472, %v8053_v53  ;;  %v2010_v38 = vmul.f32 %v13580_v21, %v2009_v11  ;;  %v3862_v32 = vsub.f32 %v3734_v22, %v13674_v44  ;;  %v3347_v12 = vmul.f32 81377.4, %v2963_v26  ;;  %v657_v26 = vld [vmem:[%s9016_s28 + $0x280] sm:$0xff] }
 0x527   : > { %16794 = vst [vmem:[#allocation102_spill] sm:$0xff] %v13683_v46  ;;  %v13686_v34 = vpop.eup %8056  ;;  %v13689_v31 = vunpack.c.l.bf16 %v873_v19  ;;  %vm2012_vm4 = vcmp.lt.f32.partialorder %v2011_v62, 0.0004427343  ;;  %v13691_v37 = vmax.f32 %v3225_v49, %v3481_v1  ;;  %v3737_v29 = vmin.f32 %v3225_v49, %v3481_v1 }
 0x528   : > { %v8059_v17 = vpop.eup %8058  ;;  %v5958_v61 = vsub.f32 -0.9189385, %v5790_v13  ;;  %v2007_v46 = vmul.f32 0.6931472, %v8051_v55  ;;  %v13695_v51 = vmax.f32 %v3224_v56, %v3480_v54  ;;  %v3736_v21 = vmin.f32 %v3224_v56, %v3480_v54 }
 0x529   : > { %16795 = vst [vmem:[#allocation127_spill] sm:$0xff] %v13691_v37  ;;  %v13693_v53 = vpop.eup %8060  ;;  %v5788_v35 = vmul.f32 0.6931472, %v8059_v17  ;;  %v6213_v11 = vmul.f32 0.5, %v6085_v20  ;;  %v3219_v57 = vsub.f32 -1.6120857, %v3091_v33  ;;  %v2962_v49 = vmul.f32 %v13375_v47, %v13375_v47 }
 0x52a   : > { %16796 = vst [vmem:[#allocation150_spill] sm:$0xff] %v13693_v53  ;;  %16797 = vst [vmem:[#allocation140_spill] sm:$0xff] %v13695_v51  ;;  %v13697_v22 = vsub.f32 %v5958_v61, %v6214_v39  ;;  %v2013_v19 = vsel %vm2012_vm4, %v2010_v38, %v2007_v46  ;;  %v2032_v62 = vadd.f32 1.0, %v13686_v34  ;;  %v13701_v44 = vpop.eup %8062  ;;  %v3475_v5 = vsub.f32 4.387914, %v3347_v12 }
 0x52b   : > { %v5957_v1 = vsub.f32 -0.9189385, %v5788_v35  ;;  %v2528_v55 = vmul.f32 %v2013_v19, %v13689_v31  ;;  %v13706_v13 = vpop.eup %8064  ;;  %v5058_v54 = vadd.f32 1.0, %v5057_v27  ;;  %v5084_v56 = vmul.f32 -0.5, %v13521_v59 }
 0x52c   : > { %16798 = vst [vmem:[#allocation90_spill] sm:$0xff] %v13697_v22  ;;  %16799 = vst [vmem:[#allocation125_spill] sm:$0xff] %v13706_v13  ;;  %8072 = vlog2.f32 %v2013_v19  ;;  %v4082_v20 = vmul.f32 1.442695, %v3862_v32  ;;  %v4991_v38 = vadd.f32 1.0, %v13693_v53  ;;  %v3865_v47 = vsub.f32 %v3737_v29, %v13691_v37 }
 0x52d   : > { %v13710_v46 = vsub.f32 %v5957_v1, %v6213_v11  ;;  %v13712_v39 = vadd.f32 %v2528_v55, %v657_v26  ;;  %8074 = vlog2.f32 %v2032_v62  ;;  %v3864_v12 = vsub.f32 %v3736_v21, %v13695_v51 }
 0x52e   : > { %v2023_v17 = vadd.f32 1.0, %v13701_v44  ;;  %v13720_v61 = vmax.f32 %v3219_v57, %v3475_v5  ;;  %v3731_v35 = vmin.f32 %v3219_v57, %v3475_v5  ;;  %v3090_v19 = vmul.f32 0.5, %v2962_v49 }
 0x52f   : > { %16800 = vst [vmem:[#allocation144_spill] sm:$0xff] %v13710_v46  ;;  %v13718_v27 = vpop.eup %8066  ;;  %v3346_v32 = vmul.f32 81377.4, %v2962_v49  ;;  %2785 = vmatpush2.xpose.msra.mxu0 %v13712_v39  ;;  %v13724_v11 = vmul.f32 %v13494_v7, %v5058_v54  ;;  %v2965_v26 = vmul.f32 %v13394_v10, %v13394_v10  ;;  %v6080_v29 = vmul.f32 %v13649_v41, %v13649_v41 }
 0x530   : > { %16801 = vst [vmem:[#allocation129_spill] sm:$0xff] %v13720_v61  ;;  %8076 = vlog2.f32 %v2023_v17  ;;  %v13730_v21 = vpop.eup %8068  ;;  %v2964_v57 = vmul.f32 %v13465_v3, %v13465_v3  ;;  %v2035_v5 = vmul.f32 -0.5, %v13686_v34  ;;  %v13736_v49 = vadd.f32 1.0, %v5084_v56 }
 0x531   : > { %16802 = vst [vmem:[#allocation134_spill] sm:$0xff] %v13724_v11  ;;  %16803 = vst [vmem:[#allocation115_spill] sm:$0xff] %v13730_v21  ;;  %8078 = vpow2.f32 %v4082_v20  ;;  %v4088_v1 = vmul.f32 1.442695, %v3865_v47  ;;  %v1978_v10 = vadd.f32 1.0, %v13718_v27  ;;  %v3859_v41 = vsub.f32 %v3731_v35, %v13720_v61 }
 0x532   : > { %8080 = vlog2.f32 %v4991_v38  ;;  %v8071_v55 = vpop.eup %8070  ;;  %v4086_v54 = vmul.f32 1.442695, %v3864_v12  ;;  %v3218_v17 = vsub.f32 -1.6120857, %v3090_v19  ;;  %v3474_v33 = vsub.f32 4.387914, %v3346_v32 }
 0x533   : > { %v3093_v11 = vmul.f32 0.5, %v2965_v26  ;;  %v5778_v62 = vmul.f32 0.6931472, %v8071_v55  ;;  %v6208_v20 = vmul.f32 0.5, %v6080_v29  ;;  %8082 = vlog2.f32 %v1978_v10 }
 0x534   : > { %v3349_v13 = vmul.f32 81377.4, %v2965_v26  ;;  %v13740_v3 = vmul.f32 0.5, %v2964_v57  ;;  %v2036_v37 = vadd.f32 1.0, %v2035_v5  ;;  %v2026_v56 = vmul.f32 -0.5, %v13701_v44 }
 0x535   : > { %8084 = vpow2.f32 %v4088_v1  ;;  %v3348_v38 = vmul.f32 81377.4, %v2964_v57  ;;  %v5952_v47 = vsub.f32 -0.9189385, %v5778_v62  ;;  %v2038_v12 = vand.u32 2147483647, %v13686_v34 }
 0x536   : > { %8086 = vpow2.f32 %v4086_v54  ;;  %v4076_v35 = vmul.f32 1.442695, %v3859_v41  ;;  %v13744_v19 = vmax.f32 %v3218_v17, %v3474_v33  ;;  %v6079_v32 = vmul.f32 %v13689_v31, %v13689_v31  ;;  %v874_v62 = vld [vmem:[%s9026_s3 + $0x148] sm:$0xff] }
 0x537   : > { %v3221_v29 = vsub.f32 -1.6120857, %v3093_v11  ;;  %v2959_v26 = vmul.f32 %v13510_v24, %v13510_v24  ;;  %v13750_v5 = vsub.f32 %v5952_v47, %v6208_v20  ;;  %v2029_v10 = vand.u32 2147483647, %v13701_v44 }
 0x538   : > { %16804 = vst [vmem:[#allocation142_spill] sm:$0xff] %v13744_v19  ;;  %v3477_v57 = vsub.f32 4.387914, %v3349_v13  ;;  %v2037_v55 = vmul.f32 %v13686_v34, %v2036_v37  ;;  %v2027_v54 = vadd.f32 1.0, %v2026_v56  ;;  %v1981_v41 = vmul.f32 -0.5, %v13718_v27 }
 0x539   : > { %16805 = vst [vmem:[#allocation126_spill] sm:$0xff] %v13750_v5  ;;  %v8073_v1 = vpop.eup %8072  ;;  %v3220_v31 = vsub.f32 -1.6120857, %v13740_v3  ;;  %v3476_v11 = vsub.f32 4.387914, %v3348_v38  ;;  %v13757_v51 = vunpack.c.h.bf16 %v874_v62  ;;  %v13759_v24 = vmin.f32 %v3218_v17, %v3474_v33  ;;  %v660_v3 = vld [vmem:[%s9016_s28 + $0x298] sm:$0xff] }
 0x53a   : > { %v8075_v21 = vpop.eup %8074  ;;  %vm2039_vm6 = vcmp.lt.f32.partialorder %v2038_v12, 0.0004427343  ;;  %v5776_v20 = vmul.f32 0.6931472, %v8073_v1  ;;  %v6207_v47 = vmul.f32 0.5, %v6079_v32  ;;  %8088 = vpow2.f32 %v4076_v35  ;;  %v772_v32 = vld [vmem:[%s9023_s13 + $0x218] sm:$0xff] }
 0x53b   : > { %v2034_v7 = vmul.f32 0.6931472, %v8075_v21  ;;  %v3087_v13 = vmul.f32 0.5, %v2959_v26  ;;  %v3343_v34 = vmul.f32 81377.4, %v2959_v26  ;;  %v2028_v60 = vmul.f32 %v13701_v44, %v2027_v54 }
 0x53c   : > { %vm13761_vm9 = vcmp.lt.f32.partialorder %v2029_v10, 0.0004427343  ;;  %v5951_v61 = vsub.f32 -0.9189385, %v5776_v20  ;;  %v1982_v12 = vadd.f32 1.0, %v1981_v41  ;;  %v13776_v10 = vmax.f32 %v3221_v29, %v3477_v57 }
 0x53d   : > { %v8077_v56 = vpop.eup %8076  ;;  %v2040_v38 = vsel %vm2039_vm6, %v2037_v55, %v2034_v7  ;;  %v1984_v35 = vand.u32 2147483647, %v13718_v27  ;;  %v3858_v7 = vsub.f32 %v13759_v24, %v13744_v19  ;;  %v13780_v1 = vunpack.c.l.bf16 %v874_v62  ;;  %v774_v62 = vld [vmem:[%s9023_s13 + $0x228] sm:$0xff] }
 0x53e   : > { %v13767_v33 = vpop.eup %8078  ;;  %v2531_v21 = vmul.f32 %v2040_v38, %v13757_v51  ;;  %8090 = vlog2.f32 %v2040_v38  ;;  %v2025_v17 = vmul.f32 0.6931472, %v8077_v56  ;;  %16810 = vst [vmem:[#allocation120_spill] sm:$0xff] %v13776_v10  ;;  %v13778_v44 = vsub.f32 %v5951_v61, %v6207_v47  ;;  %v773_v56 = vld [vmem:[%s9023_s13 + $0x220] sm:$0xff] }
 0x53f   : > { %16808 = vst [vmem:[#allocation160_spill] sm:$0xff] %v13767_v33  ;;  %v13772_v26 = vpop.eup %8080  ;;  %v3733_v55 = vmin.f32 %v3221_v29, %v3477_v57  ;;  %v3215_v54 = vsub.f32 -1.6120857, %v3087_v13  ;;  %v3471_v41 = vsub.f32 4.387914, %v3343_v34  ;;  %v13785_v63 = vmax.f32 %v3220_v31, %v3476_v11  ;;  %v659_v57 = vld [vmem:[%s9016_s28 + $0x290] sm:$0xff] }
 0x540   : > { %16809 = vst [vmem:[#allocation133_spill] sm:$0xff] %v13772_v26  ;;  %16811 = vst [vmem:[#allocation130_spill] sm:$0xff] %v13778_v44  ;;  %v13782_v20 = vadd.f32 %v2531_v21, %v660_v3  ;;  %v8083_v38 = vpop.eup %8082  ;;  %v2031_v24 = vsel %vm13761_vm9, %v2028_v60, %v2025_v17  ;;  %v13790_v26 = vld [vmem:[%s9026_s3 + $0x130] sm:$0xff]  ;;  %v1983_v61 = vmul.f32 %v13718_v27, %v1982_v12  ;;  %v1163_v47 = vmul.f32 1.442695, %v772_v32  ;;  %v654_v32 = vld [vmem:[%s9016_s28 + $0x268] sm:$0xff] }
 0x541   : > { %16812 = vst [vmem:[#allocation122_spill] sm:$0xff] %v13785_v63  ;;  %v3732_v19 = vmin.f32 %v3220_v31, %v3476_v11  ;;  %v2958_v29 = vmul.f32 %v13533_v8, %v13533_v8  ;;  %v13799_v13 = vunpack.c.h.bf16 %v13790_v26  ;;  %vm1985_vm12 = vcmp.lt.f32.partialorder %v1984_v35, 0.0004427343  ;;  %v775_v60 = vld [vmem:[%s9023_s13 + $0x230] sm:$0xff] }
 0x542   : > { %2855 = vmatprep.subr.mxu1 %v13782_v20  ;;  %v13802_v34 = vpop.eup %8084  ;;  %v2530_v27 = vmul.f32 %v2031_v24, %v13780_v1  ;;  %8092 = vlog2.f32 %v2031_v24  ;;  %v1980_v37 = vmul.f32 0.6931472, %v8083_v38  ;;  %v1165_v31 = vmul.f32 1.442695, %v773_v56 }
 0x543   : > { %16813 = vst [vmem:[#allocation146_spill] sm:$0xff] %v13802_v34  ;;  %v13805_v11 = vpop.eup %8086  ;;  %v3861_v8 = vsub.f32 %v3733_v55, %v13776_v10  ;;  %v13808_v3 = vmax.f32 %v3215_v54, %v3471_v41  ;;  %v3727_v12 = vmin.f32 %v3215_v54, %v3471_v41  ;;  %v1167_v21 = vmul.f32 1.442695, %v774_v62 }
 0x544   : > { %16814 = vst [vmem:[#allocation105_spill] sm:$0xff] %v13805_v11  ;;  %v13810_v17 = vadd.f32 %v2530_v27, %v659_v57  ;;  %v1986_v35 = vsel %vm1985_vm12, %v1983_v61, %v1980_v37  ;;  %8094 = vpow2.f32 %v1163_v47  ;;  %v1169_v45 = vmul.f32 1.442695, %v775_v60 }
 0x545   : > { %16815 = vst [vmem:[#allocation92_spill] sm:$0xff] %v13808_v3  ;;  %v3086_v40 = vmul.f32 0.5, %v2958_v29  ;;  %v3342_v36 = vmul.f32 81377.4, %v2958_v29  ;;  %v2525_v56 = vmul.f32 %v1986_v35, %v13799_v13  ;;  %8096 = vlog2.f32 %v1986_v35 }
 0x546   : > { %v13817_v55 = vmul.f32 %v13521_v59, %v13736_v49  ;;  %v4074_v38 = vmul.f32 1.442695, %v3858_v7  ;;  %v3860_v54 = vsub.f32 %v3732_v19, %v13785_v63  ;;  %2856 = vmatpush2.xpose.msra.mxu1 %v13810_v17  ;;  %8098 = vpow2.f32 %v1165_v31  ;;  %v777_v7 = vld [vmem:[%s9023_s13 + $0x240] sm:$0xff] }
 0x547   : > { %v13822_v41 = vmul.f32 0.6931472, %v13620_v0  ;;  %v13824_v24 = vadd.f32 %v2525_v56, %v654_v32  ;;  %8100 = vpow2.f32 %v1167_v21  ;;  %v1171_v61 = vmul.f32 1.442695, %v776_v6  ;;  %v13826_v62 = vpop.eup %8088 }
 0x548   : > { %16816 = vst [vmem:[#allocation113_spill] sm:$0xff] %v13817_v55  ;;  %16818 = vst [vmem:[#allocation87_spill] sm:$0xff] %v13826_v62  ;;  %v13829_v47 = vmul.f32 -0.5, %v13543_v25  ;;  %v2961_v49 = vmul.f32 %v13629_v50, %v13629_v50  ;;  %v6082_v19 = vmul.f32 %v13757_v51, %v13757_v51  ;;  %8102 = vpow2.f32 %v1169_v45  ;;  %v778_v45 = vld [vmem:[%s9023_s13 + $0x248] sm:$0xff] }
 0x549   : > { %16817 = vst [vmem:[#allocation107_spill] sm:$0xff] %v13822_v41  ;;  %v4080_v0 = vmul.f32 1.442695, %v3861_v8  ;;  %v3855_v29 = vsub.f32 %v3727_v12, %v13808_v3  ;;  %v3214_v57 = vsub.f32 -1.6120857, %v3086_v40  ;;  %2786 = vmatprep.subr.mxu0 %v13824_v24  ;;  %v5030_v37 = vmul.f32 -0.5, %v13546_v28 }
 0x54a   : > { %16819 = vst [vmem:[#allocation98_spill] sm:$0xff] %v13829_v47  ;;  %v3470_v60 = vsub.f32 4.387914, %v3342_v36  ;;  %8104 = vpow2.f32 %v4074_v38  ;;  %v4078_v50 = vmul.f32 1.442695, %v3860_v54  ;;  %v6081_v51 = vmul.f32 %v13780_v1, %v13780_v1 }
 0x54b   : > { %v8091_v6 = vpop.eup %8090  ;;  %8106 = vpow2.f32 %v1171_v61  ;;  %v1173_v8 = vmul.f32 1.442695, %v777_v7  ;;  %v3089_v40 = vmul.f32 0.5, %v2961_v49  ;;  %v3345_v36 = vmul.f32 81377.4, %v2961_v49  ;;  %v779_v61 = vld [vmem:[%s9023_s13 + $0x250] sm:$0xff] }
 0x54c   : > { %v5782_v12 = vmul.f32 0.6931472, %v8091_v6  ;;  %v6210_v21 = vmul.f32 0.5, %v6082_v19  ;;  %8108 = vpow2.f32 %v4080_v0  ;;  %v4068_v32 = vmul.f32 1.442695, %v3855_v29  ;;  %v780_v6 = vld [vmem:[%s9023_s13 + $0x258] sm:$0xff] }
 0x54d   : > { %v13844_v35 = vmax.f32 %v3214_v57, %v3470_v60  ;;  %v3726_v56 = vmin.f32 %v3214_v57, %v3470_v60  ;;  %8110 = vpow2.f32 %v4078_v50  ;;  %v2960_v38 = vmul.f32 %v13647_v9, %v13647_v9 }
 0x54e   : > { %v5954_v54 = vsub.f32 -0.9189385, %v5782_v12  ;;  %v6076_v1 = vmul.f32 %v13799_v13, %v13799_v13  ;;  %v13851_v27 = vadd.f32 1.0, %v5030_v37  ;;  %v6209_v49 = vmul.f32 0.5, %v6081_v51 }
 0x54f   : > { %16820 = vst [vmem:[#allocation112_spill] sm:$0xff] %v13844_v35  ;;  %v8093_v7 = vpop.eup %8092  ;;  %8112 = vpow2.f32 %v1173_v8  ;;  %v1175_v19 = vmul.f32 1.442695, %v778_v45  ;;  %v3217_v0 = vsub.f32 -1.6120857, %v3089_v40  ;;  %v5021_v9 = vmul.f32 -0.5, %v13573_v4 }
 0x550   : > { %16821 = vst [vmem:[#allocation123_spill] sm:$0xff] %v13851_v27  ;;  %v3473_v29 = vsub.f32 4.387914, %v3345_v36  ;;  %v13854_v57 = vsub.f32 %v5954_v54, %v6210_v21  ;;  %v5780_v60 = vmul.f32 0.6931472, %v8093_v7  ;;  %8114 = vpow2.f32 %v4068_v32  ;;  %v781_v40 = vld [vmem:[%s9023_s13 + $0x260] sm:$0xff] }
 0x551   : > { %v13856_v50 = vpop.eup %8094  ;;  %v3854_v13 = vsub.f32 %v3726_v56, %v13844_v35  ;;  %v1177_v12 = vmul.f32 1.442695, %v779_v61  ;;  %v3088_v31 = vmul.f32 0.5, %v2960_v38  ;;  %v2955_v51 = vmul.f32 %v13676_v42, %v13676_v42 }
 0x552   : > { %16822 = vst [vmem:[#allocation124_spill] sm:$0xff] %v13854_v57  ;;  %v8097_v37 = vpop.eup %8096  ;;  %v5953_v8 = vsub.f32 -0.9189385, %v5780_v60  ;;  %v6204_v45 = vmul.f32 0.5, %v6076_v1  ;;  %v3344_v21 = vmul.f32 81377.4, %v2960_v38  ;;  %8116 = vpow2.f32 %v1175_v19 }
 0x553   : > { %v13863_v36 = vpop.eup %8098  ;;  %v5770_v54 = vmul.f32 0.6931472, %v8097_v37  ;;  %v1179_v7 = vmul.f32 1.442695, %v780_v6  ;;  %v13867_v32 = vmax.f32 %v3217_v0, %v3473_v29  ;;  %v2954_v56 = vmul.f32 %v13712_v39, %v13712_v39 }
 0x554   : > { %v13865_v55 = vpop.eup %8100  ;;  %v13871_v61 = vsub.f32 %v5953_v8, %v6209_v49  ;;  %v1888_v42 = vadd.f32 1.0, %v13856_v50  ;;  %v3729_v1 = vmin.f32 %v3217_v0, %v3473_v29  ;;  %8118 = vpow2.f32 %v1177_v12 }
 0x555   : > { %16823 = vst [vmem:[#allocation111_spill] sm:$0xff] %v13867_v32  ;;  %v13874_v60 = vpop.eup %8102  ;;  %v5948_v59 = vsub.f32 -0.9189385, %v5770_v54  ;;  %v1181_v38 = vmul.f32 1.442695, %v781_v40  ;;  %v3083_v19 = vmul.f32 0.5, %v2955_v51  ;;  %8120 = vpow2.f32 %v1179_v7 }
 0x556   : > { %16824 = vst [vmem:[#allocation110_spill] sm:$0xff] %v13871_v61  ;;  %v3216_v37 = vsub.f32 -1.6120857, %v3088_v31  ;;  %v3339_v6 = vmul.f32 81377.4, %v2955_v51  ;;  %v1897_v25 = vadd.f32 1.0, %v13863_v36  ;;  %8122 = vlog2.f32 %v1888_v42 }
 0x557   : > { %v13877_v41 = vpop.eup %8104  ;;  %v3472_v47 = vsub.f32 4.387914, %v3344_v21  ;;  %v13879_v28 = vsub.f32 %v5948_v59, %v6204_v45  ;;  %v1906_v39 = vadd.f32 1.0, %v13865_v55  ;;  %v3082_v8 = vmul.f32 0.5, %v2954_v56 }
 0x558   : > { %16825 = vst [vmem:[#allocation121_spill] sm:$0xff] %v13877_v41  ;;  %v13882_v49 = vpop.eup %8106  ;;  %v3338_v0 = vmul.f32 81377.4, %v2954_v56  ;;  %v1915_v29 = vadd.f32 1.0, %v13874_v60  ;;  %v13885_v31 = vadd.f32 1.0, %v5021_v9  ;;  %v13889_v51 = vmul.f32 -0.5, %v13606_v23 }
 0x559   : > { %8124 = vpow2.f32 %v1181_v38  ;;  %v13891_v59 = vpop.eup %8108  ;;  %v4066_v45 = vmul.f32 1.442695, %v3854_v13  ;;  %v3211_v40 = vsub.f32 -1.6120857, %v3083_v19  ;;  %v3467_v21 = vsub.f32 4.387914, %v3339_v6 }
 0x55a   : > { %16826 = vst [vmem:[#allocation117_spill] sm:$0xff] %v13885_v31  ;;  %16827 = vst [vmem:[#allocation88_spill] sm:$0xff] %v13889_v51  ;;  %8126 = vlog2.f32 %v1897_v25  ;;  %v13893_v54 = vpop.eup %8110  ;;  %v3857_v7 = vsub.f32 %v3729_v1, %v13867_v32  ;;  %v13896_v56 = vmax.f32 %v3216_v37, %v3472_v47  ;;  %v1924_v9 = vadd.f32 1.0, %v13882_v49  ;;  %v867_v19 = vld [vmem:[%s9026_s3 + $0x110] sm:$0xff]  ;;  %v868_v23 = vld [vmem:[%s9026_s3 + $0x118] sm:$0xff] }
 0x55b   : > { %16828 = vst [vmem:[#allocation82_spill] sm:$0xff] %v13891_v59  ;;  %16829 = vst [vmem:[#allocation118_spill] sm:$0xff] %v13893_v54  ;;  %8128 = vlog2.f32 %v1906_v39  ;;  %v13901_v12 = vmin.f32 %v3216_v37, %v3472_v47  ;;  %v3210_v38 = vsub.f32 -1.6120857, %v3082_v8  ;;  %v3466_v13 = vsub.f32 4.387914, %v3338_v0 }
 0x55c   : > { %16830 = vst [vmem:[#allocation109_spill] sm:$0xff] %v13896_v56  ;;  %v13899_v42 = vpop.eup %8112  ;;  %8130 = vlog2.f32 %v1915_v29  ;;  %v13905_v25 = vmul.f32 -0.5, %v13693_v53  ;;  %v13909_v6 = vadd.f32 1.0, %v13767_v33  ;;  %v13913_v47 = vmax.f32 %v3211_v40, %v3467_v21  ;;  %v8312_v8 = vld [vmem:[%s9026_s3 + $0x108] sm:$0xff] }
 0x55d   : > { %8132 = vlog2.f32 %v1924_v9  ;;  %v13911_v39 = vpop.eup %8114  ;;  %v13915_v37 = vmin.f32 %v3211_v40, %v3467_v21  ;;  %v13918_v0 = vunpack.c.h.bf16 %v8312_v8  ;;  %v13920_v29 = vmul.f32 1.442695, %v3857_v7  ;;  %v869_v7 = vld [vmem:[%s9026_s3 + $0x120] sm:$0xff] }
 0x55e   : > { %16831 = vst [vmem:[#allocation79_spill] sm:$0xff] %v13911_v39  ;;  %8134 = vpow2.f32 %v4066_v45  ;;  %16832 = vst [vmem:[#allocation86_spill] sm:$0xff] %v13913_v47  ;;  %v13923_v27 = vunpack.c.l.bf16 %v867_v19  ;;  %v1891_v1 = vmul.f32 -0.5, %v13856_v50  ;;  %v1933_v9 = vadd.f32 1.0, %v13899_v42 }
 0x55f   : > { %16833 = vst [vmem:[#allocation53_spill] sm:$0xff] %v13918_v0  ;;  %v13927_v51 = vpop.eup %8116  ;;  %v13931_v31 = vmax.f32 %v3210_v38, %v3466_v13  ;;  %v13933_v40 = vmin.f32 %v3210_v38, %v3466_v13  ;;  %v1900_v21 = vmul.f32 -0.5, %v13863_v36  ;;  %v13937_v8 = vunpack.c.h.bf16 %v867_v19 }
 0x560   : > { %v1909_v10 = vmul.f32 -0.5, %v13865_v55  ;;  %v1918_v63 = vmul.f32 -0.5, %v13874_v60  ;;  %8136 = vlog2.f32 %v1933_v9  ;;  %v13945_v45 = vunpack.c.l.bf16 %v868_v23 }
 0x561   : > { %16834 = vst [vmem:[#allocation70_spill] sm:$0xff] %v13931_v31  ;;  %v13941_v53 = vpop.eup %8118  ;;  %v13947_v32 = vunpack.c.h.bf16 %v868_v23  ;;  %v1894_v38 = vand.u32 2147483647, %v13856_v50  ;;  %v1892_v13 = vadd.f32 1.0, %v1891_v1  ;;  %v1903_v19 = vand.u32 2147483647, %v13863_v36 }
 0x562   : > { %16835 = vst [vmem:[#allocation68_spill] sm:$0xff] %v13945_v45  ;;  %v1927_v3 = vmul.f32 -0.5, %v13882_v49  ;;  %v1942_v35 = vadd.f32 1.0, %v13927_v51  ;;  %v13953_v52 = vpop.eup %8120  ;;  %v13957_v22 = vunpack.c.l.bf16 %v869_v7  ;;  %v1901_v4 = vadd.f32 1.0, %v1900_v21 }
 0x563   : > { %16836 = vst [vmem:[#allocation96_spill] sm:$0xff] %v13947_v32  ;;  %v1912_v23 = vand.u32 2147483647, %v13865_v55  ;;  %v8123_v46 = vpop.eup %8122  ;;  %v1910_v58 = vadd.f32 1.0, %v1909_v10  ;;  %v1919_v2 = vadd.f32 1.0, %v1918_v63  ;;  %v1951_v1 = vadd.f32 1.0, %v13941_v53 }
 0x564   : > { %8138 = vlog2.f32 %v1942_v35  ;;  %v13963_v61 = vunpack.c.h.bf16 %v869_v7  ;;  %vm13965_vm1 = vcmp.lt.f32.partialorder %v1894_v38, 0.0004427343  ;;  %v1921_v9 = vand.u32 2147483647, %v13874_v60 }
 0x565   : > { %v1936_v21 = vmul.f32 -0.5, %v13899_v42  ;;  %v1893_v39 = vmul.f32 %v13856_v50, %v1892_v13  ;;  %vm13972_vm13 = vcmp.lt.f32.partialorder %v1903_v19, 0.0004427343  ;;  %v1928_v10 = vadd.f32 1.0, %v1927_v3 }
 0x566   : > { %v13961_v57 = vpop.eup %8124  ;;  %v1930_v35 = vand.u32 2147483647, %v13882_v49  ;;  %v1890_v54 = vmul.f32 0.6931472, %v8123_v46  ;;  %v1902_v38 = vmul.f32 %v13863_v36, %v1901_v4  ;;  %vm13978_vm11 = vcmp.lt.f32.partialorder %v1912_v23, 0.0004427343 }
 0x567   : > { %v8127_v44 = vpop.eup %8126  ;;  %8140 = vlog2.f32 %v1951_v1  ;;  %v1911_v62 = vmul.f32 %v13865_v55, %v1910_v58  ;;  %v1920_v50 = vmul.f32 %v13874_v60, %v1919_v2  ;;  %v1939_v13 = vand.u32 2147483647, %v13899_v42 }
 0x568   : > { %v8129_v7 = vpop.eup %8128  ;;  %v1945_v3 = vmul.f32 -0.5, %v13927_v51  ;;  %v1899_v11 = vmul.f32 0.6931472, %v8127_v44  ;;  %vm13986_vm10 = vcmp.lt.f32.partialorder %v1921_v9, 0.0004427343  ;;  %v1937_v4 = vadd.f32 1.0, %v1936_v21 }
 0x569   : > { %v8131_v41 = vpop.eup %8130  ;;  %v1960_v36 = vadd.f32 1.0, %v13953_v52  ;;  %v1908_v1 = vmul.f32 0.6931472, %v8129_v7  ;;  %v1929_v58 = vmul.f32 %v13882_v49, %v1928_v10  ;;  %vm13994_vm15 = vcmp.lt.f32.partialorder %v1930_v35, 0.0004427343 }
 0x56a   : > { %v8133_v19 = vpop.eup %8132  ;;  %v1969_v55 = vadd.f32 1.0, %v13961_v57  ;;  %v14001_v44 = vsel %vm13965_vm1, %v1893_v39, %v1890_v54  ;;  %v1917_v60 = vmul.f32 0.6931472, %v8131_v41  ;;  %v1954_v9 = vmul.f32 -0.5, %v13941_v53  ;;  %v870_v41 = vld [vmem:[%s9026_s3 + $0x128] sm:$0xff] }
 0x56b   : > { %v13991_v23 = vpop.eup %8134  ;;  %16848 = vst [vmem:[#allocation103_spill] sm:$0xff] %v14001_v44  ;;  %8142 = vlog2.f32 %v1960_v36  ;;  %v1926_v21 = vmul.f32 0.6931472, %v8133_v19  ;;  %vm14004_vm14 = vcmp.lt.f32.partialorder %v1939_v13, 0.0004427343  ;;  %v1946_v49 = vadd.f32 1.0, %v1945_v3 }
 0x56c   : > { %16845 = vst [vmem:[#allocation100_spill] sm:$0xff] %v13991_v23  ;;  %8144 = vlog2.f32 %v1969_v55  ;;  %v14010_v35 = vsel %vm13972_vm13, %v1902_v38, %v1899_v11  ;;  %v1938_v5 = vmul.f32 %v13899_v42, %v1937_v4  ;;  %v1948_v54 = vand.u32 2147483647, %v13927_v51 }
 0x56d   : > { %v8137_v10 = vpop.eup %8136  ;;  %8146 = vlog2.f32 %v14001_v44  ;;  %v14018_v39 = vsel %vm13978_vm11, %v1911_v62, %v1908_v1  ;;  %v1957_v3 = vand.u32 2147483647, %v13941_v53  ;;  %v14024_v11 = vsel %vm13986_vm10, %v1920_v50, %v1917_v60 }
 0x56e   : > { %16851 = vst [vmem:[#allocation116_spill] sm:$0xff] %v14018_v39  ;;  %v1935_v13 = vmul.f32 0.6931472, %v8137_v10  ;;  %8148 = vlog2.f32 %v14010_v35  ;;  %16852 = vst [vmem:[#allocation83_spill] sm:$0xff] %v14024_v11  ;;  %v1955_v63 = vadd.f32 1.0, %v1954_v9  ;;  %v1963_v42 = vmul.f32 -0.5, %v13953_v52 }
 0x56f   : > { %8150 = vlog2.f32 %v14018_v39  ;;  %v14030_v38 = vsel %vm13994_vm15, %v1929_v58, %v1926_v21  ;;  %v1947_v62 = vmul.f32 %v13927_v51, %v1946_v49  ;;  %v1972_v59 = vmul.f32 -0.5, %v13961_v57  ;;  %v784_v10 = vld [vmem:[%s9023_s13 + $0x278] sm:$0xff] }
 0x570   : > { %16853 = vst [vmem:[#allocation64_spill] sm:$0xff] %v14030_v38  ;;  %8152 = vlog2.f32 %v14024_v11  ;;  %v14035_v4 = vunpack.c.l.bf16 %v870_v41  ;;  %v14039_v50 = vsel %vm14004_vm14, %v1938_v5, %v1935_v13  ;;  %vm1949_vm5 = vcmp.lt.f32.partialorder %v1948_v54, 0.0004427343 }
 0x571   : > { %v8139_v19 = vpop.eup %8138  ;;  %8154 = vlog2.f32 %v14030_v38  ;;  %v2957_v46 = vmul.f32 %v13782_v20, %v13782_v20  ;;  %v2951_v51 = vmul.f32 %v13824_v24, %v13824_v24  ;;  %v16854_v1 = vsub.f32 %v13933_v40, %v13931_v31 }
 0x572   : > { %v1944_v36 = vmul.f32 0.6931472, %v8139_v19  ;;  %8156 = vlog2.f32 %v14039_v50  ;;  %v1956_v2 = vmul.f32 %v13941_v53, %v1955_v63  ;;  %v1964_v55 = vadd.f32 1.0, %v1963_v42  ;;  %v783_v53 = vld [vmem:[%s9023_s13 + $0x270] sm:$0xff] }
 0x573   : > { %v14050_v58 = vmul.f32 1.442695, %v16854_v1  ;;  %v1966_v60 = vand.u32 2147483647, %v13953_v52  ;;  %v14054_v20 = vunpack.c.h.bf16 %v870_v41  ;;  %vm1958_vm0 = vcmp.lt.f32.partialorder %v1957_v3, 0.0004427343 }
 0x574   : > { %v8141_v9 = vpop.eup %8140  ;;  %v14056_v21 = vsel %vm1949_vm5, %v1947_v62, %v1944_v36  ;;  %v1973_v24 = vadd.f32 1.0, %v1972_v59  ;;  %v14059_v7 = vunpack.c.l.bf16 %v13790_v26  ;;  %v1975_v40 = vand.u32 2147483647, %v13961_v57 }
 0x575   : > { %v1953_v49 = vmul.f32 0.6931472, %v8141_v9  ;;  %8158 = vlog2.f32 %v14056_v21  ;;  %v14065_v5 = vmul.f32 0.5, %v2957_v46  ;;  %v14067_v54 = vmul.f32 81377.4, %v2957_v46 }
 0x576   : > { %v14069_v41 = vmul.f32 0.5, %v2951_v51  ;;  %v14071_v13 = vmul.f32 81377.4, %v2951_v51  ;;  %v1965_v26 = vmul.f32 %v13953_v52, %v1964_v55  ;;  %vm14076_vm3 = vcmp.lt.f32.partialorder %v1966_v60, 0.0004427343 }
 0x577   : > { %v14073_v3 = vsel %vm1958_vm0, %v1956_v2, %v1953_v49  ;;  %v6066_v42 = vmul.f32 %v13918_v0, %v13918_v0  ;;  %v1974_v59 = vmul.f32 %v13961_v57, %v1973_v24  ;;  %v6067_v19 = vmul.f32 %v13923_v27, %v13923_v27 }
 0x578   : > { %v8143_v62 = vpop.eup %8142  ;;  %8160 = vlog2.f32 %v14073_v3  ;;  %v1187_v46 = vmul.f32 1.442695, %v784_v10  ;;  %vm1976_vm8 = vcmp.lt.f32.partialorder %v1975_v40, 0.0004427343  ;;  %v6068_v52 = vmul.f32 %v13937_v8, %v13937_v8 }
 0x579   : > { %v8145_v51 = vpop.eup %8144  ;;  %v1962_v36 = vmul.f32 0.6931472, %v8143_v62  ;;  %v1185_v1 = vmul.f32 1.442695, %v783_v53  ;;  %v6069_v60 = vmul.f32 %v13945_v45, %v13945_v45  ;;  %v6070_v57 = vmul.f32 %v13947_v32, %v13947_v32  ;;  %v653_v62 = vld [vmem:[%s9016_s28 + $0x260] sm:$0xff] }
 0x57a   : > { %v8147_v2 = vpop.eup %8146  ;;  %v1971_v55 = vmul.f32 0.6931472, %v8145_v51  ;;  %8162 = vpow2.f32 %v1187_v46  ;;  %v6194_v40 = vmul.f32 0.5, %v6066_v42  ;;  %v6195_v51 = vmul.f32 0.5, %v6067_v19 }
 0x57b   : > { %v8149_v9 = vpop.eup %8148  ;;  %v14094_v24 = vsel %vm14076_vm3, %v1965_v26, %v1962_v36  ;;  %v5750_v49 = vmul.f32 0.6931472, %v8147_v2  ;;  %8164 = vpow2.f32 %v1185_v1  ;;  %v6071_v42 = vmul.f32 %v13957_v22, %v13957_v22 }
 0x57c   : > { %v8151_v10 = vpop.eup %8150  ;;  %v1977_v53 = vsel %vm1976_vm8, %v1974_v59, %v1971_v55  ;;  %v5752_v31 = vmul.f32 0.6931472, %v8149_v9  ;;  %8166 = vlog2.f32 %v14094_v24  ;;  %v6196_v36 = vmul.f32 0.5, %v6068_v52 }
 0x57d   : > { %v8153_v44 = vpop.eup %8152  ;;  %v2524_v0 = vmul.f32 %v1977_v53, %v14059_v7  ;;  %v5754_v38 = vmul.f32 0.6931472, %v8151_v10  ;;  %8168 = vlog2.f32 %v1977_v53  ;;  %v5938_v46 = vsub.f32 -0.9189385, %v5750_v49 }
 0x57e   : > { %v8155_v32 = vpop.eup %8154  ;;  %v5756_v63 = vmul.f32 0.6931472, %v8153_v44  ;;  %v5939_v26 = vsub.f32 -0.9189385, %v5752_v31  ;;  %v6197_v45 = vmul.f32 0.5, %v6069_v60  ;;  %v6072_v31 = vmul.f32 %v13963_v61, %v13963_v61 }
 0x57f   : > { %v8157_v1 = vpop.eup %8156  ;;  %v14101_v2 = vadd.f32 %v2524_v0, %v653_v62  ;;  %v5758_v59 = vmul.f32 0.6931472, %v8155_v32  ;;  %v5940_v55 = vsub.f32 -0.9189385, %v5754_v38  ;;  %v6322_v9 = vsub.f32 %v5938_v46, %v6194_v40 }
 0x580   : > { %v5760_v19 = vmul.f32 0.6931472, %v8157_v1  ;;  %v5941_v11 = vsub.f32 -0.9189385, %v5756_v63  ;;  %v6323_v39 = vsub.f32 %v5939_v26, %v6195_v51  ;;  %v3213_v10 = vsub.f32 -1.6120857, %v14065_v5 }
 0x581   : > { %v3469_v49 = vsub.f32 4.387914, %v14067_v54  ;;  %2787 = vmatpush2.xpose.msra.mxu0 %v14101_v2  ;;  %v6449_v44 = vadd.f32 %v12823_v18, %v6322_v9  ;;  %8170 = vpow2.f32 %v14050_v58  ;;  %v5942_v32 = vsub.f32 -0.9189385, %v5758_v59 }
 0x582   : > { %v8159_v0 = vpop.eup %8158  ;;  %v6198_v38 = vmul.f32 0.5, %v6070_v57  ;;  %v6324_v52 = vsub.f32 %v5940_v55, %v6196_v36  ;;  %v3207_v60 = vsub.f32 -1.6120857, %v14069_v41  ;;  %v3463_v40 = vsub.f32 4.387914, %v14071_v13 }
 0x583   : > { %v5762_v5 = vmul.f32 0.6931472, %v8159_v0  ;;  %v6073_v54 = vmul.f32 %v14035_v4, %v14035_v4  ;;  %v5943_v62 = vsub.f32 -0.9189385, %v5760_v19  ;;  %v6199_v53 = vmul.f32 0.5, %v6071_v42 }
 0x584   : > { %v6325_v51 = vsub.f32 %v5941_v11, %v6197_v45  ;;  %v6450_v46 = vadd.f32 %v6449_v44, %v6323_v39  ;;  %v14114_v18 = vmax.f32 %v3213_v10, %v3469_v49  ;;  %v2956_v58 = vmul.f32 %v13810_v17, %v13810_v17 }
 0x585   : > { %v8161_v63 = vpop.eup %8160  ;;  %v6074_v57 = vmul.f32 %v14054_v20, %v14054_v20  ;;  %v6200_v41 = vmul.f32 0.5, %v6072_v31  ;;  %v5944_v13 = vsub.f32 -0.9189385, %v5762_v5  ;;  %v6326_v36 = vsub.f32 %v5942_v32, %v6198_v38 }
 0x586   : > { %16857 = vst [vmem:[#allocation51_spill] sm:$0xff] %v14114_v18  ;;  %v5764_v26 = vmul.f32 0.6931472, %v8161_v63  ;;  %v6451_v1 = vadd.f32 %v6450_v46, %v6324_v52  ;;  %v3725_v55 = vmin.f32 %v3213_v10, %v3469_v49  ;;  %v14122_v42 = vmax.f32 %v3207_v60, %v3463_v40 }
 0x587   : > { %v14120_v59 = vpop.eup %8162  ;;  %v6075_v45 = vmul.f32 %v14059_v7, %v14059_v7  ;;  %v6201_v39 = vmul.f32 0.5, %v6073_v54  ;;  %v6327_v9 = vsub.f32 %v5943_v62, %v6199_v53  ;;  %v3719_v0 = vmin.f32 %v3207_v60, %v3463_v40 }
 0x588   : > { %16858 = vst [vmem:[#allocation106_spill] sm:$0xff] %v14122_v42  ;;  %v14126_v11 = vpop.eup %8164  ;;  %v5945_v17 = vsub.f32 -0.9189385, %v5764_v26  ;;  %v6452_v19 = vadd.f32 %v6451_v1, %v6325_v51  ;;  %v1996_v31 = vadd.f32 1.0, %v14120_v59  ;;  %v6202_v32 = vmul.f32 0.5, %v6074_v57 }
 0x589   : > { %v8167_v44 = vpop.eup %8166  ;;  %v1987_v38 = vadd.f32 1.0, %v14126_v11  ;;  %v5864_v10 = vmul.f32 0.6931472, %v12798_v14  ;;  %v6328_v5 = vsub.f32 %v5944_v13, %v6200_v41  ;;  %v3084_v7 = vmul.f32 0.5, %v2956_v58 }
 0x58a   : > { %v8169_v49 = vpop.eup %8168  ;;  %v5766_v52 = vmul.f32 0.6931472, %v8167_v44  ;;  %v6453_v46 = vadd.f32 %v6452_v19, %v6326_v36  ;;  %8172 = vlog2.f32 %v1996_v31  ;;  %v3340_v54 = vmul.f32 81377.4, %v2956_v58 }
 0x58b   : > { %v5768_v63 = vmul.f32 0.6931472, %v8169_v49  ;;  %8174 = vlog2.f32 %v1987_v38  ;;  %v6203_v53 = vmul.f32 0.5, %v6075_v45  ;;  %v6329_v51 = vsub.f32 %v5945_v17, %v6201_v39 }
 0x58c   : > { %v5946_v62 = vsub.f32 -0.9189385, %v5766_v52  ;;  %v6454_v26 = vadd.f32 %v6453_v46, %v6327_v9  ;;  %8176 = vpow2.f32 %v13920_v29  ;;  %v5994_v40 = vsub.f32 -0.9189385, %v12903_v30 }
 0x58d   : > { %v5947_v60 = vsub.f32 -0.9189385, %v5768_v63  ;;  %v5995_v57 = vsub.f32 -0.9189385, %v5864_v10  ;;  %v3847_v14 = vsub.f32 %v3719_v0, %v14122_v42  ;;  %v1999_v13 = vmul.f32 -0.5, %v14120_v59  ;;  %v650_v10 = vld [vmem:[%s9016_s28 + $0x248] sm:$0xff] }
 0x58e   : > { %v6330_v1 = vsub.f32 %v5946_v62, %v6202_v32  ;;  %v6455_v41 = vadd.f32 %v6454_v26, %v6328_v5  ;;  %v14135_v58 = vpop.eup %8170  ;;  %v16859_v36 = vsub.f32 %v13901_v12, %v13896_v56  ;;  %v16860_v29 = vsub.f32 %v13915_v37, %v13913_v47  ;;  %v649_v5 = vld [vmem:[%s9016_s28 + $0x240] sm:$0xff] }
 0x58f   : > { %v3853_v30 = vsub.f32 %v3725_v55, %v14114_v18  ;;  %v6251_v17 = vmul.f32 0.5, %v12732_v43  ;;  %v3212_v9 = vsub.f32 -1.6120857, %v3084_v7  ;;  %v6331_v19 = vsub.f32 %v5947_v60, %v6203_v53 }
 0x590   : > { %v4070_v45 = vmul.f32 1.442695, %v16859_v36  ;;  %v4060_v39 = vmul.f32 1.442695, %v16860_v29  ;;  %v6456_v31 = vadd.f32 %v6455_v41, %v6329_v51  ;;  %v1990_v44 = vmul.f32 -0.5, %v14126_v11 }
 0x591   : > { %v3468_v0 = vsub.f32 4.387914, %v3340_v54  ;;  %v16861_v32 = vsub.f32 -0.9189385, %v12892_v48  ;;  %v14152_v38 = vsub.f32 %v5994_v40, %v12748_v16  ;;  %v14154_v37 = vsub.f32 %v5995_v57, %v6251_v17 }
 0x592   : > { %v4052_v55 = vmul.f32 1.442695, %v3847_v14  ;;  %v6457_v49 = vadd.f32 %v6456_v31, %v6330_v1  ;;  %v2000_v43 = vadd.f32 1.0, %v1999_v13  ;;  %v2521_v52 = vmul.f32 %v14056_v21, %v13963_v61 }
 0x593   : > { %v14149_v12 = vsub.f32 %v16861_v32, %v12819_v15  ;;  %16863 = vst [vmem:[#allocation49_spill] sm:$0xff] %v14152_v38  ;;  %16864 = vst [vmem:[#allocation76_spill] sm:$0xff] %v14154_v37  ;;  %8178 = vpow2.f32 %v4070_v45  ;;  %v2950_v48 = vmul.f32 %v14101_v2, %v14101_v2  ;;  %v2002_v15 = vand.u32 2147483647, %v14120_v59  ;;  %v872_v2 = vld [vmem:[%s9026_s3 + $0x138] sm:$0xff] }
 0x594   : > { %v2520_v16 = vmul.f32 %v14039_v50, %v13957_v22  ;;  %8180 = vpow2.f32 %v4060_v39  ;;  %v6458_v46 = vadd.f32 %v6457_v49, %v6331_v19  ;;  %v1991_v7 = vadd.f32 1.0, %v1990_v44  ;;  %v16868_v19 = vld [vmem:[#allocation105_spill] sm:$0xff] }
 0x595   : > { %16862 = vst [vmem:[#allocation80_spill] sm:$0xff] %v14149_v12  ;;  %v14165_v54 = vadd.f32 %v2521_v52, %v650_v10  ;;  %v4064_v63 = vmul.f32 1.442695, %v3853_v30  ;;  %v14167_v62 = vmax.f32 %v3212_v9, %v3468_v0  ;;  %v1993_v61 = vand.u32 2147483647, %v14126_v11  ;;  %v16969_v37 = vld [vmem:[#allocation185_spill] sm:$0xff] }
 0x596   : > { %v14170_v21 = vadd.f32 %v2520_v16, %v649_v5  ;;  %v3724_v53 = vmin.f32 %v3212_v9, %v3468_v0  ;;  %8182 = vpow2.f32 %v4052_v55  ;;  %v2001_v51 = vmul.f32 %v14120_v59, %v2000_v43  ;;  %v16869_v0 = vld [vmem:[#allocation87_spill] sm:$0xff] }
 0x597   : > { %16865 = vst [vmem:[#allocation99_spill] sm:$0xff] %v14167_v62  ;;  %v14175_v26 = vadd.f32 %v6458_v46, %v13879_v28  ;;  %2788 = vmatprep.subr.mxu0 %v14165_v54  ;;  %v8173_v22 = vpop.eup %8172  ;;  %v3078_v50 = vmul.f32 0.5, %v2950_v48  ;;  %v3334_v60 = vmul.f32 81377.4, %v2950_v48  ;;  %v14178_v40 = vunpack.c.h.bf16 %v872_v2  ;;  %v655_v55 = vld [vmem:[%s9016_s28 + $0x270] sm:$0xff]  ;;  %v652_v48 = vld [vmem:[%s9016_s28 + $0x258] sm:$0xff] }
 0x598   : > { %vm2003_vm4 = vcmp.lt.f32.partialorder %v2002_v15, 0.0004427343  ;;  %2789 = vmatpush2.xpose.msra.mxu0 %v14170_v21  ;;  %v8175_v57 = vpop.eup %8174  ;;  %v14182_v14 = vadd.f32 1.0, %v13905_v25  ;;  %v4985_v59 = vmul.f32 -0.5, %v13767_v33  ;;  %v1998_v1 = vmul.f32 0.6931472, %v8173_v22 }
 0x599   : > { %v1992_v28 = vmul.f32 %v14126_v11, %v1991_v7  ;;  %8184 = vlog2.f32 %v13909_v6  ;;  %v4874_v41 = vadd.f32 1.0, %v14135_v58  ;;  %v1989_v13 = vmul.f32 0.6931472, %v8175_v57  ;;  %v14188_v36 = vpop.eup %8176  ;;  %v656_v25 = vld [vmem:[%s9016_s28 + $0x278] sm:$0xff]  ;;  %v16875_v22 = vld [vmem:[#allocation118_spill] sm:$0xff]  ;;  %v651_v57 = vld [vmem:[%s9016_s28 + $0x250] sm:$0xff] }
 0x59a   : > { %16866 = vst [vmem:[#allocation72_spill] sm:$0xff] %v14182_v14  ;;  %vm1994_vm6 = vcmp.lt.f32.partialorder %v1993_v61, 0.0004427343  ;;  %16867 = vst [vmem:[#allocation67_spill] sm:$0xff] %v14188_v36  ;;  %v5009_v45 = vadd.f32 1.0, %v13802_v34  ;;  %v3852_v29 = vsub.f32 %v3724_v53, %v14167_v62  ;;  %v2004_v39 = vsel %vm2003_vm4, %v2001_v51, %v1998_v1  ;;  %v16871_v15 = vld [vmem:[#allocation121_spill] sm:$0xff] }
 0x59b   : > { %v14193_v30 = vunpack.c.l.bf16 %v872_v2  ;;  %8186 = vpow2.f32 %v4064_v63  ;;  %v3206_v17 = vsub.f32 -1.6120857, %v3078_v50  ;;  %v3462_v11 = vsub.f32 4.387914, %v3334_v60 }
 0x59c   : > { %v2527_v6 = vmul.f32 %v2004_v39, %v14178_v40  ;;  %v5000_v31 = vadd.f32 1.0, %v16868_v19  ;;  %8188 = vlog2.f32 %v2004_v39  ;;  %v1995_v44 = vsel %vm1994_vm6, %v1992_v28, %v1989_v13  ;;  %v16877_v28 = vld [vmem:[#allocation79_spill] sm:$0xff] }
 0x59d   : > { %v4955_v32 = vadd.f32 1.0, %v16869_v0  ;;  %8190 = vlog2.f32 %v4874_v41  ;;  %v2523_v49 = vmul.f32 %v14094_v24, %v14054_v20  ;;  %v14204_v43 = vadd.f32 1.0, %v4985_v59  ;;  %v16874_v20 = vld [vmem:[#allocation82_spill] sm:$0xff] }
 0x59e   : > { %v14199_v10 = vadd.f32 %v2527_v6, %v656_v25  ;;  %v4062_v52 = vmul.f32 1.442695, %v3852_v29  ;;  %v2526_v5 = vmul.f32 %v1995_v44, %v14193_v30  ;;  %8192 = vlog2.f32 %v1995_v44 }
 0x59f   : > { %16870 = vst [vmem:[#allocation48_spill] sm:$0xff] %v14204_v43  ;;  %8194 = vlog2.f32 %v5009_v45  ;;  %v4946_v16 = vadd.f32 1.0, %v16871_v15  ;;  %v14209_v46 = vmax.f32 %v3206_v17, %v3462_v11  ;;  %v3718_v7 = vmin.f32 %v3206_v17, %v3462_v11  ;;  %v16895_v43 = vld [vmem:[#allocation68_spill] sm:$0xff] }
 0x5a0   : > { %2857 = vmatprep.subr.mxu1 %v14199_v10  ;;  %v14212_v63 = vpop.eup %8178  ;;  %8196 = vlog2.f32 %v5000_v31  ;;  %v4973_v24 = vadd.f32 1.0, %v16874_v20  ;;  %v14215_v61 = vadd.f32 %v2526_v5, %v655_v55  ;;  %v2522_v53 = vmul.f32 %v14073_v3, %v14035_v4  ;;  %v16922_v20 = vld [vmem:[#allocation159_spill] sm:$0xff] }
 0x5a1   : > { %16872 = vst [vmem:[#allocation84_spill] sm:$0xff] %v14209_v46  ;;  %16873 = vst [vmem:[#allocation71_spill] sm:$0xff] %v14212_v63  ;;  %v14219_v2 = vpop.eup %8180  ;;  %8198 = vlog2.f32 %v4955_v32  ;;  %v4949_v51 = vmul.f32 -0.5, %v16871_v15  ;;  %v4964_v50 = vadd.f32 1.0, %v16875_v22  ;;  %v14223_v60 = vadd.f32 %v2523_v49, %v652_v48 }
 0x5a2   : > { %v14227_v59 = vmul.f32 -0.5, %v16869_v0  ;;  %v4919_v41 = vadd.f32 1.0, %v16877_v28  ;;  %8200 = vpow2.f32 %v4062_v52  ;;  %2858 = vmatpush2.xpose.msra.mxu1 %v14215_v61  ;;  %v4910_v13 = vadd.f32 1.0, %v13991_v23 }
 0x5a3   : > { %v14232_v4 = vpop.eup %8182  ;;  %8202 = vlog2.f32 %v4946_v16  ;;  %v3846_v45 = vsub.f32 %v3718_v7, %v14209_v46  ;;  %2859 = vmatprep.subr.mxu1 %v14223_v60  ;;  %v4922_v29 = vmul.f32 -0.5, %v16877_v28  ;;  %v4937_v25 = vadd.f32 1.0, %v14188_v36 }
 0x5a4   : > { %16876 = vst [vmem:[#allocation78_spill] sm:$0xff] %v14227_v59  ;;  %8204 = vlog2.f32 %v4973_v24  ;;  %v14240_v39 = vadd.f32 %v2522_v53, %v651_v57  ;;  %v14242_v17 = vadd.f32 1.0, %v4949_v51  ;;  %v4928_v11 = vadd.f32 1.0, %v14212_v63 }
 0x5a5   : > { %8206 = vlog2.f32 %v4964_v50  ;;  %v4886_v6 = vmul.f32 -0.5, %v14219_v2  ;;  %v4913_v44 = vmul.f32 -0.5, %v13991_v23  ;;  %v4877_v32 = vmul.f32 -0.5, %v14135_v58 }
 0x5a6   : > { %16878 = vst [vmem:[#allocation95_spill] sm:$0xff] %v14242_v17  ;;  %v14246_v31 = vpop.eup %8184  ;;  %8208 = vlog2.f32 %v4919_v41  ;;  %v4847_v55 = vadd.f32 1.0, %v14232_v4  ;;  %2860 = vmatpush2.xpose.msra.mxu1 %v14240_v39  ;;  %v4050_v52 = vmul.f32 1.442695, %v3846_v45  ;;  %v2947_v5 = vmul.f32 %v14165_v54, %v14165_v54 }
 0x5a7   : > { %16879 = vst [vmem:[#allocation93_spill] sm:$0xff] %v14246_v31  ;;  %8210 = vlog2.f32 %v4910_v13  ;;  %v14257_v16 = vadd.f32 1.0, %v4922_v29  ;;  %v6078_v7 = vmul.f32 %v14178_v40, %v14178_v40  ;;  %v6077_v24 = vmul.f32 %v14193_v30, %v14193_v30  ;;  %v16896_v31 = vld [vmem:[#allocation83_spill] sm:$0xff] }
 0x5a8   : > { %v14255_v48 = vpop.eup %8186  ;;  %8212 = vlog2.f32 %v4937_v25  ;;  %v4883_v50 = vadd.f32 1.0, %v14219_v2  ;;  %v4887_v57 = vadd.f32 1.0, %v4886_v6  ;;  %v14265_v54 = vadd.f32 1.0, %v4913_v44 }
 0x5a9   : > { %16880 = vst [vmem:[#allocation44_spill] sm:$0xff] %v14255_v48  ;;  %16881 = vst [vmem:[#allocation94_spill] sm:$0xff] %v14257_v16  ;;  %v8189_v53 = vpop.eup %8188  ;;  %8214 = vlog2.f32 %v4928_v11  ;;  %v4878_v13 = vadd.f32 1.0, %v4877_v32  ;;  %v4901_v25 = vadd.f32 1.0, %v14255_v48  ;;  %v3075_v40 = vmul.f32 0.5, %v2947_v5 }
 0x5aa   : > { %v8191_v41 = vpop.eup %8190  ;;  %16882 = vst [vmem:[#allocation73_spill] sm:$0xff] %v14265_v54  ;;  %8216 = vlog2.f32 %v4847_v55  ;;  %v5774_v45 = vmul.f32 0.6931472, %v8189_v53  ;;  %v3331_v9 = vmul.f32 81377.4, %v2947_v5  ;;  %v6206_v3 = vmul.f32 0.5, %v6078_v7 }
 0x5ab   : > { %v8193_v29 = vpop.eup %8192  ;;  %8218 = vpow2.f32 %v4050_v52  ;;  %v6205_v49 = vmul.f32 0.5, %v6077_v24  ;;  %v14273_v6 = vmul.f32 -0.5, %v14212_v63  ;;  %v14276_v44 = vmul.f32 %v14219_v2, %v4887_v57 }
 0x5ac   : > { %v14268_v30 = vpop.eup %8194  ;;  %v5950_v1 = vsub.f32 -0.9189385, %v5774_v45  ;;  %v5772_v11 = vmul.f32 0.6931472, %v8193_v29  ;;  %8220 = vlog2.f32 %v4883_v50  ;;  %v14281_v52 = vmul.f32 0.6931472, %v8191_v41 }
 0x5ad   : > { %16883 = vst [vmem:[#allocation63_spill] sm:$0xff] %v14268_v30  ;;  %v14270_v51 = vpop.eup %8196  ;;  %16885 = vst [vmem:[#allocation69_spill] sm:$0xff] %v14273_v6  ;;  %v14284_v5 = vmul.f32 %v14135_v58, %v4878_v13  ;;  %8222 = vlog2.f32 %v4901_v25  ;;  %v14290_v50 = vmul.f32 -0.5, %v14255_v48  ;;  %v3203_v57 = vsub.f32 -1.6120857, %v3075_v40  ;;  %v646_v30 = vld [vmem:[%s9016_s28 + $0x228] sm:$0xff] }
 0x5ae   : > { %16884 = vst [vmem:[#allocation55_spill] sm:$0xff] %v14270_v51  ;;  %16886 = vst [vmem:[#allocation66_spill] sm:$0xff] %v14276_v44  ;;  %v14279_v55 = vpop.eup %8198  ;;  %v5949_v24 = vsub.f32 -0.9189385, %v5772_v11  ;;  %v3459_v45 = vsub.f32 4.387914, %v3331_v9  ;;  %v6334_v32 = vsub.f32 %v5950_v1, %v6206_v3  ;;  %v2516_v7 = vmul.f32 %v14010_v35, %v13923_v27 }
 0x5af   : > { %16887 = vst [vmem:[#allocation50_spill] sm:$0xff] %v14279_v55  ;;  %16888 = vst [vmem:[#allocation38_spill] sm:$0xff] %v14281_v52  ;;  %v14287_v53 = vpop.eup %8200  ;;  %v4850_v41 = vmul.f32 -0.5, %v14232_v4  ;;  %v2946_v25 = vmul.f32 %v14170_v21, %v14170_v21  ;;  %v645_v51 = vld [vmem:[%s9016_s28 + $0x220] sm:$0xff]  ;;  %v648_v40 = vld [vmem:[%s9016_s28 + $0x238] sm:$0xff]  ;;  %v2518_v1 = vmul.f32 %v16896_v31, %v16895_v43  ;;  %v2949_v19 = vmul.f32 %v14223_v60, %v14223_v60 }
 0x5b0   : > { %16889 = vst [vmem:[#allocation60_spill] sm:$0xff] %v14284_v5  ;;  %16890 = vst [vmem:[#allocation52_spill] sm:$0xff] %v14287_v53  ;;  %v14292_v29 = vpop.eup %8202  ;;  %v6333_v13 = vsub.f32 %v5949_v24, %v6205_v49  ;;  %v16894_v9 = vld [vmem:[#allocation116_spill] sm:$0xff]  ;;  %v4892_v35 = vadd.f32 1.0, %v14287_v53  ;;  %v16900_v21 = vld [vmem:[#allocation53_spill] sm:$0xff]  ;;  %v14322_v43 = vmul.f32 -0.5, %v14287_v53  ;;  %v14324_v31 = vmax.f32 %v3203_v57, %v3459_v45 }
 0x5b1   : > { %16891 = vst [vmem:[#allocation58_spill] sm:$0xff] %v14290_v50  ;;  %16892 = vst [vmem:[#allocation39_spill] sm:$0xff] %v14292_v29  ;;  %v14298_v11 = vpop.eup %8204  ;;  %v2517_v14 = vmul.f32 %v16894_v9, %v13937_v8  ;;  %v16897_v3 = vld [vmem:[#allocation96_spill] sm:$0xff]  ;;  %v14334_v60 = vadd.f32 %v2516_v7, %v645_v51  ;;  %v4851_v55 = vadd.f32 1.0, %v4850_v41  ;;  %v3074_v17 = vmul.f32 0.5, %v2946_v25 }
 0x5b2   : > { %16893 = vst [vmem:[#allocation61_spill] sm:$0xff] %v14298_v11  ;;  %v16898_v49 = vld [vmem:[#allocation64_spill] sm:$0xff]  ;;  %v14310_v27 = vpop.eup %8206  ;;  %v6460_v33 = vadd.f32 %v14175_v26, %v6333_v13  ;;  %v16901_v11 = vld [vmem:[#allocation103_spill] sm:$0xff]  ;;  %16903 = vst [vmem:[#allocation57_spill] sm:$0xff] %v14322_v43  ;;  %v4853_v26 = vand.u32 2147483647, %v14232_v4  ;;  %8224 = vlog2.f32 %v4892_v35 }
 0x5b3   : > { %v2519_v24 = vmul.f32 %v16898_v49, %v16897_v3  ;;  %16899 = vst [vmem:[#allocation56_spill] sm:$0xff] %v14310_v27  ;;  %v2515_v34 = vmul.f32 %v16901_v11, %v16900_v21  ;;  %v647_v8 = vld [vmem:[%s9016_s28 + $0x230] sm:$0xff]  ;;  %v14319_v9 = vpop.eup %8208  ;;  %v3715_v3 = vmin.f32 %v3203_v57, %v3459_v45  ;;  %v644_v49 = vld [vmem:[%s9016_s28 + $0x218] sm:$0xff]  ;;  %v14327_v27 = vadd.f32 %v2517_v14, %v646_v30  ;;  %v1026_v11 = vld [vmem:[%s491_s24] sm:$0x3]  ;;  %s8653_s28 = smov [#allocation14]  }
 0x5b4   : > { %16902 = vst [vmem:[#allocation59_spill] sm:$0xff] %v14319_v9  ;;  %v14329_v56 = vpop.eup %8210  ;;  %v6461_v13 = vadd.f32 %v6460_v33, %v6334_v32  ;;  %v3330_v29 = vmul.f32 81377.4, %v2946_v25  ;;  %v14340_v57 = vadd.f32 %v2518_v1, %v647_v8  ;;  %v16907_v30 = vld [vmem:[#allocation130_spill] sm:$0xff]  ;;  %v3077_v33 = vmul.f32 0.5, %v2949_v19  ;;  %v16916_v7 = vld [vmem:[#allocation240_spill] sm:$0xff] }
 0x5b5   : > { %16904 = vst [vmem:[#allocation42_spill] sm:$0xff] %v14329_v56  ;;  %v14336_v21 = vadd.f32 %v2519_v24, %v648_v40  ;;  %v14338_v0 = vpop.eup %8212  ;;  %2790 = vmatprep.subr.mxu0 %v14327_v27  ;;  %v3333_v32 = vmul.f32 81377.4, %v2949_v19  ;;  %v2643_v15 = vadd.f32 %v2515_v34, %v644_v49  ;;  %v3843_v41 = vsub.f32 %v3715_v3, %v14324_v31  ;;  %v16908_v40 = vld [vmem:[#allocation192_spill] sm:$0xff]  ;;  %v16912_v24 = vld [vmem:[#allocation126_spill] sm:$0xff]  ;;  %s8511_s7 = sshll.u32 %s8653_s28, 4  ;;  %s8512_s7 = int_to_ptr.vmem [resolvable:$false] %s8511_s7 }
 0x5b6   : > { %16905 = vst [vmem:[#allocation41_spill] sm:$0xff] %v14338_v0  ;;  %v14343_v14 = vpop.eup %8214  ;;  %v6462_v45 = vadd.f32 %v6461_v13, %v16907_v30  ;;  %2791 = vmatpush2.xpose.msra.mxu0 %v14334_v60  ;;  %v2437_v25 = vmul.f32 1.442695, %v1026_v11  ;;  %vm14354_vm9 = vcmp.lt.f32.partialorder %v4853_v26, 0.0004427343  ;;  %v16909_v19 = vmov 0  ;;  %p8514_p1 = scmp.lt.s32.totalorder %s6588_s25, %s8512_s7 }
 0x5b7   : > { %16906 = vst [vmem:[#allocation220_spill] sm:$0xff] %v14343_v14  ;;  %2861 = vmatprep.subr.mxu1 %v14336_v21  ;;  %v8217_v51 = vpop.eup %8216  ;;  %2792 = vmatprep.subr.mxu0 %v16908_v40  ;;  %v16910_v19 = vsel %vm14354_vm9, 4294967295, %v16909_v19  ;;  %v2953_v34 = vmul.f32 %v14199_v10, %v14199_v10  ;;  %v2948_v8 = vmul.f32 %v14240_v39, %v14240_v39  ;;  %v3202_v13 = vsub.f32 -1.6120857, %v3074_v17  ;;  %v16915_v30 = vld [vmem:[#allocation110_spill] sm:$0xff]  ;;  %v16919_v0 = vld [vmem:[#allocation164_spill] sm:$0xff] }
 0x5b8   : > { %2862 = vmatpush2.xpose.msra.mxu1 %v14340_v57  ;;  %v14352_v1 = vpop.eup %8218  ;;  %16911 = vst [vmem:[#allocation188_spill] sm:$0xff] %v16910_v19  ;;  %v6463_v35 = vadd.f32 %v6462_v45, %v16912_v24  ;;  %v14364_v3 = vmul.f32 %v14232_v4, %v4851_v55  ;;  %v2952_v49 = vmul.f32 %v14215_v61, %v14215_v61  ;;  %v3458_v26 = vsub.f32 4.387914, %v3330_v29  ;;  %v16917_v24 = vld [vmem:[#allocation222_spill] sm:$0xff]  ;;  %v16924_v14 = vld [vmem:[#allocation139_spill] sm:$0xff]  ;;  %v16936_v6 = vld [vmem:[#allocation184_spill] sm:$0xff] }
 0x5b9   : > { %2863 = vmatprep.subr.mxu1 %v2643_v15  ;;  %v14368_v11 = vpop.eup %8220  ;;  %8226 = vlog2.f32 %v16916_v7  ;;  %v3205_v10 = vsub.f32 -1.6120857, %v3077_v33  ;;  %v3461_v45 = vsub.f32 4.387914, %v3333_v32  ;;  %v14373_v39 = vmul.f32 0.6931472, %v8217_v51 }
 0x5ba   : > { %16913 = vst [vmem:[#allocation243_spill] sm:$0xff] %v14364_v3  ;;  %16914 = vst [vmem:[#allocation116_spill] sm:$0xff] %v14368_v11  ;;  %v6464_v40 = vadd.f32 %v6463_v35, %v16915_v30  ;;  %2793 = vmatpush2.xpose.msra.mxu0 %v16917_v24  ;;  %v4838_v4 = vadd.f32 1.0, %v14352_v1  ;;  %v4044_v55 = vmul.f32 1.442695, %v3843_v41  ;;  %8228 = vpow2.f32 %v2437_v25  ;;  %v14377_v61 = vpop.eup %8222  ;;  %v16921_v35 = vld [vmem:[#allocation124_spill] sm:$0xff] }
 0x5bb   : > { %16918 = vst [vmem:[#allocation68_spill] sm:$0xff] %v14373_v39  ;;  %16920 = vst [vmem:[#allocation83_spill] sm:$0xff] %v14377_v61  ;;  %v14379_v17 = vmul.f32 0.5, %v2953_v34  ;;  %v14381_v29 = vmul.f32 81377.4, %v2953_v34  ;;  %v3076_v33 = vmul.f32 0.5, %v2948_v8  ;;  %v14384_v24 = vmax.f32 %v3202_v13, %v3458_v26 }
 0x5bc   : > { %2864 = vmatpush2.xpose.msra.mxu1 %v16919_v0  ;;  %v6465_v7 = vadd.f32 %v6464_v40, %v16921_v35  ;;  %v3080_v32 = vmul.f32 0.5, %v2952_v49  ;;  %v3336_v30 = vmul.f32 81377.4, %v2952_v49  ;;  %v3714_v51 = vmin.f32 %v3202_v13, %v3458_v26  ;;  %v16925_v35 = vld [vmem:[#allocation45_spill] sm:$0xff]  ;;  %v16927_v26 = vld [vmem:[#allocation158_spill] sm:$0xff]  ;;  %v16928_v34 = vld [vmem:[#allocation144_spill] sm:$0xff] }
 0x5bd   : > { %v14387_v41 = vmax.f32 %v3205_v10, %v3461_v45  ;;  %v3717_v25 = vmin.f32 %v3205_v10, %v3461_v45  ;;  %v3332_v59 = vmul.f32 81377.4, %v2948_v8  ;;  %8230 = vlog2.f32 %v4838_v4  ;;  %s8513_s13 = scalar_lea.vmem %s8512_s7, 512 }
 0x5be   : > { %v6466_v18 = vadd.f32 %v6465_v7, %v16922_v20  ;;  %v14394_v40 = vmul.f32 0.6931472, %v16924_v14  ;;  %v14397_v49 = vmul.f32 0.6931472, %v16925_v35  ;;  %v3209_v13 = vsub.f32 -1.6120857, %v14379_v17  ;;  %p8515_p3 = scmp.lt.s32.totalorder %s8513_s13, %s8507_s26 }
 0x5bf   : > { %16923 = vst [vmem:[#allocation96_spill] sm:$0xff] %v14387_v41  ;;  %v3465_v20 = vsub.f32 4.387914, %v14381_v29  ;;  %8232 = vpow2.f32 %v4044_v55  ;;  %v3208_v8 = vsub.f32 -1.6120857, %v3080_v32  ;;  %v3842_v45 = vsub.f32 %v3714_v51, %v14384_v24  ;;  %v14413_v29 = vpop.eup %8224 }
 0x5c0   : > { %16926 = vst [vmem:[#allocation64_spill] sm:$0xff] %v14397_v49  ;;  %v6467_v7 = vadd.f32 %v6466_v18, %v16927_v26  ;;  %v3464_v10 = vsub.f32 4.387914, %v3336_v30  ;;  %v2940_v4 = vmul.f32 %v16919_v0, %v16919_v0  ;;  %v3845_v22 = vsub.f32 %v3717_v25, %v14387_v41  ;;  %16929 = vst [vmem:[#allocation53_spill] sm:$0xff] %v14413_v29  ;;  %v16931_v0 = vld [vmem:[#allocation90_spill] sm:$0xff]  ;;  %p8516_p0 = por %p8515_p3, %p8514_p1 }
 0x5c1   : > { %v3204_v35 = vsub.f32 -1.6120857, %v3076_v33  ;;  %v3460_v62 = vsub.f32 4.387914, %v3332_v59  ;;  %v2941_v28 = vmul.f32 %v2643_v15, %v2643_v15  ;;  %v2942_v17 = vmul.f32 %v14334_v60, %v14334_v60  ;;  %v16932_v59 = vld [vmem:[#allocation163_spill] sm:$0xff] }
 0x5c2   : > { %v6468_v14 = vadd.f32 %v6467_v7, %v16928_v34  ;;  %v2943_v18 = vmul.f32 %v14327_v27, %v14327_v27  ;;  %v2944_v55 = vmul.f32 %v14340_v57, %v14340_v57  ;;  %v14415_v32 = vmax.f32 %v3209_v13, %v3465_v20  ;;  %v16934_v27 = vld [vmem:[#allocation190_spill] sm:$0xff]  ;;  %p8517_p13 = pnand %p8516_p0, %p8510_p12 }
 0x5c3   : > { %v2945_v33 = vmul.f32 %v14336_v21, %v14336_v21  ;;  %v3067_v15 = vmul.f32 0.5, %v16932_v59  ;;  %v14421_v51 = vmax.f32 %v3208_v8, %v3464_v10  ;;  %v3720_v60 = vmin.f32 %v3208_v8, %v3464_v10 }
 0x5c4   : > { %16930 = vst [vmem:[#allocation103_spill] sm:$0xff] %v14415_v32  ;;  %v6469_v30 = vadd.f32 %v6468_v14, %v16931_v0  ;;  %v4042_v25 = vmul.f32 1.442695, %v3842_v45  ;;  %v3068_v34 = vmul.f32 0.5, %v2940_v4  ;;  %v4048_v7 = vmul.f32 1.442695, %v3845_v22 }
 0x5c5   : > { %16933 = vst [vmem:[#allocation130_spill] sm:$0xff] %v14421_v51  ;;  %v14424_v57 = vmax.f32 %v3204_v35, %v3460_v62  ;;  %v3716_v16 = vmin.f32 %v3204_v35, %v3460_v62  ;;  %v3069_v47 = vmul.f32 0.5, %v2941_v28  ;;  %v3070_v14 = vmul.f32 0.5, %v2942_v17  ;;  %v16937_v62 = vld [vmem:[#allocation161_spill] sm:$0xff] }
 0x5c6   : > { %v6470_v26 = vadd.f32 %v6469_v30, %v16934_v27  ;;  %v14426_v9 = vpop.eup %8226  ;;  %v3071_v0 = vmul.f32 0.5, %v2943_v18  ;;  %v3072_v63 = vmul.f32 0.5, %v2944_v55  ;;  %v3073_v54 = vmul.f32 0.5, %v2945_v33 }
 0x5c7   : > { %16935 = vst [vmem:[#allocation192_spill] sm:$0xff] %v14424_v57  ;;  %v14428_v21 = vpop.eup %8228  ;;  %v3195_v8 = vsub.f32 -1.6120857, %v3067_v15  ;;  %v3323_v10 = vmul.f32 81377.4, %v16932_v59  ;;  %v3848_v45 = vsub.f32 %v3720_v60, %v14421_v51  ;;  %v3844_v36 = vsub.f32 %v3716_v16, %v14424_v57  ;;  %v16938_v15 = vld [vmem:[#allocation200_spill] sm:$0xff] }
 0x5c8   : > { %v6471_v23 = vadd.f32 %v6470_v26, %v16936_v6  ;;  %v3196_v22 = vsub.f32 -1.6120857, %v3068_v34  ;;  %v3324_v30 = vmul.f32 81377.4, %v2940_v4  ;;  %v3325_v27 = vmul.f32 81377.4, %v2941_v28 }
 0x5c9   : > { %v3326_v56 = vmul.f32 81377.4, %v2942_v17  ;;  %v3327_v61 = vmul.f32 81377.4, %v2943_v18  ;;  %v3328_v44 = vmul.f32 81377.4, %v2944_v55  ;;  %v3721_v28 = vmin.f32 %v3209_v13, %v3465_v20 }
 0x5ca   : > { %v6472_v35 = vadd.f32 %v6471_v23, %v16937_v62  ;;  %v3197_v53 = vsub.f32 -1.6120857, %v3069_v47  ;;  %v3198_v29 = vsub.f32 -1.6120857, %v3070_v14  ;;  %v3199_v48 = vsub.f32 -1.6120857, %v3071_v0  ;;  %v14435_v6 = vpop.eup %8230 }
 0x5cb   : > { %v3329_v59 = vmul.f32 81377.4, %v2945_v33  ;;  %v3451_v50 = vsub.f32 4.387914, %v3323_v10  ;;  %v3452_v60 = vsub.f32 4.387914, %v3324_v30  ;;  %8234 = vpow2.f32 %v4042_v25 }
 0x5cc   : > { %v6473_v26 = vadd.f32 %v6472_v35, %v16938_v15  ;;  %v14438_v34 = vpop.eup %8232  ;;  %v3453_v4 = vsub.f32 4.387914, %v3325_v27  ;;  %v3454_v23 = vsub.f32 4.387914, %v3326_v56  ;;  %v3455_v17 = vsub.f32 4.387914, %v3327_v61 }
 0x5cd   : > { %v16939_v18 = vld [vmem:[#allocation206_spill] sm:$0xff]  ;;  %v3200_v16 = vsub.f32 -1.6120857, %v3072_v63  ;;  %v3456_v47 = vsub.f32 4.387914, %v3328_v44  ;;  %8236 = vpow2.f32 %v4048_v7  ;;  %v2439_v62 = vadd.f32 1.0, %v14428_v21 }
 0x5ce   : > { %v6474_v55 = vadd.f32 %v6473_v26, %v16939_v18  ;;  %v4054_v14 = vmul.f32 1.442695, %v3848_v45  ;;  %v4046_v0 = vmul.f32 1.442695, %v3844_v36  ;;  %v16940_v35 = vld [vmem:[#allocation252_spill] sm:$0xff]  ;;  %v14443_v15 = vmax.f32 %v3195_v8, %v3451_v50  ;;  %v16941_v63 = vld [vmem:[#allocation198_spill] sm:$0xff] }
 0x5cf   : > { %v3201_v10 = vsub.f32 -1.6120857, %v3073_v54  ;;  %v3457_v30 = vsub.f32 4.387914, %v3329_v59  ;;  %v14445_v13 = vmax.f32 %v3196_v22, %v3452_v60  ;;  %v14447_v56 = vmax.f32 %v3197_v53, %v3453_v4  ;;  %v16942_v59 = vld [vmem:[#allocation210_spill] sm:$0xff]  ;;  %v16985_v57 = vld [vmem:[#allocation205_spill] sm:$0xff] }
 0x5d0   : > { %v6475_v33 = vadd.f32 %v6474_v55, %v16940_v35  ;;  %v14449_v61 = vmax.f32 %v3198_v29, %v3454_v23  ;;  %v14451_v20 = vmax.f32 %v3199_v48, %v3455_v17  ;;  %v14454_v25 = vmax.f32 %v3200_v16, %v3456_v47 }
 0x5d1   : > { %v3707_v36 = vmin.f32 %v3195_v8, %v3451_v50  ;;  %v3708_v7 = vmin.f32 %v3196_v22, %v3452_v60  ;;  %v3709_v45 = vmin.f32 %v3197_v53, %v3453_v4  ;;  %v3710_v27 = vmin.f32 %v3198_v29, %v3454_v23  ;;  %v16943_v53 = vld [vmem:[#allocation32_spill] sm:$0xff] }
 0x5d2   : > { %v6476_v44 = vadd.f32 %v6475_v33, %v16941_v63  ;;  %v3711_v54 = vmin.f32 %v3199_v48, %v3455_v17  ;;  %v3712_v26 = vmin.f32 %v3200_v16, %v3456_v47  ;;  %8238 = vpow2.f32 %v4054_v14  ;;  %v16944_v60 = vld [vmem:[#allocation260_spill] sm:$0xff]  ;;  %v16945_v47 = vld [vmem:[#allocation219_spill] sm:$0xff] }
 0x5d3   : > { %v14457_v55 = vmax.f32 %v3201_v10, %v3457_v30  ;;  %v3713_v35 = vmin.f32 %v3201_v10, %v3457_v30  ;;  %v3835_v51 = vsub.f32 %v3707_v36, %v14443_v15  ;;  %v3836_v5 = vsub.f32 %v3708_v7, %v14445_v13  ;;  %v16946_v30 = vld [vmem:[#allocation34_spill] sm:$0xff]  ;;  %v16948_v7 = vld [vmem:[#allocation221_spill] sm:$0xff] }
 0x5d4   : > { %v6477_v18 = vadd.f32 %v6476_v44, %v16942_v59  ;;  %v3837_v33 = vsub.f32 %v3709_v45, %v14447_v56  ;;  %v3838_v63 = vsub.f32 %v3710_v27, %v14449_v61  ;;  %v3849_v50 = vsub.f32 %v3721_v28, %v14415_v32  ;;  %v16947_v36 = vld [vmem:[#allocation258_spill] sm:$0xff]  ;;  %v16967_v32 = vld [vmem:[#allocation196_spill] sm:$0xff] }
 0x5d5   : > { %8240 = vlog2.f32 %v2439_v62  ;;  %v3839_v48 = vsub.f32 %v3711_v54, %v14451_v20  ;;  %v3840_v8 = vsub.f32 %v3712_v26, %v14454_v25  ;;  %v4028_v22 = vmul.f32 1.442695, %v3835_v51 }
 0x5d6   : > { %v6478_v29 = vadd.f32 %v6477_v18, %v16943_v53  ;;  %8242 = vpow2.f32 %v4046_v0  ;;  %v4030_v23 = vmul.f32 1.442695, %v3836_v5  ;;  %v4032_v17 = vmul.f32 1.442695, %v3837_v33  ;;  %v16949_v18 = vld [vmem:[#allocation31_spill] sm:$0xff] }
 0x5d7   : > { %v4034_v16 = vmul.f32 1.442695, %v3838_v63  ;;  %v6124_v14 = vmul.f32 %v16945_v47, %v16945_v47  ;;  %v3841_v10 = vsub.f32 %v3713_v35, %v14457_v55  ;;  %8244 = vpow2.f32 %v4028_v22  ;;  %v16955_v47 = vld [vmem:[#allocation77_spill] sm:$0xff]  ;;  %v16963_v63 = vld [vmem:[#allocation74_spill] sm:$0xff] }
 0x5d8   : > { %v6479_v4 = vadd.f32 %v6478_v29, %v16944_v60  ;;  %v4036_v28 = vmul.f32 1.442695, %v3839_v48  ;;  %v4056_v62 = vmul.f32 1.442695, %v3849_v50  ;;  %v5996_v0 = vsub.f32 -0.9189385, %v14394_v40  ;;  %v14473_v51 = vpop.eup %8234 }
 0x5d9   : > { %8246 = vpow2.f32 %v4030_v23  ;;  %v6125_v5 = vmul.f32 %v16947_v36, %v16947_v36  ;;  %v6126_v45 = vmul.f32 %v16948_v7, %v16948_v7  ;;  %v8652_v27 = vmov 1966171168   ;;  %v1027_v40 = vld [vmem:[%s500_s20] sm:$0x3]  ;;  %v16950_v48 = vld [vmem:[#allocation215_spill] sm:$0xff] }
 0x5da   : > { %v6480_v44 = vadd.f32 %v6479_v4, %v16946_v30  ;;  %v2706_v54 = vunpack.c.l.s4 %v8652_v27  ;;  %8248 = vpow2.f32 %v4032_v17  ;;  %v14479_v26 = vpop.eup %8236  ;;  %v4841_v59 = vmul.f32 -0.5, %v14352_v1 }
 0x5db   : > { %8250 = vpow2.f32 %v4034_v16  ;;  %v4038_v33 = vmul.f32 1.442695, %v3840_v8  ;;  %v2442_v50 = vmul.f32 -0.5, %v14428_v21  ;;  %v4040_v53 = vmul.f32 1.442695, %v3841_v10 }
 0x5dc   : > { %v6481_v35 = vadd.f32 %v6480_v44, %v16949_v18  ;;  %8252 = vpow2.f32 %v4036_v28  ;;  %v6252_v29 = vmul.f32 0.5, %v6124_v14  ;;  %v2708_v60 = vlaneseq }
 0x5dd   : > { %8254 = vpow2.f32 %v4056_v62  ;;  %v14488_v4 = vmul.f32 0.6931472, %v14426_v9  ;;  %v14490_v23 = vmul.f32 0.5, %v6125_v5  ;;  %v14492_v17 = vmul.f32 0.5, %v6126_v45  ;;  %v16956_v9 = vld [vmem:[#allocation244_spill] sm:$0xff] }
 0x5de   : > { %v6482_v22 = vadd.f32 %v6481_v35, %v16950_v48  ;;  %v14494_v16 = vunpack.c.l.bf16 %v1027_v40  ;;  %v4842_v8 = vadd.f32 1.0, %v4841_v59  ;;  %v2707_v44 = vunpack.c.0.s8 %v2706_v54 }
 0x5df   : > { %16951 = vst [vmem:[#allocation126_spill] sm:$0xff] %v14488_v4  ;;  %16952 = vst [vmem:[#allocation110_spill] sm:$0xff] %v14490_v23  ;;  %8256 = vpow2.f32 %v4038_v33  ;;  %v14497_v10 = vpop.eup %8238  ;;  %v4811_v14 = vadd.f32 1.0, %v14438_v34  ;;  %v2443_v28 = vadd.f32 1.0, %v2442_v50  ;;  %v2445_v62 = vand.u32 2147483647, %v14428_v21 }
 0x5e0   : > { %16953 = vst [vmem:[#allocation240_spill] sm:$0xff] %v14492_v17  ;;  %16954 = vst [vmem:[#allocation222_spill] sm:$0xff] %v14494_v16  ;;  %v6483_v30 = vadd.f32 %v6482_v22, %v16955_v47  ;;  %8258 = vpow2.f32 %v4040_v53  ;;  %v4814_v5 = vmul.f32 -0.5, %v14438_v34  ;;  %v4802_v7 = vadd.f32 1.0, %v14473_v51  ;;  %v16958_v53 = vld [vmem:[#allocation213_spill] sm:$0xff] }
 0x5e1   : > { %v14504_v45 = vshrl.u32 %v2708_v60, 7  ;;  %v14508_v18 = vsub.f32 %v5996_v0, %v6252_v29  ;;  %v4829_v35 = vadd.f32 1.0, %v14479_v26  ;;  %v14514_v33 = vmul.f32 %v14352_v1, %v4842_v8  ;;  %v16961_v8 = vld [vmem:[#allocation137_spill] sm:$0xff]  ;;  %v16966_v29 = vld [vmem:[#allocation216_spill] sm:$0xff] }
 0x5e2   : > { %v6484_v36 = vadd.f32 %v6483_v30, %v16956_v9  ;;  %v8241_v27 = vpop.eup %8240  ;;  %v4856_v50 = vadd.f32 1.0, %v14497_v10  ;;  %v6522_v22 = vmul.f32 %v14494_v16, %v14494_v16  ;;  %v14521_v60 = vmul.f32 0.6931472, %v14435_v6  ;;  %v16968_v17 = vld [vmem:[#allocation193_spill] sm:$0xff] }
 0x5e3   : > { %16957 = vst [vmem:[#allocation164_spill] sm:$0xff] %v14508_v18  ;;  %v14511_v40 = vpop.eup %8242  ;;  %8260 = vlog2.f32 %v4811_v14  ;;  %v2444_v0 = vmul.f32 %v14428_v21, %v2443_v28  ;;  %vm14524_vm12 = vcmp.lt.f32.partialorder %v2445_v62, 0.0004427343  ;;  %v4815_v9 = vadd.f32 1.0, %v4814_v5  ;;  %v16962_v62 = vld [vmem:[#allocation181_spill] sm:$0xff] }
 0x5e4   : > { %v6485_v48 = vadd.f32 %v6484_v36, %v16958_v53  ;;  %v14528_v47 = vpop.eup %8244  ;;  %8262 = vlog2.f32 %v4802_v7  ;;  %v14532_v36 = vsub.s32 %v2707_v44, %v14504_v45  ;;  %v4805_v6 = vmul.f32 -0.5, %v14473_v51 }
 0x5e5   : > { %8264 = vlog2.f32 %v4829_v35  ;;  %v2441_v14 = vmul.f32 0.6931472, %v8241_v27  ;;  %v4739_v21 = vadd.f32 1.0, %v14528_v47  ;;  %v4808_v44 = vand.u32 2147483647, %v14473_v51 }
 0x5e6   : > { %v6486_v30 = vadd.f32 %v6485_v48, %v16961_v8  ;;  %v14534_v53 = vpop.eup %8246  ;;  %8266 = vlog2.f32 %v4856_v50  ;;  %v4820_v48 = vadd.f32 1.0, %v14511_v40  ;;  %v4832_v8 = vmul.f32 -0.5, %v14479_v26 }
 0x5e7   : > { %v14538_v28 = vpop.eup %8248  ;;  %v4748_v5 = vadd.f32 1.0, %v14534_v53  ;;  %8268 = vlog2.f32 %v4739_v21  ;;  %v14552_v50 = vmul.f32 %v14438_v34, %v4815_v9  ;;  %v4806_v16 = vadd.f32 1.0, %v4805_v6  ;;  %v16964_v21 = vld [vmem:[#allocation104_spill] sm:$0xff] }
 0x5e8   : > { %v6487_v59 = vadd.f32 %v6486_v30, %v16962_v62  ;;  %v14543_v7 = vpop.eup %8250  ;;  %v4757_v27 = vadd.f32 1.0, %v14538_v28  ;;  %v14554_v30 = vmul.f32 0.5, %v6522_v22  ;;  %v14568_v9 = vadd.f32 1.0, %v4832_v8 }
 0x5e9   : > { %v14548_v35 = vpop.eup %8252  ;;  %8270 = vlog2.f32 %v4748_v5  ;;  %v4742_v6 = vmul.f32 -0.5, %v14528_v47  ;;  %v4823_v8 = vmul.f32 -0.5, %v14511_v40  ;;  %v4745_v11 = vand.u32 2147483647, %v14528_v47 }
 0x5ea   : > { %v6488_v54 = vadd.f32 %v6487_v59, %v16963_v63  ;;  %v14556_v62 = vpop.eup %8254  ;;  %8272 = vlog2.f32 %v4757_v27  ;;  %v14563_v63 = vsel %vm14524_vm12, %v2444_v0, %v2441_v14  ;;  %v4766_v59 = vadd.f32 1.0, %v14543_v7 }
 0x5eb   : > { %8274 = vlog2.f32 %v4820_v48  ;;  %16965 = vst [vmem:[#allocation124_spill] sm:$0xff] %v14563_v63  ;;  %v4775_v5 = vadd.f32 1.0, %v14548_v35  ;;  %v4751_v14 = vmul.f32 -0.5, %v14534_v53  ;;  %v14581_v48 = vmul.f32 %v14473_v51, %v4806_v16 }
 0x5ec   : > { %v6489_v52 = vadd.f32 %v6488_v54, %v16964_v21  ;;  %v14566_v22 = vpop.eup %8256  ;;  %8276 = vlog2.f32 %v14563_v63  ;;  %v14576_v54 = vadd.f32 1.0, %v14556_v62  ;;  %v4760_v21 = vmul.f32 -0.5, %v14538_v28 }
 0x5ed   : > { %v14573_v27 = vpop.eup %8258  ;;  %8278 = vlog2.f32 %v4766_v59  ;;  %v4769_v18 = vmul.f32 -0.5, %v14543_v7  ;;  %v4784_v4 = vadd.f32 1.0, %v14566_v22  ;;  %v4778_v59 = vmul.f32 -0.5, %v14548_v35 }
 0x5ee   : > { %v6490_v0 = vadd.f32 %v6489_v52, %v16966_v29  ;;  %8280 = vlog2.f32 %v4775_v5  ;;  %v4743_v52 = vadd.f32 1.0, %v4742_v6  ;;  %v4754_v29 = vand.u32 2147483647, %v14534_v53 }
 0x5ef   : > { %v4793_v51 = vadd.f32 1.0, %v14573_v27  ;;  %v4752_v5 = vadd.f32 1.0, %v4751_v14  ;;  %8282 = vlog2.f32 %v4784_v4  ;;  %v4761_v19 = vadd.f32 1.0, %v4760_v21  ;;  %v16990_v21 = vld [vmem:[#allocation29_spill] sm:$0xff] }
 0x5f0   : > { %v6491_v63 = vadd.f32 %v6490_v0, %v16967_v32  ;;  %v14592_v16 = vpop.eup %8260  ;;  %v4763_v32 = vand.u32 2147483647, %v14538_v28  ;;  %v4772_v6 = vand.u32 2147483647, %v14543_v7  ;;  %v14601_v49 = vadd.f32 1.0, %v4823_v8 }
 0x5f1   : > { %v8263_v0 = vpop.eup %8262  ;;  %8284 = vlog2.f32 %v4793_v51  ;;  %v4770_v23 = vadd.f32 1.0, %v4769_v18  ;;  %v4744_v4 = vmul.f32 %v14528_v47, %v4743_v52  ;;  %vm14607_vm1 = vcmp.lt.f32.partialorder %v4745_v11, 0.0004427343 }
 0x5f2   : > { %v6492_v39 = vadd.f32 %v6491_v63, %v16968_v17  ;;  %v14598_v42 = vpop.eup %8264  ;;  %v4781_v17 = vand.u32 2147483647, %v14548_v35  ;;  %vm14611_vm13 = vcmp.lt.f32.partialorder %v4754_v29, 0.0004427343  ;;  %v4779_v51 = vadd.f32 1.0, %v4778_v59  ;;  %v16999_v59 = vld [vmem:[#allocation256_spill] sm:$0xff] }
 0x5f3   : > { %v14604_v63 = vpop.eup %8266  ;;  %v4753_v18 = vmul.f32 %v14534_v53, %v4752_v5  ;;  %vm14617_vm11 = vcmp.lt.f32.partialorder %v4763_v32, 0.0004427343  ;;  %v4787_v47 = vmul.f32 -0.5, %v14566_v22  ;;  %vm14622_vm10 = vcmp.lt.f32.partialorder %v4808_v44, 0.0004427343  ;;  %v16982_v5 = vld [vmem:[#allocation236_spill] sm:$0xff] }
 0x5f4   : > { %v6493_v46 = vadd.f32 %v6492_v39, %v16969_v37  ;;  %16970 = vst [vmem:[#allocation159_spill] sm:$0xff] %v14604_v63  ;;  %v8269_v3 = vpop.eup %8268  ;;  %v16975_v37 = vld [vmem:[#allocation233_spill] sm:$0xff]  ;;  %v4762_v43 = vmul.f32 %v14538_v28, %v4761_v19  ;;  %vm14627_vm15 = vcmp.lt.f32.partialorder %v4772_v6, 0.0004427343  ;;  %v4771_v41 = vmul.f32 %v14543_v7, %v4770_v23  ;;  %v17039_v23 = vld [vmem:[#allocation164_spill] sm:$0xff] }
 0x5f5   : > { %v4741_v29 = vmul.f32 0.6931472, %v8269_v3  ;;  %vm14634_vm14 = vcmp.lt.f32.partialorder %v4781_v17, 0.0004427343  ;;  %v4780_v28 = vmul.f32 %v14548_v35, %v4779_v51  ;;  %v4790_v6 = vand.u32 2147483647, %v14566_v22 }
 0x5f6   : > { %v6494_v39 = vadd.f32 %v6493_v46, %v16975_v37  ;;  %v8271_v11 = vpop.eup %8270  ;;  %v4796_v46 = vmul.f32 -0.5, %v14573_v27  ;;  %v4788_v17 = vadd.f32 1.0, %v4787_v47  ;;  %8286 = vlog2.f32 %v14576_v54 }
 0x5f7   : > { %v8273_v53 = vpop.eup %8272  ;;  %v4750_v37 = vmul.f32 0.6931472, %v8271_v11  ;;  %v4747_v19 = vsel %vm14607_vm1, %v4744_v4, %v4741_v29  ;;  %v4799_v11 = vand.u32 2147483647, %v14573_v27  ;;  %v16989_v29 = vld [vmem:[#allocation239_spill] sm:$0xff] }
 0x5f8   : > { %v6495_v32 = vadd.f32 %v6494_v39, %v16982_v5  ;;  %v8275_v38 = vpop.eup %8274  ;;  %v4759_v3 = vmul.f32 0.6931472, %v8273_v53  ;;  %v16986_v39 = vand.u32 2147483647, %v14438_v34  ;;  %v5371_v4 = vadd.f32 %v4747_v19, %v14443_v15  ;;  %v2715_v19 = vld [vmem:[#allocation2] sm:$0xff] }
 0x5f9   : > { %v8277_v63 = vpop.eup %8276  ;;  %v4756_v7 = vsel %vm14611_vm13, %v4753_v18, %v4750_v37  ;;  %v4797_v51 = vadd.f32 1.0, %v4796_v46  ;;  %v4804_v15 = vmul.f32 0.6931472, %v8263_v0  ;;  %vm14660_vm0 = vcmp.lt.f32.partialorder %v4790_v6, 0.0004427343  ;;  %v2716_v0 = vld [vmem:[#allocation2 + $0x8] sm:$0xff] }
 0x5fa   : > { %v6496_v12 = vadd.f32 %v6495_v32, %v16985_v57  ;;  %vm14645_vm5 = vcmp.lt.f32.partialorder %v16986_v39, 0.0004427343  ;;  %v8279_v14 = vpop.eup %8278  ;;  %v4765_v35 = vsel %vm14617_vm11, %v4762_v43, %v4759_v3  ;;  %v5372_v57 = vadd.f32 %v4756_v7, %v14445_v13  ;;  %v2718_v3 = vld [vmem:[#allocation2 + $0x18] sm:$0xff]  ;;  %2794 = vmatprep.mubr.f32.mxu0 %v2716_v0 }
 0x5fb   : > { %v8281_v34 = vpop.eup %8280  ;;  %v4768_v5 = vmul.f32 0.6931472, %v8279_v14  ;;  %v5373_v32 = vadd.f32 %v4765_v35, %v14447_v56  ;;  %v5498_v18 = vadd.f32 %v16990_v21, %v5371_v4  ;;  %v16993_v43 = vand.u32 2147483647, %v14352_v1  ;;  %2865 = vmatprep.mubr.f32.mxu1 %v2718_v3  ;;  %2795 = vmatmul.mubr.f32.vlgmr.msra.gmra.mxu0 %v2715_v19  ;;  %v17001_v21 = vld [vmem:[#allocation257_spill] sm:$0xff]  ;;  %v17017_v13 = vld [vmem:[#allocation192_spill] sm:$0xff] }
 0x5fc   : > { %v6497_v53 = vadd.f32 %v6496_v12, %v16989_v29  ;;  %v4777_v47 = vmul.f32 0.6931472, %v8281_v34  ;;  %v16996_v12 = vld [vmem:[#allocation250_spill] sm:$0xff]  ;;  %v4789_v37 = vmul.f32 %v14566_v22, %v4788_v17  ;;  %v8283_v6 = vpop.eup %8282  ;;  %v4798_v1 = vmul.f32 %v14573_v27, %v4797_v51  ;;  %v17000_v51 = vld [vmem:[#allocation255_spill] sm:$0xff]  ;;  %v17061_v7 = vld [vmem:[#allocation69_spill] sm:$0xff] }
 0x5fd   : > { %vm14666_vm3 = vcmp.lt.f32.partialorder %v16993_v43, 0.0004427343  ;;  %v4774_v56 = vsel %vm14627_vm15, %v4771_v41, %v4768_v5  ;;  %v5499_v54 = vadd.f32 %v5498_v18, %v5372_v57  ;;  %vm14677_vm8 = vcmp.lt.f32.partialorder %v4799_v11, 0.0004427343  ;;  %v2717_v41 = vld [vmem:[#allocation2 + $0x10] sm:$0xff]  ;;  %v17008_v43 = vld [vmem:[#allocation245_spill] sm:$0xff] }
 0x5fe   : > { %v6498_v46 = vadd.f32 %v6497_v53, %v16996_v12  ;;  %v4783_v39 = vsel %vm14634_vm14, %v4780_v28, %v4777_v47  ;;  %v5374_v4 = vadd.f32 %v4774_v56, %v14449_v61  ;;  %v8285_v22 = vpop.eup %8284  ;;  %v4786_v14 = vmul.f32 0.6931472, %v8283_v6  ;;  %2866 = vmatmul.mubr.f32.vlgmr.msra.gmra.mxu1 %v2717_v41  ;;  %v17031_v47 = vld [vmem:[#allocation106_spill] sm:$0xff] }
 0x5ff   : > { %v5375_v35 = vadd.f32 %v4783_v39, %v14451_v20  ;;  %v5500_v57 = vadd.f32 %v5499_v54, %v5373_v32  ;;  %v4859_v27 = vmul.f32 -0.5, %v14497_v10  ;;  %v4813_v44 = vmul.f32 0.6931472, %v14592_v16  ;;  %v17012_v54 = vld [vmem:[#allocation254_spill] sm:$0xff] }
 0x600   : > { %v6499_v17 = vadd.f32 %v6498_v46, %v16999_v59  ;;  %v4825_v28 = vmul.f32 %v14511_v40, %v14601_v49  ;;  %v4795_v61 = vmul.f32 0.6931472, %v8285_v22  ;;  %v4810_v34 = vsel %vm14622_vm10, %v14581_v48, %v4804_v15  ;;  %v17018_v22 = vld [vmem:[#allocation159_spill] sm:$0xff] }
 0x601   : > { %v4792_v20 = vsel %vm14660_vm0, %v4789_v37, %v4786_v14  ;;  %v5501_v29 = vadd.f32 %v5500_v57, %v5374_v4  ;;  %v4822_v53 = vmul.f32 0.6931472, %v8275_v38  ;;  %v6520_v5 = vmul.f32 0.6931472, %v8277_v63  ;;  %v17016_v4 = vld [vmem:[#allocation80_spill] sm:$0xff]  ;;  %v17021_v57 = vld [vmem:[#allocation49_spill] sm:$0xff] }
 0x602   : > { %v6500_v11 = vadd.f32 %v6499_v17, %v17000_v51  ;;  %v4801_v32 = vsel %vm14677_vm8, %v4798_v1, %v4795_v61  ;;  %v5376_v16 = vadd.f32 %v4792_v20, %v14454_v25  ;;  %v17002_v18 = vand.u32 2147483647, %v14511_v40  ;;  %v17023_v51 = vld [vmem:[#allocation57_spill] sm:$0xff] }
 0x603   : > { %v5377_v48 = vadd.f32 %v4801_v32, %v14457_v55  ;;  %v5502_v52 = vadd.f32 %v5501_v29, %v5375_v35  ;;  %v4868_v15 = vmul.f32 -0.5, %v14556_v62  ;;  %v4819_v38 = vsel %vm14645_vm5, %v14552_v50, %v4813_v44  ;;  %v17022_v44 = vld [vmem:[#allocation96_spill] sm:$0xff]  ;;  %v17024_v29 = vld [vmem:[#allocation110_spill] sm:$0xff] }
 0x604   : > { %v6501_v49 = vadd.f32 %v6500_v11, %v17001_v21  ;;  %vm14700_vm4 = vcmp.lt.f32.partialorder %v17002_v18, 0.0004427343  ;;  %v4831_v63 = vmul.f32 0.6931472, %v14598_v42  ;;  %v4834_v25 = vmul.f32 %v14479_v26, %v14568_v9  ;;  %v17030_v21 = vld [vmem:[#allocation76_spill] sm:$0xff] }
 0x605   : > { %v17005_v40 = vand.u32 2147483647, %v14135_v58  ;;  %v5378_v12 = vadd.f32 %v4810_v34, %v14384_v24  ;;  %v17009_v46 = vand.u32 2147483647, %v14479_v26  ;;  %v5503_v42 = vadd.f32 %v5502_v52, %v5376_v16  ;;  %v17033_v52 = vld [vmem:[#allocation243_spill] sm:$0xff]  ;;  %v17059_v16 = vld [vmem:[#allocation73_spill] sm:$0xff] }
 0x606   : > { %v6502_v55 = vadd.f32 %v6501_v49, %v17008_v43  ;;  %v4860_v50 = vadd.f32 1.0, %v4859_v27  ;;  %v4828_v9 = vsel %vm14700_vm4, %v4825_v28, %v4822_v53  ;;  %v6521_v58 = vsub.f32 -0.9189385, %v6520_v5  ;;  %v17027_v5 = vld [vmem:[#allocation84_spill] sm:$0xff] }
 0x607   : > { %vm14714_vm6 = vcmp.lt.f32.partialorder %v17005_v40, 0.0004427343  ;;  %vm14722_vm12 = vcmp.lt.f32.partialorder %v17009_v46, 0.0004427343  ;;  %v6531_v56 = vrot.slane %v14554_v30, %v14532_v36  ;;  %v4862_v37 = vand.u32 2147483647, %v14497_v10  ;;  %v8287_v30 = vpop.eup %8286 }
 0x608   : > { %v6503_v0 = vadd.f32 %v6502_v55, %v17012_v54  ;;  %v5379_v24 = vadd.f32 %v4819_v38, %v14324_v31  ;;  %v5504_v26 = vadd.f32 %v5503_v42, %v5377_v48  ;;  %v4846_v19 = vsel %vm14666_vm3, %v14514_v33, %v14521_v60  ;;  %v17036_v43 = vld [vmem:[#allocation240_spill] sm:$0xff]  ;;  %v17037_v55 = vld [vmem:[#allocation126_spill] sm:$0xff] }
 0x609   : > { %v4869_v3 = vadd.f32 1.0, %v4868_v15  ;;  %v4837_v6 = vsel %vm14722_vm12, %v4834_v25, %v4831_v63  ;;  %v14740_v39 = vsub.s32 0, %v14504_v45  ;;  %v17013_v1 = vand.u32 2147483647, %v14219_v2  ;;  %v17034_v15 = vld [vmem:[#allocation68_spill] sm:$0xff] }
 0x60a   : > { %v4871_v31 = vand.u32 2147483647, %v14556_v62  ;;  %v6504_v41 = vadd.f32 %v6503_v0, %v17016_v4  ;;  %v5380_v33 = vadd.f32 %v4828_v9, %v17017_v13  ;;  %v5505_v60 = vadd.f32 %v5504_v26, %v5378_v12  ;;  %v17040_v9 = vld [vmem:[#allocation116_spill] sm:$0xff]  ;;  %v17043_v0 = vld [vmem:[#allocation58_spill] sm:$0xff]  ;;  %v17046_v4 = vld [vmem:[#allocation53_spill] sm:$0xff] }
 0x60b   : > { %vm14744_vm1 = vcmp.lt.f32.partialorder %v17013_v1, 0.0004427343  ;;  %v4858_v59 = vmul.f32 0.6931472, %v17018_v22  ;;  %v4861_v17 = vmul.f32 %v14497_v10, %v4860_v50  ;;  %v14754_v14 = vsub.s32 1, %v14504_v45  ;;  %v17025_v10 = vld [vmem:[#allocation64_spill] sm:$0xff] }
 0x60c   : > { %v6533_v35 = vsub.f32 %v6521_v58, %v6531_v56  ;;  %vm14756_vm13 = vcmp.lt.f32.partialorder %v4862_v37, 0.0004427343  ;;  %v6505_v27 = vadd.f32 %v6504_v41, %v17021_v57  ;;  %v5381_v28 = vadd.f32 %v4837_v6, %v17022_v44  ;;  %v17041_v56 = vld [vmem:[#allocation38_spill] sm:$0xff]  ;;  %v17042_v37 = vld [vmem:[#allocation60_spill] sm:$0xff] }
 0x60d   : > { %v5506_v61 = vadd.f32 %v5505_v60, %v5379_v24  ;;  %v4896_v11 = vadd.f32 1.0, %v17023_v51  ;;  %v4867_v34 = vmul.f32 0.6931472, %v8287_v30  ;;  %v4870_v20 = vmul.f32 %v14556_v62, %v4869_v3  ;;  %v17045_v6 = vld [vmem:[#allocation130_spill] sm:$0xff]  ;;  %v17047_v13 = vld [vmem:[#allocation52_spill] sm:$0xff]  ;;  %v17054_v51 = vld [vmem:[#allocation83_spill] sm:$0xff] }
 0x60e   : > { %v17026_v53 = vsub.f32 -0.9189385, %v17025_v10  ;;  %v5382_v32 = vadd.f32 %v4846_v19, %v17027_v5  ;;  %vm14768_vm11 = vcmp.lt.f32.partialorder %v4871_v31, 0.0004427343  ;;  %v6506_v49 = vadd.f32 %v6505_v27, %v17030_v21  ;;  %v17044_v19 = vld [vmem:[#allocation44_spill] sm:$0xff]  ;;  %v17052_v27 = vld [vmem:[#allocation67_spill] sm:$0xff] }
 0x60f   : > { %v5507_v18 = vadd.f32 %v5506_v61, %v5380_v33  ;;  %v17035_v38 = vsel %vm14354_vm9, %v17033_v52, %v17034_v15  ;;  %v4864_v63 = vsel %vm14756_vm13, %v4861_v17, %v4858_v59  ;;  %v6538_v25 = vrot.slane %v6533_v35, %v14740_v39  ;;  %v17051_v17 = vld [vmem:[#allocation103_spill] sm:$0xff]  ;;  %v17058_v5 = vld [vmem:[#allocation42_spill] sm:$0xff]  ;;  %v17060_v21 = vld [vmem:[#allocation100_spill] sm:$0xff] }
 0x610   : > { %v6381_v45 = vsub.f32 %v17026_v53, %v17024_v29  ;;  %v5383_v62 = vadd.f32 %v17035_v38, %v17031_v47  ;;  %v6542_v40 = vrot.slane %v6533_v35, %v14754_v14  ;;  %v17038_v12 = vsub.f32 -0.9189385, %v17037_v55  ;;  %v17065_v15 = vld [vmem:[#allocation71_spill] sm:$0xff]  ;;  %v17068_v55 = vld [vmem:[#allocation94_spill] sm:$0xff] }
 0x611   : > { %v6507_v42 = vadd.f32 %v6506_v49, %v17039_v23  ;;  %vm5601_vm10 = vcmask 1040384   ;;  %v5508_v50 = vadd.f32 %v5507_v18, %v5381_v28  ;;  %v4885_v58 = vmul.f32 0.6931472, %v17040_v9  ;;  %v17053_v28 = vld [vmem:[#allocation66_spill] sm:$0xff] }
 0x612   : > { %v6382_v46 = vsub.f32 %v17038_v12, %v17036_v43  ;;  %v4882_v54 = vsel %vm14714_vm6, %v17042_v37, %v17041_v56  ;;  %v4905_v24 = vadd.f32 1.0, %v17043_v0  ;;  %v4873_v26 = vsel %vm14768_vm11, %v4870_v20, %v4867_v34  ;;  %v17055_v20 = vld [vmem:[#allocation70_spill] sm:$0xff]  ;;  %v17069_v12 = vld [vmem:[#allocation79_spill] sm:$0xff] }
 0x613   : > { %v4907_v3 = vand.u32 2147483647, %v17044_v19  ;;  %v5384_v30 = vadd.f32 %v4864_v63, %v17045_v6  ;;  %v6508_v1 = vadd.f32 %v6507_v42, %v6381_v45  ;;  %v5509_v31 = vadd.f32 %v5508_v50, %v5382_v32  ;;  %v17073_v56 = vld [vmem:[#allocation99_spill] sm:$0xff]  ;;  %v17074_v0 = vld [vmem:[#allocation118_spill] sm:$0xff] }
 0x614   : > { %v4894_v41 = vmul.f32 0.6931472, %v17046_v4  ;;  %v4897_v33 = vmul.f32 %v17047_v13, %v4896_v11  ;;  %v6545_v60 = vsel %vm5601_vm10, %v6538_v25, 0.0  ;;  %v6546_v8 = vsel %vm5601_vm10, %v6542_v40, 0.0  ;;  %v17067_v40 = vld [vmem:[#allocation59_spill] sm:$0xff] }
 0x615   : > { %v17048_v22 = vand.u32 2147483647, %v17047_v13  ;;  %v5385_v35 = vadd.f32 %v4873_v26, %v17051_v17  ;;  %v6509_v2 = vadd.f32 %v6508_v1, %v6382_v46  ;;  %v5510_v57 = vadd.f32 %v5509_v31, %v5383_v62  ;;  %v17066_v62 = vld [vmem:[#allocation86_spill] sm:$0xff]  ;;  %v17079_v4 = vld [vmem:[#allocation51_spill] sm:$0xff] }
 0x616   : > { %v4940_v44 = vmul.f32 -0.5, %v17052_v27  ;;  %v4891_v61 = vsel %vm14744_vm1, %v17053_v28, %v4885_v58  ;;  %v4903_v11 = vmul.f32 0.6931472, %v17054_v51  ;;  %v4906_v34 = vmul.f32 %v17044_v19, %v4905_v24  ;;  %v17075_v19 = vld [vmem:[#allocation220_spill] sm:$0xff] }
 0x617   : > { %vm14803_vm9 = vcmp.lt.f32.partialorder %v17048_v22, 0.0004427343  ;;  %v5386_v29 = vadd.f32 %v4882_v54, %v17055_v20  ;;  %vm14815_vm15 = vcmp.lt.f32.partialorder %v4907_v3, 0.0004427343  ;;  %6510 = vadd.xlane.f32.xlu1 %v6509_v2  ;;  %v6547_v53 = vadd.f32 %v6546_v8, %v6545_v60  ;;  %v17081_v22 = vld [vmem:[#allocation41_spill] sm:$0xff]  ;;  %v17090_v20 = vld [vmem:[#allocation95_spill] sm:$0xff] }
 0x618   : > { %v5511_v45 = vadd.f32 %v5510_v57, %v5384_v30  ;;  %v4912_v32 = vmul.f32 0.6931472, %v17058_v5  ;;  %v4915_v49 = vmul.f32 %v17060_v21, %v17059_v16  ;;  %v4932_v18 = vadd.f32 1.0, %v17061_v7  ;;  %v17076_v30 = vld [vmem:[#allocation78_spill] sm:$0xff] }
 0x619   : > { %v4900_v47 = vsel %vm14803_vm9, %v4897_v33, %v4894_v41  ;;  %v17062_v48 = vand.u32 2147483647, %v17060_v21  ;;  %v4934_v38 = vand.u32 2147483647, %v17065_v15  ;;  %v5387_v63 = vadd.f32 %v4891_v61, %v17066_v62  ;;  %v17080_v33 = vld [vmem:[#allocation82_spill] sm:$0xff]  ;;  %v17120_v61 = vld [vmem:[#allocation129_spill] sm:$0xff] }
 0x61a   : > { %v5512_v25 = vadd.f32 %v5511_v45, %v5385_v35  ;;  %v4921_v43 = vmul.f32 0.6931472, %v17067_v40  ;;  %v4924_v46 = vmul.f32 %v17069_v12, %v17068_v55  ;;  %v4941_v23 = vadd.f32 1.0, %v4940_v44  ;;  %v17082_v35 = vld [vmem:[#allocation121_spill] sm:$0xff]  ;;  %v17086_v44 = vld [vmem:[#allocation112_spill] sm:$0xff] }
 0x61b   : > { %vm14827_vm14 = vcmp.lt.f32.partialorder %v17062_v48, 0.0004427343  ;;  %v4909_v42 = vsel %vm14815_vm15, %v4906_v34, %v4903_v11  ;;  %v17070_v50 = vand.u32 2147483647, %v17069_v12  ;;  %v4943_v58 = vand.u32 2147483647, %v17052_v27  ;;  %6548 = vadd.xlane.f32.xlu1 %v6547_v53 }
 0x61c   : > { %v5388_v37 = vadd.f32 %v4900_v47, %v17073_v56  ;;  %v5513_v54 = vadd.f32 %v5512_v25, %v5386_v29  ;;  %v4967_v24 = vmul.f32 -0.5, %v17074_v0  ;;  %v4918_v26 = vsel %vm14827_vm14, %v4915_v49, %v4912_v32  ;;  %v17089_v11 = vld [vmem:[#allocation39_spill] sm:$0xff]  ;;  %v17091_v45 = vld [vmem:[#allocation92_spill] sm:$0xff]  ;;  %v17092_v32 = vld [vmem:[#allocation222_spill] sm:$0xff] }
 0x61d   : > { %vm14840_vm5 = vcmp.lt.f32.partialorder %v17070_v50, 0.0004427343  ;;  %v4930_v3 = vmul.f32 0.6931472, %v17075_v19  ;;  %v4933_v6 = vmul.f32 %v17065_v15, %v4932_v18  ;;  %v4959_v1 = vadd.f32 1.0, %v17076_v30  ;;  %v17093_v49 = vld [vmem:[#allocation50_spill] sm:$0xff] }
 0x61e   : > { %vm14852_vm0 = vcmp.lt.f32.partialorder %v4934_v38, 0.0004427343  ;;  %v5389_v41 = vadd.f32 %v4909_v42, %v17079_v4  ;;  %v5514_v13 = vadd.f32 %v5513_v54, %v5387_v63  ;;  %v4976_v60 = vmul.f32 -0.5, %v17080_v33  ;;  %v17094_v18 = vld [vmem:[#allocation87_spill] sm:$0xff]  ;;  %v17098_v63 = vld [vmem:[#allocation109_spill] sm:$0xff]  ;;  %v17100_v12 = vld [vmem:[#allocation56_spill] sm:$0xff] }
 0x61f   : > { %v4927_v8 = vsel %vm14840_vm5, %v4924_v46, %v4921_v43  ;;  %v4939_v59 = vmul.f32 0.6931472, %v17081_v22  ;;  %v4942_v17 = vmul.f32 %v17052_v27, %v4941_v23  ;;  %v17083_v2 = vand.u32 2147483647, %v17082_v35  ;;  %v17099_v40 = vld [vmem:[#allocation105_spill] sm:$0xff]  ;;  %v17103_v50 = vld [vmem:[#allocation111_spill] sm:$0xff] }
 0x620   : > { %v5390_v28 = vadd.f32 %v4918_v26, %v17086_v44  ;;  %vm14869_vm8 = vcmp.lt.f32.partialorder %v4943_v58, 0.0004427343  ;;  %v5515_v51 = vadd.f32 %v5514_v13, %v5388_v37  ;;  %v4948_v34 = vmul.f32 0.6931472, %v17089_v11  ;;  %v17104_v58 = vld [vmem:[#allocation124_spill] sm:$0xff]  ;;  %v17105_v54 = vld [vmem:[#allocation146_spill] sm:$0xff] }
 0x621   : > { %vm14864_vm3 = vcmp.lt.f32.partialorder %v17083_v2, 0.0004427343  ;;  %v4951_v29 = vmul.f32 %v17082_v35, %v17090_v20  ;;  %v4968_v10 = vadd.f32 1.0, %v4967_v24  ;;  %v4936_v27 = vsel %vm14852_vm0, %v4933_v6, %v4930_v3  ;;  %v17106_v19 = vld [vmem:[#allocation61_spill] sm:$0xff]  ;;  %v17107_v30 = vld [vmem:[#allocation160_spill] sm:$0xff]  ;;  %v17111_v4 = vld [vmem:[#allocation142_spill] sm:$0xff] }
 0x622   : > { %v4970_v53 = vand.u32 2147483647, %v17074_v0  ;;  %v5391_v5 = vadd.f32 %v4927_v8, %v17091_v45  ;;  %v2711_v16 = vrot.slane %v17092_v32, %v14532_v36  ;;  %v5516_v21 = vadd.f32 %v5515_v51, %v5389_v41  ;;  %v17114_v8 = vld [vmem:[#allocation93_spill] sm:$0xff]  ;;  %v17116_v2 = vld [vmem:[#allocation171_spill] sm:$0xff] }
 0x623   : > { %v4957_v7 = vmul.f32 0.6931472, %v17093_v49  ;;  %v4960_v47 = vmul.f32 %v17094_v18, %v4959_v1  ;;  %v4977_v48 = vadd.f32 1.0, %v4976_v60  ;;  %v4945_v52 = vsel %vm14869_vm8, %v4942_v17, %v4939_v59  ;;  %v17115_v59 = vld [vmem:[#allocation48_spill] sm:$0xff]  ;;  %v17121_v20 = vld [vmem:[#allocation133_spill] sm:$0xff]  ;;  %v17127_v49 = vld [vmem:[#allocation122_spill] sm:$0xff] }
 0x624   : > { %v17095_v15 = vand.u32 2147483647, %v17094_v18  ;;  %v4979_v62 = vand.u32 2147483647, %v17080_v33  ;;  %v5392_v36 = vadd.f32 %v4936_v27, %v17098_v63  ;;  %v5517_v25 = vadd.f32 %v5516_v21, %v5390_v28  ;;  %v17123_v27 = vld [vmem:[#allocation150_spill] sm:$0xff]  ;;  %v17134_v42 = vld [vmem:[#allocation63_spill] sm:$0xff] }
 0x625   : > { %v5003_v43 = vmul.f32 -0.5, %v17099_v40  ;;  %v4954_v55 = vsel %vm14864_vm3, %v4951_v29, %v4948_v34  ;;  %v4966_v46 = vmul.f32 0.6931472, %v17100_v12  ;;  %v4969_v23 = vmul.f32 %v17074_v0, %v4968_v10  ;;  %v1025_v0 = vld [vmem:[%s482_s1] sm:$0x3]  ;;  %v17122_v10 = vld [vmem:[#allocation72_spill] sm:$0xff] }
 0x626   : > { %vm14888_vm4 = vcmp.lt.f32.partialorder %v17095_v15, 0.0004427343  ;;  %vm14899_vm6 = vcmp.lt.f32.partialorder %v4970_v53, 0.0004427343  ;;  %v5393_v9 = vadd.f32 %v4945_v52, %v17103_v50  ;;  %v2713_v56 = vmul.f32 %v2711_v16, %v17104_v58  ;;  %v17129_v15 = vld [vmem:[#allocation55_spill] sm:$0xff]  ;;  %v17133_v12 = vld [vmem:[#allocation117_spill] sm:$0xff] }
 0x627   : > { %v5518_v37 = vadd.f32 %v5517_v25, %v5391_v5  ;;  %v5012_v24 = vmul.f32 -0.5, %v17105_v54  ;;  %v4963_v26 = vsel %vm14888_vm4, %v4960_v47, %v4957_v7  ;;  %v4975_v3 = vmul.f32 0.6931472, %v17106_v19  ;;  %v17128_v47 = vld [vmem:[#allocation145_spill] sm:$0xff]  ;;  %v17139_v19 = vld [vmem:[#allocation152_spill] sm:$0xff]  ;;  %v17156_v16 = vld [vmem:[#allocation127_spill] sm:$0xff] }
 0x628   : > { %v4978_v6 = vmul.f32 %v17080_v33, %v4977_v48  ;;  %v17108_v1 = vand.u32 2147483647, %v17107_v30  ;;  %v5394_v41 = vadd.f32 %v4954_v55, %v17111_v4  ;;  %vm14919_vm1 = vcmp.lt.f32.partialorder %v4979_v62, 0.0004427343  ;;  %v17144_v4 = vld [vmem:[#allocation179_spill] sm:$0xff]  ;;  %v17158_v44 = vld [vmem:[#allocation81_spill] sm:$0xff] }
 0x629   : > { %v5519_v60 = vadd.f32 %v5518_v37, %v5392_v36  ;;  %v4984_v22 = vmul.f32 0.6931472, %v17114_v8  ;;  %v4987_v33 = vmul.f32 %v17107_v30, %v17115_v59  ;;  %v5004_v17 = vadd.f32 1.0, %v5003_v43  ;;  %v17132_v36 = vld [vmem:[#allocation120_spill] sm:$0xff]  ;;  %v17159_v63 = vld [vmem:[#allocation98_spill] sm:$0xff] }
 0x62a   : > { %vm14914_vm12 = vcmp.lt.f32.partialorder %v17108_v1, 0.0004427343  ;;  %v4972_v35 = vsel %vm14899_vm6, %v4969_v23, %v4966_v46  ;;  %v17117_v57 = vand.u32 2147483647, %v17116_v2  ;;  %v5006_v28 = vand.u32 2147483647, %v17099_v40 }
 0x62b   : > { %v5395_v51 = vadd.f32 %v4963_v26, %v17120_v61  ;;  %v14936_v11 = vadd.f32 %v2713_v56, %v1025_v0  ;;  %v5520_v34 = vadd.f32 %v5519_v60, %v5393_v9  ;;  %v4993_v29 = vmul.f32 0.6931472, %v17121_v20  ;;  %v17135_v9 = vld [vmem:[#allocation88_spill] sm:$0xff]  ;;  %v17136_v56 = vld [vmem:[#allocation166_spill] sm:$0xff] }
 0x62c   : > { %vm14930_vm13 = vcmp.lt.f32.partialorder %v17117_v57, 0.0004427343  ;;  %v4996_v53 = vmul.f32 %v17123_v27, %v17122_v10  ;;  %v5013_v45 = vadd.f32 1.0, %v5012_v24  ;;  %v4981_v5 = vsel %vm14919_vm1, %v4978_v6, %v4975_v3  ;;  %v17143_v0 = vld [vmem:[#allocation102_spill] sm:$0xff]  ;;  %v17152_v20 = vld [vmem:[#allocation140_spill] sm:$0xff]  ;;  %v17171_v24 = vld [vmem:[#allocation131_spill] sm:$0xff] }
 0x62d   : > { %v17124_v32 = vand.u32 2147483647, %v17123_v27  ;;  %v5015_v21 = vand.u32 2147483647, %v17105_v54  ;;  %v5396_v7 = vadd.f32 %v4972_v35, %v17127_v49  ;;  %v5521_v18 = vadd.f32 %v5520_v34, %v5394_v41  ;;  %v17151_v61 = vld [vmem:[#allocation114_spill] sm:$0xff]  ;;  %v17187_v6 = vld [vmem:[#allocation141_spill] sm:$0xff] }
 0x62e   : > { %v5039_v48 = vmul.f32 -0.5, %v17128_v47  ;;  %v4990_v52 = vsel %vm14914_vm12, %v4987_v33, %v4984_v22  ;;  %v5002_v38 = vmul.f32 0.6931472, %v17129_v15  ;;  %v5005_v62 = vmul.f32 %v17099_v40, %v5004_v17  ;;  %v17145_v22 = vld [vmem:[#allocation153_spill] sm:$0xff]  ;;  %v17146_v33 = vld [vmem:[#allocation123_spill] sm:$0xff]  ;;  %v17147_v17 = vld [vmem:[#allocation136_spill] sm:$0xff] }
 0x62f   : > { %vm14945_vm11 = vcmp.lt.f32.partialorder %v17124_v32, 0.0004427343  ;;  %vm14956_vm9 = vcmp.lt.f32.partialorder %v5006_v28, 0.0004427343  ;;  %v5397_v25 = vadd.f32 %v4981_v5, %v17132_v36  ;;  %v5522_v43 = vadd.f32 %v5521_v18, %v5395_v51  ;;  %v17160_v36 = vld [vmem:[#allocation178_spill] sm:$0xff] }
 0x630   : > { %v5570_v55 = vmul.f32 %v14936_v11, %v14936_v11  ;;  %v5023_v46 = vmul.f32 %v17116_v2, %v17133_v12  ;;  %v4999_v23 = vsel %vm14945_vm11, %v4996_v53, %v4993_v29  ;;  %v5011_v50 = vmul.f32 0.6931472, %v17134_v42  ;;  %v17153_v53 = vld [vmem:[#allocation115_spill] sm:$0xff] }
 0x631   : > { %v5014_v40 = vmul.f32 %v17105_v54, %v5013_v45  ;;  %v5049_v58 = vadd.f32 1.0, %v17135_v9  ;;  %v5398_v37 = vadd.f32 %v4990_v52, %v17136_v56  ;;  %vm14971_vm15 = vcmp.lt.f32.partialorder %v5015_v21, 0.0004427343  ;;  %v17157_v52 = vld [vmem:[#allocation125_spill] sm:$0xff]  ;;  %v17163_v12 = vld [vmem:[#allocation207_spill] sm:$0xff]  ;;  %v17168_v9 = vld [vmem:[#allocation62_spill] sm:$0xff] }
 0x632   : > { %v5523_v26 = vadd.f32 %v5522_v43, %v5396_v7  ;;  %v17140_v3 = vand.u32 2147483647, %v17139_v19  ;;  %v5020_v30 = vmul.f32 0.6931472, %v17143_v0  ;;  %v5040_v1 = vadd.f32 1.0, %v5039_v48  ;;  %v17169_v56 = vld [vmem:[#allocation89_spill] sm:$0xff] }
 0x633   : > { %v5042_v54 = vand.u32 2147483647, %v17128_v47  ;;  %v5008_v31 = vsel %vm14956_vm9, %v5005_v62, %v5002_v38  ;;  %v5399_v41 = vadd.f32 %v4999_v23, %v17144_v4  ;;  %v5571_v60 = vmul.f32 0.5, %v5570_v55  ;;  %v17212_v23 = vld [vmem:[#allocation135_spill] sm:$0xff] }
 0x634   : > { %vm14977_vm14 = vcmp.lt.f32.partialorder %v17140_v3, 0.0004427343  ;;  %v5524_v13 = vadd.f32 %v5523_v26, %v5397_v25  ;;  %v5573_v8 = vmul.f32 81377.4, %v5570_v55  ;;  %v5029_v59 = vmul.f32 0.6931472, %v17145_v22 }
 0x635   : > { %v5032_v35 = vmul.f32 %v17147_v17, %v17146_v33  ;;  %v17148_v2 = vand.u32 2147483647, %v17147_v17  ;;  %v5017_v28 = vsel %vm14971_vm15, %v5014_v40, %v5011_v50  ;;  %v5050_v51 = vmul.f32 %v17151_v61, %v5049_v58  ;;  %v17167_v50 = vld [vmem:[#allocation46_spill] sm:$0xff]  ;;  %v17173_v3 = vld [vmem:[#allocation187_spill] sm:$0xff] }
 0x636   : > { %v5051_v34 = vand.u32 2147483647, %v17151_v61  ;;  %v5400_v29 = vadd.f32 %v5008_v31, %v17152_v20  ;;  %v5525_v10 = vadd.f32 %v5524_v13, %v5398_v37  ;;  %v5026_v27 = vsel %vm14930_vm13, %v5023_v46, %v5020_v30  ;;  %v17174_v13 = vld [vmem:[#allocation119_spill] sm:$0xff]  ;;  %v17179_v17 = vld [vmem:[#allocation134_spill] sm:$0xff] }
 0x637   : > { %vm14991_vm5 = vcmp.lt.f32.partialorder %v17148_v2, 0.0004427343  ;;  %v5038_v45 = vmul.f32 0.6931472, %v17153_v53  ;;  %v5041_v5 = vmul.f32 %v17128_v47, %v5040_v1  ;;  %vm15004_vm0 = vcmp.lt.f32.partialorder %v5042_v54, 0.0004427343 }
 0x638   : > { %v5401_v21 = vadd.f32 %v5017_v28, %v17156_v16  ;;  %v5526_v49 = vadd.f32 %v5525_v10, %v5399_v41  ;;  %v5572_v7 = vsub.f32 -1.6120857, %v5571_v60  ;;  %v5574_v18 = vsub.f32 4.387914, %v5573_v8  ;;  %v17176_v8 = vld [vmem:[#allocation132_spill] sm:$0xff]  ;;  %v17178_v33 = vld [vmem:[#allocation107_spill] sm:$0xff] }
 0x639   : > { %v5035_v48 = vsel %vm14991_vm5, %v5032_v35, %v5029_v59  ;;  %v5047_v15 = vmul.f32 0.6931472, %v17157_v52  ;;  %v3129_v38 = vmul.f32 0.5, %v17158_v44  ;;  %v3385_v62 = vmul.f32 81377.4, %v17158_v44  ;;  %v17180_v2 = vld [vmem:[#allocation168_spill] sm:$0xff] }
 0x63a   : > { %v5076_v47 = vadd.f32 1.0, %v17159_v63  ;;  %v5402_v25 = vadd.f32 %v5026_v27, %v17160_v36  ;;  %vm15016_vm3 = vcmp.lt.f32.partialorder %v5051_v34, 0.0004427343  ;;  %v5527_v55 = vadd.f32 %v5526_v49, %v5400_v29  ;;  %v17181_v28 = vld [vmem:[#allocation162_spill] sm:$0xff]  ;;  %v17182_v20 = vld [vmem:[#allocation143_spill] sm:$0xff]  ;;  %v17183_v27 = vld [vmem:[#allocation65_spill] sm:$0xff] }
 0x63b   : > { %v17164_v46 = vand.u32 2147483647, %v17163_v12  ;;  %v5044_v42 = vsel %vm15004_vm0, %v5041_v5, %v5038_v45  ;;  %v3256_v40 = vsub.f32 -1.6120857, %v17167_v50  ;;  %v3512_v58 = vsub.f32 4.387914, %v17168_v9 }
 0x63c   : > { %v17170_v37 = vsub.f32 4.387914, %v17169_v56  ;;  %v17172_v26 = vsub.f32 -1.6120857, %v17171_v24  ;;  %v5403_v0 = vadd.f32 %v5035_v48, %v17173_v3  ;;  %v5528_v30 = vadd.f32 %v5527_v55, %v5401_v21  ;;  %v17188_v49 = vld [vmem:[#allocation108_spill] sm:$0xff]  ;;  %v17189_v52 = vld [vmem:[#allocation101_spill] sm:$0xff] }
 0x63d   : > { %vm15022_vm8 = vcmp.lt.f32.partialorder %v17164_v46, 0.0004427343  ;;  %v15037_v1 = vmax.f32 %v5572_v7, %v5574_v18  ;;  %v5576_v54 = vmin.f32 %v5572_v7, %v5574_v18  ;;  %v5053_v31 = vsel %vm15016_vm3, %v5050_v51, %v5047_v15  ;;  %v17190_v44 = vld [vmem:[#allocation183_spill] sm:$0xff]  ;;  %v17196_v55 = vld [vmem:[#allocation148_spill] sm:$0xff] }
 0x63e   : > { %v15034_v19 = vmax.f32 %v17172_v26, %v17170_v37  ;;  %v3257_v4 = vsub.f32 -1.6120857, %v3129_v38  ;;  %v3513_v41 = vsub.f32 4.387914, %v3385_v62  ;;  %v17175_v60 = vsub.f32 4.387914, %v17174_v13 }
 0x63f   : > { %v17177_v22 = vsub.f32 -1.6120857, %v17176_v8  ;;  %v5062_v35 = vsel %vm14977_vm14, %v17179_v17, %v17178_v33  ;;  %v5077_v57 = vmul.f32 %v17180_v2, %v5076_v47  ;;  %v5404_v61 = vadd.f32 %v5044_v42, %v17181_v28  ;;  %v17191_v62 = vld [vmem:[#allocation194_spill] sm:$0xff]  ;;  %v17192_v47 = vld [vmem:[#allocation156_spill] sm:$0xff]  ;;  %v17200_v37 = vld [vmem:[#allocation149_spill] sm:$0xff] }
 0x640   : > { %v5529_v34 = vadd.f32 %v5528_v30, %v5402_v25  ;;  %v5074_v51 = vmul.f32 0.6931472, %v17182_v20  ;;  %v15054_v29 = vmax.f32 %v3256_v40, %v3512_v58  ;;  %v3768_v10 = vmin.f32 %v3256_v40, %v3512_v58  ;;  %v17197_v40 = vld [vmem:[#allocation189_spill] sm:$0xff]  ;;  %v17198_v58 = vld [vmem:[#allocation223_spill] sm:$0xff]  ;;  %v17205_v8 = vld [vmem:[#allocation182_spill] sm:$0xff] }
 0x641   : > { %v15045_v59 = vmax.f32 %v17177_v22, %v17175_v60  ;;  %v3894_v53 = vsub.f32 %v17183_v27, %v15034_v19  ;;  %v17184_v45 = vand.u32 2147483647, %v17180_v2  ;;  %v5405_v32 = vadd.f32 %v5053_v31, %v17187_v6  ;;  %v17201_v24 = vld [vmem:[#allocation167_spill] sm:$0xff]  ;;  %v17206_v33 = vld [vmem:[#allocation186_spill] sm:$0xff] }
 0x642   : > { %v5530_v16 = vadd.f32 %v5529_v34, %v5403_v0  ;;  %v5577_v21 = vsub.f32 %v5576_v54, %v15037_v1  ;;  %v5083_v7 = vmul.f32 0.6931472, %v17188_v49  ;;  %v15067_v18 = vmax.f32 %v3257_v4, %v3513_v41  ;;  %v17203_v54 = vld [vmem:[#allocation157_spill] sm:$0xff]  ;;  %v17208_v28 = vld [vmem:[#allocation138_spill] sm:$0xff]  ;;  %v17215_v49 = vld [vmem:[#allocation228_spill] sm:$0xff] }
 0x643   : > { %vm15060_vm4 = vcmp.lt.f32.partialorder %v17184_v45, 0.0004427343  ;;  %v3769_v48 = vmin.f32 %v3257_v4, %v3513_v41  ;;  %v3895_v15 = vsub.f32 %v17189_v52, %v15045_v59  ;;  %v5092_v38 = vmul.f32 0.6931472, %v17190_v44  ;;  %v17204_v4 = vld [vmem:[#allocation113_spill] sm:$0xff]  ;;  %v17223_v25 = vld [vmem:[#allocation174_spill] sm:$0xff] }
 0x644   : > { %v5406_v63 = vadd.f32 %v5062_v35, %v17191_v62  ;;  %v17193_v36 = vand.u32 2147483647, %v17192_v47  ;;  %v5531_v43 = vadd.f32 %v5530_v16, %v5404_v61  ;;  %v5112_v12 = vadd.f32 1.0, %v17196_v55  ;;  %v17207_v35 = vld [vmem:[#allocation191_spill] sm:$0xff]  ;;  %v17224_v55 = vld [vmem:[#allocation249_spill] sm:$0xff] }
 0x645   : > { %v5080_v46 = vsel %vm15060_vm4, %v5077_v57, %v5074_v51  ;;  %v3896_v42 = vsub.f32 %v3768_v10, %v15054_v29  ;;  %v4146_v50 = vmul.f32 1.442695, %v3894_v53  ;;  %v5114_v9 = vand.u32 2147483647, %v17197_v40  ;;  %v17211_v10 = vld [vmem:[#allocation212_spill] sm:$0xff]  ;;  %v17214_v16 = vld [vmem:[#allocation227_spill] sm:$0xff] }
 0x646   : > { %vm15075_vm6 = vcmp.lt.f32.partialorder %v17193_v36, 0.0004427343  ;;  %v17202_v26 = vsel %vm13656_vm2, %v17200_v37, %v17201_v24  ;;  %v5532_v0 = vadd.f32 %v5531_v43, %v5405_v32  ;;  %v5578_v30 = vmul.f32 1.442695, %v5577_v21  ;;  %v17213_v32 = vld [vmem:[#allocation195_spill] sm:$0xff]  ;;  %v17230_v37 = vld [vmem:[#allocation169_spill] sm:$0xff] }
 0x647   : > { %v5407_v3 = vadd.f32 %v17202_v26, %v17198_v58  ;;  %v5121_v31 = vadd.f32 1.0, %v17203_v54  ;;  %v5089_v41 = vsel %vm15075_vm6, %v17204_v4, %v5083_v7  ;;  %v3897_v13 = vsub.f32 %v3769_v48, %v15067_v18  ;;  %v17229_v58 = vld [vmem:[#allocation209_spill] sm:$0xff]  ;;  %v17246_v51 = vld [vmem:[#allocation208_spill] sm:$0xff]  ;;  %v17253_v48 = vld [vmem:[#allocation35_spill] sm:$0xff] }
 0x648   : > { %v4148_v60 = vmul.f32 1.442695, %v3895_v15  ;;  %v5098_v22 = vsel %vm15022_vm8, %v17205_v8, %v5092_v38  ;;  %v5123_v17 = vand.u32 2147483647, %v17206_v33  ;;  %v5408_v2 = vadd.f32 %v5080_v46, %v17207_v35  ;;  %v17218_v15 = vld [vmem:[#allocation211_spill] sm:$0xff]  ;;  %v17219_v38 = vld [vmem:[#allocation172_spill] sm:$0xff] }
 0x649   : > { %v5533_v57 = vadd.f32 %v5532_v0, %v5406_v63  ;;  %v5110_v61 = vmul.f32 0.6931472, %v17208_v28  ;;  %v5113_v34 = vmul.f32 %v17197_v40, %v5112_v12  ;;  %8288 = vpow2.f32 %v4146_v50  ;;  %v17226_v46 = vld [vmem:[#allocation175_spill] sm:$0xff]  ;;  %v17235_v54 = vld [vmem:[#allocation197_spill] sm:$0xff] }
 0x64a   : > { %v4150_v20 = vmul.f32 1.442695, %v3896_v42  ;;  %vm15102_vm2 = vcmp.lt.f32.partialorder %v5114_v9, 0.0004427343  ;;  %v5409_v27 = vadd.f32 %v5089_v41, %v17211_v10  ;;  %8290 = vpow2.f32 %v5578_v30  ;;  %v17227_v42 = vld [vmem:[#allocation176_spill] sm:$0xff]  ;;  %v17239_v41 = vld [vmem:[#allocation229_spill] sm:$0xff] }
 0x64b   : > { %v5534_v53 = vadd.f32 %v5533_v57, %v5407_v3  ;;  %v5119_v45 = vmul.f32 0.6931472, %v17212_v23  ;;  %v5122_v5 = vmul.f32 %v17206_v33, %v5121_v31  ;;  %8292 = vpow2.f32 %v4148_v60  ;;  %v17231_v3 = vld [vmem:[#allocation33_spill] sm:$0xff]  ;;  %v17240_v60 = vld [vmem:[#allocation204_spill] sm:$0xff] }
 0x64c   : > { %v4152_v6 = vmul.f32 1.442695, %v3897_v13  ;;  %v5131_v21 = vmul.f32 %v17214_v16, %v17213_v32  ;;  %v5410_v7 = vadd.f32 %v5098_v22, %v17215_v49  ;;  %vm15112_vm12 = vcmp.lt.f32.partialorder %v5123_v17, 0.0004427343  ;;  %v17241_v33 = vld [vmem:[#allocation241_spill] sm:$0xff]  ;;  %v17249_v32 = vld [vmem:[#allocation36_spill] sm:$0xff] }
 0x64d   : > { %v5535_v52 = vadd.f32 %v5534_v53, %v5408_v2  ;;  %v5128_v44 = vmul.f32 0.6931472, %v17218_v15  ;;  %v5148_v62 = vadd.f32 1.0, %v17219_v38  ;;  %v5116_v63 = vsel %vm15102_vm2, %v5113_v34, %v5110_v61  ;;  %v17242_v2 = vld [vmem:[#allocation177_spill] sm:$0xff]  ;;  %v17243_v61 = vld [vmem:[#allocation30_spill] sm:$0xff]  ;;  %v17247_v53 = vld [vmem:[#allocation203_spill] sm:$0xff] }
 0x64e   : > { %8294 = vpow2.f32 %v4150_v20  ;;  %v17220_v47 = vand.u32 2147483647, %v17214_v16  ;;  %v5150_v43 = vand.u32 2147483647, %v17223_v25  ;;  %v17228_v50 = vsel %vm13503_vm7, %v17226_v46, %v17227_v42  ;;  %v17261_v42 = vld [vmem:[#allocation242_spill] sm:$0xff]  ;;  %v17272_v20 = vld [vmem:[#allocation47_spill] sm:$0xff] }
 0x64f   : > { %v5411_v40 = vadd.f32 %v17228_v50, %v17224_v55  ;;  %v5536_v9 = vadd.f32 %v5535_v52, %v5409_v27  ;;  %v5137_v56 = vmul.f32 0.6931472, %v17229_v58  ;;  %v5157_v24 = vadd.f32 1.0, %v17230_v37  ;;  %v17257_v55 = vld [vmem:[#allocation40_spill] sm:$0xff]  ;;  %v17268_v37 = vld [vmem:[#allocation253_spill] sm:$0xff]  ;;  %v17291_v58 = vld [vmem:[#allocation230_spill] sm:$0xff] }
 0x650   : > { %vm15122_vm1 = vcmp.lt.f32.partialorder %v17220_v47, 0.0004427343  ;;  %v5125_v26 = vsel %vm15112_vm12, %v5122_v5, %v5119_v45  ;;  %8296 = vpow2.f32 %v4152_v6  ;;  %v17232_v0 = vand.u32 2147483647, %v17231_v3  ;;  %v17248_v45 = vld [vmem:[#allocation154_spill] sm:$0xff] }
 0x651   : > { %v17236_v31 = vand.u32 2147483647, %v17235_v54  ;;  %v5159_v13 = vand.u32 2147483647, %v17239_v41  ;;  %v5412_v8 = vadd.f32 %v5116_v63, %v17240_v60  ;;  %v5537_v22 = vadd.f32 %v5536_v9, %v5410_v7  ;;  %v17256_v63 = vld [vmem:[#allocation28_spill] sm:$0xff]  ;;  %v17270_v60 = vld [vmem:[#allocation27_spill] sm:$0xff] }
 0x652   : > { %vm15139_vm13 = vcmp.lt.f32.partialorder %v17232_v0, 0.0004427343  ;;  %v5183_v17 = vmul.f32 -0.5, %v17241_v33  ;;  %v5134_v35 = vsel %vm15122_vm1, %v5131_v21, %v5128_v44  ;;  %v5146_v57 = vmul.f32 0.6931472, %v17242_v2  ;;  %v17250_v21 = vld [vmem:[#allocation259_spill] sm:$0xff] }
 0x653   : > { %vm15145_vm11 = vcmp.lt.f32.partialorder %v17236_v31, 0.0004427343  ;;  %v5149_v28 = vmul.f32 %v17223_v25, %v5148_v62  ;;  %v5192_v34 = vmul.f32 -0.5, %v17243_v61  ;;  %vm15157_vm7 = vcmp.lt.f32.partialorder %v5150_v43, 0.0004427343  ;;  %v17254_v44 = vld [vmem:[#allocation217_spill] sm:$0xff] }
 0x654   : > { %v5413_v10 = vadd.f32 %v5125_v26, %v17246_v51  ;;  %v5538_v27 = vadd.f32 %v5537_v22, %v5411_v40  ;;  %v5143_v23 = vsel %vm15145_vm11, %v17247_v53, %v5137_v56  ;;  %v5155_v5 = vmul.f32 0.6931472, %v17248_v45  ;;  %v17255_v62 = vld [vmem:[#allocation226_spill] sm:$0xff]  ;;  %v17269_v0 = vld [vmem:[#allocation224_spill] sm:$0xff]  ;;  %v17284_v7 = vld [vmem:[#allocation151_spill] sm:$0xff] }
 0x655   : > { %v5158_v6 = vmul.f32 %v17239_v41, %v5157_v24  ;;  %v5252_v16 = vadd.f32 1.0, %v17249_v32  ;;  %v5414_v49 = vadd.f32 %v5134_v35, %v17250_v21  ;;  %vm15169_vm9 = vcmp.lt.f32.partialorder %v5159_v13, 0.0004427343  ;;  %v17271_v35 = vld [vmem:[#allocation180_spill] sm:$0xff]  ;;  %v17283_v21 = vld [vmem:[#allocation170_spill] sm:$0xff] }
 0x656   : > { %v5261_v52 = vadd.f32 1.0, %v17253_v48  ;;  %v5539_v15 = vadd.f32 %v5538_v27, %v5412_v8  ;;  %v5164_v38 = vmul.f32 0.6931472, %v17254_v44  ;;  %v5167_v47 = vmul.f32 %v17256_v63, %v17255_v62  ;;  %v15179_v43 = vpop.eup %8288  ;;  %v17276_v27 = vld [vmem:[#allocation54_spill] sm:$0xff]  ;;  %v17285_v62 = vld [vmem:[#allocation251_spill] sm:$0xff] }
 0x657   : > { %v5184_v36 = vadd.f32 1.0, %v5183_v17  ;;  %v5152_v25 = vsel %vm15157_vm7, %v5149_v28, %v5146_v57  ;;  %v17258_v12 = vand.u32 2147483647, %v17257_v55  ;;  %v17262_v50 = vand.u32 2147483647, %v17261_v42  ;;  %v15201_v3 = vpop.eup %8290 }
 0x658   : > { %v17265_v9 = vand.u32 2147483647, %v17256_v63  ;;  %v5186_v56 = vand.u32 2147483647, %v17241_v33  ;;  %v5415_v24 = vadd.f32 %v5143_v23, %v17268_v37  ;;  %v5540_v26 = vadd.f32 %v5539_v15, %v5413_v10  ;;  %v15206_v41 = vpop.eup %8292 }
 0x659   : > { %vm15183_vm15 = vcmp.lt.f32.partialorder %v17258_v12, 0.0004427343  ;;  %vm15189_vm14 = vcmp.lt.f32.partialorder %v17262_v50, 0.0004427343  ;;  %v5173_v54 = vmul.f32 0.6931472, %v17269_v0  ;;  %v5161_v4 = vsel %vm15169_vm9, %v5158_v6, %v5155_v5 }
 0x65a   : > { %vm15195_vm5 = vcmp.lt.f32.partialorder %v17265_v9, 0.0004427343  ;;  %v5193_v31 = vadd.f32 1.0, %v5192_v34  ;;  %8298 = vlog2.f32 %v5252_v16  ;;  %v5195_v13 = vand.u32 2147483647, %v17243_v61  ;;  %v17289_v12 = vld [vmem:[#allocation238_spill] sm:$0xff] }
 0x65b   : > { %v5416_v8 = vadd.f32 %v5152_v25, %v17270_v60  ;;  %8300 = vlog2.f32 %v5261_v52  ;;  %v5541_v22 = vadd.f32 %v5540_v26, %v5414_v49  ;;  %v5170_v17 = vsel %vm15195_vm5, %v5167_v47, %v5164_v38  ;;  %v15215_v34 = vpop.eup %8294  ;;  %v17286_v47 = vld [vmem:[#allocation231_spill] sm:$0xff]  ;;  %v17290_v50 = vld [vmem:[#allocation261_spill] sm:$0xff] }
 0x65c   : > { %v5182_v2 = vmul.f32 0.6931472, %v17271_v35  ;;  %v5185_v57 = vmul.f32 %v17241_v33, %v5184_v36  ;;  %v5270_v28 = vadd.f32 1.0, %v15179_v43  ;;  %v17273_v51 = vand.u32 2147483647, %v17272_v20  ;;  %v17282_v33 = vld [vmem:[#allocation237_spill] sm:$0xff] }
 0x65d   : > { %v17277_v53 = vand.u32 2147483647, %v17276_v27  ;;  %vm15229_vm8 = vcmp.lt.f32.partialorder %v5186_v56, 0.0004427343  ;;  %v5417_v5 = vadd.f32 %v5161_v4, %v17282_v33  ;;  %v5542_v6 = vadd.f32 %v5541_v22, %v5415_v24  ;;  %v15241_v38 = vpop.eup %8296  ;;  %v17293_v4 = vld [vmem:[#allocation234_spill] sm:$0xff]  ;;  %v17294_v22 = vld [vmem:[#allocation247_spill] sm:$0xff] }
 0x65e   : > { %vm15219_vm0 = vcmp.lt.f32.partialorder %v17273_v51, 0.0004427343  ;;  %v5580_v16 = vadd.f32 1.0, %v15201_v3  ;;  %v5179_v49 = vsel %vm15139_vm13, %v17283_v21, %v5173_v54  ;;  %v5191_v52 = vmul.f32 0.6931472, %v17284_v7  ;;  %v17292_v54 = vld [vmem:[#allocation199_spill] sm:$0xff] }
 0x65f   : > { %vm15225_vm3 = vcmp.lt.f32.partialorder %v17277_v53, 0.0004427343  ;;  %v5194_v15 = vmul.f32 %v17243_v61, %v5193_v31  ;;  %v5279_v44 = vadd.f32 1.0, %v15206_v41  ;;  %v5222_v63 = vand.u32 2147483647, %v17285_v62  ;;  %v17299_v20 = vld [vmem:[#allocation218_spill] sm:$0xff] }
 0x660   : > { %v5418_v36 = vadd.f32 %v5170_v17, %v17286_v47  ;;  %vm15245_vm4 = vcmp.lt.f32.partialorder %v5195_v13, 0.0004427343  ;;  %v5543_v55 = vadd.f32 %v5542_v6, %v5416_v8  ;;  %v5200_v30 = vmul.f32 0.6931472, %v17289_v12  ;;  %v17295_v17 = vld [vmem:[#allocation214_spill] sm:$0xff]  ;;  %v17300_v27 = vld [vmem:[#allocation201_spill] sm:$0xff] }
 0x661   : > { %v5188_v42 = vsel %vm15229_vm8, %v5185_v57, %v5182_v2  ;;  %8302 = vlog2.f32 %v5270_v28  ;;  %v5288_v61 = vadd.f32 1.0, %v15215_v34  ;;  %v5221_v9 = vmul.f32 %v17285_v62, %v17290_v50  ;;  %v17296_v2 = vld [vmem:[#allocation225_spill] sm:$0xff]  ;;  %v17301_v53 = vld [vmem:[#allocation246_spill] sm:$0xff]  ;;  %v17302_v33 = vld [vmem:[#allocation235_spill] sm:$0xff] }
 0x662   : > { %v5419_v56 = vadd.f32 %v5179_v49, %v17291_v58  ;;  %v5544_v37 = vadd.f32 %v5543_v55, %v5417_v5  ;;  %8304 = vlog2.f32 %v5580_v16  ;;  %v5197_v24 = vsel %vm15245_vm4, %v5194_v15, %v5191_v52  ;;  %v17306_v7 = vld [vmem:[#allocation37_spill] sm:$0xff]  ;;  %v17307_v47 = vld [vmem:[#allocation248_spill] sm:$0xff]  ;;  %v17309_v55 = vld [vmem:[#allocation202_spill] sm:$0xff] }
 0x663   : > { %v5255_v26 = vmul.f32 -0.5, %v17249_v32  ;;  %8306 = vlog2.f32 %v5279_v44  ;;  %v5297_v0 = vadd.f32 1.0, %v15241_v38  ;;  %v5218_v31 = vmul.f32 0.6931472, %v17292_v54  ;;  %v17310_v12 = vld [vmem:[#allocation97_spill] sm:$0xff]  ;;  %v17311_v50 = vld [vmem:[#allocation128_spill] sm:$0xff] }
 0x664   : > { %v5420_v13 = vadd.f32 %v5188_v42, %v17293_v4  ;;  %v5264_v60 = vmul.f32 -0.5, %v17253_v48  ;;  %v5545_v8 = vadd.f32 %v5544_v37, %v5418_v36  ;;  %v5215_v35 = vsel %vm15183_vm15, %v17295_v17, %v17294_v22  ;;  %v17308_v36 = vld [vmem:[#allocation43_spill] sm:$0xff] }
 0x665   : > { %v5206_v57 = vsel %vm15189_vm14, %v17296_v2, %v5200_v30  ;;  %vm15270_vm6 = vcmp.lt.f32.partialorder %v5222_v63, 0.0004427343  ;;  %8308 = vlog2.f32 %v5288_v61  ;;  %v5227_v51 = vmul.f32 0.6931472, %v17299_v20 }
 0x666   : > { %v5230_v45 = vmul.f32 %v17301_v53, %v17300_v27  ;;  %v5421_v5 = vadd.f32 %v5197_v24, %v17302_v33  ;;  %v5546_v6 = vadd.f32 %v5545_v8, %v5419_v56  ;;  %v17303_v46 = vand.u32 2147483647, %v17301_v53  ;;  %v17312_v24 = vld [vmem:[#allocation232_spill] sm:$0xff]  ;;  %v17319_v53 = vld [vmem:[#allocation147_spill] sm:$0xff] }
 0x667   : > { %v5256_v40 = vadd.f32 1.0, %v5255_v26  ;;  %v5258_v21 = vand.u32 2147483647, %v17249_v32  ;;  %8310 = vlog2.f32 %v5297_v0  ;;  %v8299_v49 = vpop.eup %8298  ;;  %v5422_v52 = vadd.f32 %v5206_v57, %v17306_v7  ;;  %v17318_v57 = vld [vmem:[#allocation75_spill] sm:$0xff] }
 0x668   : > { %vm15280_vm2 = vcmp.lt.f32.partialorder %v17303_v46, 0.0004427343  ;;  %v5224_v15 = vsel %vm15270_vm6, %v5221_v9, %v5218_v31  ;;  %v5265_v44 = vadd.f32 1.0, %v5264_v60  ;;  %v5547_v62 = vadd.f32 %v5546_v6, %v5420_v13  ;;  %v8301_v63 = vpop.eup %8300 }
 0x669   : > { %v5251_v25 = vsel %vm15219_vm0, %v17308_v36, %v17307_v47  ;;  %v5242_v30 = vsel %vm15225_vm3, %v17310_v12, %v17309_v55  ;;  %v5267_v42 = vand.u32 2147483647, %v17253_v48  ;;  %v5273_v61 = vmul.f32 -0.5, %v15179_v43 }
 0x66a   : > { %v5423_v58 = vadd.f32 %v5215_v35, %v17311_v50  ;;  %v5233_v9 = vsel %vm15280_vm2, %v5230_v45, %v5227_v51  ;;  %v5548_v56 = vadd.f32 %v5547_v62, %v5421_v5  ;;  %v5583_v37 = vmul.f32 -0.5, %v15201_v3  ;;  %v17317_v35 = vld [vmem:[#allocation165_spill] sm:$0xff]  ;;  %v17326_v50 = vld [vmem:[#allocation91_spill] sm:$0xff] }
 0x66b   : > { %v5424_v10 = vadd.f32 %v5224_v15, %v17312_v24  ;;  %v5257_v26 = vmul.f32 %v17249_v32, %v5256_v40  ;;  %vm15304_vm12 = vcmp.lt.f32.partialorder %v5258_v21, 0.0004427343  ;;  %v5282_v23 = vmul.f32 -0.5, %v15206_v41 }
 0x66c   : > { %v5254_v54 = vmul.f32 0.6931472, %v8299_v49  ;;  %v5263_v31 = vmul.f32 0.6931472, %v8301_v63  ;;  %v5266_v4 = vmul.f32 %v17253_v48, %v5265_v44  ;;  %v5549_v13 = vadd.f32 %v5548_v56, %v5422_v52 }
 0x66d   : > { %vm15310_vm1 = vcmp.lt.f32.partialorder %v5267_v42, 0.0004427343  ;;  %v5274_v8 = vadd.f32 1.0, %v5273_v61  ;;  %v5276_v22 = vand.u32 2147483647, %v15179_v43  ;;  %v5291_v32 = vmul.f32 -0.5, %v15215_v34 }
 0x66e   : > { %v8303_v17 = vpop.eup %8302  ;;  %v5427_v2 = vadd.f32 %v5251_v25, %v17317_v35  ;;  %v5425_v28 = vadd.f32 %v5233_v9, %v17318_v57  ;;  %v5550_v20 = vadd.f32 %v5549_v13, %v5423_v58  ;;  %v5584_v51 = vadd.f32 1.0, %v5583_v37  ;;  %v17327_v37 = vld [vmem:[#allocation85_spill] sm:$0xff] }
 0x66f   : > { %v8305_v27 = vpop.eup %8304  ;;  %v5426_v48 = vadd.f32 %v5242_v30, %v17319_v53  ;;  %v5283_v45 = vadd.f32 1.0, %v5282_v23  ;;  %v5300_v33 = vmul.f32 -0.5, %v15241_v38  ;;  %v5586_v5 = vand.u32 2147483647, %v15201_v3 }
 0x670   : > { %v8307_v6 = vpop.eup %8306  ;;  %v5260_v46 = vsel %vm15304_vm12, %v5257_v26, %v5254_v54  ;;  %v5269_v16 = vsel %vm15310_vm1, %v5266_v4, %v5263_v31  ;;  %v5285_v40 = vand.u32 2147483647, %v15206_v41  ;;  %v5551_v21 = vadd.f32 %v5550_v20, %v5424_v10 }
 0x671   : > { %v5272_v49 = vmul.f32 0.6931472, %v8303_v17  ;;  %v5275_v7 = vmul.f32 %v15179_v43, %v5274_v8  ;;  %vm15327_vm13 = vcmp.lt.f32.partialorder %v5276_v22, 0.0004427343  ;;  %v5292_v15 = vadd.f32 1.0, %v5291_v32 }
 0x672   : > { %v8309_v44 = vpop.eup %8308  ;;  %v5294_v62 = vand.u32 2147483647, %v15215_v34  ;;  %v5552_v63 = vadd.f32 %v5551_v21, %v5425_v28  ;;  %v5582_v47 = vmul.f32 0.6931472, %v8305_v27  ;;  %v5585_v36 = vmul.f32 %v15201_v3, %v5584_v51 }
 0x673   : > { %v5281_v25 = vmul.f32 0.6931472, %v8307_v6  ;;  %v5284_v55 = vmul.f32 %v15206_v41, %v5283_v45  ;;  %v5301_v12 = vadd.f32 1.0, %v5300_v33  ;;  %vm15334_vm11 = vcmp.lt.f32.partialorder %v5586_v5, 0.0004427343 }
 0x674   : > { %v8311_v43 = vpop.eup %8310  ;;  %vm15338_vm7 = vcmp.lt.f32.partialorder %v5285_v40, 0.0004427343  ;;  %v5303_v61 = vand.u32 2147483647, %v15241_v38  ;;  %v5428_v58 = vadd.f32 %v5260_v46, %v17326_v50  ;;  %v5553_v9 = vadd.f32 %v5552_v63, %v5426_v48 }
 0x675   : > { %v5278_v3 = vsel %vm15327_vm13, %v5275_v7, %v5272_v49  ;;  %v5290_v56 = vmul.f32 0.6931472, %v8309_v44  ;;  %v5293_v41 = vmul.f32 %v15215_v34, %v5292_v15  ;;  %vm5295_vm9 = vcmp.lt.f32.partialorder %v5294_v62, 0.0004427343 }
 0x676   : > { %v5429_v24 = vadd.f32 %v5269_v16, %v17327_v37  ;;  %v5554_v10 = vadd.f32 %v5553_v9, %v5427_v2  ;;  %v5588_v26 = vsel %vm15334_vm11, %v5585_v36, %v5582_v47  ;;  %v5287_v0 = vsel %vm15338_vm7, %v5284_v55, %v5281_v25 }
 0x677   : > { %v5299_v23 = vmul.f32 0.6931472, %v8311_v43  ;;  %v5302_v54 = vmul.f32 %v15241_v38, %v5301_v12  ;;  %vm5304_vm15 = vcmp.lt.f32.partialorder %v5303_v61, 0.0004427343  ;;  %v5430_v31 = vadd.f32 %v5278_v3, %v15034_v19 }
 0x678   : > { %v5555_v4 = vadd.f32 %v5554_v10, %v5428_v58  ;;  %v5296_v13 = vsel %vm5295_vm9, %v5293_v41, %v5290_v56  ;;  %v5589_v34 = vadd.f32 %v5588_v26, %v15037_v1  ;;  %v5431_v60 = vadd.f32 %v5287_v0, %v15045_v59 }
 0x679   : > { %v5305_v22 = vsel %vm5304_vm15, %v5302_v54, %v5299_v23  ;;  %v5432_v32 = vadd.f32 %v5296_v13, %v15054_v29  ;;  %v2723_v29 = vrot.slane %v14936_v11, %v14740_v39 }
 0x67a   : > { %v5556_v8 = vadd.f32 %v5555_v4, %v5429_v24  ;;  %v5594_v35 = vrot.slane %v5589_v34, %v14740_v39  ;;  %v5598_v2 = vrot.slane %v5589_v34, %v14754_v14  ;;  %v5433_v38 = vadd.f32 %v5305_v22, %v15067_v18 }
 0x67b   : > { %v2727_v18 = vrot.slane %v14936_v11, %v14754_v14 }
 0x67c   : > { %v5557_v17 = vadd.f32 %v5556_v8, %v5430_v31  ;;  %v5602_v28 = vsel %vm5601_vm10, %v5594_v35, 0.0  ;;  %v5603_v1 = vsel %vm5601_vm10, %v5598_v2, 0.0 }
 0x67d   : > { %v5604_v59 = vadd.f32 %v5603_v1, %v5602_v28 }
 0x67e   : > { %v5558_v57 = vadd.f32 %v5557_v17, %v5431_v60 }
 0x680   : > { %v5559_v19 = vadd.f32 %v5558_v57, %v5432_v32 }
 0x682   : > { %v5560_v20 = vadd.f32 %v5559_v19, %v5433_v38 }
 0x684   : > { %5561 = vadd.xlane.f32.xlu0 %v5560_v20 }
 0x688   : > { %5605 = vadd.xlane.f32.xlu0 %v5604_v59 }
 0x6bb   : > { %v2796_v51 = vpop.f32.mrf.mxu0 }
 0x6bc   : > { %v2797_v27 = vadd.f32 %v2796_v51, %v2723_v29 }
 0x6bd   : > { %v2798_v48 = vpop.f32.mrf.mxu0 }
 0x6be   : > { %v2867_v53 = vpop.f32.mrf.mxu1  ;;  %v2799_v45 = vadd.f32 %v2798_v48, %v2727_v18 }
 0x6bf   : > { %v2868_v33 = vadd.f32 %v2867_v53, %v2797_v27 }
 0x6c0   : > { %v2869_v5 = vpop.f32.mrf.mxu1 }
 0x6c1   : > { %2872 = vst [vmem:[%s555_s11] sm:$0xff] %v2868_v33  ;;  %v2870_v6 = vadd.f32 %v2869_v5, %v2799_v45 }
 0x6c3   : > { %2873 = vst [vmem:[%s555_s11 + $0x8] sm:$0xff] %v2870_v6 }
 0x6c4   : > { %8520 = shalt.err (!%p8517_p13)
}
 0x6c5   : > { %s8521_s9 = scalar_lea.hbm %s6585_s14, 256  ;;  %s8525_s1 = scalar_lea.hbm %s17328_s22, 1024 }
 0x6c6   : > { %p8522_p8 = scmp.ne.s32.totalorder %s6585_s14, %s8521_s9  ;;  %p8526_p7 = scmp.lt.s32.totalorder %s6585_s14, %s17328_s22 }
 0x6c7   : > { %p8527_p2 = scmp.lt.s32.totalorder %s8525_s1, %s8521_s9 }
 0x6c8   : > { %p8523_p10 = pnand %p8522_p8, %p17329_p6 }
 0x6c9   : > { %p8528_p5 = por %p8527_p2, %p8526_p7 }
 0x6ca   : > { %p8524_p11 = pneg %p8523_p10 }
 0x6cc   : > { %p8529_p4 = pnand %p8528_p5, %p8524_p11 }
 0x6ce   : > { %8532 = shalt.err (!%p8529_p4)
}
 0x6cf   : > { %6941 = dma.vmem_to_hbm [thread:$0]  (%p17329_p6), %s6588_s25, 256, %s6585_s14, %s6563_s17   ;;  %v6511_v39 = vpop.xlane.xlu1 %6510 }
 0x6d0   : > { %v6512_v11 = vrot.slane %v6511_v39, 4  ;;  %s6896_s20 = sshll.u32 %s9012_s15, 3  ;;  %s6903_s5 = sshll.u32 %s8873_s27, 7 }
 0x6d1   : > { %s15386_s11 = scalar_lea.vmem [#allocation17], %s6896_s20  ;;  %s562_s19 = scalar_lea.vmem [#allocation15], %s6896_s20 }
 0x6d2   : > { %v6513_v16 = vadd.f32 %v6512_v11, %v6511_v39  ;;  %s6613_s2 = sshll.u32 %s15386_s11, 4  ;;  %s6600_s8 = sshll.u32 %s562_s19, 4  ;;  %s15394_s8 = int_to_ptr.vmem [resolvable:$true] %s6600_s8  ;;  %s15396_s2 = int_to_ptr.vmem [resolvable:$true] %s6613_s2 }
 0x6d3   : > { %v6549_v14 = vpop.xlane.xlu1 %6548  ;;  %s17330_s28 = sld [smem:[#allocation267_spill]]  ;;  %s6568_s24 = scalar_lea.sflag [#allocation16], %s9009_s29 }
 0x6d4   : > { %v6550_v46 = vrot.slane %v6549_v14, 4  ;;  %v6514_v52 = vrot.slane %v6513_v16, 2  ;;  %s17331_s1 = sld [smem:[#allocation268_spill]]  ;;  %s8533_s20 = scalar_lea.vmem %s15394_s8, 128 }
 0x6d5   : > { %p8534_p9 = scmp.ne.s32.totalorder %s15394_s8, %s8533_s20 }
 0x6d6   : > { %v6551_v21 = vadd.f32 %v6550_v46, %v6549_v14  ;;  %v6515_v25 = vadd.f32 %v6514_v52, %v6513_v16 }
 0x6d7   : > { %p8535_p12 = pnand %p8534_p9, %p17329_p6 }
 0x6d8   : > { %v6552_v44 = vrot.slane %v6551_v21, 2  ;;  %v6516_v61 = vrot.slane %v6515_v25, 1 }
 0x6d9   : > { %s15392_s7 = scalar_lea.hbm %s17330_s28, %s6903_s5  ;;  %p8536_p1 = pneg %p8535_p12 }
 0x6da   : > { %v6553_v55 = vadd.f32 %v6552_v44, %v6551_v21  ;;  %v6517_v3 = vadd.f32 %v6516_v61, %v6515_v25  ;;  %s15401_s18 = scalar_lea.hbm %s17331_s1, %s6903_s5 }
 0x6dc   : > { %v6554_v58 = vrot.slane %v6553_v55, 1 }
 0x6de   : > { %v6555_v56 = vadd.f32 %v6554_v58, %v6553_v55 }
 0x70d   : > { %v5562_v40 = vpop.xlane.xlu0 %5561 }
 0x70e   : > { %v5563_v49 = vrot.slane %v5562_v40, 4 }
 0x710   : > { %v5564_v7 = vadd.f32 %v5563_v49, %v5562_v40 }
 0x711   : > { %v5606_v15 = vpop.xlane.xlu0 %5605 }
 0x712   : > { %v5565_v62 = vrot.slane %v5564_v7, 2  ;;  %v5607_v63 = vrot.slane %v5606_v15, 4 }
 0x714   : > { %v5608_v47 = vadd.f32 %v5607_v63, %v5606_v15  ;;  %v5566_v36 = vadd.f32 %v5565_v62, %v5564_v7 }
 0x716   : > { %v5609_v12 = vrot.slane %v5608_v47, 2  ;;  %v5567_v30 = vrot.slane %v5566_v36, 1 }
 0x718   : > { %v5610_v43 = vadd.f32 %v5609_v12, %v5608_v47  ;;  %v5568_v42 = vadd.f32 %v5567_v30, %v5566_v36 }
 0x71a   : > { %6917 = vpush %v5568_v42  ;;  %v5611_v50 = vrot.slane %v5610_v43, 1 }
 0x71c   : > { %v5612_v9 = vadd.f32 %v5611_v50, %v5610_v43 }
 0x71e   : > { %6919 = vpush %v5612_v9 }
 0x71f   : > { %6921 = vpush %v6517_v3 }
 0x720   : > { %6923 = vpush %v6555_v56 }
 0x74b   : > { %s6918_s14 = spop %6917 }
 0x74f   : > { %s6920_s25 = spop %6919 }
 0x750   : > { %s5614_s13 = sadd.f32 %s6920_s25, %s6918_s14  ;;  %s6922_s9 = spop %6921 }
 0x751   : > { %s6924_s3 = spop %6923  ;;  %s8654_s14 = smov [#allocation15]  }
 0x752   : > { %v6558_v41 = vstv %s5614_s13  ;;  %s6557_s27 = sadd.f32 %s6924_s3, %s6922_s9  ;;  %s8537_s25 = sshll.u32 %s8654_s14, 4  ;;  %s8538_s25 = int_to_ptr.vmem [resolvable:$false] %s8537_s25 }
 0x753   : > { %6559 = vst [vmem:[%s562_s19] sm:$0xff] %v6558_v41  ;;  %s8539_s17 = scalar_lea.vmem %s8538_s25, 256  ;;  %p8540_p3 = scmp.lt.s32.totalorder %s15394_s8, %s8538_s25 }
 0x754   : > { %v6560_v37 = vstv %s6557_s27  ;;  %p8541_p0 = scmp.lt.s32.totalorder %s8539_s17, %s8533_s20 }
 0x756   : > { %p8542_p13 = por %p8541_p0, %p8540_p3 }
 0x758   : > { %p8543_p8 = pnand %p8542_p13, %p8536_p1 }
 0x75a   : > { %8546 = shalt.err (!%p8543_p8)
}
 0x75b   : > { %s8547_s5 = scalar_lea.hbm %s15392_s7, 128  ;;  %s8551_s13 = scalar_lea.hbm %s17330_s28, 512 }
 0x75c   : > { %p8548_p10 = scmp.ne.s32.totalorder %s15392_s7, %s8547_s5  ;;  %p8552_p2 = scmp.lt.s32.totalorder %s15392_s7, %s17330_s28 }
 0x75d   : > { %p8553_p5 = scmp.lt.s32.totalorder %s8551_s13, %s8547_s5 }
 0x75e   : > { %p8549_p11 = pnand %p8548_p10, %p17329_p6 }
 0x75f   : > { %p8554_p4 = por %p8553_p5, %p8552_p2 }
 0x760   : > { %p8550_p7 = pneg %p8549_p11 }
 0x762   : > { %p8555_p9 = pnand %p8554_p4, %p8550_p7 }
 0x764   : > { %8558 = shalt.err (!%p8555_p9)
}
 0x765   : > { %6942 = dma.vmem_to_hbm [thread:$0]  (%p17329_p6), %s15394_s8, 128, %s15392_s7, %s6568_s24   ;;  %6561 = vst [vmem:[%s15386_s11] sm:$0xff] %v6560_v37 }
 0x766   : > { %s8559_s27 = scalar_lea.vmem %s15396_s2, 128  ;;  %s8655_s15 = smov [#allocation17]  }
 0x767   : > { %p8560_p12 = scmp.ne.s32.totalorder %s15396_s2, %s8559_s27  ;;  %s8563_s21 = sshll.u32 %s8655_s15, 4  ;;  %s8564_s21 = int_to_ptr.vmem [resolvable:$false] %s8563_s21 }
 0x768   : > { %s8565_s20 = scalar_lea.vmem %s8564_s21, 256  ;;  %p8566_p0 = scmp.lt.s32.totalorder %s15396_s2, %s8564_s21 }
 0x769   : > { %p8561_p1 = pnand %p8560_p12, %p17329_p6  ;;  %p8567_p13 = scmp.lt.s32.totalorder %s8565_s20, %s8559_s27 }
 0x76b   : > { %p8562_p3 = pneg %p8561_p1  ;;  %p8568_p8 = por %p8567_p13, %p8566_p0 }
 0x76d   : > { %p8569_p10 = pnand %p8568_p8, %p8562_p3 }
 0x76f   : > { %8572 = shalt.err (!%p8569_p10)
}
 0x770   : > { %s8573_s8 = scalar_lea.hbm %s15401_s18, 128  ;;  %s8577_s14 = scalar_lea.hbm %s17331_s1, 512 }
 0x771   : > { %p8574_p11 = scmp.ne.s32.totalorder %s15401_s18, %s8573_s8  ;;  %p8578_p5 = scmp.lt.s32.totalorder %s15401_s18, %s17331_s1 }
 0x772   : > { %p8579_p4 = scmp.lt.s32.totalorder %s8577_s14, %s8573_s8 }
 0x773   : > { %p8575_p7 = pnand %p8574_p11, %p17329_p6 }
 0x774   : > { %p8580_p9 = por %p8579_p4, %p8578_p5 }
 0x775   : > { %p8576_p2 = pneg %p8575_p7 }
 0x777   : > { %p8581_p12 = pnand %p8580_p9, %p8576_p2 }
 0x779   : > { %8584 = shalt.err (!%p8581_p12)
}
 0x77a   : > { %6943 = dma.vmem_to_hbm [thread:$0]  (%p17329_p6), %s15396_s2, 128, %s15401_s18, %s6568_s24  }
 0x77b PF: > { %p6983_p1 = scmp.ge.s32.totalorder %s8639_s12, 2  ;;  %s6625_s5 = sand.u32 1, %s8627_s30  }
 0x77c   : > { %p17332_p3 = scmp.ne.s32.totalorder %s15808_s23, 0  ;;  %s6626_s19 = scalar_lea.sflag [#allocation4], %s6625_s5 }
 0x77e   : > { %p6971_p0 = pnand %p6983_p1, %p17332_p3 }
 0x780   : > { %p6972_p13 = pneg %p6971_p0 }
 0x782   : > { %8618 = dma.done.wait (%p6972_p13), %s6626_s19, 256  }
 0x783   : > { %8620 = vsyncadd (%p6972_p13), %s6626_s19, 4294967040  ;;  %s17333_s26 = sadd.s32 4294967294, %s8639_s12  }
 0x784   : > { %s6634_s16 = sand.u32 1, %s17333_s26  }
 0x785   : > { %s6635_s13 = scalar_lea.sflag [#allocation16], %s6634_s16 }
 0x786   : > { %8622 = dma.done.wait (%p6972_p13), %s6635_s13, 256  }
 0x787   : > { %8624 = vsyncadd (%p6972_p13), %s6635_s13, 4294967040  ;;  %s17334_s12 = sld [smem:[#allocation25_spill]]  ;;  %s17337_s30 = smov %s8631_s10 }
 0x788   : > { %s17335_s29 = sld [smem:[#allocation24_spill]] }
 0x789   : > { %s17336_s11 = sld [smem:[#allocation26_spill]] }
 0x78d   : > { %p33_p6 = scmp.ge.s32.totalorder %s17334_s12, 6  }
 0x78e   : > { %s17338_s10 = smov %s17335_s29 }
 0x78f   :  { %35 = sbr.rel (!%p33_p6) target bundleno = 20 (0x14), region = 189 }
 0x794   :  { %6649 = vsyncpa [#allocation3], 1 }
 0x795   :  { %6651 = vsyncpa [#allocation3 + $0x1], 1 }
 0x796   :  { %6652 = vsyncpa [#allocation6], 1 }
 0x797   :  { %6654 = vsyncpa [#allocation6 + $0x1], 1 }
 0x798   :  { %6655 = vsyncpa [#allocation9], 1 }
 0x799   :  { %6657 = vsyncpa [#allocation9 + $0x1], 1 }
 0x79a   :  { %6658 = vsyncpa [#allocation12], 1 }
 0x79b   :  { %6660 = vsyncpa [#allocation12 + $0x1], 1 }
 0x79c   :  { %6661 = vsyncpa [#allocation4], 1 }
 0x79d   :  { %6663 = vsyncpa [#allocation4 + $0x1], 1 }
 0x79e   :  { %6664 = vsyncpa [#allocation16], 1 }
 0x79f   :  { %6666 = vsyncpa [#allocation16 + $0x1], 1 }

</bundles_post_ra>
